<compile_context>
chip_gen: v7x
topology: tpu7x:2x2x1
jax: 0.10.0
libtpu: 0.0.40
codegen_flags: <defaults>
</compile_context>

<pallas_src>
import math

import jax
import jax.numpy as jnp
import numpy as np
from jax.experimental import pallas as pl
from jax.experimental.pallas import tpu as pltpu

CPAD = 128  # lane width; every feature channel dim is zero-padded to this


def _round_up(x, m):
    return ((x + m - 1) // m) * m


def _compiler_params(dimension_semantics, est_vmem_bytes):
    # Explicit scoped-VMEM limit sized from the actual block shapes (32 MiB floor, 100 MiB cap).
    limit = int(min(max(2 * est_vmem_bytes, 32 * 1024 * 1024), 100 * 1024 * 1024))
    return pltpu.CompilerParams(dimension_semantics=dimension_semantics,
                                vmem_limit_bytes=limit)


def _pad_channels(x, cpad=CPAD):
    """x: (..., C) -> (..., cpad), zero-padded along the channel (lane) axis."""
    c = x.shape[-1]
    assert c <= cpad, "channel padding target must cover the true channel count"
    if c == cpad:
        return x
    pad = [(0, 0)] * (x.ndim - 1) + [(0, cpad - c)]
    return jnp.pad(x, pad)


# ----------------------------------------------------------------------------
# Fused 3x3 conv (pad=1, stride=1) + bias + ReLU Pallas kernel (NHWC, channel-padded, row-strips).
# ----------------------------------------------------------------------------

def _conv3x3_kernel(xs_ref, w_ref, b_ref, o_ref):
    # xs_ref: (1, TH+2, Wp, C) row strip with a 1-row halo; Wp = round_up(W+2, 8), zero padded.
    # w_ref : (9, C, C)        weight slab, tap t = dh*3 + dw
    # b_ref : (1, C)
    # o_ref : (1, TH*W, C)     lane-dense output strip
    thp, wp, cin = xs_ref.shape[1], xs_ref.shape[2], xs_ref.shape[3]
    th = thp - 2
    cout = o_ref.shape[2]
    w_real = o_ref.shape[1] // th
    nflat = th * wp

    acc = jnp.zeros((nflat, cout), jnp.float32)
    for dw in range(3):                       # static unroll; dw groups share one roll
        s = jnp.zeros((nflat, cout), jnp.float32)
        for dh in range(3):
            # Slice only along the untiled H dim (free view); reshape is layout-preserving (Wp%8==0).
            xs = xs_ref[0, dh:dh + th, :, :].reshape(nflat, cin)
            s = s + jnp.dot(xs, w_ref[dh * 3 + dw],
                            preferred_element_type=jnp.float32)
        if dw:
            # z[k] = s[k + dw]: left-rotate by dw along sublanes (XLU; overlaps MXU work).
            s = pltpu.roll(s, shift=nflat - dw, axis=0)
        acc = acc + s

    # Crop the padded width once at the end (single re-tiling, W % 8 == 0).
    out = acc.reshape(th, wp, cout)[:, :w_real, :].reshape(th * w_real, cout)
    o_ref[0] = jnp.maximum(out + b_ref[...], 0.0)


def _pick_strip_height(h, wp, c, max_block_bytes=8 << 20):
    """Largest divisor of h whose (TH+2, Wp, C) f32 strip fits the budget; prefer >= 2 strips."""
    th = h
    for cand in range(h, 0, -1):
        if h % cand == 0 and (cand + 2) * wp * c * 4 <= max_block_bytes:
            th = cand
            break
    if th == h and h >= 16:   # keep at least two strips so the strip axis pipelines / shards
        for cand in range(h // 2, 0, -1):
            if h % cand == 0:
                th = cand
                break
    return th


def conv3x3_relu(x_nhwc, w9, b2):
    """x_nhwc: (N, H, W, CPAD); w9: (9, CPAD, CPAD); b2: (1, CPAD) -> (N, H*W, CPAD)."""
    n, h, w, c = x_nhwc.shape
    assert c == CPAD and w % 8 == 0
    wp = _round_up(w + 2, 8)                         # W halo + align to sublane width
    th = _pick_strip_height(h, wp, c)
    ns = h // th

    # One fused host pass: halo pad + strip-expand (strips carry their own 1-row halo, so the
    # BlockSpec stays non-overlapping and each grid step DMAs exactly one strip).
    xp = jnp.pad(x_nhwc, ((0, 0), (1, 1), (1, wp - w - 1), (0, 0)))   # (n, h+2, wp, c)
    row_idx = jnp.arange(ns)[:, None] * th + jnp.arange(th + 2)[None, :]
    xs = xp[:, row_idx].reshape(n * ns, th + 2, wp, c)

    est = (2 * ((th + 2) * wp * c * 4 + th * w * c * 4)   # in/out blocks, double buffered
           + 2 * 9 * c * c * 4                            # weight slab
           + 4 * th * wp * c * 4)                         # f32 accumulator temps
    return pl.pallas_call(
        _conv3x3_kernel,
        out_shape=jax.ShapeDtypeStruct((n, h * w, CPAD), jnp.float32),
        grid_spec=pltpu.PrefetchScalarGridSpec(
            num_scalar_prefetch=0,
            grid=(n, ns),
            in_specs=[
                pl.BlockSpec((1, th + 2, wp, CPAD), lambda b, i: (b * ns + i, 0, 0, 0)),
                pl.BlockSpec((9, CPAD, CPAD), lambda b, i: (0, 0, 0)),
                pl.BlockSpec((1, CPAD), lambda b, i: (0, 0)),
            ],
            out_specs=pl.BlockSpec((1, th * w, CPAD), lambda b, i: (b, i, 0)),
        ),
        compiler_params=_compiler_params(("parallel", "parallel"), est),
    )(xs, w9, b2)


def _maxpool2x2_nhwc(x):
    # glue: trivial 2x2/stride-2 max pool kept in plain JAX
    n, h, w, c = x.shape
    return x.reshape(n, h // 2, 2, w // 2, 2, c).max(axis=(2, 4))


# ----------------------------------------------------------------------------
# Mini VGG feature extractor (VGG19 structure up to relu2_1, reduced channels).
# ----------------------------------------------------------------------------

_IMAGENET_MEAN = jnp.array([0.485, 0.456, 0.406], jnp.float32).reshape(1, 3, 1, 1)
_IMAGENET_STD = jnp.array([0.229, 0.224, 0.225], jnp.float32).reshape(1, 3, 1, 1)

# layer_weights: only the *keys* are used by the original forward (values are ignored).
LAYER_WEIGHTS = {"relu1_1": 1.0, "relu2_1": 1.0}


def _to_kernel_layout(w_oihw, b):
    """torch-layout (Cout, Cin, 3, 3) conv weight -> padded (9, CPAD, CPAD) tap slab + (1, CPAD) bias."""
    cout, cin = w_oihw.shape[0], w_oihw.shape[1]
    w9 = jnp.transpose(w_oihw, (2, 3, 1, 0)).reshape(9, cin, cout)   # tap t = kh*3 + kw
    w9 = jnp.pad(w9, ((0, 0), (0, CPAD - cin), (0, CPAD - cout)))
    b2 = jnp.pad(b, (0, CPAD - cout)).reshape(1, CPAD)
    return w9, b2


def init_vgg_params(key, c1=8, c2=16):
    def conv_init(k, cin, cout):
        w = jax.random.normal(k, (cout, cin, 3, 3), jnp.float32) * (0.5 / math.sqrt(cin * 9))
        b = jnp.full((cout,), 0.5, jnp.float32)
        return w, b

    k1, k2, k3 = jax.random.split(key, 3)
    raw = {
        "conv1_1": conv_init(k1, 3, c1),
        "conv1_2": conv_init(k2, c1, c1),
        "conv2_1": conv_init(k3, c1, c2),
    }
    params = {}
    for name, (w, b) in raw.items():
        w9, b2 = _to_kernel_layout(w, b)
        params[name] = {"w_raw": w, "b_raw": b, "w": w9, "b": b2}
    return params


def vgg_features(x_nchw, params):
    """x: (N, 3, H, W) in [0, 1]. Returns {name: ((N, H*W, CPAD) features, (H, W))}."""
    n, _, h0, w0 = x_nchw.shape
    h = (x_nchw - _IMAGENET_MEAN) / _IMAGENET_STD
    h = jnp.transpose(h, (0, 2, 3, 1))            # one-time NCHW -> NHWC
    h = _pad_channels(h)                          # (N, H, W, CPAD)

    f11 = conv3x3_relu(h, params["conv1_1"]["w"], params["conv1_1"]["b"])
    feats = {"relu1_1": (f11, (h0, w0))}
    f12 = conv3x3_relu(f11.reshape(n, h0, w0, CPAD),
                       params["conv1_2"]["w"], params["conv1_2"]["b"])
    p1 = _maxpool2x2_nhwc(f12.reshape(n, h0, w0, CPAD))
    f21 = conv3x3_relu(p1, params["conv2_1"]["w"], params["conv2_1"]["b"])
    feats["relu2_1"] = (f21, (h0 // 2, w0 // 2))
    return feats


# ----------------------------------------------------------------------------
# Relt-loss kernel: column-tiled EMD-style distance slabs reduced to per-batch scalars in-kernel.
# ----------------------------------------------------------------------------

def _relt_kernel(fx_ref, fc_ref, fsj_ref, out_ref, rowmin_ref, cacc_ref, macc_ref):
    # fx_ref/fc_ref: (1, HW, C) full row features (x / content); fsj_ref: (1, TJ, C) style columns.
    # out_ref: (1, 1, 128) per-batch result vector: lane 0 = sum|Mx-My|, lane 1 = sum row-min(CX),
    # lane 2 = sum col-min(CX).
    j = pl.program_id(1)
    nj = pl.num_programs(1)
    tj = fsj_ref.shape[1]

    @pl.when(j == 0)
    def _():
        rowmin_ref[...] = jnp.full_like(rowmin_ref, jnp.inf)
        cacc_ref[...] = jnp.zeros_like(cacc_ref)
        macc_ref[...] = jnp.zeros_like(macc_ref)

    def l2n(f):
        rn = jax.lax.rsqrt(jnp.sum(f * f, axis=1, keepdims=True) + 1e-12)   # EUP rsqrt
        return f * rn

    col0 = pl.multiple_of(j * tj, 8)
    fx_rows = l2n(fx_ref[0])                          # (HW, C)
    fc_rows = l2n(fc_ref[0])
    fx_cols = l2n(fx_ref[0, pl.ds(col0, tj), :])      # (TJ, C) sliced in VMEM (aligned, no extra DMA)
    fc_cols = l2n(fc_ref[0, pl.ds(col0, tj), :])
    fs_cols = l2n(fsj_ref[0])

    def cos_dist(rows, cols):
        # 1 - cosine similarity: (HW, TJ); contract C directly (flash-attn style A @ B^T).
        g = jax.lax.dot_general(rows, cols, (((1,), (1,)), ((), ())),
                                preferred_element_type=jnp.float32)
        return 1.0 - g

    def col_normalize(m):
        # torch: M / M.sum(1, keepdim=True); column sums are local to this column slab.
        s = jnp.maximum(jnp.sum(m, axis=0, keepdims=True), 1e-12)            # (1, TJ)
        inv = pl.reciprocal(s, approx=True)
        inv = inv * (2.0 - s * inv)          # one Newton step -> near-exact reciprocal
        return m * inv

    mx = col_normalize(cos_dist(fx_rows, fx_cols))
    my = col_normalize(cos_dist(fc_rows, fc_cols))
    cacc_ref[...] += jnp.sum(jnp.abs(mx - my)).reshape(1, 1)

    cx = cos_dist(fx_rows, fs_cols)
    macc_ref[...] += jnp.sum(jnp.min(cx, axis=0, keepdims=True)).reshape(1, 1)  # torch CX_M.min(1)
    rowmin_ref[...] = jnp.minimum(rowmin_ref[...],
                                  jnp.min(cx, axis=1, keepdims=True))           # torch CX_M.min(2)

    @pl.when(j == nj - 1)
    def _():
        m1 = jnp.sum(rowmin_ref[...]).reshape(1, 1)
        cd = cacc_ref[...]
        m2 = macc_ref[...]
        lane = jax.lax.broadcasted_iota(jnp.int32, (1, CPAD), 1)
        out_ref[0] = (jnp.where(lane == 0, cd, 0.0)
                      + jnp.where(lane == 1, m1, 0.0)
                      + jnp.where(lane == 2, m2, 0.0))


def _pick_col_tile(hw, max_tj=512):
    """Largest multiple-of-128 divisor of hw (<= max_tj) keeping >= 2 column tiles; else full width."""
    if hw % 128 == 0 and hw // 2 >= 128:
        top = min(max_tj, hw // 2) // 128
        for k in range(top, 0, -1):
            cand = k * 128
            if hw % cand == 0:
                return cand
    return hw


def relt_layer_stats(fx, fc, fs, tj=None):
    """fx, fc, fs: (N, HW, CPAD) float32.

    Returns per-batch scalars (each shape (N,)):
      sum|Mx - My|, sum of row-mins of CX_M, sum of col-mins of CX_M.
    """
    n, hw, c = fx.shape
    assert c == CPAD and hw % 8 == 0
    if tj is None:
        tj = _pick_col_tile(hw)
    assert hw % tj == 0 and tj % 8 == 0
    nj = hw // tj

    est = (2 * 2 * hw * c * 4        # fx, fc full blocks (double buffered)
           + 2 * tj * c * 4          # fs column block
           + 3 * hw * tj * 4         # distance slabs (compiler temporaries)
           + hw * 4 + 4 * CPAD * 4)  # row-min scratch + accumulators + output
    out = pl.pallas_call(
        _relt_kernel,
        out_shape=jax.ShapeDtypeStruct((n, 1, CPAD), jnp.float32),
        grid_spec=pltpu.PrefetchScalarGridSpec(
            num_scalar_prefetch=0,
            grid=(n, nj),
            in_specs=[
                pl.BlockSpec((1, hw, CPAD), lambda b, j: (b, 0, 0)),   # x rows (resident per batch)
                pl.BlockSpec((1, hw, CPAD), lambda b, j: (b, 0, 0)),   # content rows
                pl.BlockSpec((1, tj, CPAD), lambda b, j: (b, j, 0)),   # style column tile
            ],
            out_specs=pl.BlockSpec((1, 1, CPAD), lambda b, j: (b, 0, 0)),
            scratch_shapes=[
                pltpu.VMEM((hw, 1), jnp.float32),   # running row-min of CX
                pltpu.VMEM((1, 1), jnp.float32),    # sum|Mx-My| accumulator
                pltpu.VMEM((1, 1), jnp.float32),    # sum col-min(CX) accumulator
            ],
        ),
        compiler_params=_compiler_params(("parallel", "arbitrary"), est),
    )(fx, fc, fs)
    return out[:, 0, 0], out[:, 0, 1], out[:, 0, 2]


def content_style_relt_loss(x, content, style, params, content_weight=1.0, style_weight=1.0):
    """Mirror of ContentStyleReltLoss.forward. Returns (content_loss, style_loss)."""
    n = x.shape[0]
    stacked = jnp.concatenate([x, content, style], axis=0)   # one VGG pass over 3N images
    feats = vgg_features(stacked, params)                    # .detach() is a no-op for forward semantics

    content_loss = jnp.float32(0.0)
    style_loss = jnp.float32(0.0)
    for k in LAYER_WEIGHTS.keys():
        f, (h, w) = feats[k]
        hw = h * w
        fx, fc, fs = f[:n], f[n:2 * n], f[2 * n:]
        cdiff, m1s, m2s = relt_layer_stats(fx, fc, fs)
        # torch: abs(Mx - My).mean() * H * W
        content_loss = content_loss + (jnp.sum(cdiff) / (n * hw * hw)) * h * w
        # torch: max(CX_M.min(2)[0].mean(), CX_M.min(1)[0].mean())
        style_loss = style_loss + jnp.maximum(jnp.sum(m1s) / (n * hw), jnp.sum(m2s) / (n * hw))
    return content_weight * content_loss, style_weight * style_loss


# ----------------------------------------------------------------------------
# Pure-JAX end-to-end reference (XLA conv stack + torch-style loss math), no Pallas.
# ----------------------------------------------------------------------------

def _conv3x3_relu_ref(x, w, b):
    y = jax.lax.conv_general_dilated(x, w, window_strides=(1, 1), padding=((1, 1), (1, 1)),
                                     dimension_numbers=("NCHW", "OIHW", "NCHW"))
    return jnp.maximum(y + b.reshape(1, -1, 1, 1), 0.0)


def vgg_features_ref(x, params):
    h = (x - _IMAGENET_MEAN) / _IMAGENET_STD
    h = _conv3x3_relu_ref(h, params["conv1_1"]["w_raw"], params["conv1_1"]["b_raw"])
    feats = {"relu1_1": h}
    h = _conv3x3_relu_ref(h, params["conv1_2"]["w_raw"], params["conv1_2"]["b_raw"])
    n, c, hh, ww = h.shape
    h = h.reshape(n, c, hh // 2, 2, ww // 2, 2).max(axis=(3, 5))
    h = _conv3x3_relu_ref(h, params["conv2_1"]["w_raw"], params["conv2_1"]["b_raw"])
    feats["relu2_1"] = h
    return feats


def _calc_emd_loss_ref(pred, target):
    b, c, h, w = pred.shape
    pred_r = pred.reshape(b, c, h * w)
    pred_norm = jnp.sqrt((pred_r ** 2).sum(1)).reshape(b, -1, 1)
    pred_t = pred_r.transpose(0, 2, 1)
    target_t = target.reshape(b, c, h * w)
    target_norm = jnp.sqrt((target ** 2).sum(1).reshape(b, 1, -1))
    sim = jnp.einsum("bik,bkj->bij", pred_t, target_t) / pred_norm / target_norm
    return 1.0 - sim


def reference_loss(xf, cf, sf, content_weight=1.0, style_weight=1.0):
    content_loss = jnp.float32(0.0)
    style_loss = jnp.float32(0.0)
    for k in xf.keys():
        mx = _calc_emd_loss_ref(xf[k], xf[k])
        mx = mx / mx.sum(1, keepdims=True)
        my = _calc_emd_loss_ref(cf[k], cf[k])
        my = my / my.sum(1, keepdims=True)
        content_loss = content_loss + jnp.abs(mx - my).mean() * xf[k].shape[2] * xf[k].shape[3]
        cx = _calc_emd_loss_ref(xf[k], sf[k])
        style_loss = style_loss + jnp.maximum(cx.min(2).mean(), cx.min(1).mean())
    return content_weight * content_loss, style_weight * style_loss


# ----------------------------------------------------------------------------

if __name__ == "__main__":
    key = jax.random.PRNGKey(0)
    k_par, kx, kc, ks = jax.random.split(key, 4)

    params = init_vgg_params(k_par)

    N, H, W = 2, 16, 16
    x = jax.random.uniform(kx, (N, 3, H, W), jnp.float32)
    content = jax.random.uniform(kc, (N, 3, H, W), jnp.float32)
    style = jax.random.uniform(ks, (N, 3, H, W), jnp.float32)

    loss_fn = jax.jit(lambda a, b, c: content_style_relt_loss(a, b, c, params))
    c_loss, s_loss = loss_fn(x, content, style)
    jax.block_until_ready((c_loss, s_loss))

    # End-to-end check against the pure-JAX reference (XLA conv + torch-style loss math).
    xf = vgg_features_ref(x, params)
    cf = vgg_features_ref(content, params)
    sf = vgg_features_ref(style, params)
    rc, rs = reference_loss(xf, cf, sf)
    np.testing.assert_allclose(np.asarray(c_loss), np.asarray(rc), rtol=5e-3, atol=1e-4)
    np.testing.assert_allclose(np.asarray(s_loss), np.asarray(rs), rtol=5e-3, atol=1e-4)

    print("KERNEL_OK")
</pallas_src>

<mosaic_0001>
module attributes {stable_mosaic.version = 11 : i64} {
  func.func @_conv3x3_kernel(%arg0: i32, %arg1: i32, %arg2: memref<1x10x24x128xf32, #tpu.memory_space<vmem>>, %arg3: memref<9x128x128xf32, #tpu.memory_space<vmem>>, %arg4: memref<1x128xf32, #tpu.memory_space<vmem>>, %arg5: memref<1x128x128xf32, #tpu.memory_space<vmem>>) attributes {dimension_semantics = [#tpu.dimension_semantics<parallel>, #tpu.dimension_semantics<parallel>], iteration_bounds = array<i64: 6, 2>, scalar_prefetch = 0 : i64, scratch_operands = 0 : i64, tpu.core_type = #tpu.core_type<tc>, window_params = [{transform_indices = @transform_0, window_bounds = array<i64: 1, 10, 24, 128>}, {pipeline_mode = #tpu.pipeline_mode<synchronous>, transform_indices = @transform_1, window_bounds = array<i64: 9, 128, 128>}, {pipeline_mode = #tpu.pipeline_mode<synchronous>, transform_indices = @transform_2, window_bounds = array<i64: 1, 128>}, {transform_indices = @transform_3, window_bounds = array<i64: 1, 128, 128>}]} {
    %cst = arith.constant 0.000000e+00 : f32
    %0 = vector.broadcast %cst : f32 to vector<192x128xf32>
    %cst_0 = arith.constant 0.000000e+00 : f32
    %1 = vector.broadcast %cst_0 : f32 to vector<192x128xf32>
    %c0 = arith.constant 0 : index
    %c0_1 = arith.constant 0 : index
    %c0_2 = arith.constant 0 : index
    %c0_3 = arith.constant 0 : index
    %2 = vector.load %arg2[%c0, %c0_1, %c0_2, %c0_3] : memref<1x10x24x128xf32, #tpu.memory_space<vmem>>, vector<1x8x24x128xf32>
    %3 = vector.shape_cast %2 : vector<1x8x24x128xf32> to vector<8x24x128xf32>
    %4 = vector.shape_cast %3 : vector<8x24x128xf32> to vector<192x128xf32>
    %c0_4 = arith.constant 0 : index
    %c0_5 = arith.constant 0 : index
    %c0_6 = arith.constant 0 : index
    %5 = vector.load %arg3[%c0_4, %c0_5, %c0_6] : memref<9x128x128xf32, #tpu.memory_space<vmem>>, vector<1x128x128xf32>
    %6 = vector.shape_cast %5 : vector<1x128x128xf32> to vector<128x128xf32>
    %cst_7 = arith.constant dense<0.000000e+00> : vector<192x128xf32>
    %7 = tpu.matmul %4, %6, %cst_7 {dimension_numbers = #tpu.dot_dimension_numbers<[1], [0], [0], [1], [0, 0, 1, 1], [], []>} : vector<192x128xf32>, vector<128x128xf32>, vector<192x128xf32> -> vector<192x128xf32>
    %8 = arith.addf %1, %7 : vector<192x128xf32>
    %c0_8 = arith.constant 0 : index
    %c1 = arith.constant 1 : index
    %c0_9 = arith.constant 0 : index
    %c0_10 = arith.constant 0 : index
    %9 = vector.load %arg2[%c0_8, %c1, %c0_9, %c0_10] : memref<1x10x24x128xf32, #tpu.memory_space<vmem>>, vector<1x8x24x128xf32>
    %10 = vector.shape_cast %9 : vector<1x8x24x128xf32> to vector<8x24x128xf32>
    %11 = vector.shape_cast %10 : vector<8x24x128xf32> to vector<192x128xf32>
    %c3 = arith.constant 3 : index
    %c0_11 = arith.constant 0 : index
    %c0_12 = arith.constant 0 : index
    %12 = vector.load %arg3[%c3, %c0_11, %c0_12] : memref<9x128x128xf32, #tpu.memory_space<vmem>>, vector<1x128x128xf32>
    %13 = vector.shape_cast %12 : vector<1x128x128xf32> to vector<128x128xf32>
    %cst_13 = arith.constant dense<0.000000e+00> : vector<192x128xf32>
    %14 = tpu.matmul %11, %13, %cst_13 {dimension_numbers = #tpu.dot_dimension_numbers<[1], [0], [0], [1], [0, 0, 1, 1], [], []>} : vector<192x128xf32>, vector<128x128xf32>, vector<192x128xf32> -> vector<192x128xf32>
    %15 = arith.addf %8, %14 : vector<192x128xf32>
    %c0_14 = arith.constant 0 : index
    %c2 = arith.constant 2 : index
    %c0_15 = arith.constant 0 : index
    %c0_16 = arith.constant 0 : index
    %16 = vector.load %arg2[%c0_14, %c2, %c0_15, %c0_16] : memref<1x10x24x128xf32, #tpu.memory_space<vmem>>, vector<1x8x24x128xf32>
    %17 = vector.shape_cast %16 : vector<1x8x24x128xf32> to vector<8x24x128xf32>
    %18 = vector.shape_cast %17 : vector<8x24x128xf32> to vector<192x128xf32>
    %c6 = arith.constant 6 : index
    %c0_17 = arith.constant 0 : index
    %c0_18 = arith.constant 0 : index
    %19 = vector.load %arg3[%c6, %c0_17, %c0_18] : memref<9x128x128xf32, #tpu.memory_space<vmem>>, vector<1x128x128xf32>
    %20 = vector.shape_cast %19 : vector<1x128x128xf32> to vector<128x128xf32>
    %cst_19 = arith.constant dense<0.000000e+00> : vector<192x128xf32>
    %21 = tpu.matmul %18, %20, %cst_19 {dimension_numbers = #tpu.dot_dimension_numbers<[1], [0], [0], [1], [0, 0, 1, 1], [], []>} : vector<192x128xf32>, vector<128x128xf32>, vector<192x128xf32> -> vector<192x128xf32>
    %22 = arith.addf %15, %21 : vector<192x128xf32>
    %23 = arith.addf %0, %22 : vector<192x128xf32>
    %cst_20 = arith.constant 0.000000e+00 : f32
    %24 = vector.broadcast %cst_20 : f32 to vector<192x128xf32>
    %c0_21 = arith.constant 0 : index
    %c0_22 = arith.constant 0 : index
    %c0_23 = arith.constant 0 : index
    %c0_24 = arith.constant 0 : index
    %25 = vector.load %arg2[%c0_21, %c0_22, %c0_23, %c0_24] : memref<1x10x24x128xf32, #tpu.memory_space<vmem>>, vector<1x8x24x128xf32>
    %26 = vector.shape_cast %25 : vector<1x8x24x128xf32> to vector<8x24x128xf32>
    %27 = vector.shape_cast %26 : vector<8x24x128xf32> to vector<192x128xf32>
    %c1_25 = arith.constant 1 : index
    %c0_26 = arith.constant 0 : index
    %c0_27 = arith.constant 0 : index
    %28 = vector.load %arg3[%c1_25, %c0_26, %c0_27] : memref<9x128x128xf32, #tpu.memory_space<vmem>>, vector<1x128x128xf32>
    %29 = vector.shape_cast %28 : vector<1x128x128xf32> to vector<128x128xf32>
    %cst_28 = arith.constant dense<0.000000e+00> : vector<192x128xf32>
    %30 = tpu.matmul %27, %29, %cst_28 {dimension_numbers = #tpu.dot_dimension_numbers<[1], [0], [0], [1], [0, 0, 1, 1], [], []>} : vector<192x128xf32>, vector<128x128xf32>, vector<192x128xf32> -> vector<192x128xf32>
    %31 = arith.addf %24, %30 : vector<192x128xf32>
    %c0_29 = arith.constant 0 : index
    %c1_30 = arith.constant 1 : index
    %c0_31 = arith.constant 0 : index
    %c0_32 = arith.constant 0 : index
    %32 = vector.load %arg2[%c0_29, %c1_30, %c0_31, %c0_32] : memref<1x10x24x128xf32, #tpu.memory_space<vmem>>, vector<1x8x24x128xf32>
    %33 = vector.shape_cast %32 : vector<1x8x24x128xf32> to vector<8x24x128xf32>
    %34 = vector.shape_cast %33 : vector<8x24x128xf32> to vector<192x128xf32>
    %c4 = arith.constant 4 : index
    %c0_33 = arith.constant 0 : index
    %c0_34 = arith.constant 0 : index
    %35 = vector.load %arg3[%c4, %c0_33, %c0_34] : memref<9x128x128xf32, #tpu.memory_space<vmem>>, vector<1x128x128xf32>
    %36 = vector.shape_cast %35 : vector<1x128x128xf32> to vector<128x128xf32>
    %cst_35 = arith.constant dense<0.000000e+00> : vector<192x128xf32>
    %37 = tpu.matmul %34, %36, %cst_35 {dimension_numbers = #tpu.dot_dimension_numbers<[1], [0], [0], [1], [0, 0, 1, 1], [], []>} : vector<192x128xf32>, vector<128x128xf32>, vector<192x128xf32> -> vector<192x128xf32>
    %38 = arith.addf %31, %37 : vector<192x128xf32>
    %c0_36 = arith.constant 0 : index
    %c2_37 = arith.constant 2 : index
    %c0_38 = arith.constant 0 : index
    %c0_39 = arith.constant 0 : index
    %39 = vector.load %arg2[%c0_36, %c2_37, %c0_38, %c0_39] : memref<1x10x24x128xf32, #tpu.memory_space<vmem>>, vector<1x8x24x128xf32>
    %40 = vector.shape_cast %39 : vector<1x8x24x128xf32> to vector<8x24x128xf32>
    %41 = vector.shape_cast %40 : vector<8x24x128xf32> to vector<192x128xf32>
    %c7 = arith.constant 7 : index
    %c0_40 = arith.constant 0 : index
    %c0_41 = arith.constant 0 : index
    %42 = vector.load %arg3[%c7, %c0_40, %c0_41] : memref<9x128x128xf32, #tpu.memory_space<vmem>>, vector<1x128x128xf32>
    %43 = vector.shape_cast %42 : vector<1x128x128xf32> to vector<128x128xf32>
    %cst_42 = arith.constant dense<0.000000e+00> : vector<192x128xf32>
    %44 = tpu.matmul %41, %43, %cst_42 {dimension_numbers = #tpu.dot_dimension_numbers<[1], [0], [0], [1], [0, 0, 1, 1], [], []>} : vector<192x128xf32>, vector<128x128xf32>, vector<192x128xf32> -> vector<192x128xf32>
    %45 = arith.addf %38, %44 : vector<192x128xf32>
    %c191_i32 = arith.constant 191 : i32
    %46 = tpu.dynamic_rotate %45 by %c191_i32 dim 0 : vector<192x128xf32>, i32 -> vector<192x128xf32>
    %47 = arith.addf %23, %46 : vector<192x128xf32>
    %cst_43 = arith.constant 0.000000e+00 : f32
    %48 = vector.broadcast %cst_43 : f32 to vector<192x128xf32>
    %c0_44 = arith.constant 0 : index
    %c0_45 = arith.constant 0 : index
    %c0_46 = arith.constant 0 : index
    %c0_47 = arith.constant 0 : index
    %49 = vector.load %arg2[%c0_44, %c0_45, %c0_46, %c0_47] : memref<1x10x24x128xf32, #tpu.memory_space<vmem>>, vector<1x8x24x128xf32>
    %50 = vector.shape_cast %49 : vector<1x8x24x128xf32> to vector<8x24x128xf32>
    %51 = vector.shape_cast %50 : vector<8x24x128xf32> to vector<192x128xf32>
    %c2_48 = arith.constant 2 : index
    %c0_49 = arith.constant 0 : index
    %c0_50 = arith.constant 0 : index
    %52 = vector.load %arg3[%c2_48, %c0_49, %c0_50] : memref<9x128x128xf32, #tpu.memory_space<vmem>>, vector<1x128x128xf32>
    %53 = vector.shape_cast %52 : vector<1x128x128xf32> to vector<128x128xf32>
    %cst_51 = arith.constant dense<0.000000e+00> : vector<192x128xf32>
    %54 = tpu.matmul %51, %53, %cst_51 {dimension_numbers = #tpu.dot_dimension_numbers<[1], [0], [0], [1], [0, 0, 1, 1], [], []>} : vector<192x128xf32>, vector<128x128xf32>, vector<192x128xf32> -> vector<192x128xf32>
    %55 = arith.addf %48, %54 : vector<192x128xf32>
    %c0_52 = arith.constant 0 : index
    %c1_53 = arith.constant 1 : index
    %c0_54 = arith.constant 0 : index
    %c0_55 = arith.constant 0 : index
    %56 = vector.load %arg2[%c0_52, %c1_53, %c0_54, %c0_55] : memref<1x10x24x128xf32, #tpu.memory_space<vmem>>, vector<1x8x24x128xf32>
    %57 = vector.shape_cast %56 : vector<1x8x24x128xf32> to vector<8x24x128xf32>
    %58 = vector.shape_cast %57 : vector<8x24x128xf32> to vector<192x128xf32>
    %c5 = arith.constant 5 : index
    %c0_56 = arith.constant 0 : index
    %c0_57 = arith.constant 0 : index
    %59 = vector.load %arg3[%c5, %c0_56, %c0_57] : memref<9x128x128xf32, #tpu.memory_space<vmem>>, vector<1x128x128xf32>
    %60 = vector.shape_cast %59 : vector<1x128x128xf32> to vector<128x128xf32>
    %cst_58 = arith.constant dense<0.000000e+00> : vector<192x128xf32>
    %61 = tpu.matmul %58, %60, %cst_58 {dimension_numbers = #tpu.dot_dimension_numbers<[1], [0], [0], [1], [0, 0, 1, 1], [], []>} : vector<192x128xf32>, vector<128x128xf32>, vector<192x128xf32> -> vector<192x128xf32>
    %62 = arith.addf %55, %61 : vector<192x128xf32>
    %c0_59 = arith.constant 0 : index
    %c2_60 = arith.constant 2 : index
    %c0_61 = arith.constant 0 : index
    %c0_62 = arith.constant 0 : index
    %63 = vector.load %arg2[%c0_59, %c2_60, %c0_61, %c0_62] : memref<1x10x24x128xf32, #tpu.memory_space<vmem>>, vector<1x8x24x128xf32>
    %64 = vector.shape_cast %63 : vector<1x8x24x128xf32> to vector<8x24x128xf32>
    %65 = vector.shape_cast %64 : vector<8x24x128xf32> to vector<192x128xf32>
    %c8 = arith.constant 8 : index
    %c0_63 = arith.constant 0 : index
    %c0_64 = arith.constant 0 : index
    %66 = vector.load %arg3[%c8, %c0_63, %c0_64] : memref<9x128x128xf32, #tpu.memory_space<vmem>>, vector<1x128x128xf32>
    %67 = vector.shape_cast %66 : vector<1x128x128xf32> to vector<128x128xf32>
    %cst_65 = arith.constant dense<0.000000e+00> : vector<192x128xf32>
    %68 = tpu.matmul %65, %67, %cst_65 {dimension_numbers = #tpu.dot_dimension_numbers<[1], [0], [0], [1], [0, 0, 1, 1], [], []>} : vector<192x128xf32>, vector<128x128xf32>, vector<192x128xf32> -> vector<192x128xf32>
    %69 = arith.addf %62, %68 : vector<192x128xf32>
    %c190_i32 = arith.constant 190 : i32
    %70 = tpu.dynamic_rotate %69 by %c190_i32 dim 0 : vector<192x128xf32>, i32 -> vector<192x128xf32>
    %71 = arith.addf %47, %70 : vector<192x128xf32>
    %72 = vector.shape_cast %71 : vector<192x128xf32> to vector<8x24x128xf32>
    %73 = vector.extract_strided_slice %72 {offsets = [0, 0, 0], sizes = [8, 16, 128], strides = [1, 1, 1]} : vector<8x24x128xf32> to vector<8x16x128xf32>
    %74 = vector.shape_cast %73 : vector<8x16x128xf32> to vector<128x128xf32>
    %c0_66 = arith.constant 0 : index
    %c0_67 = arith.constant 0 : index
    %75 = vector.load %arg4[%c0_66, %c0_67] : memref<1x128xf32, #tpu.memory_space<vmem>>, vector<1x128xf32>
    %76 = vector.broadcast %75 : vector<1x128xf32> to vector<128x128xf32>
    %77 = arith.addf %74, %76 : vector<128x128xf32>
    %cst_68 = arith.constant 0.000000e+00 : f32
    %78 = vector.broadcast %cst_68 : f32 to vector<128x128xf32>
    %79 = arith.maximumf %77, %78 : vector<128x128xf32>
    %c0_69 = arith.constant 0 : index
    %c0_70 = arith.constant 0 : index
    %c0_71 = arith.constant 0 : index
    %80 = vector.load %arg5[%c0_69, %c0_70, %c0_71] : memref<1x128x128xf32, #tpu.memory_space<vmem>>, vector<1x128x128xf32>
    %81 = vector.shape_cast %80 : vector<1x128x128xf32> to vector<128x128xf32>
    %82 = vector.shape_cast %79 : vector<128x128xf32> to vector<1x128x128xf32>
    tpu.vector_store %arg5[%c0_69, %c0_70, %c0_71], %82 {strides = array<i32>} : memref<1x128x128xf32, #tpu.memory_space<vmem>>, vector<1x128x128xf32>,
    return
  }
  func.func @transform_0(%arg0: i32, %arg1: i32) -> (i32, i32, i32, i32) {
    %c2_i32 = arith.constant 2 : i32
    %0 = arith.muli %arg0, %c2_i32 : i32
    %1 = arith.addi %0, %arg1 : i32
    %c0_i32 = arith.constant 0 : i32
    %c0_i32_0 = arith.constant 0 : i32
    %c0_i32_1 = arith.constant 0 : i32
    %c0_i32_2 = arith.constant 0 : i32
    return %1, %c0_i32, %c0_i32_0, %c0_i32_1 : i32, i32, i32, i32
  }
  func.func @transform_1(%arg0: i32, %arg1: i32) -> (i32, i32, i32) {
    %c0_i32 = arith.constant 0 : i32
    %c0_i32_0 = arith.constant 0 : i32
    %c0_i32_1 = arith.constant 0 : i32
    %c0_i32_2 = arith.constant 0 : i32
    return %c0_i32, %c0_i32_0, %c0_i32_1 : i32, i32, i32
  }
  func.func @transform_2(%arg0: i32, %arg1: i32) -> (i32, i32) {
    %c0_i32 = arith.constant 0 : i32
    %c0_i32_0 = arith.constant 0 : i32
    %c0_i32_1 = arith.constant 0 : i32
    return %c0_i32, %c0_i32_0 : i32, i32
  }
  func.func @transform_3(%arg0: i32, %arg1: i32) -> (i32, i32, i32) {
    %c0_i32 = arith.constant 0 : i32
    %c0_i32_0 = arith.constant 0 : i32
    return %arg0, %arg1, %c0_i32 : i32, i32, i32
  }
}

module attributes {stable_mosaic.version = 11 : i64} {
  func.func @_relt_kernel(%arg0: i32, %arg1: i32, %arg2: memref<1x256x128xf32, #tpu.memory_space<vmem>>, %arg3: memref<1x256x128xf32, #tpu.memory_space<vmem>>, %arg4: memref<1x128x128xf32, #tpu.memory_space<vmem>>, %arg5: memref<1x1x128xf32, #tpu.memory_space<vmem>>, %arg6: memref<256x1xf32, #tpu.memory_space<vmem>>, %arg7: memref<1x1xf32, #tpu.memory_space<vmem>>, %arg8: memref<1x1xf32, #tpu.memory_space<vmem>>) attributes {dimension_semantics = [#tpu.dimension_semantics<parallel>, #tpu.dimension_semantics<arbitrary>], iteration_bounds = array<i64: 2, 2>, scalar_prefetch = 0 : i64, scratch_operands = 3 : i64, tpu.core_type = #tpu.core_type<tc>, window_params = [{transform_indices = @transform_0, window_bounds = array<i64: 1, 256, 128>}, {transform_indices = @transform_1, window_bounds = array<i64: 1, 256, 128>}, {transform_indices = @transform_2, window_bounds = array<i64: 1, 128, 128>}, {transform_indices = @transform_3, window_bounds = array<i64: 1, 1, 128>}]} {
    %c0_i32 = arith.constant 0 : i32
    %0 = arith.cmpi eq, %arg1, %c0_i32 : i32
    %1 = arith.extui %0 : i1 to i32
    %c0_i32_0 = arith.constant 0 : i32
    %2 = arith.cmpi ne, %1, %c0_i32_0 : i32
    scf.if %2 {
      %cst_51 = arith.constant 0x7F800000 : f32
      %116 = vector.broadcast %cst_51 : f32 to vector<256x1xf32>
      %c0_52 = arith.constant 0 : index
      %c0_53 = arith.constant 0 : index
      %117 = vector.load %arg6[%c0_52, %c0_53] : memref<256x1xf32, #tpu.memory_space<vmem>>, vector<256x1xf32>
      tpu.vector_store %arg6[%c0_52, %c0_53], %116 {strides = array<i32>} : memref<256x1xf32, #tpu.memory_space<vmem>>, vector<256x1xf32>,
      %cst_54 = arith.constant 0.000000e+00 : f32
      %118 = vector.broadcast %cst_54 : f32 to vector<1x1xf32>
      %c0_55 = arith.constant 0 : index
      %c0_56 = arith.constant 0 : index
      %119 = vector.load %arg7[%c0_55, %c0_56] : memref<1x1xf32, #tpu.memory_space<vmem>>, vector<1x1xf32>
      tpu.vector_store %arg7[%c0_55, %c0_56], %118 {strides = array<i32>} : memref<1x1xf32, #tpu.memory_space<vmem>>, vector<1x1xf32>,
      %cst_57 = arith.constant 0.000000e+00 : f32
      %120 = vector.broadcast %cst_57 : f32 to vector<1x1xf32>
      %c0_58 = arith.constant 0 : index
      %c0_59 = arith.constant 0 : index
      %121 = vector.load %arg8[%c0_58, %c0_59] : memref<1x1xf32, #tpu.memory_space<vmem>>, vector<1x1xf32>
      tpu.vector_store %arg8[%c0_58, %c0_59], %120 {strides = array<i32>} : memref<1x1xf32, #tpu.memory_space<vmem>>, vector<1x1xf32>,
    } else {
    }
    %c128_i32 = arith.constant 128 : i32
    %3 = arith.muli %arg1, %c128_i32 : i32
    %4 = tpu.assume_multiple %3, 8 : i32
    %c0 = arith.constant 0 : index
    %c0_1 = arith.constant 0 : index
    %c0_2 = arith.constant 0 : index
    %5 = vector.load %arg2[%c0, %c0_1, %c0_2] : memref<1x256x128xf32, #tpu.memory_space<vmem>>, vector<1x256x128xf32>
    %6 = vector.shape_cast %5 : vector<1x256x128xf32> to vector<256x128xf32>
    %7 = arith.mulf %6, %6 : vector<256x128xf32>
    %cst = arith.constant dense<0.000000e+00> : vector<256xf32>
    %8 = vector.multi_reduction <add>, %7, %cst [1] : vector<256x128xf32> to vector<256xf32>
    %9 = vector.shape_cast %8 : vector<256xf32> to vector<256x1xf32>
    %cst_3 = arith.constant 9.99999996E-13 : f32
    %10 = vector.broadcast %cst_3 : f32 to vector<256x1xf32>
    %11 = arith.addf %9, %10 : vector<256x1xf32>
    %12 = math.rsqrt %11 : vector<256x1xf32>
    %13 = vector.broadcast %12 : vector<256x1xf32> to vector<256x128xf32>
    %14 = arith.mulf %6, %13 : vector<256x128xf32>
    %c0_4 = arith.constant 0 : index
    %c0_5 = arith.constant 0 : index
    %c0_6 = arith.constant 0 : index
    %15 = vector.load %arg3[%c0_4, %c0_5, %c0_6] : memref<1x256x128xf32, #tpu.memory_space<vmem>>, vector<1x256x128xf32>
    %16 = vector.shape_cast %15 : vector<1x256x128xf32> to vector<256x128xf32>
    %17 = arith.mulf %16, %16 : vector<256x128xf32>
    %cst_7 = arith.constant dense<0.000000e+00> : vector<256xf32>
    %18 = vector.multi_reduction <add>, %17, %cst_7 [1] : vector<256x128xf32> to vector<256xf32>
    %19 = vector.shape_cast %18 : vector<256xf32> to vector<256x1xf32>
    %cst_8 = arith.constant 9.99999996E-13 : f32
    %20 = vector.broadcast %cst_8 : f32 to vector<256x1xf32>
    %21 = arith.addf %19, %20 : vector<256x1xf32>
    %22 = math.rsqrt %21 : vector<256x1xf32>
    %23 = vector.broadcast %22 : vector<256x1xf32> to vector<256x128xf32>
    %24 = arith.mulf %16, %23 : vector<256x128xf32>
    %c0_9 = arith.constant 0 : index
    %25 = arith.index_cast %4 : i32 to index
    %c0_10 = arith.constant 0 : index
    %26 = vector.load %arg2[%c0_9, %25, %c0_10] : memref<1x256x128xf32, #tpu.memory_space<vmem>>, vector<1x128x128xf32>
    %27 = vector.shape_cast %26 : vector<1x128x128xf32> to vector<128x128xf32>
    %28 = arith.mulf %27, %27 : vector<128x128xf32>
    %cst_11 = arith.constant dense<0.000000e+00> : vector<128xf32>
    %29 = vector.multi_reduction <add>, %28, %cst_11 [1] : vector<128x128xf32> to vector<128xf32>
    %30 = vector.shape_cast %29 : vector<128xf32> to vector<128x1xf32>
    %cst_12 = arith.constant 9.99999996E-13 : f32
    %31 = vector.broadcast %cst_12 : f32 to vector<128x1xf32>
    %32 = arith.addf %30, %31 : vector<128x1xf32>
    %33 = math.rsqrt %32 : vector<128x1xf32>
    %34 = vector.broadcast %33 : vector<128x1xf32> to vector<128x128xf32>
    %35 = arith.mulf %27, %34 : vector<128x128xf32>
    %c0_13 = arith.constant 0 : index
    %36 = arith.index_cast %4 : i32 to index
    %c0_14 = arith.constant 0 : index
    %37 = vector.load %arg3[%c0_13, %36, %c0_14] : memref<1x256x128xf32, #tpu.memory_space<vmem>>, vector<1x128x128xf32>
    %38 = vector.shape_cast %37 : vector<1x128x128xf32> to vector<128x128xf32>
    %39 = arith.mulf %38, %38 : vector<128x128xf32>
    %cst_15 = arith.constant dense<0.000000e+00> : vector<128xf32>
    %40 = vector.multi_reduction <add>, %39, %cst_15 [1] : vector<128x128xf32> to vector<128xf32>
    %41 = vector.shape_cast %40 : vector<128xf32> to vector<128x1xf32>
    %cst_16 = arith.constant 9.99999996E-13 : f32
    %42 = vector.broadcast %cst_16 : f32 to vector<128x1xf32>
    %43 = arith.addf %41, %42 : vector<128x1xf32>
    %44 = math.rsqrt %43 : vector<128x1xf32>
    %45 = vector.broadcast %44 : vector<128x1xf32> to vector<128x128xf32>
    %46 = arith.mulf %38, %45 : vector<128x128xf32>
    %c0_17 = arith.constant 0 : index
    %c0_18 = arith.constant 0 : index
    %c0_19 = arith.constant 0 : index
    %47 = vector.load %arg4[%c0_17, %c0_18, %c0_19] : memref<1x128x128xf32, #tpu.memory_space<vmem>>, vector<1x128x128xf32>
    %48 = vector.shape_cast %47 : vector<1x128x128xf32> to vector<128x128xf32>
    %49 = arith.mulf %48, %48 : vector<128x128xf32>
    %cst_20 = arith.constant dense<0.000000e+00> : vector<128xf32>
    %50 = vector.multi_reduction <add>, %49, %cst_20 [1] : vector<128x128xf32> to vector<128xf32>
    %51 = vector.shape_cast %50 : vector<128xf32> to vector<128x1xf32>
    %cst_21 = arith.constant 9.99999996E-13 : f32
    %52 = vector.broadcast %cst_21 : f32 to vector<128x1xf32>
    %53 = arith.addf %51, %52 : vector<128x1xf32>
    %54 = math.rsqrt %53 : vector<128x1xf32>
    %55 = vector.broadcast %54 : vector<128x1xf32> to vector<128x128xf32>
    %56 = arith.mulf %48, %55 : vector<128x128xf32>
    %cst_22 = arith.constant dense<0.000000e+00> : vector<256x128xf32>
    %57 = tpu.matmul %14, %35, %cst_22 {dimension_numbers = #tpu.dot_dimension_numbers<[1], [1], [0], [0], [0, 0, 1, 0], [], []>} : vector<256x128xf32>, vector<128x128xf32>, vector<256x128xf32> -> vector<256x128xf32>
    %cst_23 = arith.constant 1.000000e+00 : f32
    %58 = vector.broadcast %cst_23 : f32 to vector<256x128xf32>
    %59 = arith.subf %58, %57 : vector<256x128xf32>
    %cst_24 = arith.constant dense<0.000000e+00> : vector<128xf32>
    %60 = vector.multi_reduction <add>, %59, %cst_24 [0] : vector<256x128xf32> to vector<128xf32>
    %61 = vector.shape_cast %60 : vector<128xf32> to vector<1x128xf32>
    %cst_25 = arith.constant 9.99999996E-13 : f32
    %62 = vector.broadcast %cst_25 : f32 to vector<1x128xf32>
    %63 = arith.maximumf %61, %62 : vector<1x128xf32>
    %64 = tpu.reciprocal %63 {approx = true} : vector<1x128xf32> -> vector<1x128xf32>
    %65 = arith.mulf %63, %64 : vector<1x128xf32>
    %cst_26 = arith.constant 2.000000e+00 : f32
    %66 = vector.broadcast %cst_26 : f32 to vector<1x128xf32>
    %67 = arith.subf %66, %65 : vector<1x128xf32>
    %68 = arith.mulf %64, %67 : vector<1x128xf32>
    %69 = vector.broadcast %68 : vector<1x128xf32> to vector<256x128xf32>
    %70 = arith.mulf %59, %69 : vector<256x128xf32>
    %cst_27 = arith.constant dense<0.000000e+00> : vector<256x128xf32>
    %71 = tpu.matmul %24, %46, %cst_27 {dimension_numbers = #tpu.dot_dimension_numbers<[1], [1], [0], [0], [0, 0, 1, 0], [], []>} : vector<256x128xf32>, vector<128x128xf32>, vector<256x128xf32> -> vector<256x128xf32>
    %cst_28 = arith.constant 1.000000e+00 : f32
    %72 = vector.broadcast %cst_28 : f32 to vector<256x128xf32>
    %73 = arith.subf %72, %71 : vector<256x128xf32>
    %cst_29 = arith.constant dense<0.000000e+00> : vector<128xf32>
    %74 = vector.multi_reduction <add>, %73, %cst_29 [0] : vector<256x128xf32> to vector<128xf32>
    %75 = vector.shape_cast %74 : vector<128xf32> to vector<1x128xf32>
    %cst_30 = arith.constant 9.99999996E-13 : f32
    %76 = vector.broadcast %cst_30 : f32 to vector<1x128xf32>
    %77 = arith.maximumf %75, %76 : vector<1x128xf32>
    %78 = tpu.reciprocal %77 {approx = true} : vector<1x128xf32> -> vector<1x128xf32>
    %79 = arith.mulf %77, %78 : vector<1x128xf32>
    %cst_31 = arith.constant 2.000000e+00 : f32
    %80 = vector.broadcast %cst_31 : f32 to vector<1x128xf32>
    %81 = arith.subf %80, %79 : vector<1x128xf32>
    %82 = arith.mulf %78, %81 : vector<1x128xf32>
    %83 = vector.broadcast %82 : vector<1x128xf32> to vector<256x128xf32>
    %84 = arith.mulf %73, %83 : vector<256x128xf32>
    %c0_32 = arith.constant 0 : index
    %c0_33 = arith.constant 0 : index
    %85 = vector.load %arg7[%c0_32, %c0_33] : memref<1x1xf32, #tpu.memory_space<vmem>>, vector<1x1xf32>
    %86 = arith.subf %70, %84 : vector<256x128xf32>
    %87 = math.absf %86 : vector<256x128xf32>
    %88 = vector.shape_cast %87 : vector<256x128xf32> to vector<1x256x128xf32>
    %cst_34 = arith.constant dense<0.000000e+00> : vector<1xf32>
    %89 = vector.multi_reduction <add>, %88, %cst_34 [1, 2] : vector<1x256x128xf32> to vector<1xf32>
    %90 = vector.shape_cast %89 : vector<1xf32> to vector<1x1x1xf32>
    %91 = vector.extract %90[0, 0, 0] : f32 from vector<1x1x1xf32>
    %92 = vector.broadcast %91 : f32 to vector<1x1xf32>
    %93 = arith.addf %85, %92 : vector<1x1xf32>
    %c0_35 = arith.constant 0 : index
    %c0_36 = arith.constant 0 : index
    %94 = vector.load %arg7[%c0_35, %c0_36] : memref<1x1xf32, #tpu.memory_space<vmem>>, vector<1x1xf32>
    tpu.vector_store %arg7[%c0_35, %c0_36], %93 {strides = array<i32>} : memref<1x1xf32, #tpu.memory_space<vmem>>, vector<1x1xf32>,
    %cst_37 = arith.constant dense<0.000000e+00> : vector<256x128xf32>
    %95 = tpu.matmul %14, %56, %cst_37 {dimension_numbers = #tpu.dot_dimension_numbers<[1], [1], [0], [0], [0, 0, 1, 0], [], []>} : vector<256x128xf32>, vector<128x128xf32>, vector<256x128xf32> -> vector<256x128xf32>
    %cst_38 = arith.constant 1.000000e+00 : f32
    %96 = vector.broadcast %cst_38 : f32 to vector<256x128xf32>
    %97 = arith.subf %96, %95 : vector<256x128xf32>
    %c0_39 = arith.constant 0 : index
    %c0_40 = arith.constant 0 : index
    %98 = vector.load %arg8[%c0_39, %c0_40] : memref<1x1xf32, #tpu.memory_space<vmem>>, vector<1x1xf32>
    %cst_41 = arith.constant dense<0x7F800000> : vector<128xf32>
    %99 = vector.multi_reduction <minimumf>, %97, %cst_41 [0] : vector<256x128xf32> to vector<128xf32>
    %100 = vector.shape_cast %99 : vector<128xf32> to vector<1x128xf32>
    %101 = vector.shape_cast %100 : vector<1x128xf32> to vector<1x1x128xf32>
    %cst_42 = arith.constant dense<0.000000e+00> : vector<1xf32>
    %102 = vector.multi_reduction <add>, %101, %cst_42 [1, 2] : vector<1x1x128xf32> to vector<1xf32>
    %103 = vector.shape_cast %102 : vector<1xf32> to vector<1x1x1xf32>
    %104 = vector.extract %103[0, 0, 0] : f32 from vector<1x1x1xf32>
    %105 = vector.broadcast %104 : f32 to vector<1x1xf32>
    %106 = arith.addf %98, %105 : vector<1x1xf32>
    %c0_43 = arith.constant 0 : index
    %c0_44 = arith.constant 0 : index
    %107 = vector.load %arg8[%c0_43, %c0_44] : memref<1x1xf32, #tpu.memory_space<vmem>>, vector<1x1xf32>
    tpu.vector_store %arg8[%c0_43, %c0_44], %106 {strides = array<i32>} : memref<1x1xf32, #tpu.memory_space<vmem>>, vector<1x1xf32>,
    %c0_45 = arith.constant 0 : index
    %c0_46 = arith.constant 0 : index
    %108 = vector.load %arg6[%c0_45, %c0_46] : memref<256x1xf32, #tpu.memory_space<vmem>>, vector<256x1xf32>
    %cst_47 = arith.constant dense<0x7F800000> : vector<256xf32>
    %109 = vector.multi_reduction <minimumf>, %97, %cst_47 [1] : vector<256x128xf32> to vector<256xf32>
    %110 = vector.shape_cast %109 : vector<256xf32> to vector<256x1xf32>
    %111 = arith.minimumf %108, %110 : vector<256x1xf32>
    %c0_48 = arith.constant 0 : index
    %c0_49 = arith.constant 0 : index
    %112 = vector.load %arg6[%c0_48, %c0_49] : memref<256x1xf32, #tpu.memory_space<vmem>>, vector<256x1xf32>
    tpu.vector_store %arg6[%c0_48, %c0_49], %111 {strides = array<i32>} : memref<256x1xf32, #tpu.memory_space<vmem>>, vector<256x1xf32>,
    %c1_i32 = arith.constant 1 : i32
    %113 = arith.cmpi eq, %arg1, %c1_i32 : i32
    %114 = arith.extui %113 : i1 to i32
    %c0_i32_50 = arith.constant 0 : i32
    %115 = arith.cmpi ne, %114, %c0_i32_50 : i32
    scf.if %115 {
      %c0_51 = arith.constant 0 : index
      %c0_52 = arith.constant 0 : index
      %116 = vector.load %arg6[%c0_51, %c0_52] : memref<256x1xf32, #tpu.memory_space<vmem>>, vector<256x1xf32>
      %117 = vector.shape_cast %116 : vector<256x1xf32> to vector<1x256x1xf32>
      %cst_53 = arith.constant dense<0.000000e+00> : vector<1xf32>
      %118 = vector.multi_reduction <add>, %117, %cst_53 [1, 2] : vector<1x256x1xf32> to vector<1xf32>
      %119 = vector.shape_cast %118 : vector<1xf32> to vector<1x1x1xf32>
      %120 = vector.extract %119[0, 0, 0] : f32 from vector<1x1x1xf32>
      %121 = vector.broadcast %120 : f32 to vector<1x1xf32>
      %c0_54 = arith.constant 0 : index
      %c0_55 = arith.constant 0 : index
      %122 = vector.load %arg7[%c0_54, %c0_55] : memref<1x1xf32, #tpu.memory_space<vmem>>, vector<1x1xf32>
      %c0_56 = arith.constant 0 : index
      %c0_57 = arith.constant 0 : index
      %123 = vector.load %arg8[%c0_56, %c0_57] : memref<1x1xf32, #tpu.memory_space<vmem>>, vector<1x1xf32>
      %124 = tpu.iota {dimensions = array<i32: 1>} : vector<1x128xi32>
      %c0_i32_58 = arith.constant 0 : i32
      %125 = vector.broadcast %c0_i32_58 : i32 to vector<1x128xi32>
      %126 = arith.cmpi eq, %124, %125 : vector<1x128xi32>
      %cst_59 = arith.constant 0.000000e+00 : f32
      %127 = vector.shape_cast %122 : vector<1x1xf32> to vector<1x1xf32>
      %128 = vector.broadcast %127 : vector<1x1xf32> to vector<1x128xf32>
      %129 = vector.broadcast %cst_59 : f32 to vector<1x128xf32>
      %130 = arith.select %126, %128, %129 : vector<1x128xi1>, vector<1x128xf32>
      %c1_i32_60 = arith.constant 1 : i32
      %131 = vector.broadcast %c1_i32_60 : i32 to vector<1x128xi32>
      %132 = arith.cmpi eq, %124, %131 : vector<1x128xi32>
      %cst_61 = arith.constant 0.000000e+00 : f32
      %133 = vector.shape_cast %121 : vector<1x1xf32> to vector<1x1xf32>
      %134 = vector.broadcast %133 : vector<1x1xf32> to vector<1x128xf32>
      %135 = vector.broadcast %cst_61 : f32 to vector<1x128xf32>
      %136 = arith.select %132, %134, %135 : vector<1x128xi1>, vector<1x128xf32>
      %137 = arith.addf %130, %136 : vector<1x128xf32>
      %c2_i32 = arith.constant 2 : i32
      %138 = vector.broadcast %c2_i32 : i32 to vector<1x128xi32>
      %139 = arith.cmpi eq, %124, %138 : vector<1x128xi32>
      %cst_62 = arith.constant 0.000000e+00 : f32
      %140 = vector.shape_cast %123 : vector<1x1xf32> to vector<1x1xf32>
      %141 = vector.broadcast %140 : vector<1x1xf32> to vector<1x128xf32>
      %142 = vector.broadcast %cst_62 : f32 to vector<1x128xf32>
      %143 = arith.select %139, %141, %142 : vector<1x128xi1>, vector<1x128xf32>
      %144 = arith.addf %137, %143 : vector<1x128xf32>
      %c0_63 = arith.constant 0 : index
      %c0_64 = arith.constant 0 : index
      %c0_65 = arith.constant 0 : index
      %145 = vector.load %arg5[%c0_63, %c0_64, %c0_65] : memref<1x1x128xf32, #tpu.memory_space<vmem>>, vector<1x1x128xf32>
      %146 = vector.shape_cast %145 : vector<1x1x128xf32> to vector<1x128xf32>
      %147 = vector.shape_cast %144 : vector<1x128xf32> to vector<1x1x128xf32>
      tpu.vector_store %arg5[%c0_63, %c0_64, %c0_65], %147 {strides = array<i32>} : memref<1x1x128xf32, #tpu.memory_space<vmem>>, vector<1x1x128xf32>,
    } else {
    }
    return
  }
  func.func @transform_0(%arg0: i32, %arg1: i32) -> (i32, i32, i32) {
    %c0_i32 = arith.constant 0 : i32
    %c0_i32_0 = arith.constant 0 : i32
    %c0_i32_1 = arith.constant 0 : i32
    return %arg0, %c0_i32, %c0_i32_0 : i32, i32, i32
  }
  func.func @transform_1(%arg0: i32, %arg1: i32) -> (i32, i32, i32) {
    %c0_i32 = arith.constant 0 : i32
    %c0_i32_0 = arith.constant 0 : i32
    %c0_i32_1 = arith.constant 0 : i32
    return %arg0, %c0_i32, %c0_i32_0 : i32, i32, i32
  }
  func.func @transform_2(%arg0: i32, %arg1: i32) -> (i32, i32, i32) {
    %c0_i32 = arith.constant 0 : i32
    %c0_i32_0 = arith.constant 0 : i32
    return %arg0, %arg1, %c0_i32 : i32, i32, i32
  }
  func.func @transform_3(%arg0: i32, %arg1: i32) -> (i32, i32, i32) {
    %c0_i32 = arith.constant 0 : i32
    %c0_i32_0 = arith.constant 0 : i32
    %c0_i32_1 = arith.constant 0 : i32
    return %arg0, %c0_i32, %c0_i32_0 : i32, i32, i32
  }
}

module attributes {stable_mosaic.version = 11 : i64} {
  func.func @_relt_kernel(%arg0: i32, %arg1: i32, %arg2: memref<1x64x128xf32, #tpu.memory_space<vmem>>, %arg3: memref<1x64x128xf32, #tpu.memory_space<vmem>>, %arg4: memref<1x64x128xf32, #tpu.memory_space<vmem>>, %arg5: memref<1x1x128xf32, #tpu.memory_space<vmem>>, %arg6: memref<64x1xf32, #tpu.memory_space<vmem>>, %arg7: memref<1x1xf32, #tpu.memory_space<vmem>>, %arg8: memref<1x1xf32, #tpu.memory_space<vmem>>) attributes {dimension_semantics = [#tpu.dimension_semantics<parallel>, #tpu.dimension_semantics<arbitrary>], iteration_bounds = array<i64: 2, 1>, scalar_prefetch = 0 : i64, scratch_operands = 3 : i64, tpu.core_type = #tpu.core_type<tc>, window_params = [{transform_indices = @transform_0, window_bounds = array<i64: 1, 64, 128>}, {transform_indices = @transform_1, window_bounds = array<i64: 1, 64, 128>}, {transform_indices = @transform_2, window_bounds = array<i64: 1, 64, 128>}, {transform_indices = @transform_3, window_bounds = array<i64: 1, 1, 128>}]} {
    %c0_i32 = arith.constant 0 : i32
    %0 = arith.cmpi eq, %arg1, %c0_i32 : i32
    %1 = arith.extui %0 : i1 to i32
    %c0_i32_0 = arith.constant 0 : i32
    %2 = arith.cmpi ne, %1, %c0_i32_0 : i32
    scf.if %2 {
      %cst_52 = arith.constant 0x7F800000 : f32
      %116 = vector.broadcast %cst_52 : f32 to vector<64x1xf32>
      %c0_53 = arith.constant 0 : index
      %c0_54 = arith.constant 0 : index
      %117 = vector.load %arg6[%c0_53, %c0_54] : memref<64x1xf32, #tpu.memory_space<vmem>>, vector<64x1xf32>
      tpu.vector_store %arg6[%c0_53, %c0_54], %116 {strides = array<i32>} : memref<64x1xf32, #tpu.memory_space<vmem>>, vector<64x1xf32>,
      %cst_55 = arith.constant 0.000000e+00 : f32
      %118 = vector.broadcast %cst_55 : f32 to vector<1x1xf32>
      %c0_56 = arith.constant 0 : index
      %c0_57 = arith.constant 0 : index
      %119 = vector.load %arg7[%c0_56, %c0_57] : memref<1x1xf32, #tpu.memory_space<vmem>>, vector<1x1xf32>
      tpu.vector_store %arg7[%c0_56, %c0_57], %118 {strides = array<i32>} : memref<1x1xf32, #tpu.memory_space<vmem>>, vector<1x1xf32>,
      %cst_58 = arith.constant 0.000000e+00 : f32
      %120 = vector.broadcast %cst_58 : f32 to vector<1x1xf32>
      %c0_59 = arith.constant 0 : index
      %c0_60 = arith.constant 0 : index
      %121 = vector.load %arg8[%c0_59, %c0_60] : memref<1x1xf32, #tpu.memory_space<vmem>>, vector<1x1xf32>
      tpu.vector_store %arg8[%c0_59, %c0_60], %120 {strides = array<i32>} : memref<1x1xf32, #tpu.memory_space<vmem>>, vector<1x1xf32>,
    } else {
    }
    %c64_i32 = arith.constant 64 : i32
    %3 = arith.muli %arg1, %c64_i32 : i32
    %4 = tpu.assume_multiple %3, 8 : i32
    %c0 = arith.constant 0 : index
    %c0_1 = arith.constant 0 : index
    %c0_2 = arith.constant 0 : index
    %5 = vector.load %arg2[%c0, %c0_1, %c0_2] : memref<1x64x128xf32, #tpu.memory_space<vmem>>, vector<1x64x128xf32>
    %6 = vector.shape_cast %5 : vector<1x64x128xf32> to vector<64x128xf32>
    %7 = arith.mulf %6, %6 : vector<64x128xf32>
    %cst = arith.constant dense<0.000000e+00> : vector<64xf32>
    %8 = vector.multi_reduction <add>, %7, %cst [1] : vector<64x128xf32> to vector<64xf32>
    %9 = vector.shape_cast %8 : vector<64xf32> to vector<64x1xf32>
    %cst_3 = arith.constant 9.99999996E-13 : f32
    %10 = vector.broadcast %cst_3 : f32 to vector<64x1xf32>
    %11 = arith.addf %9, %10 : vector<64x1xf32>
    %12 = math.rsqrt %11 : vector<64x1xf32>
    %13 = vector.broadcast %12 : vector<64x1xf32> to vector<64x128xf32>
    %14 = arith.mulf %6, %13 : vector<64x128xf32>
    %c0_4 = arith.constant 0 : index
    %c0_5 = arith.constant 0 : index
    %c0_6 = arith.constant 0 : index
    %15 = vector.load %arg3[%c0_4, %c0_5, %c0_6] : memref<1x64x128xf32, #tpu.memory_space<vmem>>, vector<1x64x128xf32>
    %16 = vector.shape_cast %15 : vector<1x64x128xf32> to vector<64x128xf32>
    %17 = arith.mulf %16, %16 : vector<64x128xf32>
    %cst_7 = arith.constant dense<0.000000e+00> : vector<64xf32>
    %18 = vector.multi_reduction <add>, %17, %cst_7 [1] : vector<64x128xf32> to vector<64xf32>
    %19 = vector.shape_cast %18 : vector<64xf32> to vector<64x1xf32>
    %cst_8 = arith.constant 9.99999996E-13 : f32
    %20 = vector.broadcast %cst_8 : f32 to vector<64x1xf32>
    %21 = arith.addf %19, %20 : vector<64x1xf32>
    %22 = math.rsqrt %21 : vector<64x1xf32>
    %23 = vector.broadcast %22 : vector<64x1xf32> to vector<64x128xf32>
    %24 = arith.mulf %16, %23 : vector<64x128xf32>
    %c0_9 = arith.constant 0 : index
    %25 = arith.index_cast %4 : i32 to index
    %c0_10 = arith.constant 0 : index
    %26 = vector.load %arg2[%c0_9, %25, %c0_10] : memref<1x64x128xf32, #tpu.memory_space<vmem>>, vector<1x64x128xf32>
    %27 = vector.shape_cast %26 : vector<1x64x128xf32> to vector<64x128xf32>
    %28 = arith.mulf %27, %27 : vector<64x128xf32>
    %cst_11 = arith.constant dense<0.000000e+00> : vector<64xf32>
    %29 = vector.multi_reduction <add>, %28, %cst_11 [1] : vector<64x128xf32> to vector<64xf32>
    %30 = vector.shape_cast %29 : vector<64xf32> to vector<64x1xf32>
    %cst_12 = arith.constant 9.99999996E-13 : f32
    %31 = vector.broadcast %cst_12 : f32 to vector<64x1xf32>
    %32 = arith.addf %30, %31 : vector<64x1xf32>
    %33 = math.rsqrt %32 : vector<64x1xf32>
    %34 = vector.broadcast %33 : vector<64x1xf32> to vector<64x128xf32>
    %35 = arith.mulf %27, %34 : vector<64x128xf32>
    %c0_13 = arith.constant 0 : index
    %36 = arith.index_cast %4 : i32 to index
    %c0_14 = arith.constant 0 : index
    %37 = vector.load %arg3[%c0_13, %36, %c0_14] : memref<1x64x128xf32, #tpu.memory_space<vmem>>, vector<1x64x128xf32>
    %38 = vector.shape_cast %37 : vector<1x64x128xf32> to vector<64x128xf32>
    %39 = arith.mulf %38, %38 : vector<64x128xf32>
    %cst_15 = arith.constant dense<0.000000e+00> : vector<64xf32>
    %40 = vector.multi_reduction <add>, %39, %cst_15 [1] : vector<64x128xf32> to vector<64xf32>
    %41 = vector.shape_cast %40 : vector<64xf32> to vector<64x1xf32>
    %cst_16 = arith.constant 9.99999996E-13 : f32
    %42 = vector.broadcast %cst_16 : f32 to vector<64x1xf32>
    %43 = arith.addf %41, %42 : vector<64x1xf32>
    %44 = math.rsqrt %43 : vector<64x1xf32>
    %45 = vector.broadcast %44 : vector<64x1xf32> to vector<64x128xf32>
    %46 = arith.mulf %38, %45 : vector<64x128xf32>
    %c0_17 = arith.constant 0 : index
    %c0_18 = arith.constant 0 : index
    %c0_19 = arith.constant 0 : index
    %47 = vector.load %arg4[%c0_17, %c0_18, %c0_19] : memref<1x64x128xf32, #tpu.memory_space<vmem>>, vector<1x64x128xf32>
    %48 = vector.shape_cast %47 : vector<1x64x128xf32> to vector<64x128xf32>
    %49 = arith.mulf %48, %48 : vector<64x128xf32>
    %cst_20 = arith.constant dense<0.000000e+00> : vector<64xf32>
    %50 = vector.multi_reduction <add>, %49, %cst_20 [1] : vector<64x128xf32> to vector<64xf32>
    %51 = vector.shape_cast %50 : vector<64xf32> to vector<64x1xf32>
    %cst_21 = arith.constant 9.99999996E-13 : f32
    %52 = vector.broadcast %cst_21 : f32 to vector<64x1xf32>
    %53 = arith.addf %51, %52 : vector<64x1xf32>
    %54 = math.rsqrt %53 : vector<64x1xf32>
    %55 = vector.broadcast %54 : vector<64x1xf32> to vector<64x128xf32>
    %56 = arith.mulf %48, %55 : vector<64x128xf32>
    %cst_22 = arith.constant dense<0.000000e+00> : vector<64x64xf32>
    %57 = tpu.matmul %14, %35, %cst_22 {dimension_numbers = #tpu.dot_dimension_numbers<[1], [1], [0], [0], [0, 0, 1, 0], [], []>} : vector<64x128xf32>, vector<64x128xf32>, vector<64x64xf32> -> vector<64x64xf32>
    %cst_23 = arith.constant 1.000000e+00 : f32
    %58 = vector.broadcast %cst_23 : f32 to vector<64x64xf32>
    %59 = arith.subf %58, %57 : vector<64x64xf32>
    %cst_24 = arith.constant dense<0.000000e+00> : vector<64xf32>
    %60 = vector.multi_reduction <add>, %59, %cst_24 [0] : vector<64x64xf32> to vector<64xf32>
    %61 = vector.shape_cast %60 : vector<64xf32> to vector<1x64xf32>
    %cst_25 = arith.constant 9.99999996E-13 : f32
    %62 = vector.broadcast %cst_25 : f32 to vector<1x64xf32>
    %63 = arith.maximumf %61, %62 : vector<1x64xf32>
    %64 = tpu.reciprocal %63 {approx = true} : vector<1x64xf32> -> vector<1x64xf32>
    %65 = arith.mulf %63, %64 : vector<1x64xf32>
    %cst_26 = arith.constant 2.000000e+00 : f32
    %66 = vector.broadcast %cst_26 : f32 to vector<1x64xf32>
    %67 = arith.subf %66, %65 : vector<1x64xf32>
    %68 = arith.mulf %64, %67 : vector<1x64xf32>
    %69 = vector.broadcast %68 : vector<1x64xf32> to vector<64x64xf32>
    %70 = arith.mulf %59, %69 : vector<64x64xf32>
    %cst_27 = arith.constant dense<0.000000e+00> : vector<64x64xf32>
    %71 = tpu.matmul %24, %46, %cst_27 {dimension_numbers = #tpu.dot_dimension_numbers<[1], [1], [0], [0], [0, 0, 1, 0], [], []>} : vector<64x128xf32>, vector<64x128xf32>, vector<64x64xf32> -> vector<64x64xf32>
    %cst_28 = arith.constant 1.000000e+00 : f32
    %72 = vector.broadcast %cst_28 : f32 to vector<64x64xf32>
    %73 = arith.subf %72, %71 : vector<64x64xf32>
    %cst_29 = arith.constant dense<0.000000e+00> : vector<64xf32>
    %74 = vector.multi_reduction <add>, %73, %cst_29 [0] : vector<64x64xf32> to vector<64xf32>
    %75 = vector.shape_cast %74 : vector<64xf32> to vector<1x64xf32>
    %cst_30 = arith.constant 9.99999996E-13 : f32
    %76 = vector.broadcast %cst_30 : f32 to vector<1x64xf32>
    %77 = arith.maximumf %75, %76 : vector<1x64xf32>
    %78 = tpu.reciprocal %77 {approx = true} : vector<1x64xf32> -> vector<1x64xf32>
    %79 = arith.mulf %77, %78 : vector<1x64xf32>
    %cst_31 = arith.constant 2.000000e+00 : f32
    %80 = vector.broadcast %cst_31 : f32 to vector<1x64xf32>
    %81 = arith.subf %80, %79 : vector<1x64xf32>
    %82 = arith.mulf %78, %81 : vector<1x64xf32>
    %83 = vector.broadcast %82 : vector<1x64xf32> to vector<64x64xf32>
    %84 = arith.mulf %73, %83 : vector<64x64xf32>
    %c0_32 = arith.constant 0 : index
    %c0_33 = arith.constant 0 : index
    %85 = vector.load %arg7[%c0_32, %c0_33] : memref<1x1xf32, #tpu.memory_space<vmem>>, vector<1x1xf32>
    %86 = arith.subf %70, %84 : vector<64x64xf32>
    %87 = math.absf %86 : vector<64x64xf32>
    %88 = vector.shape_cast %87 : vector<64x64xf32> to vector<1x64x64xf32>
    %cst_34 = arith.constant dense<0.000000e+00> : vector<1xf32>
    %89 = vector.multi_reduction <add>, %88, %cst_34 [1, 2] : vector<1x64x64xf32> to vector<1xf32>
    %90 = vector.shape_cast %89 : vector<1xf32> to vector<1x1x1xf32>
    %91 = vector.extract %90[0, 0, 0] : f32 from vector<1x1x1xf32>
    %92 = vector.broadcast %91 : f32 to vector<1x1xf32>
    %93 = arith.addf %85, %92 : vector<1x1xf32>
    %c0_35 = arith.constant 0 : index
    %c0_36 = arith.constant 0 : index
    %94 = vector.load %arg7[%c0_35, %c0_36] : memref<1x1xf32, #tpu.memory_space<vmem>>, vector<1x1xf32>
    tpu.vector_store %arg7[%c0_35, %c0_36], %93 {strides = array<i32>} : memref<1x1xf32, #tpu.memory_space<vmem>>, vector<1x1xf32>,
    %cst_37 = arith.constant dense<0.000000e+00> : vector<64x64xf32>
    %95 = tpu.matmul %14, %56, %cst_37 {dimension_numbers = #tpu.dot_dimension_numbers<[1], [1], [0], [0], [0, 0, 1, 0], [], []>} : vector<64x128xf32>, vector<64x128xf32>, vector<64x64xf32> -> vector<64x64xf32>
    %cst_38 = arith.constant 1.000000e+00 : f32
    %96 = vector.broadcast %cst_38 : f32 to vector<64x64xf32>
    %97 = arith.subf %96, %95 : vector<64x64xf32>
    %c0_39 = arith.constant 0 : index
    %c0_40 = arith.constant 0 : index
    %98 = vector.load %arg8[%c0_39, %c0_40] : memref<1x1xf32, #tpu.memory_space<vmem>>, vector<1x1xf32>
    %cst_41 = arith.constant dense<0x7F800000> : vector<64xf32>
    %99 = vector.multi_reduction <minimumf>, %97, %cst_41 [0] : vector<64x64xf32> to vector<64xf32>
    %100 = vector.shape_cast %99 : vector<64xf32> to vector<1x64xf32>
    %101 = vector.shape_cast %100 : vector<1x64xf32> to vector<1x1x64xf32>
    %cst_42 = arith.constant dense<0.000000e+00> : vector<1xf32>
    %102 = vector.multi_reduction <add>, %101, %cst_42 [1, 2] : vector<1x1x64xf32> to vector<1xf32>
    %103 = vector.shape_cast %102 : vector<1xf32> to vector<1x1x1xf32>
    %104 = vector.extract %103[0, 0, 0] : f32 from vector<1x1x1xf32>
    %105 = vector.broadcast %104 : f32 to vector<1x1xf32>
    %106 = arith.addf %98, %105 : vector<1x1xf32>
    %c0_43 = arith.constant 0 : index
    %c0_44 = arith.constant 0 : index
    %107 = vector.load %arg8[%c0_43, %c0_44] : memref<1x1xf32, #tpu.memory_space<vmem>>, vector<1x1xf32>
    tpu.vector_store %arg8[%c0_43, %c0_44], %106 {strides = array<i32>} : memref<1x1xf32, #tpu.memory_space<vmem>>, vector<1x1xf32>,
    %c0_45 = arith.constant 0 : index
    %c0_46 = arith.constant 0 : index
    %108 = vector.load %arg6[%c0_45, %c0_46] : memref<64x1xf32, #tpu.memory_space<vmem>>, vector<64x1xf32>
    %cst_47 = arith.constant dense<0x7F800000> : vector<64xf32>
    %109 = vector.multi_reduction <minimumf>, %97, %cst_47 [1] : vector<64x64xf32> to vector<64xf32>
    %110 = vector.shape_cast %109 : vector<64xf32> to vector<64x1xf32>
    %111 = arith.minimumf %108, %110 : vector<64x1xf32>
    %c0_48 = arith.constant 0 : index
    %c0_49 = arith.constant 0 : index
    %112 = vector.load %arg6[%c0_48, %c0_49] : memref<64x1xf32, #tpu.memory_space<vmem>>, vector<64x1xf32>
    tpu.vector_store %arg6[%c0_48, %c0_49], %111 {strides = array<i32>} : memref<64x1xf32, #tpu.memory_space<vmem>>, vector<64x1xf32>,
    %c0_i32_50 = arith.constant 0 : i32
    %113 = arith.cmpi eq, %arg1, %c0_i32_50 : i32
    %114 = arith.extui %113 : i1 to i32
    %c0_i32_51 = arith.constant 0 : i32
    %115 = arith.cmpi ne, %114, %c0_i32_51 : i32
    scf.if %115 {
      %c0_52 = arith.constant 0 : index
      %c0_53 = arith.constant 0 : index
      %116 = vector.load %arg6[%c0_52, %c0_53] : memref<64x1xf32, #tpu.memory_space<vmem>>, vector<64x1xf32>
      %117 = vector.shape_cast %116 : vector<64x1xf32> to vector<1x64x1xf32>
      %cst_54 = arith.constant dense<0.000000e+00> : vector<1xf32>
      %118 = vector.multi_reduction <add>, %117, %cst_54 [1, 2] : vector<1x64x1xf32> to vector<1xf32>
      %119 = vector.shape_cast %118 : vector<1xf32> to vector<1x1x1xf32>
      %120 = vector.extract %119[0, 0, 0] : f32 from vector<1x1x1xf32>
      %121 = vector.broadcast %120 : f32 to vector<1x1xf32>
      %c0_55 = arith.constant 0 : index
      %c0_56 = arith.constant 0 : index
      %122 = vector.load %arg7[%c0_55, %c0_56] : memref<1x1xf32, #tpu.memory_space<vmem>>, vector<1x1xf32>
      %c0_57 = arith.constant 0 : index
      %c0_58 = arith.constant 0 : index
      %123 = vector.load %arg8[%c0_57, %c0_58] : memref<1x1xf32, #tpu.memory_space<vmem>>, vector<1x1xf32>
      %124 = tpu.iota {dimensions = array<i32: 1>} : vector<1x128xi32>
      %c0_i32_59 = arith.constant 0 : i32
      %125 = vector.broadcast %c0_i32_59 : i32 to vector<1x128xi32>
      %126 = arith.cmpi eq, %124, %125 : vector<1x128xi32>
      %cst_60 = arith.constant 0.000000e+00 : f32
      %127 = vector.shape_cast %122 : vector<1x1xf32> to vector<1x1xf32>
      %128 = vector.broadcast %127 : vector<1x1xf32> to vector<1x128xf32>
      %129 = vector.broadcast %cst_60 : f32 to vector<1x128xf32>
      %130 = arith.select %126, %128, %129 : vector<1x128xi1>, vector<1x128xf32>
      %c1_i32 = arith.constant 1 : i32
      %131 = vector.broadcast %c1_i32 : i32 to vector<1x128xi32>
      %132 = arith.cmpi eq, %124, %131 : vector<1x128xi32>
      %cst_61 = arith.constant 0.000000e+00 : f32
      %133 = vector.shape_cast %121 : vector<1x1xf32> to vector<1x1xf32>
      %134 = vector.broadcast %133 : vector<1x1xf32> to vector<1x128xf32>
      %135 = vector.broadcast %cst_61 : f32 to vector<1x128xf32>
      %136 = arith.select %132, %134, %135 : vector<1x128xi1>, vector<1x128xf32>
      %137 = arith.addf %130, %136 : vector<1x128xf32>
      %c2_i32 = arith.constant 2 : i32
      %138 = vector.broadcast %c2_i32 : i32 to vector<1x128xi32>
      %139 = arith.cmpi eq, %124, %138 : vector<1x128xi32>
      %cst_62 = arith.constant 0.000000e+00 : f32
      %140 = vector.shape_cast %123 : vector<1x1xf32> to vector<1x1xf32>
      %141 = vector.broadcast %140 : vector<1x1xf32> to vector<1x128xf32>
      %142 = vector.broadcast %cst_62 : f32 to vector<1x128xf32>
      %143 = arith.select %139, %141, %142 : vector<1x128xi1>, vector<1x128xf32>
      %144 = arith.addf %137, %143 : vector<1x128xf32>
      %c0_63 = arith.constant 0 : index
      %c0_64 = arith.constant 0 : index
      %c0_65 = arith.constant 0 : index
      %145 = vector.load %arg5[%c0_63, %c0_64, %c0_65] : memref<1x1x128xf32, #tpu.memory_space<vmem>>, vector<1x1x128xf32>
      %146 = vector.shape_cast %145 : vector<1x1x128xf32> to vector<1x128xf32>
      %147 = vector.shape_cast %144 : vector<1x128xf32> to vector<1x1x128xf32>
      tpu.vector_store %arg5[%c0_63, %c0_64, %c0_65], %147 {strides = array<i32>} : memref<1x1x128xf32, #tpu.memory_space<vmem>>, vector<1x1x128xf32>,
    } else {
    }
    return
  }
  func.func @transform_0(%arg0: i32, %arg1: i32) -> (i32, i32, i32) {
    %c0_i32 = arith.constant 0 : i32
    %c0_i32_0 = arith.constant 0 : i32
    %c0_i32_1 = arith.constant 0 : i32
    return %arg0, %c0_i32, %c0_i32_0 : i32, i32, i32
  }
  func.func @transform_1(%arg0: i32, %arg1: i32) -> (i32, i32, i32) {
    %c0_i32 = arith.constant 0 : i32
    %c0_i32_0 = arith.constant 0 : i32
    %c0_i32_1 = arith.constant 0 : i32
    return %arg0, %c0_i32, %c0_i32_0 : i32, i32, i32
  }
  func.func @transform_2(%arg0: i32, %arg1: i32) -> (i32, i32, i32) {
    %c0_i32 = arith.constant 0 : i32
    %c0_i32_0 = arith.constant 0 : i32
    return %arg0, %arg1, %c0_i32 : i32, i32, i32
  }
  func.func @transform_3(%arg0: i32, %arg1: i32) -> (i32, i32, i32) {
    %c0_i32 = arith.constant 0 : i32
    %c0_i32_0 = arith.constant 0 : i32
    %c0_i32_1 = arith.constant 0 : i32
    return %arg0, %c0_i32, %c0_i32_0 : i32, i32, i32
  }
}

module attributes {stable_mosaic.version = 11 : i64} {
  func.func @_conv3x3_kernel(%arg0: i32, %arg1: i32, %arg2: memref<1x10x16x128xf32, #tpu.memory_space<vmem>>, %arg3: memref<9x128x128xf32, #tpu.memory_space<vmem>>, %arg4: memref<1x128xf32, #tpu.memory_space<vmem>>, %arg5: memref<1x64x128xf32, #tpu.memory_space<vmem>>) attributes {dimension_semantics = [#tpu.dimension_semantics<parallel>, #tpu.dimension_semantics<parallel>], iteration_bounds = array<i64: 6, 1>, scalar_prefetch = 0 : i64, scratch_operands = 0 : i64, tpu.core_type = #tpu.core_type<tc>, window_params = [{transform_indices = @transform_0, window_bounds = array<i64: 1, 10, 16, 128>}, {pipeline_mode = #tpu.pipeline_mode<synchronous>, transform_indices = @transform_1, window_bounds = array<i64: 9, 128, 128>}, {pipeline_mode = #tpu.pipeline_mode<synchronous>, transform_indices = @transform_2, window_bounds = array<i64: 1, 128>}, {transform_indices = @transform_3, window_bounds = array<i64: 1, 64, 128>}]} {
    %cst = arith.constant 0.000000e+00 : f32
    %0 = vector.broadcast %cst : f32 to vector<128x128xf32>
    %cst_0 = arith.constant 0.000000e+00 : f32
    %1 = vector.broadcast %cst_0 : f32 to vector<128x128xf32>
    %c0 = arith.constant 0 : index
    %c0_1 = arith.constant 0 : index
    %c0_2 = arith.constant 0 : index
    %c0_3 = arith.constant 0 : index
    %2 = vector.load %arg2[%c0, %c0_1, %c0_2, %c0_3] : memref<1x10x16x128xf32, #tpu.memory_space<vmem>>, vector<1x8x16x128xf32>
    %3 = vector.shape_cast %2 : vector<1x8x16x128xf32> to vector<8x16x128xf32>
    %4 = vector.shape_cast %3 : vector<8x16x128xf32> to vector<128x128xf32>
    %c0_4 = arith.constant 0 : index
    %c0_5 = arith.constant 0 : index
    %c0_6 = arith.constant 0 : index
    %5 = vector.load %arg3[%c0_4, %c0_5, %c0_6] : memref<9x128x128xf32, #tpu.memory_space<vmem>>, vector<1x128x128xf32>
    %6 = vector.shape_cast %5 : vector<1x128x128xf32> to vector<128x128xf32>
    %cst_7 = arith.constant dense<0.000000e+00> : vector<128x128xf32>
    %7 = tpu.matmul %4, %6, %cst_7 {dimension_numbers = #tpu.dot_dimension_numbers<[1], [0], [0], [1], [0, 0, 1, 1], [], []>} : vector<128x128xf32>, vector<128x128xf32>, vector<128x128xf32> -> vector<128x128xf32>
    %8 = arith.addf %1, %7 : vector<128x128xf32>
    %c0_8 = arith.constant 0 : index
    %c1 = arith.constant 1 : index
    %c0_9 = arith.constant 0 : index
    %c0_10 = arith.constant 0 : index
    %9 = vector.load %arg2[%c0_8, %c1, %c0_9, %c0_10] : memref<1x10x16x128xf32, #tpu.memory_space<vmem>>, vector<1x8x16x128xf32>
    %10 = vector.shape_cast %9 : vector<1x8x16x128xf32> to vector<8x16x128xf32>
    %11 = vector.shape_cast %10 : vector<8x16x128xf32> to vector<128x128xf32>
    %c3 = arith.constant 3 : index
    %c0_11 = arith.constant 0 : index
    %c0_12 = arith.constant 0 : index
    %12 = vector.load %arg3[%c3, %c0_11, %c0_12] : memref<9x128x128xf32, #tpu.memory_space<vmem>>, vector<1x128x128xf32>
    %13 = vector.shape_cast %12 : vector<1x128x128xf32> to vector<128x128xf32>
    %cst_13 = arith.constant dense<0.000000e+00> : vector<128x128xf32>
    %14 = tpu.matmul %11, %13, %cst_13 {dimension_numbers = #tpu.dot_dimension_numbers<[1], [0], [0], [1], [0, 0, 1, 1], [], []>} : vector<128x128xf32>, vector<128x128xf32>, vector<128x128xf32> -> vector<128x128xf32>
    %15 = arith.addf %8, %14 : vector<128x128xf32>
    %c0_14 = arith.constant 0 : index
    %c2 = arith.constant 2 : index
    %c0_15 = arith.constant 0 : index
    %c0_16 = arith.constant 0 : index
    %16 = vector.load %arg2[%c0_14, %c2, %c0_15, %c0_16] : memref<1x10x16x128xf32, #tpu.memory_space<vmem>>, vector<1x8x16x128xf32>
    %17 = vector.shape_cast %16 : vector<1x8x16x128xf32> to vector<8x16x128xf32>
    %18 = vector.shape_cast %17 : vector<8x16x128xf32> to vector<128x128xf32>
    %c6 = arith.constant 6 : index
    %c0_17 = arith.constant 0 : index
    %c0_18 = arith.constant 0 : index
    %19 = vector.load %arg3[%c6, %c0_17, %c0_18] : memref<9x128x128xf32, #tpu.memory_space<vmem>>, vector<1x128x128xf32>
    %20 = vector.shape_cast %19 : vector<1x128x128xf32> to vector<128x128xf32>
    %cst_19 = arith.constant dense<0.000000e+00> : vector<128x128xf32>
    %21 = tpu.matmul %18, %20, %cst_19 {dimension_numbers = #tpu.dot_dimension_numbers<[1], [0], [0], [1], [0, 0, 1, 1], [], []>} : vector<128x128xf32>, vector<128x128xf32>, vector<128x128xf32> -> vector<128x128xf32>
    %22 = arith.addf %15, %21 : vector<128x128xf32>
    %23 = arith.addf %0, %22 : vector<128x128xf32>
    %cst_20 = arith.constant 0.000000e+00 : f32
    %24 = vector.broadcast %cst_20 : f32 to vector<128x128xf32>
    %c0_21 = arith.constant 0 : index
    %c0_22 = arith.constant 0 : index
    %c0_23 = arith.constant 0 : index
    %c0_24 = arith.constant 0 : index
    %25 = vector.load %arg2[%c0_21, %c0_22, %c0_23, %c0_24] : memref<1x10x16x128xf32, #tpu.memory_space<vmem>>, vector<1x8x16x128xf32>
    %26 = vector.shape_cast %25 : vector<1x8x16x128xf32> to vector<8x16x128xf32>
    %27 = vector.shape_cast %26 : vector<8x16x128xf32> to vector<128x128xf32>
    %c1_25 = arith.constant 1 : index
    %c0_26 = arith.constant 0 : index
    %c0_27 = arith.constant 0 : index
    %28 = vector.load %arg3[%c1_25, %c0_26, %c0_27] : memref<9x128x128xf32, #tpu.memory_space<vmem>>, vector<1x128x128xf32>
    %29 = vector.shape_cast %28 : vector<1x128x128xf32> to vector<128x128xf32>
    %cst_28 = arith.constant dense<0.000000e+00> : vector<128x128xf32>
    %30 = tpu.matmul %27, %29, %cst_28 {dimension_numbers = #tpu.dot_dimension_numbers<[1], [0], [0], [1], [0, 0, 1, 1], [], []>} : vector<128x128xf32>, vector<128x128xf32>, vector<128x128xf32> -> vector<128x128xf32>
    %31 = arith.addf %24, %30 : vector<128x128xf32>
    %c0_29 = arith.constant 0 : index
    %c1_30 = arith.constant 1 : index
    %c0_31 = arith.constant 0 : index
    %c0_32 = arith.constant 0 : index
    %32 = vector.load %arg2[%c0_29, %c1_30, %c0_31, %c0_32] : memref<1x10x16x128xf32, #tpu.memory_space<vmem>>, vector<1x8x16x128xf32>
    %33 = vector.shape_cast %32 : vector<1x8x16x128xf32> to vector<8x16x128xf32>
    %34 = vector.shape_cast %33 : vector<8x16x128xf32> to vector<128x128xf32>
    %c4 = arith.constant 4 : index
    %c0_33 = arith.constant 0 : index
    %c0_34 = arith.constant 0 : index
    %35 = vector.load %arg3[%c4, %c0_33, %c0_34] : memref<9x128x128xf32, #tpu.memory_space<vmem>>, vector<1x128x128xf32>
    %36 = vector.shape_cast %35 : vector<1x128x128xf32> to vector<128x128xf32>
    %cst_35 = arith.constant dense<0.000000e+00> : vector<128x128xf32>
    %37 = tpu.matmul %34, %36, %cst_35 {dimension_numbers = #tpu.dot_dimension_numbers<[1], [0], [0], [1], [0, 0, 1, 1], [], []>} : vector<128x128xf32>, vector<128x128xf32>, vector<128x128xf32> -> vector<128x128xf32>
    %38 = arith.addf %31, %37 : vector<128x128xf32>
    %c0_36 = arith.constant 0 : index
    %c2_37 = arith.constant 2 : index
    %c0_38 = arith.constant 0 : index
    %c0_39 = arith.constant 0 : index
    %39 = vector.load %arg2[%c0_36, %c2_37, %c0_38, %c0_39] : memref<1x10x16x128xf32, #tpu.memory_space<vmem>>, vector<1x8x16x128xf32>
    %40 = vector.shape_cast %39 : vector<1x8x16x128xf32> to vector<8x16x128xf32>
    %41 = vector.shape_cast %40 : vector<8x16x128xf32> to vector<128x128xf32>
    %c7 = arith.constant 7 : index
    %c0_40 = arith.constant 0 : index
    %c0_41 = arith.constant 0 : index
    %42 = vector.load %arg3[%c7, %c0_40, %c0_41] : memref<9x128x128xf32, #tpu.memory_space<vmem>>, vector<1x128x128xf32>
    %43 = vector.shape_cast %42 : vector<1x128x128xf32> to vector<128x128xf32>
    %cst_42 = arith.constant dense<0.000000e+00> : vector<128x128xf32>
    %44 = tpu.matmul %41, %43, %cst_42 {dimension_numbers = #tpu.dot_dimension_numbers<[1], [0], [0], [1], [0, 0, 1, 1], [], []>} : vector<128x128xf32>, vector<128x128xf32>, vector<128x128xf32> -> vector<128x128xf32>
    %45 = arith.addf %38, %44 : vector<128x128xf32>
    %c127_i32 = arith.constant 127 : i32
    %46 = tpu.dynamic_rotate %45 by %c127_i32 dim 0 : vector<128x128xf32>, i32 -> vector<128x128xf32>
    %47 = arith.addf %23, %46 : vector<128x128xf32>
    %cst_43 = arith.constant 0.000000e+00 : f32
    %48 = vector.broadcast %cst_43 : f32 to vector<128x128xf32>
    %c0_44 = arith.constant 0 : index
    %c0_45 = arith.constant 0 : index
    %c0_46 = arith.constant 0 : index
    %c0_47 = arith.constant 0 : index
    %49 = vector.load %arg2[%c0_44, %c0_45, %c0_46, %c0_47] : memref<1x10x16x128xf32, #tpu.memory_space<vmem>>, vector<1x8x16x128xf32>
    %50 = vector.shape_cast %49 : vector<1x8x16x128xf32> to vector<8x16x128xf32>
    %51 = vector.shape_cast %50 : vector<8x16x128xf32> to vector<128x128xf32>
    %c2_48 = arith.constant 2 : index
    %c0_49 = arith.constant 0 : index
    %c0_50 = arith.constant 0 : index
    %52 = vector.load %arg3[%c2_48, %c0_49, %c0_50] : memref<9x128x128xf32, #tpu.memory_space<vmem>>, vector<1x128x128xf32>
    %53 = vector.shape_cast %52 : vector<1x128x128xf32> to vector<128x128xf32>
    %cst_51 = arith.constant dense<0.000000e+00> : vector<128x128xf32>
    %54 = tpu.matmul %51, %53, %cst_51 {dimension_numbers = #tpu.dot_dimension_numbers<[1], [0], [0], [1], [0, 0, 1, 1], [], []>} : vector<128x128xf32>, vector<128x128xf32>, vector<128x128xf32> -> vector<128x128xf32>
    %55 = arith.addf %48, %54 : vector<128x128xf32>
    %c0_52 = arith.constant 0 : index
    %c1_53 = arith.constant 1 : index
    %c0_54 = arith.constant 0 : index
    %c0_55 = arith.constant 0 : index
    %56 = vector.load %arg2[%c0_52, %c1_53, %c0_54, %c0_55] : memref<1x10x16x128xf32, #tpu.memory_space<vmem>>, vector<1x8x16x128xf32>
    %57 = vector.shape_cast %56 : vector<1x8x16x128xf32> to vector<8x16x128xf32>
    %58 = vector.shape_cast %57 : vector<8x16x128xf32> to vector<128x128xf32>
    %c5 = arith.constant 5 : index
    %c0_56 = arith.constant 0 : index
    %c0_57 = arith.constant 0 : index
    %59 = vector.load %arg3[%c5, %c0_56, %c0_57] : memref<9x128x128xf32, #tpu.memory_space<vmem>>, vector<1x128x128xf32>
    %60 = vector.shape_cast %59 : vector<1x128x128xf32> to vector<128x128xf32>
    %cst_58 = arith.constant dense<0.000000e+00> : vector<128x128xf32>
    %61 = tpu.matmul %58, %60, %cst_58 {dimension_numbers = #tpu.dot_dimension_numbers<[1], [0], [0], [1], [0, 0, 1, 1], [], []>} : vector<128x128xf32>, vector<128x128xf32>, vector<128x128xf32> -> vector<128x128xf32>
    %62 = arith.addf %55, %61 : vector<128x128xf32>
    %c0_59 = arith.constant 0 : index
    %c2_60 = arith.constant 2 : index
    %c0_61 = arith.constant 0 : index
    %c0_62 = arith.constant 0 : index
    %63 = vector.load %arg2[%c0_59, %c2_60, %c0_61, %c0_62] : memref<1x10x16x128xf32, #tpu.memory_space<vmem>>, vector<1x8x16x128xf32>
    %64 = vector.shape_cast %63 : vector<1x8x16x128xf32> to vector<8x16x128xf32>
    %65 = vector.shape_cast %64 : vector<8x16x128xf32> to vector<128x128xf32>
    %c8 = arith.constant 8 : index
    %c0_63 = arith.constant 0 : index
    %c0_64 = arith.constant 0 : index
    %66 = vector.load %arg3[%c8, %c0_63, %c0_64] : memref<9x128x128xf32, #tpu.memory_space<vmem>>, vector<1x128x128xf32>
    %67 = vector.shape_cast %66 : vector<1x128x128xf32> to vector<128x128xf32>
    %cst_65 = arith.constant dense<0.000000e+00> : vector<128x128xf32>
    %68 = tpu.matmul %65, %67, %cst_65 {dimension_numbers = #tpu.dot_dimension_numbers<[1], [0], [0], [1], [0, 0, 1, 1], [], []>} : vector<128x128xf32>, vector<128x128xf32>, vector<128x128xf32> -> vector<128x128xf32>
    %69 = arith.addf %62, %68 : vector<128x128xf32>
    %c126_i32 = arith.constant 126 : i32
    %70 = tpu.dynamic_rotate %69 by %c126_i32 dim 0 : vector<128x128xf32>, i32 -> vector<128x128xf32>
    %71 = arith.addf %47, %70 : vector<128x128xf32>
    %72 = vector.shape_cast %71 : vector<128x128xf32> to vector<8x16x128xf32>
    %73 = vector.extract_strided_slice %72 {offsets = [0, 0, 0], sizes = [8, 8, 128], strides = [1, 1, 1]} : vector<8x16x128xf32> to vector<8x8x128xf32>
    %74 = vector.shape_cast %73 : vector<8x8x128xf32> to vector<64x128xf32>
    %c0_66 = arith.constant 0 : index
    %c0_67 = arith.constant 0 : index
    %75 = vector.load %arg4[%c0_66, %c0_67] : memref<1x128xf32, #tpu.memory_space<vmem>>, vector<1x128xf32>
    %76 = vector.broadcast %75 : vector<1x128xf32> to vector<64x128xf32>
    %77 = arith.addf %74, %76 : vector<64x128xf32>
    %cst_68 = arith.constant 0.000000e+00 : f32
    %78 = vector.broadcast %cst_68 : f32 to vector<64x128xf32>
    %79 = arith.maximumf %77, %78 : vector<64x128xf32>
    %c0_69 = arith.constant 0 : index
    %c0_70 = arith.constant 0 : index
    %c0_71 = arith.constant 0 : index
    %80 = vector.load %arg5[%c0_69, %c0_70, %c0_71] : memref<1x64x128xf32, #tpu.memory_space<vmem>>, vector<1x64x128xf32>
    %81 = vector.shape_cast %80 : vector<1x64x128xf32> to vector<64x128xf32>
    %82 = vector.shape_cast %79 : vector<64x128xf32> to vector<1x64x128xf32>
    tpu.vector_store %arg5[%c0_69, %c0_70, %c0_71], %82 {strides = array<i32>} : memref<1x64x128xf32, #tpu.memory_space<vmem>>, vector<1x64x128xf32>,
    return
  }
  func.func @transform_0(%arg0: i32, %arg1: i32) -> (i32, i32, i32, i32) {
    %c1_i32 = arith.constant 1 : i32
    %0 = arith.muli %arg0, %c1_i32 : i32
    %1 = arith.addi %0, %arg1 : i32
    %c0_i32 = arith.constant 0 : i32
    %c0_i32_0 = arith.constant 0 : i32
    %c0_i32_1 = arith.constant 0 : i32
    %c0_i32_2 = arith.constant 0 : i32
    return %1, %c0_i32, %c0_i32_0, %c0_i32_1 : i32, i32, i32, i32
  }
  func.func @transform_1(%arg0: i32, %arg1: i32) -> (i32, i32, i32) {
    %c0_i32 = arith.constant 0 : i32
    %c0_i32_0 = arith.constant 0 : i32
    %c0_i32_1 = arith.constant 0 : i32
    %c0_i32_2 = arith.constant 0 : i32
    return %c0_i32, %c0_i32_0, %c0_i32_1 : i32, i32, i32
  }
  func.func @transform_2(%arg0: i32, %arg1: i32) -> (i32, i32) {
    %c0_i32 = arith.constant 0 : i32
    %c0_i32_0 = arith.constant 0 : i32
    %c0_i32_1 = arith.constant 0 : i32
    return %c0_i32, %c0_i32_0 : i32, i32
  }
  func.func @transform_3(%arg0: i32, %arg1: i32) -> (i32, i32, i32) {
    %c0_i32 = arith.constant 0 : i32
    %c0_i32_0 = arith.constant 0 : i32
    return %arg0, %arg1, %c0_i32 : i32, i32, i32
  }
}

</mosaic_0001>

<bundles_post_ra>
// kernel: _lambda_.5
= control target key start
LH: loop header
LB: loop body
LE: loop exit
PB: predicated region body
PF: predicated region fallthrough
CT: control target
= control target key end

     0   :  { %s4090_s12 = smov 0   ;;  %s4092_s13 = smov 0   ;;  %s5108_s0 = inlined_call_operand.vmem [shape: f32[12,10,24,128], index: 0, kind: input, shape index: {}]   ;;  %s5109_s1 = inlined_call_operand.vmem [shape: f32[9,128,128], index: 1, kind: input, shape index: {}]   ;;  %s5110_s2 = inlined_call_operand.vmem [shape: f32[1,128], index: 2, kind: input, shape index: {}]   ;;  %s5111_s3 = inlined_call_operand.vmem [shape: f32[6,256,128], index: 3, kind: output, shape index: {}]  }
   0x1   :  { %s4094_s14 = smov 0   ;;  %s4096_s15 = smov 0  }
   0x2   :  { %s4098_s16 = smov 0  }
   0x3 LB: > { %s22_s17 = sadd.s32 1, %s4060_s14  ;;  %s25_s18 = sadd.s32 1, %s4064_s15  ;;  %s4068_s16 = sphi %s4098_s16, %s13_s16   ;;  %s4064_s15 = sphi %s4096_s15, %s5115_s15   ;;  %s4060_s14 = sphi %s4094_s14, %s5114_s14   ;;  %s4056_s13 = sphi %s4092_s13, %s5113_s13   ;;  %s4052_s12 = sphi %s4090_s12, %s5112_s12  }
   0x4   : > { %p23_p0 = scmp.ge.s32.totalorder %s22_s17, 2  ;;  %p2416_p1 = scmp.ge.s32.totalorder %s4068_s16, 1 }
   0x5   : > { %p159_p2 = scmp.lt.s32.totalorder %s4068_s16, 13 }
   0x6   : > { %s5117_s17 = smov (%p23_p0, %s22_s17), 0  ;;  %s5119_s18 = smov (!%p23_p0, %s25_s18), %s4064_s15 }
   0x7   : > { %p160_p3 = pnand %p2416_p1, %p159_p2  ;;  %p27_p4 = scmp.ge.s32.totalorder %s5119_s18, 6 }
   0x8   : > { %v2446_v0 = vld [vmem:[%s5109_s1 + $0x180] sm:$0xff] (!%p160_p3)  ;;  %v2447_v1 = vld [vmem:[%s5109_s1 + $0x188] sm:$0xff] (!%p160_p3)  ;;  %s2417_s25 = sshll.u32 (!%p160_p3), %s4056_s13, 1  ;;  %v2448_v5 = vld [vmem:[%s5109_s1 + $0x190] sm:$0xff] (!%p160_p3)  ;;  %s2419_s21 = sshll.u32 (!%p160_p3), %s4052_s12, 4 }
   0x9   : > { %s5121_s18 = smov (%p27_p4, %s5119_s18), 0  ;;  %163 = sbr.rel (%p160_p3) target bundleno = 483 (0x1e3), region = 32 }
   0xa   : > { %v232_v2 = vld [vmem:[%s5109_s1] sm:$0xff] (!%p160_p3)  ;;  %v3573_v3 = vpack.c.bf16 (!%p160_p3), %v2447_v1, %v2446_v0  ;;  %v233_v4 = vld [vmem:[%s5109_s1 + $0x8] sm:$0xff] (!%p160_p3)  ;;  %v2449_v6 = vld [vmem:[%s5109_s1 + $0x198] sm:$0xff] (!%p160_p3)  ;;  %s190_s5 = sadd.s32 (!%p160_p3), %s4052_s12, %s2417_s25  ;;  %p199_p6 = scmp.lt.s32.totalorder (!%p160_p3), %s4056_s13, 5 }
   0xb   : > { %v3605_v7 = vpack.c.bf16 (!%p160_p3), %v233_v4, %v232_v2  ;;  %v3577_v8 = vpack.c.bf16 (!%p160_p3), %v2449_v6, %v2448_v5  ;;  %v234_v9 = vld [vmem:[%s5109_s1 + $0x10] sm:$0xff] (!%p160_p3)  ;;  %v235_v10 = vld [vmem:[%s5109_s1 + $0x18] sm:$0xff] (!%p160_p3)  ;;  %v2450_v11 = vld [vmem:[%s5109_s1 + $0x1a0] sm:$0xff] (!%p160_p3)  ;;  %p191_p5 = scmp.lt.s32.totalorder (!%p160_p3), %s190_s5, 11  ;;  %p201_p7 = scmp.lt.s32.totalorder (!%p160_p3), %s2419_s21, 31 }
   0xc   : > { %3574 = vmatprep.subr.bf16.mxu1 (!%p160_p3), %v3573_v3  ;;  %v3609_v12 = vpack.c.bf16 (!%p160_p3), %v235_v10, %v234_v9  ;;  %v2451_v13 = vld [vmem:[%s5109_s1 + $0x1a8] sm:$0xff] (!%p160_p3)  ;;  %v236_v14 = vld [vmem:[%s5109_s1 + $0x20] sm:$0xff] (!%p160_p3)  ;;  %v2452_v18 = vld [vmem:[%s5109_s1 + $0x1b0] sm:$0xff] (!%p160_p3) }
   0xd   : > { %v237_v15 = vld [vmem:[%s5109_s1 + $0x28] sm:$0xff] (!%p160_p3)  ;;  %3606 = vmatprep.subr.bf16.mxu0 (!%p160_p3), %v3605_v7  ;;  %3576 = vmatpush3.bf16.msra.mxu1 (!%p160_p3), %v3573_v3  ;;  %v3581_v16 = vpack.c.bf16 (!%p160_p3), %v2451_v13, %v2450_v11  ;;  %v2453_v19 = vld [vmem:[%s5109_s1 + $0x1b8] sm:$0xff] (!%p160_p3)  ;;  %v238_v20 = vld [vmem:[%s5109_s1 + $0x30] sm:$0xff] (!%p160_p3) }
   0xe   : > { %3608 = vmatpush3.bf16.msra.mxu0 (!%p160_p3), %v3605_v7  ;;  %3578 = vmatprep.subr.bf16.mxu1 (!%p160_p3), %v3577_v8  ;;  %v3613_v17 = vpack.c.bf16 (!%p160_p3), %v237_v15, %v236_v14  ;;  %v239_v21 = vld [vmem:[%s5109_s1 + $0x38] sm:$0xff] (!%p160_p3)  ;;  %v3585_v22 = vpack.c.bf16 (!%p160_p3), %v2453_v19, %v2452_v18  ;;  %v2454_v24 = vld [vmem:[%s5109_s1 + $0x1c0] sm:$0xff] (!%p160_p3)  ;;  %v2455_v25 = vld [vmem:[%s5109_s1 + $0x1c8] sm:$0xff] (!%p160_p3) }
   0xf   : > { %3610 = vmatprep.subr.bf16.mxu0 (!%p160_p3), %v3609_v12  ;;  %v3617_v23 = vpack.c.bf16 (!%p160_p3), %v239_v21, %v238_v20  ;;  %v240_v27 = vld [vmem:[%s5109_s1 + $0x40] sm:$0xff] (!%p160_p3)  ;;  %v241_v28 = vld [vmem:[%s5109_s1 + $0x48] sm:$0xff] (!%p160_p3)  ;;  %v3589_v30 = vpack.c.bf16 (!%p160_p3), %v2455_v25, %v2454_v24  ;;  %v2456_v32 = vld [vmem:[%s5109_s1 + $0x1d0] sm:$0xff] (!%p160_p3) }
  0x10   : > { %s5123_s5 = smov (!%p191_p5, %s190_s5), 11  ;;  %v3621_v31 = vpack.c.bf16 %v241_v28, %v240_v27  ;;  %v2457_v33 = vld [vmem:[%s5109_s1 + $0x1d8] sm:$0xff]  ;;  %v242_v34 = vld [vmem:[%s5109_s1 + $0x50] sm:$0xff]  ;;  %v2458_v38 = vld [vmem:[%s5109_s1 + $0x1e0] sm:$0xff]  ;;  %s5125_s13 = smov (!%p199_p6, %s4056_s13), 5 }
  0x11   : > { %s3989_s29 = smul.u32 240, %s5123_s5  ;;  %3580 = vmatpush3.bf16.msra.mxu1 %v3577_v8  ;;  %v243_v35 = vld [vmem:[%s5109_s1 + $0x58] sm:$0xff]  ;;  %v3593_v36 = vpack.c.bf16 %v2457_v33, %v2456_v32  ;;  %v2459_v39 = vld [vmem:[%s5109_s1 + $0x1e8] sm:$0xff]  ;;  %v244_v40 = vld [vmem:[%s5109_s1 + $0x60] sm:$0xff]  ;;  %s5127_s21 = smov (!%p201_p7, %s2419_s21), 31 }
  0x12   : > { %3612 = vmatpush3.bf16.msra.mxu0 %v3609_v12  ;;  %3582 = vmatprep.subr.bf16.mxu1 %v3581_v16  ;;  %v3625_v37 = vpack.c.bf16 %v243_v35, %v242_v34  ;;  %v245_v41 = vld [vmem:[%s5109_s1 + $0x68] sm:$0xff]  ;;  %v3597_v42 = vpack.c.bf16 %v2459_v39, %v2458_v38  ;;  %v2460_v44 = vld [vmem:[%s5109_s1 + $0x1f0] sm:$0xff]  ;;  %v2461_v45 = vld [vmem:[%s5109_s1 + $0x1f8] sm:$0xff]  ;;  %s2420_s12 = sshll.u32 %s5125_s13, 5 }
  0x13   : > { %s4177_s10 = scalar_lea.vmem %s5108_s0, %s3989_s29  ;;  %3614 = vmatprep.subr.bf16.mxu0 %v3613_v17  ;;  %v3629_v43 = vpack.c.bf16 %v245_v41, %v244_v40  ;;  %v246_v46 = vld [vmem:[%s5109_s1 + $0x70] sm:$0xff]  ;;  %v247_v47 = vld [vmem:[%s5109_s1 + $0x78] sm:$0xff]  ;;  %v3601_v48 = vpack.c.bf16 %v2461_v45, %v2460_v44  ;;  %v2518_v50 = vld [vmem:[%s5109_s1 + $0x200] sm:$0xff]  ;;  %s204_s22 = sadd.s32 %s2420_s12, %s5127_s21 }
  0x14   : > { %v4186_v26 = vld [vmem:[%s4177_s10 + $0x18] sm:$0xff]  ;;  %v4196_v29 = vld [vmem:[%s4177_s10] sm:$0xff]  ;;  %v3633_v49 = vpack.c.bf16 %v247_v47, %v246_v46  ;;  %v2519_v51 = vld [vmem:[%s5109_s1 + $0x208] sm:$0xff]  ;;  %s2421_s24 = sshll.u32 %s204_s22, 3 }
  0x15   : > { %2993 = vmatprep.mubr.f32.mxu1 %v4186_v26  ;;  %3584 = vmatpush3.bf16.msra.mxu1 %v3581_v16  ;;  %v2486_v52 = vld [vmem:[%s5109_s1 + $0x300] sm:$0xff]  ;;  %v2487_v53 = vld [vmem:[%s5109_s1 + $0x308] sm:$0xff]  ;;  %v3669_v54 = vpack.c.bf16 %v2519_v51, %v2518_v50  ;;  %v2520_v56 = vld [vmem:[%s5109_s1 + $0x210] sm:$0xff]  ;;  %s5010_s27 = scalar_lea.vmem %s5111_s3, %s2421_s24 }
  0x16   : > { %3061 = vmatprep.mubr.f32.mxu0 %v4196_v29  ;;  %3616 = vmatpush3.bf16.msra.mxu0 %v3613_v17  ;;  %v3637_v55 = vpack.c.bf16 %v2487_v53, %v2486_v52  ;;  %v2521_v57 = vld [vmem:[%s5109_s1 + $0x218] sm:$0xff]  ;;  %v4254_v58 = vld [vmem:[%s4177_s10 + $0x20] sm:$0xff]  ;;  %v2488_v59 = vld [vmem:[%s5109_s1 + $0x310] sm:$0xff] }
  0x17   : > { %3586 = vmatprep.subr.bf16.mxu1 %v3585_v22  ;;  %3618 = vmatprep.subr.bf16.mxu0 %v3617_v23  ;;  %v2489_v60 = vld [vmem:[%s5109_s1 + $0x318] sm:$0xff]  ;;  %v4263_v61 = vld [vmem:[%s4177_s10 + $0x8] sm:$0xff]  ;;  %v4269_v63 = vld [vmem:[%s4177_s10 + $0x10] sm:$0xff]  ;;  %v3673_v0 = vpack.c.bf16 %v2521_v57, %v2520_v56 }
  0x18   : > { %v4266_v62 = vld [vmem:[%s4177_s10 + $0x28] sm:$0xff]  ;;  %v3641_v1 = vpack.c.bf16 %v2489_v60, %v2488_v59  ;;  %v2522_v2 = vld [vmem:[%s5109_s1 + $0x220] sm:$0xff]  ;;  %v4280_v4 = vld [vmem:[%s4177_s10 + $0x30] sm:$0xff] }
  0x19   : > { %3588 = vmatpush3.bf16.msra.mxu1 %v3585_v22  ;;  %v2523_v3 = vld [vmem:[%s5109_s1 + $0x228] sm:$0xff]  ;;  %v2490_v5 = vld [vmem:[%s5109_s1 + $0x320] sm:$0xff]  ;;  %v4291_v7 = vld [vmem:[%s4177_s10 + $0x38] sm:$0xff] }
  0x1a   : > { %3620 = vmatpush3.bf16.msra.mxu0 %v3617_v23  ;;  %3590 = vmatprep.subr.bf16.mxu1 %v3589_v30  ;;  %v2491_v6 = vld [vmem:[%s5109_s1 + $0x328] sm:$0xff]  ;;  %v3677_v8 = vpack.c.bf16 %v2523_v3, %v2522_v2  ;;  %v2524_v10 = vld [vmem:[%s5109_s1 + $0x230] sm:$0xff]  ;;  %v2525_v11 = vld [vmem:[%s5109_s1 + $0x238] sm:$0xff] }
  0x1b   : > { %3622 = vmatprep.subr.bf16.mxu0 %v3621_v31  ;;  %v3645_v9 = vpack.c.bf16 %v2491_v6, %v2490_v5  ;;  %v4303_v12 = vld [vmem:[%s4177_s10 + $0x40] sm:$0xff]  ;;  %v2492_v13 = vld [vmem:[%s5109_s1 + $0x330] sm:$0xff]  ;;  %v2493_v14 = vld [vmem:[%s5109_s1 + $0x338] sm:$0xff]  ;;  %v3681_v16 = vpack.c.bf16 %v2525_v11, %v2524_v10 }
  0x1c   : > { %v4313_v15 = vld [vmem:[%s4177_s10 + $0x48] sm:$0xff]  ;;  %v3649_v17 = vpack.c.bf16 %v2493_v14, %v2492_v13  ;;  %v2526_v18 = vld [vmem:[%s5109_s1 + $0x240] sm:$0xff]  ;;  %v4325_v20 = vld [vmem:[%s4177_s10 + $0x50] sm:$0xff] }
  0x1d   : > { %3592 = vmatpush3.bf16.msra.mxu1 %v3589_v30  ;;  %v2527_v19 = vld [vmem:[%s5109_s1 + $0x248] sm:$0xff]  ;;  %v2494_v21 = vld [vmem:[%s5109_s1 + $0x340] sm:$0xff]  ;;  %v4335_v23 = vld [vmem:[%s4177_s10 + $0x58] sm:$0xff] }
  0x1e   : > { %3624 = vmatpush3.bf16.msra.mxu0 %v3621_v31  ;;  %3594 = vmatprep.subr.bf16.mxu1 %v3593_v36  ;;  %v2495_v22 = vld [vmem:[%s5109_s1 + $0x348] sm:$0xff]  ;;  %v3685_v24 = vpack.c.bf16 %v2527_v19, %v2526_v18  ;;  %v2528_v27 = vld [vmem:[%s5109_s1 + $0x250] sm:$0xff]  ;;  %v2529_v28 = vld [vmem:[%s5109_s1 + $0x258] sm:$0xff] }
  0x1f   : > { %3626 = vmatprep.subr.bf16.mxu0 %v3625_v37  ;;  %v3653_v25 = vpack.c.bf16 %v2495_v22, %v2494_v21  ;;  %v4347_v30 = vld [vmem:[%s4177_s10 + $0x60] sm:$0xff]  ;;  %v2496_v31 = vld [vmem:[%s5109_s1 + $0x350] sm:$0xff]  ;;  %v2497_v32 = vld [vmem:[%s5109_s1 + $0x358] sm:$0xff]  ;;  %v3689_v34 = vpack.c.bf16 %v2529_v28, %v2528_v27 }
  0x20   : > { %v4357_v33 = vld [vmem:[%s4177_s10 + $0x68] sm:$0xff]  ;;  %v3657_v35 = vpack.c.bf16 %v2497_v32, %v2496_v31  ;;  %v4369_v38 = vld [vmem:[%s4177_s10 + $0x70] sm:$0xff]  ;;  %v2498_v39 = vld [vmem:[%s5109_s1 + $0x360] sm:$0xff] }
  0x21   : > { %3596 = vmatpush3.bf16.msra.mxu1 %v3593_v36  ;;  %v2530_v36 = vld [vmem:[%s5109_s1 + $0x260] sm:$0xff]  ;;  %v2499_v40 = vld [vmem:[%s5109_s1 + $0x368] sm:$0xff]  ;;  %v4379_v41 = vld [vmem:[%s4177_s10 + $0x78] sm:$0xff] }
  0x22   : > { %3628 = vmatpush3.bf16.msra.mxu0 %v3625_v37  ;;  %3598 = vmatprep.subr.bf16.mxu1 %v3597_v42  ;;  %v2531_v37 = vld [vmem:[%s5109_s1 + $0x268] sm:$0xff]  ;;  %v2532_v44 = vld [vmem:[%s5109_s1 + $0x270] sm:$0xff]  ;;  %v2533_v45 = vld [vmem:[%s5109_s1 + $0x278] sm:$0xff] }
  0x23   : > { %3630 = vmatprep.subr.bf16.mxu0 %v3629_v43  ;;  %v4391_v46 = vld [vmem:[%s4177_s10 + $0x80] sm:$0xff]  ;;  %v2500_v47 = vld [vmem:[%s5109_s1 + $0x370] sm:$0xff]  ;;  %v3697_v50 = vpack.c.bf16 %v2533_v45, %v2532_v44  ;;  %v2503_v53 = vld [vmem:[%s5109_s1 + $0x88] sm:$0xff] }
  0x24   : > { %v2502_v52 = vld [vmem:[%s5109_s1 + $0x80] sm:$0xff]  ;;  %v2567_v56 = vld [vmem:[%s5109_s1 + $0x288] sm:$0xff]  ;;  %v4423_v57 = vld [vmem:[%s4177_s10 + $0x98] sm:$0xff] }
  0x25   : > { %3600 = vmatpush3.bf16.msra.mxu1 %v3597_v42  ;;  %v3693_v42 = vpack.c.bf16 %v2531_v37, %v2530_v36  ;;  %v3701_v59 = vpack.c.bf16 %v2503_v53, %v2502_v52  ;;  %v4439_v2 = vld [vmem:[%s4177_s10 + $0xb0] sm:$0xff]  ;;  %v4443_v3 = vld [vmem:[%s4177_s10 + $0xb8] sm:$0xff]  ;;  %v4449_v5 = vld [vmem:[%s4177_s10 + $0xc0] sm:$0xff] }
  0x26   : > { %3632 = vmatpush3.bf16.msra.mxu0 %v3629_v43  ;;  %3602 = vmatprep.subr.bf16.mxu1 %v3601_v48  ;;  %v3661_v43 = vpack.c.bf16 %v2499_v40, %v2498_v39  ;;  %v4453_v6 = vld [vmem:[%s4177_s10 + $0xc8] sm:$0xff]  ;;  %v2505_v10 = vld [vmem:[%s5109_s1 + $0x98] sm:$0xff]  ;;  %v2568_v11 = vld [vmem:[%s5109_s1 + $0x290] sm:$0xff] }
  0x27   : > { %3634 = vmatprep.subr.bf16.mxu0 %v3633_v49  ;;  %v2569_v13 = vld [vmem:[%s5109_s1 + $0x298] sm:$0xff]  ;;  %v2507_v18 = vld [vmem:[%s5109_s1 + $0xa8] sm:$0xff]  ;;  %v2570_v19 = vld [vmem:[%s5109_s1 + $0x2a0] sm:$0xff] }
  0x28   : > { %v2571_v21 = vld [vmem:[%s5109_s1 + $0x2a8] sm:$0xff]  ;;  %v2509_v27 = vld [vmem:[%s5109_s1 + $0xb8] sm:$0xff]  ;;  %v2572_v28 = vld [vmem:[%s5109_s1 + $0x2b0] sm:$0xff] }
  0x29   : > { %3604 = vmatpush3.bf16.msra.mxu1 %v3601_v48  ;;  %v2501_v48 = vld [vmem:[%s5109_s1 + $0x378] sm:$0xff]  ;;  %v2511_v36 = vld [vmem:[%s5109_s1 + $0xc8] sm:$0xff]  ;;  %v2574_v37 = vld [vmem:[%s5109_s1 + $0x2c0] sm:$0xff] }
  0x2a   : > { %3636 = vmatpush3.bf16.msra.mxu0 %v3633_v49  ;;  %3670 = vmatprep.subr.bf16.mxu1 %v3669_v54  ;;  %v4401_v49 = vld [vmem:[%s4177_s10 + $0x88] sm:$0xff]  ;;  %v3665_v51 = vpack.c.bf16 %v2501_v48, %v2500_v47  ;;  %v2573_v31 = vld [vmem:[%s5109_s1 + $0x2b8] sm:$0xff]  ;;  %v2576_v45 = vld [vmem:[%s5109_s1 + $0x2d0] sm:$0xff] }
  0x2b   : > { %3638 = vmatprep.subr.bf16.mxu0 %v3637_v55  ;;  %v2575_v39 = vld [vmem:[%s5109_s1 + $0x2c8] sm:$0xff]  ;;  %v2513_v44 = vld [vmem:[%s5109_s1 + $0xd8] sm:$0xff]  ;;  %v2578_v53 = vld [vmem:[%s5109_s1 + $0x2e0] sm:$0xff] }
  0x2c   : > { %2994 = vmatmul.mubr.f32.vlgmr.msra.gmra.mrb[0].mxu1 %v4254_v58  ;;  %v2577_v47 = vld [vmem:[%s5109_s1 + $0x2d8] sm:$0xff]  ;;  %v2515_v52 = vld [vmem:[%s5109_s1 + $0xe8] sm:$0xff] }
  0x2d   : > { %3062 = vmatmul.mubr.f32.vlgmr.msra.gmra.mrb[0].mxu0 %v4263_v61  ;;  %3672 = vmatpush3.bf16.msra.mxu1 %v3669_v54  ;;  %v4413_v54 = vld [vmem:[%s4177_s10 + $0x90] sm:$0xff] }
  0x2e   : > { %2996 = vmatprep.mubr.f32.mxu1 %v4266_v62  ;;  %3064 = vmatprep.mubr.f32.mxu0 %v4269_v63 }
  0x2f   : > { %3640 = vmatpush3.bf16.msra.mxu0 %v3637_v55  ;;  %3674 = vmatprep.subr.bf16.mxu1 %v3673_v0  ;;  %v2566_v55 = vld [vmem:[%s5109_s1 + $0x280] sm:$0xff] }
  0x30   : > { %2997 = vmatmul.mubr.f32.gmra.mrb[2].mxu1 %v4280_v4  ;;  %3642 = vmatprep.subr.bf16.mxu0 %v3641_v1  ;;  %v3765_v60 = vpack.c.bf16 %v2567_v56, %v2566_v55  ;;  %v2579_v55 = vld [vmem:[%s5109_s1 + $0x2e8] sm:$0xff] }
  0x31   : > { %3065 = vmatmul.mubr.f32.gmra.mrb[2].mxu0 %v4186_v26  ;;  %2999 = vmatprep.mubr.f32.mxu1 %v4291_v7 }
  0x32   : > { %3067 = vmatprep.mubr.f32.mxu0 %v4254_v58  ;;  %3676 = vmatpush3.bf16.msra.mxu1 %v3673_v0  ;;  %v4429_v0 = vld [vmem:[%s4177_s10 + $0xa0] sm:$0xff] }
  0x33   : > { %3644 = vmatpush3.bf16.msra.mxu0 %v3641_v1  ;;  %3678 = vmatprep.subr.bf16.mxu1 %v3677_v8  ;;  %v4433_v1 = vld [vmem:[%s4177_s10 + $0xa8] sm:$0xff] }
  0x34   : > { %3000 = vmatmul.mubr.f32.gmra.mrb[4].mxu1 %v4303_v12  ;;  %3646 = vmatprep.subr.bf16.mxu0 %v3645_v9 }
  0x35   : > { %3068 = vmatmul.mubr.f32.gmra.mrb[4].mxu0 %v4266_v62  ;;  %3002 = vmatprep.mubr.f32.mxu1 %v4313_v15 }
  0x36   : > { %3070 = vmatprep.mubr.f32.mxu0 %v4280_v4  ;;  %3680 = vmatpush3.bf16.msra.mxu1 %v3677_v8  ;;  %v4459_v8 = vld [vmem:[%s4177_s10 + $0xd0] sm:$0xff] }
  0x37   : > { %3648 = vmatpush3.bf16.msra.mxu0 %v3645_v9  ;;  %3682 = vmatprep.subr.bf16.mxu1 %v3681_v16  ;;  %v2504_v9 = vld [vmem:[%s5109_s1 + $0x90] sm:$0xff] }
  0x38   : > { %3003 = vmatmul.mubr.f32.gmra.mrb[6].mxu1 %v4325_v20  ;;  %3650 = vmatprep.subr.bf16.mxu0 %v3649_v17  ;;  %v3705_v14 = vpack.c.bf16 %v2505_v10, %v2504_v9  ;;  %v2517_v9 = vld [vmem:[%s5109_s1 + $0xf8] sm:$0xff]  ;;  %v2580_v10 = vld [vmem:[%s5109_s1 + $0x2f0] sm:$0xff] }
  0x39   : > { %3071 = vmatmul.mubr.f32.gmra.mrb[6].mxu0 %v4291_v7  ;;  %3005 = vmatprep.mubr.f32.mxu1 %v4335_v23 }
  0x3a   : > { %3073 = vmatprep.mubr.f32.mxu0 %v4303_v12  ;;  %3684 = vmatpush3.bf16.msra.mxu1 %v3681_v16  ;;  %v3769_v16 = vpack.c.bf16 %v2569_v13, %v2568_v11  ;;  %v2581_v11 = vld [vmem:[%s5109_s1 + $0x2f8] sm:$0xff] }
  0x3b   : > { %3652 = vmatpush3.bf16.msra.mxu0 %v3649_v17  ;;  %3686 = vmatprep.subr.bf16.mxu1 %v3685_v24  ;;  %v2506_v17 = vld [vmem:[%s5109_s1 + $0xa0] sm:$0xff] }
  0x3c   : > { %3006 = vmatmul.mubr.f32.gmra.mrb[8].mxu1 %v4347_v30  ;;  %3654 = vmatprep.subr.bf16.mxu0 %v3653_v25  ;;  %v3709_v22 = vpack.c.bf16 %v2507_v18, %v2506_v17  ;;  %v2535_v17 = vld [vmem:[%s5109_s1 + $0x388] sm:$0xff]  ;;  %v2550_v18 = vld [vmem:[%s5109_s1 + $0x100] sm:$0xff] }
  0x3d   : > { %3074 = vmatmul.mubr.f32.gmra.mrb[8].mxu0 %v4313_v15  ;;  %3008 = vmatprep.mubr.f32.mxu1 %v4357_v33 }
  0x3e   : > { %3076 = vmatprep.mubr.f32.mxu0 %v4325_v20  ;;  %3688 = vmatpush3.bf16.msra.mxu1 %v3685_v24  ;;  %v3773_v24 = vpack.c.bf16 %v2571_v21, %v2570_v19  ;;  %v2551_v19 = vld [vmem:[%s5109_s1 + $0x108] sm:$0xff] }
  0x3f   : > { %3656 = vmatpush3.bf16.msra.mxu0 %v3653_v25  ;;  %3690 = vmatprep.subr.bf16.mxu1 %v3689_v34  ;;  %v2508_v25 = vld [vmem:[%s5109_s1 + $0xb0] sm:$0xff] }
  0x40   : > { %3009 = vmatmul.mubr.f32.gmra.mrb[10].mxu1 %v4369_v38  ;;  %3658 = vmatprep.subr.bf16.mxu0 %v3657_v35  ;;  %v3713_v32 = vpack.c.bf16 %v2509_v27, %v2508_v25  ;;  %v4606_v25 = vld [vmem:[%s4177_s10 + $0xe0] sm:$0xff]  ;;  %v4613_v27 = vld [vmem:[%s4177_s10 + $0xe8] sm:$0xff] }
  0x41   : > { %3077 = vmatmul.mubr.f32.gmra.mrb[10].mxu0 %v4335_v23  ;;  %3011 = vmatprep.mubr.f32.mxu1 %v4379_v41 }
  0x42   : > { %3079 = vmatprep.mubr.f32.mxu0 %v4347_v30  ;;  %3692 = vmatpush3.bf16.msra.mxu1 %v3689_v34  ;;  %v3777_v34 = vpack.c.bf16 %v2573_v31, %v2572_v28  ;;  %v2536_v28 = vld [vmem:[%s5109_s1 + $0x390] sm:$0xff]  ;;  %v2537_v31 = vld [vmem:[%s5109_s1 + $0x398] sm:$0xff] }
  0x43   : > { %3660 = vmatpush3.bf16.msra.mxu0 %v3657_v35  ;;  %3694 = vmatprep.subr.bf16.mxu1 %v3693_v42  ;;  %v2510_v35 = vld [vmem:[%s5109_s1 + $0xc0] sm:$0xff] }
  0x44   : > { %3012 = vmatmul.mubr.f32.gmra.mrb[12].mxu1 %v4391_v46  ;;  %3662 = vmatprep.subr.bf16.mxu0 %v3661_v43  ;;  %v3717_v40 = vpack.c.bf16 %v2511_v36, %v2510_v35  ;;  %v3737_v35 = vpack.c.bf16 %v2537_v31, %v2536_v28 }
  0x45   : > { %3080 = vmatmul.mubr.f32.gmra.mrb[12].mxu0 %v4357_v33  ;;  %3014 = vmatprep.mubr.f32.mxu1 %v4401_v49 }
  0x46   : > { %3082 = vmatprep.mubr.f32.mxu0 %v4369_v38  ;;  %3696 = vmatpush3.bf16.msra.mxu1 %v3693_v42  ;;  %v3781_v42 = vpack.c.bf16 %v2575_v39, %v2574_v37  ;;  %v2538_v37 = vld [vmem:[%s5109_s1 + $0x3a0] sm:$0xff]  ;;  %v2539_v39 = vld [vmem:[%s5109_s1 + $0x3a8] sm:$0xff] }
  0x47   : > { %3664 = vmatpush3.bf16.msra.mxu0 %v3661_v43  ;;  %3698 = vmatprep.subr.bf16.mxu1 %v3697_v50  ;;  %v2512_v43 = vld [vmem:[%s5109_s1 + $0xd0] sm:$0xff] }
  0x48   : > { %3015 = vmatmul.mubr.f32.gmra.mrb[14].mxu1 %v4413_v54  ;;  %3666 = vmatprep.subr.bf16.mxu0 %v3665_v51  ;;  %v3721_v48 = vpack.c.bf16 %v2513_v44, %v2512_v43  ;;  %v3741_v43 = vpack.c.bf16 %v2539_v39, %v2538_v37 }
  0x49   : > { %3083 = vmatmul.mubr.f32.gmra.mrb[14].mxu0 %v4379_v41  ;;  %3017 = vmatprep.mubr.f32.mxu1 %v4423_v57 }
  0x4a   : > { %3085 = vmatprep.mubr.f32.mxu0 %v4391_v46  ;;  %3700 = vmatpush3.bf16.msra.mxu1 %v3697_v50  ;;  %v3785_v50 = vpack.c.bf16 %v2577_v47, %v2576_v45  ;;  %v2540_v45 = vld [vmem:[%s5109_s1 + $0x3b0] sm:$0xff]  ;;  %v2541_v47 = vld [vmem:[%s5109_s1 + $0x3b8] sm:$0xff] }
  0x4b   : > { %3668 = vmatpush3.bf16.msra.mxu0 %v3665_v51  ;;  %3702 = vmatprep.subr.bf16.mxu1 %v3701_v59  ;;  %v2514_v51 = vld [vmem:[%s5109_s1 + $0xe0] sm:$0xff] }
  0x4c   : > { %3018 = vmatmul.mubr.f32.gmra.mrb[16].mxu1 %v4429_v0  ;;  %3766 = vmatprep.subr.bf16.mxu0 %v3765_v60  ;;  %v3725_v56 = vpack.c.bf16 %v2515_v52, %v2514_v51  ;;  %v3745_v51 = vpack.c.bf16 %v2541_v47, %v2540_v45  ;;  %v2585_v45 = vld [vmem:[%s5109_s1 + $0x418] sm:$0xff] }
  0x4d   : > { %3086 = vmatmul.mubr.f32.gmra.mrb[16].mxu0 %v4401_v49  ;;  %3020 = vmatprep.mubr.f32.mxu1 %v4433_v1 }
  0x4e   : > { %3088 = vmatprep.mubr.f32.mxu0 %v4413_v54 }
  0x50   : > { %3021 = vmatmul.mubr.f32.gmra.mrb[18].mxu1 %v4439_v2 }
  0x51   : > { %3089 = vmatmul.mubr.f32.gmra.mrb[18].mxu0 %v4423_v57  ;;  %3023 = vmatprep.mubr.f32.mxu1 %v4443_v3 }
  0x52   : > { %3091 = vmatprep.mubr.f32.mxu0 %v4429_v0 }
  0x54   : > { %3024 = vmatmul.mubr.f32.gmra.mrb[20].mxu1 %v4449_v5 }
  0x55   : > { %3092 = vmatmul.mubr.f32.gmra.mrb[20].mxu0 %v4433_v1  ;;  %3026 = vmatprep.mubr.f32.mxu1 %v4453_v6 }
  0x56   : > { %3094 = vmatprep.mubr.f32.mxu0 %v4439_v2 }
  0x58   : > { %3027 = vmatmul.mubr.f32.gmra.mrb[22].mxu1 %v4459_v8 }
  0x59   : > { %3095 = vmatmul.mubr.f32.gmra.mrb[22].mxu0 %v4443_v3  ;;  %3197 = vmatprep.mubr.f32.mxu1 %v4186_v26 }
  0x5a   : > { %3129 = vmatprep.mubr.f32.mxu0 %v4280_v4 }
  0x5c   : > { %3198 = vmatmul.mubr.f32.vlgmr.msra.gmra.mrb[24].mxu1 %v4254_v58 }
  0x5d   : > { %3130 = vmatmul.mubr.f32.vlgmr.msra.gmra.mrb[0].mxu0 %v4291_v7  ;;  %3704 = vmatpush3.bf16.msra.mxu1 %v3701_v59  ;;  %v3789_v59 = vpack.c.bf16 %v2579_v55, %v2578_v53  ;;  %v2542_v53 = vld [vmem:[%s5109_s1 + $0x3c0] sm:$0xff]  ;;  %v2543_v55 = vld [vmem:[%s5109_s1 + $0x3c8] sm:$0xff] }
  0x5e   : > { %3132 = vmatprep.mubr.f32.mxu0 %v4303_v12  ;;  %3200 = vmatprep.mubr.f32.mxu1 %v4266_v62 }
  0x5f   : > { %3768 = vmatpush3.bf16.msra.mxu0 %v3765_v60  ;;  %3706 = vmatprep.subr.bf16.mxu1 %v3705_v14  ;;  %v2516_v60 = vld [vmem:[%s5109_s1 + $0xf0] sm:$0xff] }
  0x60   : > { %3201 = vmatmul.mubr.f32.gmra.mrb[26].mxu1 %v4280_v4  ;;  %3770 = vmatprep.subr.bf16.mxu0 %v3769_v16  ;;  %v3729_v13 = vpack.c.bf16 %v2517_v9, %v2516_v60  ;;  %v3749_v60 = vpack.c.bf16 %v2543_v55, %v2542_v53  ;;  %v2591_v53 = vld [vmem:[%s5109_s1 + $0x448] sm:$0xff]  ;;  %v2593_v55 = vld [vmem:[%s5109_s1 + $0x458] sm:$0xff] }
  0x61   : > { %3133 = vmatmul.mubr.f32.gmra.mrb[24].mxu0 %v4313_v15  ;;  %3203 = vmatprep.mubr.f32.mxu1 %v4291_v7 }
  0x62   : > { %3135 = vmatprep.mubr.f32.mxu0 %v4325_v20  ;;  %3708 = vmatpush3.bf16.msra.mxu1 %v3705_v14  ;;  %v3793_v14 = vpack.c.bf16 %v2581_v11, %v2580_v10  ;;  %v2544_v10 = vld [vmem:[%s5109_s1 + $0x3d0] sm:$0xff]  ;;  %v2545_v11 = vld [vmem:[%s5109_s1 + $0x3d8] sm:$0xff] }
  0x63   : > { %3772 = vmatpush3.bf16.msra.mxu0 %v3769_v16  ;;  %3710 = vmatprep.subr.bf16.mxu1 %v3709_v22  ;;  %v2534_v16 = vld [vmem:[%s5109_s1 + $0x380] sm:$0xff] }
  0x64   : > { %3204 = vmatmul.mubr.f32.gmra.mrb[28].mxu1 %v4303_v12  ;;  %3774 = vmatprep.subr.bf16.mxu0 %v3773_v24  ;;  %v3733_v21 = vpack.c.bf16 %v2535_v17, %v2534_v16  ;;  %v3753_v16 = vpack.c.bf16 %v2545_v11, %v2544_v10  ;;  %v2597_v10 = vld [vmem:[%s5109_s1 + $0x478] sm:$0xff] }
  0x65   : > { %3136 = vmatmul.mubr.f32.gmra.mrb[26].mxu0 %v4335_v23  ;;  %3206 = vmatprep.mubr.f32.mxu1 %v4313_v15 }
  0x66   : > { %3138 = vmatprep.mubr.f32.mxu0 %v4347_v30  ;;  %3712 = vmatpush3.bf16.msra.mxu1 %v3709_v22  ;;  %v3797_v22 = vpack.c.bf16 %v2551_v19, %v2550_v18  ;;  %v2546_v18 = vld [vmem:[%s5109_s1 + $0x3e0] sm:$0xff]  ;;  %v2547_v19 = vld [vmem:[%s5109_s1 + $0x3e8] sm:$0xff] }
  0x67   : > { %3776 = vmatpush3.bf16.msra.mxu0 %v3773_v24  ;;  %3714 = vmatprep.subr.bf16.mxu1 %v3713_v32  ;;  %v4603_v24 = vld [vmem:[%s4177_s10 + $0xd8] sm:$0xff]  ;;  %v3757_v28 = vpack.c.bf16 %v2547_v19, %v2546_v18 }
  0x68   : > { %3207 = vmatmul.mubr.f32.gmra.mrb[30].mxu1 %v4325_v20  ;;  %3778 = vmatprep.subr.bf16.mxu0 %v3777_v34 }
  0x69   : > { %3139 = vmatmul.mubr.f32.gmra.mrb[6].mxu0 %v4357_v33  ;;  %3209 = vmatprep.mubr.f32.mxu1 %v4335_v23 }
  0x6a   : > { %3141 = vmatprep.mubr.f32.mxu0 %v4369_v38  ;;  %3716 = vmatpush3.bf16.msra.mxu1 %v3713_v32  ;;  %v2552_v32 = vld [vmem:[%s5109_s1 + $0x110] sm:$0xff] }
  0x6b   : > { %3780 = vmatpush3.bf16.msra.mxu0 %v3777_v34  ;;  %3718 = vmatprep.subr.bf16.mxu1 %v3717_v40  ;;  %v2553_v34 = vld [vmem:[%s5109_s1 + $0x118] sm:$0xff] }
  0x6c   : > { %3210 = vmatmul.mubr.f32.gmra.mrb[32].mxu1 %v4347_v30  ;;  %3782 = vmatprep.subr.bf16.mxu0 %v3781_v42  ;;  %v3801_v36 = vpack.c.bf16 %v2553_v34, %v2552_v32  ;;  %v2548_v32 = vld [vmem:[%s5109_s1 + $0x3f0] sm:$0xff]  ;;  %v2549_v34 = vld [vmem:[%s5109_s1 + $0x3f8] sm:$0xff] }
  0x6d   : > { %3142 = vmatmul.mubr.f32.gmra.mrb[28].mxu0 %v4379_v41  ;;  %3212 = vmatprep.mubr.f32.mxu1 %v4357_v33  ;;  %v3761_v37 = vpack.c.bf16 %v2549_v34, %v2548_v32 }
  0x6e   : > { %3144 = vmatprep.mubr.f32.mxu0 %v4391_v46  ;;  %3720 = vmatpush3.bf16.msra.mxu1 %v3717_v40  ;;  %v2554_v40 = vld [vmem:[%s5109_s1 + $0x120] sm:$0xff] }
  0x6f   : > { %3784 = vmatpush3.bf16.msra.mxu0 %v3781_v42  ;;  %3722 = vmatprep.subr.bf16.mxu1 %v3721_v48  ;;  %v2555_v42 = vld [vmem:[%s5109_s1 + $0x128] sm:$0xff] }
  0x70   : > { %3213 = vmatmul.mubr.f32.gmra.mrb[34].mxu1 %v4369_v38  ;;  %3786 = vmatprep.subr.bf16.mxu0 %v3785_v50  ;;  %v3805_v44 = vpack.c.bf16 %v2555_v42, %v2554_v40  ;;  %v2582_v40 = vld [vmem:[%s5109_s1 + $0x400] sm:$0xff]  ;;  %v2583_v42 = vld [vmem:[%s5109_s1 + $0x408] sm:$0xff] }
  0x71   : > { %3145 = vmatmul.mubr.f32.gmra.mrb[30].mxu0 %v4401_v49  ;;  %3215 = vmatprep.mubr.f32.mxu1 %v4379_v41 }
  0x72   : > { %3147 = vmatprep.mubr.f32.mxu0 %v4413_v54  ;;  %3724 = vmatpush3.bf16.msra.mxu1 %v3721_v48  ;;  %v2556_v48 = vld [vmem:[%s5109_s1 + $0x130] sm:$0xff] }
  0x73   : > { %3788 = vmatpush3.bf16.msra.mxu0 %v3785_v50  ;;  %3726 = vmatprep.subr.bf16.mxu1 %v3725_v56  ;;  %v2557_v50 = vld [vmem:[%s5109_s1 + $0x138] sm:$0xff] }
  0x74   : > { %3216 = vmatmul.mubr.f32.gmra.mrb[36].mxu1 %v4391_v46  ;;  %3790 = vmatprep.subr.bf16.mxu0 %v3789_v59  ;;  %v3809_v52 = vpack.c.bf16 %v2557_v50, %v2556_v48  ;;  %v2586_v48 = vld [vmem:[%s5109_s1 + $0x420] sm:$0xff]  ;;  %v2587_v50 = vld [vmem:[%s5109_s1 + $0x428] sm:$0xff] }
  0x75   : > { %3148 = vmatmul.mubr.f32.gmra.mrb[12].mxu0 %v4423_v57  ;;  %3218 = vmatprep.mubr.f32.mxu1 %v4401_v49 }
  0x76   : > { %3150 = vmatprep.mubr.f32.mxu0 %v4429_v0  ;;  %3728 = vmatpush3.bf16.msra.mxu1 %v3725_v56  ;;  %v2558_v56 = vld [vmem:[%s5109_s1 + $0x140] sm:$0xff] }
  0x77   : > { %3792 = vmatpush3.bf16.msra.mxu0 %v3789_v59  ;;  %3730 = vmatprep.subr.bf16.mxu1 %v3729_v13  ;;  %v2559_v59 = vld [vmem:[%s5109_s1 + $0x148] sm:$0xff] }
  0x78   : > { %3219 = vmatmul.mubr.f32.gmra.mrb[38].mxu1 %v4413_v54  ;;  %3794 = vmatprep.subr.bf16.mxu0 %v3793_v14  ;;  %v3813_v9 = vpack.c.bf16 %v2559_v59, %v2558_v56  ;;  %v2594_v56 = vld [vmem:[%s5109_s1 + $0x460] sm:$0xff]  ;;  %v2595_v59 = vld [vmem:[%s5109_s1 + $0x468] sm:$0xff] }
  0x79   : > { %3151 = vmatmul.mubr.f32.gmra.mrb[32].mxu0 %v4433_v1  ;;  %3221 = vmatprep.mubr.f32.mxu1 %v4423_v57 }
  0x7a   : > { %3153 = vmatprep.mubr.f32.mxu0 %v4439_v2  ;;  %3732 = vmatpush3.bf16.msra.mxu1 %v3729_v13  ;;  %v2560_v13 = vld [vmem:[%s5109_s1 + $0x150] sm:$0xff] }
  0x7b   : > { %3796 = vmatpush3.bf16.msra.mxu0 %v3793_v14  ;;  %3734 = vmatprep.subr.bf16.mxu1 %v3733_v21  ;;  %v2561_v14 = vld [vmem:[%s5109_s1 + $0x158] sm:$0xff] }
  0x7c   : > { %3222 = vmatmul.mubr.f32.gmra.mrb[40].mxu1 %v4429_v0  ;;  %3798 = vmatprep.subr.bf16.mxu0 %v3797_v22  ;;  %v3817_v17 = vpack.c.bf16 %v2561_v14, %v2560_v13 }
  0x7d   : > { %3154 = vmatmul.mubr.f32.gmra.mrb[34].mxu0 %v4443_v3  ;;  %3224 = vmatprep.mubr.f32.mxu1 %v4433_v1 }
  0x7e   : > { %3156 = vmatprep.mubr.f32.mxu0 %v4449_v5 }
  0x80   : > { %3225 = vmatmul.mubr.f32.gmra.mrb[42].mxu1 %v4439_v2 }
  0x81   : > { %3157 = vmatmul.mubr.f32.gmra.mrb[18].mxu0 %v4453_v6  ;;  %3227 = vmatprep.mubr.f32.mxu1 %v4443_v3 }
  0x82   : > { %3159 = vmatprep.mubr.f32.mxu0 %v4459_v8 }
  0x84   : > { %3228 = vmatmul.mubr.f32.gmra.mrb[44].mxu1 %v4449_v5 }
  0x85   : > { %3160 = vmatmul.mubr.f32.gmra.mrb[36].mxu0 %v4603_v24  ;;  %3230 = vmatprep.mubr.f32.mxu1 %v4453_v6 }
  0x86   : > { %3162 = vmatprep.mubr.f32.mxu0 %v4606_v25 }
  0x88   : > { %3231 = vmatmul.mubr.f32.gmra.mrb[46].mxu1 %v4459_v8 }
  0x89   : > { %3163 = vmatmul.mubr.f32.gmra.mrb[38].mxu0 %v4613_v27  ;;  %3265 = vmatprep.mubr.f32.mxu1 %v4196_v29 }
  0x8a   : > { %3401 = vmatprep.mubr.f32.mxu0 %v4186_v26 }
  0x8c   : > { %3266 = vmatmul.mubr.f32.vlgmr.msra.gmra.mrb[24].mxu1 %v4263_v61 }
  0x8d   : > { %3402 = vmatmul.mubr.f32.vlgmr.msra.gmra.mrb[40].mxu0 %v4254_v58  ;;  %3736 = vmatpush3.bf16.msra.mxu1 %v3733_v21  ;;  %v2562_v21 = vld [vmem:[%s5109_s1 + $0x160] sm:$0xff] }
  0x8e   : > { %3268 = vmatprep.mubr.f32.mxu1 %v4269_v63  ;;  %3404 = vmatprep.mubr.f32.mxu0 %v4266_v62 }
  0x8f   : > { %3800 = vmatpush3.bf16.msra.mxu0 %v3797_v22  ;;  %3738 = vmatprep.subr.bf16.mxu1 %v3737_v35  ;;  %v2563_v22 = vld [vmem:[%s5109_s1 + $0x168] sm:$0xff] }
  0x90   : > { %3269 = vmatmul.mubr.f32.gmra.mrb[26].mxu1 %v4186_v26  ;;  %3802 = vmatprep.subr.bf16.mxu0 %v3801_v36  ;;  %v3821_v31 = vpack.c.bf16 %v2563_v22, %v2562_v21 }
  0x91   : > { %3405 = vmatmul.mubr.f32.gmra.mrb[42].mxu0 %v4280_v4  ;;  %3271 = vmatprep.mubr.f32.mxu1 %v4254_v58 }
  0x92   : > { %3740 = vmatpush3.bf16.msra.mxu1 %v3737_v35  ;;  %3407 = vmatprep.mubr.f32.mxu0 %v4291_v7  ;;  %v2564_v35 = vld [vmem:[%s5109_s1 + $0x170] sm:$0xff] }
  0x93   : > { %3804 = vmatpush3.bf16.msra.mxu0 %v3801_v36  ;;  %3742 = vmatprep.subr.bf16.mxu1 %v3741_v43  ;;  %v2565_v36 = vld [vmem:[%s5109_s1 + $0x178] sm:$0xff] }
  0x94   : > { %3272 = vmatmul.mubr.f32.gmra.mrb[28].mxu1 %v4266_v62  ;;  %3806 = vmatprep.subr.bf16.mxu0 %v3805_v44  ;;  %v3825_v39 = vpack.c.bf16 %v2565_v36, %v2564_v35 }
  0x95   : > { %3408 = vmatmul.mubr.f32.gmra.mrb[44].mxu0 %v4303_v12  ;;  %3274 = vmatprep.mubr.f32.mxu1 %v4280_v4 }
  0x96   : > { %3410 = vmatprep.mubr.f32.mxu0 %v4313_v15  ;;  %3744 = vmatpush3.bf16.msra.mxu1 %v3741_v43  ;;  %v3829_v43 = vpack.c.bf16 %v2583_v42, %v2582_v40 }
  0x97   : > { %3808 = vmatpush3.bf16.msra.mxu0 %v3805_v44  ;;  %3746 = vmatprep.subr.bf16.mxu1 %v3745_v51  ;;  %v2584_v44 = vld [vmem:[%s5109_s1 + $0x410] sm:$0xff] }
  0x98   : > { %3275 = vmatmul.mubr.f32.gmra.mrb[30].mxu1 %v4291_v7  ;;  %3810 = vmatprep.subr.bf16.mxu0 %v3809_v52  ;;  %v3833_v47 = vpack.c.bf16 %v2585_v45, %v2584_v44 }
  0x99   : > { %3411 = vmatmul.mubr.f32.gmra.mrb[46].mxu0 %v4325_v20  ;;  %3277 = vmatprep.mubr.f32.mxu1 %v4303_v12 }
  0x9a   : > { %3413 = vmatprep.mubr.f32.mxu0 %v4335_v23  ;;  %3748 = vmatpush3.bf16.msra.mxu1 %v3745_v51  ;;  %v2588_v51 = vld [vmem:[%s5109_s1 + $0x430] sm:$0xff] }
  0x9b   : > { %3812 = vmatpush3.bf16.msra.mxu0 %v3809_v52  ;;  %3750 = vmatprep.subr.bf16.mxu1 %v3749_v60  ;;  %v2589_v52 = vld [vmem:[%s5109_s1 + $0x438] sm:$0xff] }
  0x9c   : > { %3278 = vmatmul.mubr.f32.gmra.mrb[32].mxu1 %v4313_v15  ;;  %3814 = vmatprep.subr.bf16.mxu0 %v3813_v9 }
  0x9d   : > { %3414 = vmatmul.mubr.f32.gmra.mrb[48].mxu0 %v4347_v30  ;;  %3280 = vmatprep.mubr.f32.mxu1 %v4325_v20 }
  0x9e   : > { %3416 = vmatprep.mubr.f32.mxu0 %v4357_v33  ;;  %3752 = vmatpush3.bf16.msra.mxu1 %v3749_v60  ;;  %v3853_v60 = vpack.c.bf16 %v2595_v59, %v2594_v56 }
  0x9f   : > { %3816 = vmatpush3.bf16.msra.mxu0 %v3813_v9  ;;  %3754 = vmatprep.subr.bf16.mxu1 %v3753_v16  ;;  %v2596_v9 = vld [vmem:[%s5109_s1 + $0x470] sm:$0xff] }
  0xa0   : > { %3281 = vmatmul.mubr.f32.gmra.mrb[34].mxu1 %v4335_v23  ;;  %3818 = vmatprep.subr.bf16.mxu0 %v3817_v17  ;;  %v3857_v11 = vpack.c.bf16 %v2597_v10, %v2596_v9 }
  0xa1   : > { %3417 = vmatmul.mubr.f32.gmra.mrb[50].mxu0 %v4369_v38  ;;  %3283 = vmatprep.mubr.f32.mxu1 %v4347_v30 }
  0xa2   : > { %3419 = vmatprep.mubr.f32.mxu0 %v4379_v41  ;;  %3756 = vmatpush3.bf16.msra.mxu1 %v3753_v16 }
  0xa3   : > { %3820 = vmatpush3.bf16.msra.mxu0 %v3817_v17  ;;  %3758 = vmatprep.subr.bf16.mxu1 %v3757_v28 }
  0xa4   : > { %3284 = vmatmul.mubr.f32.gmra.mrb[36].mxu1 %v4357_v33  ;;  %3822 = vmatprep.subr.bf16.mxu0 %v3821_v31 }
  0xa5   : > { %3420 = vmatmul.mubr.f32.gmra.mrb[52].mxu0 %v4391_v46  ;;  %3286 = vmatprep.mubr.f32.mxu1 %v4369_v38 }
  0xa6   : > { %3422 = vmatprep.mubr.f32.mxu0 %v4401_v49  ;;  %3760 = vmatpush3.bf16.msra.mxu1 %v3757_v28 }
  0xa7   : > { %3824 = vmatpush3.bf16.msra.mxu0 %v3821_v31  ;;  %3762 = vmatprep.subr.bf16.mxu1 %v3761_v37 }
  0xa8   : > { %3287 = vmatmul.mubr.f32.gmra.mrb[38].mxu1 %v4379_v41  ;;  %3826 = vmatprep.subr.bf16.mxu0 %v3825_v39 }
  0xa9   : > { %3423 = vmatmul.mubr.f32.gmra.mrb[54].mxu0 %v4413_v54  ;;  %3289 = vmatprep.mubr.f32.mxu1 %v4391_v46 }
  0xaa   : > { %3425 = vmatprep.mubr.f32.mxu0 %v4423_v57  ;;  %3764 = vmatpush3.bf16.msra.mxu1 %v3761_v37 }
  0xab   : > { %3828 = vmatpush3.bf16.msra.mxu0 %v3825_v39  ;;  %3861 = vmatprep.subr.bf16.mxu1 %v3829_v43 }
  0xac   : > { %3290 = vmatmul.mubr.f32.gmra.mrb[40].mxu1 %v4401_v49  ;;  %3830 = vmatprep.subr.bf16.mxu0 %v3829_v43 }
  0xad   : > { %3426 = vmatmul.mubr.f32.gmra.mrb[56].mxu0 %v4429_v0  ;;  %3292 = vmatprep.mubr.f32.mxu1 %v4413_v54 }
  0xae   : > { %3428 = vmatprep.mubr.f32.mxu0 %v4433_v1 }
  0xb0   : > { %3293 = vmatmul.mubr.f32.gmra.mrb[42].mxu1 %v4423_v57 }
  0xb1   : > { %3429 = vmatmul.mubr.f32.gmra.mrb[58].mxu0 %v4439_v2  ;;  %3295 = vmatprep.mubr.f32.mxu1 %v4429_v0 }
  0xb2   : > { %3431 = vmatprep.mubr.f32.mxu0 %v4443_v3 }
  0xb4   : > { %3296 = vmatmul.mubr.f32.gmra.mrb[44].mxu1 %v4433_v1 }
  0xb5   : > { %3432 = vmatmul.mubr.f32.gmra.mrb[60].mxu0 %v4449_v5  ;;  %3298 = vmatprep.mubr.f32.mxu1 %v4439_v2 }
  0xb6   : > { %3434 = vmatprep.mubr.f32.mxu0 %v4453_v6 }
  0xb8   : > { %3299 = vmatmul.mubr.f32.gmra.mrb[46].mxu1 %v4443_v3 }
  0xb9   : > { %3435 = vmatmul.mubr.f32.gmra.mrb[62].mxu0 %v4459_v8  ;;  %3333 = vmatprep.mubr.f32.mxu1 %v4280_v4 }
  0xba   : > { %3469 = vmatprep.mubr.f32.mxu0 %v4196_v29  ;;  %v3837_v29 = vpack.c.bf16 %v2587_v50, %v2586_v48 }
  0xbc   : > { %3334 = vmatmul.mubr.f32.vlgmr.msra.gmra.mrb[24].mxu1 %v4291_v7 }
  0xbd   : > { %3470 = vmatmul.mubr.f32.vlgmr.msra.gmra.mrb[40].mxu0 %v4263_v61  ;;  %3869 = vmatpush3.bf16.msra.mxu1 %v3829_v43  ;;  %v3841_v61 = vpack.c.bf16 %v2589_v52, %v2588_v51 }
  0xbe   : > { %3336 = vmatprep.mubr.f32.mxu1 %v4303_v12  ;;  %3472 = vmatprep.mubr.f32.mxu0 %v4269_v63  ;;  %v2590_v63 = vld [vmem:[%s5109_s1 + $0x440] sm:$0xff] }
  0xbf   : > { %3832 = vmatpush3.bf16.msra.mxu0 %v3829_v43  ;;  %3862 = vmatprep.subr.bf16.mxu1 %v3833_v47 }
  0xc0   : > { %3337 = vmatmul.mubr.f32.gmra.mrb[26].mxu1 %v4313_v15  ;;  %3834 = vmatprep.subr.bf16.mxu0 %v3833_v47 }
  0xc1   : > { %3473 = vmatmul.mubr.f32.gmra.mrb[42].mxu0 %v4186_v26  ;;  %3339 = vmatprep.mubr.f32.mxu1 %v4325_v20  ;;  %v3845_v26 = vpack.c.bf16 %v2591_v53, %v2590_v63 }
  0xc2   : > { %3475 = vmatprep.mubr.f32.mxu0 %v4254_v58  ;;  %3870 = vmatpush3.bf16.msra.mxu1 %v3833_v47  ;;  %v2592_v58 = vld [vmem:[%s5109_s1 + $0x450] sm:$0xff] }
  0xc3   : > { %3836 = vmatpush3.bf16.msra.mxu0 %v3833_v47  ;;  %3863 = vmatprep.subr.bf16.mxu1 %v3837_v29 }
  0xc4   : > { %3340 = vmatmul.mubr.f32.gmra.mrb[28].mxu1 %v4335_v23  ;;  %3838 = vmatprep.subr.bf16.mxu0 %v3837_v29 }
  0xc5   : > { %3476 = vmatmul.mubr.f32.gmra.mrb[44].mxu0 %v4266_v62  ;;  %3342 = vmatprep.mubr.f32.mxu1 %v4347_v30  ;;  %v3849_v62 = vpack.c.bf16 %v2593_v55, %v2592_v58 }
  0xc6   : > { %3478 = vmatprep.mubr.f32.mxu0 %v4280_v4  ;;  %3871 = vmatpush3.bf16.msra.mxu1 %v3837_v29 }
  0xc7   : > { %3840 = vmatpush3.bf16.msra.mxu0 %v3837_v29  ;;  %3864 = vmatprep.subr.bf16.mxu1 %v3841_v61 }
  0xc8   : > { %3343 = vmatmul.mubr.f32.gmra.mrb[30].mxu1 %v4357_v33  ;;  %3842 = vmatprep.subr.bf16.mxu0 %v3841_v61 }
  0xc9   : > { %3479 = vmatmul.mubr.f32.gmra.mrb[46].mxu0 %v4291_v7  ;;  %3345 = vmatprep.mubr.f32.mxu1 %v4369_v38 }
  0xca   : > { %3481 = vmatprep.mubr.f32.mxu0 %v4303_v12  ;;  %3872 = vmatpush3.bf16.msra.mxu1 %v3841_v61 }
  0xcb   : > { %3844 = vmatpush3.bf16.msra.mxu0 %v3841_v61  ;;  %3865 = vmatprep.subr.bf16.mxu1 %v3845_v26 }
  0xcc   : > { %3346 = vmatmul.mubr.f32.gmra.mrb[32].mxu1 %v4379_v41  ;;  %3846 = vmatprep.subr.bf16.mxu0 %v3845_v26 }
  0xcd   : > { %3482 = vmatmul.mubr.f32.gmra.mrb[48].mxu0 %v4313_v15  ;;  %3348 = vmatprep.mubr.f32.mxu1 %v4391_v46 }
  0xce   : > { %3484 = vmatprep.mubr.f32.mxu0 %v4325_v20  ;;  %3873 = vmatpush3.bf16.msra.mxu1 %v3845_v26 }
  0xcf   : > { %3848 = vmatpush3.bf16.msra.mxu0 %v3845_v26  ;;  %3866 = vmatprep.subr.bf16.mxu1 %v3849_v62 }
  0xd0   : > { %3349 = vmatmul.mubr.f32.gmra.mrb[34].mxu1 %v4401_v49  ;;  %3850 = vmatprep.subr.bf16.mxu0 %v3849_v62 }
  0xd1   : > { %3485 = vmatmul.mubr.f32.gmra.mrb[50].mxu0 %v4335_v23  ;;  %3351 = vmatprep.mubr.f32.mxu1 %v4413_v54 }
  0xd2   : > { %3487 = vmatprep.mubr.f32.mxu0 %v4347_v30  ;;  %3874 = vmatpush3.bf16.msra.mxu1 %v3849_v62 }
  0xd3   : > { %3852 = vmatpush3.bf16.msra.mxu0 %v3849_v62  ;;  %3867 = vmatprep.subr.bf16.mxu1 %v3853_v60 }
  0xd4   : > { %3352 = vmatmul.mubr.f32.gmra.mrb[36].mxu1 %v4423_v57  ;;  %3854 = vmatprep.subr.bf16.mxu0 %v3853_v60 }
  0xd5   : > { %3488 = vmatmul.mubr.f32.gmra.mrb[52].mxu0 %v4357_v33  ;;  %3354 = vmatprep.mubr.f32.mxu1 %v4429_v0 }
  0xd6   : > { %3490 = vmatprep.mubr.f32.mxu0 %v4369_v38  ;;  %3875 = vmatpush3.bf16.msra.mxu1 %v3853_v60 }
  0xd7   : > { %3856 = vmatpush3.bf16.msra.mxu0 %v3853_v60  ;;  %3868 = vmatprep.subr.bf16.mxu1 %v3857_v11 }
  0xd8   : > { %3355 = vmatmul.mubr.f32.gmra.mrb[38].mxu1 %v4433_v1  ;;  %3858 = vmatprep.subr.bf16.mxu0 %v3857_v11 }
  0xd9   : > { %3491 = vmatmul.mubr.f32.gmra.mrb[54].mxu0 %v4379_v41  ;;  %3357 = vmatprep.mubr.f32.mxu1 %v4439_v2 }
  0xda   : > { %3493 = vmatprep.mubr.f32.mxu0 %v4391_v46  ;;  %3876 = vmatpush3.bf16.msra.mxu1 %v3857_v11 }
  0xdb   : > { %3860 = vmatpush3.bf16.msra.mxu0 %v3857_v11 }
  0xdc   : > { %3358 = vmatmul.mubr.f32.gmra.mrb[40].mxu1 %v4443_v3 }
  0xdd   : > { %3494 = vmatmul.mubr.f32.gmra.mrb[56].mxu0 %v4401_v49  ;;  %3360 = vmatprep.mubr.f32.mxu1 %v4449_v5 }
  0xde   : > { %3496 = vmatprep.mubr.f32.mxu0 %v4413_v54 }
  0xe0   : > { %3361 = vmatmul.mubr.f32.gmra.mrb[42].mxu1 %v4453_v6 }
  0xe1   : > { %3497 = vmatmul.mubr.f32.gmra.mrb[58].mxu0 %v4423_v57  ;;  %3363 = vmatprep.mubr.f32.mxu1 %v4459_v8 }
  0xe2   : > { %3499 = vmatprep.mubr.f32.mxu0 %v4429_v0 }
  0xe4   : > { %3364 = vmatmul.mubr.f32.gmra.mrb[44].mxu1 %v4603_v24 }
  0xe5   : > { %3500 = vmatmul.mubr.f32.gmra.mrb[60].mxu0 %v4433_v1  ;;  %3366 = vmatprep.mubr.f32.mxu1 %v4606_v25 }
  0xe6   : > { %3502 = vmatprep.mubr.f32.mxu0 %v4439_v2 }
  0xe8   : > { %3367 = vmatmul.mubr.f32.gmra.mrb[46].mxu1 %v4613_v27 }
  0xe9   : > { %3503 = vmatmul.mubr.f32.gmra.mrb[62].mxu0 %v4443_v3  ;;  %3555 = vmatprep.mubr.f32.mxu1 %v4413_v54 }
  0xea   : > { %3537 = vmatprep.mubr.f32.mxu0 %v4280_v4 }
  0xec   : > { %3556 = vmatmul.mubr.f32.vlgmr.msra.gmra.mrb[48].mxu1 %v4423_v57 }
  0xed   : > { %3538 = vmatmul.mubr.f32.vlgmr.msra.gmra.mrb[40].mxu0 %v4291_v7  ;;  %3558 = vmatprep.mubr.f32.mxu1 %v4429_v0 }
  0xee   : > { %3540 = vmatprep.mubr.f32.mxu0 %v4303_v12 }
  0xf0   : > { %3559 = vmatmul.mubr.f32.gmra.mrb[50].mxu1 %v4433_v1 }
  0xf1   : > { %3541 = vmatmul.mubr.f32.gmra.mrb[42].mxu0 %v4313_v15  ;;  %3561 = vmatprep.mubr.f32.mxu1 %v4439_v2 }
  0xf2   : > { %3543 = vmatprep.mubr.f32.mxu0 %v4325_v20 }
  0xf4   : > { %3562 = vmatmul.mubr.f32.gmra.mrb[52].mxu1 %v4443_v3 }
  0xf5   : > { %3544 = vmatmul.mubr.f32.gmra.mrb[44].mxu0 %v4335_v23  ;;  %3564 = vmatprep.mubr.f32.mxu1 %v4449_v5 }
  0xf6   : > { %3546 = vmatprep.mubr.f32.mxu0 %v4347_v30 }
  0xf8   : > { %3565 = vmatmul.mubr.f32.gmra.mrb[54].mxu1 %v4453_v6 }
  0xf9   : > { %3547 = vmatmul.mubr.f32.gmra.mrb[46].mxu0 %v4357_v33  ;;  %3567 = vmatprep.mubr.f32.mxu1 %v4459_v8 }
  0xfa   : > { %3549 = vmatprep.mubr.f32.mxu0 %v4369_v38 }
  0xfc   : > { %3568 = vmatmul.mubr.f32.gmra.mrb[56].mxu1 %v4603_v24 }
  0xfd   : > { %3550 = vmatmul.mubr.f32.gmra.mrb[48].mxu0 %v4379_v41  ;;  %3570 = vmatprep.mubr.f32.mxu1 %v4606_v25 }
  0xfe   : > { %3552 = vmatprep.mubr.f32.mxu0 %v4391_v46 }
  0xff   : > { %v2995_v4 = vpop.f32.mrb[0].mxu1 }
 0x100   : > { %v356_v7 = vpop.f32.mrb[1].mxu1  ;;  %3571 = vmatmul.mubr.f32.gmra.mrb[58].mxu1 %v4613_v27 }
 0x101   : > { %3553 = vmatmul.mubr.f32.gmra.mrb[50].mxu0 %v4401_v49 }
 0x103   : > { %v2998_v12 = vpop.f32.mrb[2].mxu1 }
 0x104   : > { %v366_v15 = vpop.f32.mrb[3].mxu1  ;;  %v3066_v20 = vpop.f32.mrb[2].mxu0 }
 0x105   : > { %v548_v23 = vadd.f32 %v3066_v20, %v2998_v12  ;;  %v543_v30 = vpop.f32.mrb[3].mxu0 }
 0x107   : > { %v3001_v33 = vpop.f32.mrb[4].mxu1 }
 0x108   : > { %v3069_v38 = vpop.f32.mrb[4].mxu0  ;;  %v375_v54 = vpop.f32.mrb[5].mxu1 }
 0x109   : > { %v552_v57 = vpop.f32.mrb[5].mxu0 }
 0x10a   : > { %v553_v41 = vadd.f32 %v552_v57, %v375_v54 }
 0x10b   : > { %v3004_v0 = vpop.f32.mrb[6].mxu1 }
 0x10c   : > { %v384_v1 = vpop.f32.mrb[7].mxu1 }
 0x10f   : > { %v3007_v2 = vpop.f32.mrb[8].mxu1 }
 0x110   : > { %v394_v46 = vpop.f32.mrb[9].mxu1  ;;  %v3075_v3 = vpop.f32.mrb[8].mxu0 }
 0x111   : > { %v576_v5 = vadd.f32 %v3075_v3, %v3007_v2  ;;  %v571_v6 = vpop.f32.mrb[9].mxu0 }
 0x113   : > { %v3010_v8 = vpop.f32.mrb[10].mxu1 }
 0x114   : > { %v3078_v24 = vpop.f32.mrb[10].mxu0  ;;  %v403_v49 = vpop.f32.mrb[11].mxu1 }
 0x115   : > { %v580_v25 = vpop.f32.mrb[11].mxu0 }
 0x116   : > { %v581_v27 = vadd.f32 %v580_v25, %v403_v49 }
 0x117   : > { %v3013_v13 = vpop.f32.mrb[12].mxu1 }
 0x118   : > { %v412_v14 = vpop.f32.mrb[13].mxu1 }
 0x11b   : > { %v3016_v16 = vpop.f32.mrb[14].mxu1 }
 0x11c   : > { %v422_v17 = vpop.f32.mrb[15].mxu1  ;;  %v3084_v18 = vpop.f32.mrb[14].mxu0 }
 0x11d   : > { %v604_v19 = vadd.f32 %v3084_v18, %v3016_v16  ;;  %v599_v21 = vpop.f32.mrb[15].mxu0 }
 0x11f   : > { %v3019_v22 = vpop.f32.mrb[16].mxu1 }
 0x120   : > { %v3087_v28 = vpop.f32.mrb[16].mxu0  ;;  %v431_v31 = vpop.f32.mrb[17].mxu1 }
 0x121   : > { %v608_v32 = vpop.f32.mrb[17].mxu0 }
 0x122   : > { %v609_v34 = vadd.f32 %v608_v32, %v431_v31 }
 0x123   : > { %v3022_v35 = vpop.f32.mrb[18].mxu1 }
 0x124   : > { %v440_v36 = vpop.f32.mrb[19].mxu1 }
 0x127   : > { %v3025_v37 = vpop.f32.mrb[20].mxu1 }
 0x128   : > { %v450_v39 = vpop.f32.mrb[21].mxu1  ;;  %v3093_v40 = vpop.f32.mrb[20].mxu0 }
 0x129   : > { %v632_v42 = vadd.f32 %v3093_v40, %v3025_v37  ;;  %v627_v43 = vpop.f32.mrb[21].mxu0 }
 0x12b   : > { %v3028_v44 = vpop.f32.mrb[22].mxu1 }
 0x12c   : > { %v3096_v45 = vpop.f32.mrb[22].mxu0  ;;  %v459_v47 = vpop.f32.mrb[23].mxu1 }
 0x12d   : > { %v636_v48 = vpop.f32.mrb[23].mxu0 }
 0x12e   : > { %v637_v50 = vadd.f32 %v636_v48, %v459_v47 }
 0x130   : > { %v3131_v29 = vpop.f32.mrb[0].mxu0 }
 0x131   : > { %v3877_v51 = vadd.f32 %v3131_v29, %v2995_v4  ;;  %v752_v52 = vpop.f32.mrb[1].mxu0 }
 0x132   : > { %v3878_v61 = vadd.f32 %v752_v52, %v356_v7 }
 0x134   : > { %v3134_v63 = vpop.f32.mrb[24].mxu0 }
 0x135   : > { %v865_v53 = vadd.f32 %v3134_v63, %v548_v23  ;;  %v762_v26 = vpop.f32.mrb[25].mxu0 }
 0x138   : > { %v3137_v58 = vpop.f32.mrb[26].mxu0 }
 0x139   : > { %v771_v55 = vpop.f32.mrb[27].mxu0 }
 0x13a   : > { %v866_v62 = vadd.f32 %v771_v55, %v553_v41 }
 0x13c   : > { %v3140_v56 = vpop.f32.mrb[6].mxu0 }
 0x13d   : > { %v4869_v59 = vadd.f32 %v3140_v56, %v3004_v0  ;;  %v780_v60 = vpop.f32.mrb[7].mxu0 }
 0x13e   : > { %v3880_v9 = vadd.f32 %v780_v60, %v384_v1 }
 0x140   : > { %v3143_v10 = vpop.f32.mrb[28].mxu0 }
 0x141   : > { %v4871_v11 = vadd.f32 %v3143_v10, %v576_v5  ;;  %v790_v12 = vpop.f32.mrb[29].mxu0 }
 0x144   : > { %v3146_v15 = vpop.f32.mrb[30].mxu0 }
 0x145   : > { %v799_v20 = vpop.f32.mrb[31].mxu0 }
 0x146   : > { %v4873_v4 = vadd.f32 %v799_v20, %v581_v27 }
 0x148   : > { %v3149_v7 = vpop.f32.mrb[12].mxu0 }
 0x149   : > { %v4875_v30 = vadd.f32 %v3149_v7, %v3013_v13  ;;  %v808_v23 = vpop.f32.mrb[13].mxu0  ;;  %v1549_v13 = vlaneseq }
 0x14a   : > { %v4877_v33 = vadd.f32 %v808_v23, %v412_v14 }
 0x14b   : > { %v4891_v14 = vshrl.u32 %v1549_v13, 7 }
 0x14c   : > { %v3152_v38 = vpop.f32.mrb[32].mxu0 }
 0x14d   : > { %v4879_v54 = vadd.f32 %v3152_v38, %v604_v19  ;;  %v818_v57 = vpop.f32.mrb[33].mxu0  ;;  %vm1551_vm0 = vcmp.lt.s32.totalorder %v4891_v14, 7  ;;  %vm2238_vm1 = vcmp.lt.s32.totalorder %v4891_v14, 6 }
 0x150   : > { %v3155_v41 = vpop.f32.mrb[34].mxu0 }
 0x151   : > { %v827_v0 = vpop.f32.mrb[35].mxu0 }
 0x152   : > { %v4881_v1 = vadd.f32 %v827_v0, %v609_v34 }
 0x154   : > { %v3158_v2 = vpop.f32.mrb[18].mxu0 }
 0x155   : > { %v4883_v46 = vadd.f32 %v3158_v2, %v3022_v35  ;;  %v836_v3 = vpop.f32.mrb[19].mxu0 }
 0x156   : > { %v4885_v5 = vadd.f32 %v836_v3, %v440_v36 }
 0x158   : > { %v3161_v6 = vpop.f32.mrb[36].mxu0 }
 0x159   : > { %v4887_v8 = vadd.f32 %v3161_v6, %v632_v42  ;;  %v846_v24 = vpop.f32.mrb[37].mxu0 }
 0x15c   : > { %v3164_v49 = vpop.f32.mrb[38].mxu0 }
 0x15d   : > { %v855_v25 = vpop.f32.mrb[39].mxu0 }
 0x15e   : > { %v4889_v27 = vadd.f32 %v855_v25, %v637_v50 }
 0x18f   : > { %v3335_v16 = vpop.f32.mrb[24].mxu1 }
 0x190   : > { %v1526_v17 = vrot.slane %v3335_v16, 1  ;;  %v1382_v18 = vpop.f32.mrb[25].mxu1 }
 0x191   : > { %v1525_v19 = vrot.slane %v1382_v18, 1 }
 0x193   : > { %v1567_v21 = vsel %vm1551_vm0, %v1525_v19, %v1526_v17  ;;  %v3338_v22 = vpop.f32.mrb[26].mxu1 }
 0x194   : > { %v4896_v28 = vadd.f32 %v3878_v61, %v1567_v21  ;;  %v1392_v31 = vpop.f32.mrb[27].mxu1  ;;  %v1528_v40 = vrot.slane %v3338_v22, 1 }
 0x195   : > { %v1527_v32 = vrot.slane %v1392_v31, 1 }
 0x197   : > { %v1566_v34 = vsel %vm1551_vm0, %v1526_v17, %v1527_v32  ;;  %v3341_v35 = vpop.f32.mrb[28].mxu1 }
 0x198   : > { %v4900_v36 = vadd.f32 %v3877_v51, %v1566_v34  ;;  %v1530_v37 = vrot.slane %v3341_v35, 1  ;;  %v1402_v39 = vpop.f32.mrb[29].mxu1 }
 0x199   : > { %v1529_v42 = vrot.slane %v1402_v39, 1 }
 0x19b   : > { %v1564_v43 = vsel %vm1551_vm0, %v1529_v42, %v1530_v37  ;;  %v1565_v44 = vsel %vm1551_vm0, %v1528_v40, %v1529_v42  ;;  %v3344_v45 = vpop.f32.mrb[30].mxu1 }
 0x19c   : > { %v4906_v47 = vadd.f32 %v1565_v44, %v865_v53  ;;  %v4908_v48 = vadd.f32 %v1564_v43, %v866_v62  ;;  %v1532_v50 = vrot.slane %v3344_v45, 1  ;;  %v1412_v29 = vpop.f32.mrb[31].mxu1 }
 0x19d   : > { %v1531_v52 = vrot.slane %v1412_v29, 1 }
 0x19f   : > { %v1563_v51 = vsel %vm1551_vm0, %v1531_v52, %v1532_v50  ;;  %v3347_v61 = vpop.f32.mrb[32].mxu1 }
 0x1a0   : > { %v4912_v63 = vadd.f32 %v3880_v9, %v1563_v51  ;;  %v1422_v26 = vpop.f32.mrb[33].mxu1  ;;  %v1534_v10 = vrot.slane %v3347_v61, 1 }
 0x1a1   : > { %v1533_v58 = vrot.slane %v1422_v26, 1 }
 0x1a3   : > { %v1562_v55 = vsel %vm1551_vm0, %v1532_v50, %v1533_v58  ;;  %v3350_v56 = vpop.f32.mrb[34].mxu1 }
 0x1a4   : > { %v4917_v53 = vadd.f32 %v4869_v59, %v1562_v55  ;;  %v1536_v62 = vrot.slane %v3350_v56, 1  ;;  %v1432_v60 = vpop.f32.mrb[35].mxu1 }
 0x1a5   : > { %v1535_v12 = vrot.slane %v1432_v60, 1 }
 0x1a7   : > { %v1560_v15 = vsel %vm1551_vm0, %v1535_v12, %v1536_v62  ;;  %v1561_v9 = vsel %vm1551_vm0, %v1534_v10, %v1535_v12  ;;  %v3353_v20 = vpop.f32.mrb[36].mxu1 }
 0x1a8   : > { %v4924_v7 = vadd.f32 %v1561_v9, %v4871_v11  ;;  %v4927_v23 = vadd.f32 %v1560_v15, %v4873_v4  ;;  %v1538_v38 = vrot.slane %v3353_v20, 1  ;;  %v3489_v59 = vpop.f32.mrb[52].mxu0  ;;  %v1442_v57 = vpop.f32.mrb[37].mxu1 }
 0x1a9   : > { %v1537_v41 = vrot.slane %v1442_v57, 1  ;;  %v1929_v0 = vpop.f32.mrb[53].mxu0 }
 0x1ab   : > { %v1559_v2 = vsel %vm1551_vm0, %v1537_v41, %v1538_v38  ;;  %v3356_v3 = vpop.f32.mrb[38].mxu1 }
 0x1ac   : > { %v4932_v6 = vadd.f32 %v4877_v33, %v1559_v2  ;;  %v4934_v24 = vpop.f32.mrb[54].mxu0  ;;  %v1452_v49 = vpop.f32.mrb[39].mxu1  ;;  %v1540_v33 = vrot.slane %v3356_v3, 1 }
 0x1ad   : > { %v1539_v11 = vrot.slane %v1452_v49, 1  ;;  %v4936_v25 = vpop.f32.mrb[55].mxu0 }
 0x1af   : > { %v1558_v4 = vsel %vm1551_vm0, %v1538_v38, %v1539_v11  ;;  %v3359_v13 = vpop.f32.mrb[40].mxu1 }
 0x1b0   : > { %v4941_v16 = vadd.f32 %v4875_v30, %v1558_v4  ;;  %v1542_v17 = vrot.slane %v3359_v13, 1  ;;  %v4943_v18 = vpop.f32.mrb[56].mxu0  ;;  %v1462_v19 = vpop.f32.mrb[41].mxu1 }
 0x1b1   : > { %v1541_v21 = vrot.slane %v1462_v19, 1  ;;  %v4945_v22 = vpop.f32.mrb[57].mxu0 }
 0x1b3   : > { %v1556_v31 = vsel %vm1551_vm0, %v1541_v21, %v1542_v17  ;;  %v1557_v32 = vsel %vm1551_vm0, %v1540_v33, %v1541_v21  ;;  %v3362_v34 = vpop.f32.mrb[42].mxu1 }
 0x1b4   : > { %v4952_v30 = vadd.f32 %v1557_v32, %v4879_v54  ;;  %v4955_v35 = vadd.f32 %v1556_v31, %v4881_v1  ;;  %v1544_v37 = vrot.slane %v3362_v34, 1  ;;  %v4957_v39 = vpop.f32.mrb[58].mxu0  ;;  %v1472_v40 = vpop.f32.mrb[43].mxu1 }
 0x1b5   : > { %v1543_v42 = vrot.slane %v1472_v40, 1  ;;  %v4959_v43 = vpop.f32.mrb[59].mxu0 }
 0x1b7   : > { %v1555_v44 = vsel %vm1551_vm0, %v1543_v42, %v1544_v37  ;;  %v3365_v45 = vpop.f32.mrb[44].mxu1 }
 0x1b8   : > { %v4966_v54 = vadd.f32 %v4885_v5, %v1555_v44  ;;  %v4968_v50 = vpop.f32.mrb[60].mxu0  ;;  %v1482_v1 = vpop.f32.mrb[45].mxu1  ;;  %v1546_v56 = vrot.slane %v3365_v45, 1 }
 0x1b9   : > { %v1545_v29 = vrot.slane %v1482_v1, 1  ;;  %v4970_v52 = vpop.f32.mrb[61].mxu0 }
 0x1bb   : > { %v1554_v51 = vsel %vm1551_vm0, %v1544_v37, %v1545_v29  ;;  %v3368_v61 = vpop.f32.mrb[46].mxu1 }
 0x1bc   : > { %v4976_v26 = vadd.f32 %v4883_v46, %v1554_v51  ;;  %v1548_v58 = vrot.slane %v3368_v61, 1  ;;  %v4978_v55 = vpop.f32.mrb[62].mxu0  ;;  %v1492_v5 = vpop.f32.mrb[47].mxu1 }
 0x1bd   : > { %v1547_v62 = vrot.slane %v1492_v5, 1  ;;  %v4980_v60 = vpop.f32.mrb[63].mxu0 }
 0x1bf   : > { %v1552_v10 = vsel %vm1551_vm0, %v1547_v62, %v1548_v58  ;;  %v1553_v12 = vsel %vm1551_vm0, %v1546_v56, %v1547_v62  ;;  %v3557_v15 = vpop.f32.mrb[48].mxu1 }
 0x1c0   : > { %v4987_v46 = vadd.f32 %v1553_v12, %v4887_v8  ;;  %v4990_v9 = vadd.f32 %v1552_v10, %v4889_v27  ;;  %v3539_v20 = vpop.f32.mrb[40].mxu0  ;;  %v3885_v38 = vadd.f32 %v3557_v15, %v3489_v59  ;;  %v2131_v57 = vpop.f32.mrb[49].mxu1  ;;  %v4998_v27 = vld [vmem:[%s5110_s2] ss:$0 sm:$0xff] }
 0x1c1   : > { %v2215_v41 = vrot.slane %v3539_v20, 2  ;;  %v2071_v2 = vpop.f32.mrb[41].mxu0  ;;  %v3886_v3 = vadd.f32 %v2131_v57, %v1929_v0 }
 0x1c2   : > { %v2227_v49 = vrot.slane %v3885_v38, 2  ;;  %v2214_v11 = vrot.slane %v2071_v2, 2 }
 0x1c3   : > { %v2226_v4 = vrot.slane %v3886_v3, 2  ;;  %v3560_v13 = vpop.f32.mrb[50].mxu1 }
 0x1c4   : > { %v2254_v8 = vsel %vm2238_vm1, %v2214_v11, %v2215_v41  ;;  %v3542_v59 = vpop.f32.mrb[42].mxu0  ;;  %v3887_v17 = vadd.f32 %v3560_v13, %v4934_v24  ;;  %v2141_v19 = vpop.f32.mrb[51].mxu1 }
 0x1c5   : > { %v2255_v0 = vadd.f32 %v2254_v8, %v4896_v28  ;;  %v2246_v33 = vsel %vm2238_vm1, %v2226_v4, %v2227_v49  ;;  %v2081_v21 = vpop.f32.mrb[43].mxu0  ;;  %v3888_v31 = vadd.f32 %v2141_v19, %v4936_v25  ;;  %v2217_v5 = vrot.slane %v3542_v59, 2 }
 0x1c6   : > { %v2263_v32 = vadd.f32 %v2246_v33, %v4932_v6  ;;  %v2216_v34 = vrot.slane %v2081_v21, 2  ;;  %v2229_v10 = vrot.slane %v3887_v17, 2 }
 0x1c7   : > { %v2278_v37 = vadd.f32 %v4998_v27, %v2255_v0  ;;  %v2228_v40 = vrot.slane %v3888_v31, 2  ;;  %v3563_v42 = vpop.f32.mrb[52].mxu1 }
 0x1c8   : > { %v2286_v28 = vadd.f32 %v4998_v27, %v2263_v32  ;;  %v2253_v24 = vsel %vm2238_vm1, %v2215_v41, %v2216_v34  ;;  %v3545_v44 = vpop.f32.mrb[44].mxu0  ;;  %v3889_v25 = vadd.f32 %v3563_v42, %v4943_v18  ;;  %v2151_v6 = vpop.f32.mrb[53].mxu1 }
 0x1c9   : > { %v2294_v45 = vmax.f32 %v2278_v37, 0.0  ;;  %v2256_v1 = vadd.f32 %v2253_v24, %v4900_v36  ;;  %v2245_v29 = vsel %vm2238_vm1, %v2227_v49, %v2228_v40  ;;  %v2219_v51 = vrot.slane %v3545_v44, 2  ;;  %v2091_v61 = vpop.f32.mrb[45].mxu0 }
 0x1ca   : > { %v2302_v58 = vmax.f32 %v2286_v28, 0.0  ;;  %v2264_v56 = vadd.f32 %v2245_v29, %v4941_v16  ;;  %v2218_v62 = vrot.slane %v2091_v61, 2  ;;  %v2231_v18 = vrot.slane %v3889_v25, 2 }
 0x1cb   : > { %2310 = vst [vmem:[%s5010_s27] sm:$0xff] %v2294_v45  ;;  %v2279_v12 = vadd.f32 %v4998_v27, %v2256_v1  ;;  %v3890_v15 = vadd.f32 %v2151_v6, %v4945_v22  ;;  %v3566_v20 = vpop.f32.mrb[54].mxu1 }
 0x1cc   : > { %2318 = vst [vmem:[%s5010_s27 + $0x40] sm:$0xff] %v2302_v58  ;;  %v2287_v36 = vadd.f32 %v4998_v27, %v2264_v56  ;;  %v2251_v38 = vsel %vm2238_vm1, %v2218_v62, %v2219_v51  ;;  %v2252_v57 = vsel %vm2238_vm1, %v2217_v5, %v2218_v62  ;;  %v3548_v16 = vpop.f32.mrb[46].mxu0  ;;  %v3891_v41 = vadd.f32 %v3566_v20, %v4957_v39  ;;  %v2161_v2 = vpop.f32.mrb[55].mxu1 }
 0x1cd   : > { %v2295_v3 = vmax.f32 %v2279_v12, 0.0  ;;  %v2257_v49 = vadd.f32 %v2252_v57, %v4906_v47  ;;  %v2258_v22 = vadd.f32 %v2251_v38, %v4908_v48  ;;  %v2230_v11 = vrot.slane %v3890_v15, 2  ;;  %v2101_v4 = vpop.f32.mrb[47].mxu0 }
 0x1ce   : > { %v2303_v13 = vmax.f32 %v2287_v36, 0.0  ;;  %v2221_v8 = vrot.slane %v3548_v16, 2  ;;  %v2233_v59 = vrot.slane %v3891_v41, 2  ;;  %v2220_v17 = vrot.slane %v2101_v4, 2 }
 0x1cf   : > { %2311 = vst [vmem:[%s5010_s27 + $0x8] sm:$0xff] %v2295_v3  ;;  %v2280_v19 = vadd.f32 %v4998_v27, %v2257_v49  ;;  %v2281_v0 = vadd.f32 %v4998_v27, %v2258_v22  ;;  %v2243_v39 = vsel %vm2238_vm1, %v2230_v11, %v2231_v18  ;;  %v2244_v33 = vsel %vm2238_vm1, %v2229_v10, %v2230_v11  ;;  %v3569_v47 = vpop.f32.mrb[56].mxu1 }
 0x1d0   : > { %2319 = vst [vmem:[%s5010_s27 + $0x48] sm:$0xff] %v2303_v13  ;;  %v2265_v48 = vadd.f32 %v2244_v33, %v4952_v30  ;;  %v2266_v21 = vadd.f32 %v2243_v39, %v4955_v35  ;;  %v2250_v31 = vsel %vm2238_vm1, %v2220_v17, %v2221_v8  ;;  %v3892_v32 = vadd.f32 %v2161_v2, %v4959_v43  ;;  %v3551_v34 = vpop.f32.mrb[48].mxu0  ;;  %v2171_v37 = vpop.f32.mrb[57].mxu1 }
 0x1d1   : > { %v2296_v40 = vmax.f32 %v2280_v19, 0.0  ;;  %v2297_v42 = vmax.f32 %v2281_v0, 0.0  ;;  %v2259_v28 = vadd.f32 %v2250_v31, %v4912_v63  ;;  %v2111_v24 = vpop.f32.mrb[49].mxu0  ;;  %v3893_v30 = vadd.f32 %v3569_v47, %v4968_v50 }
 0x1d2   : > { %v2288_v44 = vadd.f32 %v4998_v27, %v2265_v48  ;;  %v2289_v25 = vadd.f32 %v4998_v27, %v2266_v21  ;;  %v2232_v6 = vrot.slane %v3892_v32, 2  ;;  %v2222_v43 = vrot.slane %v2111_v24, 2 }
 0x1d3   : > { %2312 = vst [vmem:[%s5010_s27 + $0x10] sm:$0xff] %v2296_v40  ;;  %2313 = vst [vmem:[%s5010_s27 + $0x18] sm:$0xff] %v2297_v42  ;;  %v2282_v35 = vadd.f32 %v4998_v27, %v2259_v28  ;;  %v3894_v45 = vadd.f32 %v2171_v37, %v4970_v52  ;;  %v3572_v1 = vpop.f32.mrb[58].mxu1  ;;  %v2223_v61 = vrot.slane %v3551_v34, 2  ;;  %v2235_v38 = vrot.slane %v3893_v30, 2 }
 0x1d4   : > { %v2304_v29 = vmax.f32 %v2288_v44, 0.0  ;;  %v2305_v63 = vmax.f32 %v2289_v25, 0.0  ;;  %v2242_v51 = vsel %vm2238_vm1, %v2232_v6, %v2233_v59  ;;  %v3554_v58 = vpop.f32.mrb[50].mxu0  ;;  %v2181_v5 = vpop.f32.mrb[59].mxu1  ;;  %v2249_v62 = vsel %vm2238_vm1, %v2221_v8, %v2222_v43 }
 0x1d5   : > { %v2298_v50 = vmax.f32 %v2282_v35, 0.0  ;;  %v2267_v56 = vadd.f32 %v2242_v51, %v4966_v54  ;;  %v2234_v10 = vrot.slane %v3894_v45, 2  ;;  %v2121_v12 = vpop.f32.mrb[51].mxu0  ;;  %v2260_v52 = vadd.f32 %v2249_v62, %v4917_v53 }
 0x1d6   : > { %2320 = vst [vmem:[%s5010_s27 + $0x50] sm:$0xff] %v2304_v29  ;;  %2321 = vst [vmem:[%s5010_s27 + $0x58] sm:$0xff] %v2305_v63  ;;  %v2225_v18 = vrot.slane %v3554_v58, 2  ;;  %v3895_v15 = vadd.f32 %v3572_v1, %v4978_v55  ;;  %v2224_v20 = vrot.slane %v2121_v12, 2  ;;  %v3896_v57 = vadd.f32 %v2181_v5, %v4980_v60 }
 0x1d7   : > { %2314 = vst [vmem:[%s5010_s27 + $0x20] sm:$0xff] %v2298_v50  ;;  %v2290_v36 = vadd.f32 %v4998_v27, %v2267_v56  ;;  %v2241_v54 = vsel %vm2238_vm1, %v2233_v59, %v2234_v10  ;;  %v2283_v16 = vadd.f32 %v4998_v27, %v2260_v52 }
 0x1d8   : > { %v2268_v41 = vadd.f32 %v2241_v54, %v4976_v26  ;;  %v2237_v53 = vrot.slane %v3895_v15, 2  ;;  %v2247_v55 = vsel %vm2238_vm1, %v2224_v20, %v2225_v18  ;;  %v2248_v3 = vsel %vm2238_vm1, %v2223_v61, %v2224_v20 }
 0x1d9   : > { %v2306_v2 = vmax.f32 %v2290_v36, 0.0  ;;  %v2262_v49 = vadd.f32 %v2247_v55, %v4927_v23  ;;  %v2236_v22 = vrot.slane %v3896_v57, 2  ;;  %v2299_v11 = vmax.f32 %v2283_v16, 0.0 }
 0x1da   : > { %v2291_v60 = vadd.f32 %v4998_v27, %v2268_v41  ;;  %v2261_v4 = vadd.f32 %v2248_v3, %v4924_v7 }
 0x1db   : > { %2322 = vst [vmem:[%s5010_s27 + $0x60] sm:$0xff] %v2306_v2  ;;  %v2285_v26 = vadd.f32 %v4998_v27, %v2262_v49  ;;  %v2239_v13 = vsel %vm2238_vm1, %v2236_v22, %v2237_v53  ;;  %v2240_v8 = vsel %vm2238_vm1, %v2235_v38, %v2236_v22  ;;  %2315 = vst [vmem:[%s5010_s27 + $0x28] sm:$0xff] %v2299_v11 }
 0x1dc   : > { %v2307_v23 = vmax.f32 %v2291_v60, 0.0  ;;  %v2284_v59 = vadd.f32 %v4998_v27, %v2261_v4  ;;  %v2269_v17 = vadd.f32 %v2240_v8, %v4987_v46  ;;  %v2270_v7 = vadd.f32 %v2239_v13, %v4990_v9 }
 0x1dd   : > { %v2301_v19 = vmax.f32 %v2285_v26, 0.0 }
 0x1de   : > { %2323 = vst [vmem:[%s5010_s27 + $0x68] sm:$0xff] %v2307_v23  ;;  %v2300_v0 = vmax.f32 %v2284_v59, 0.0  ;;  %v2292_v39 = vadd.f32 %v4998_v27, %v2269_v17  ;;  %v2293_v33 = vadd.f32 %v4998_v27, %v2270_v7 }
 0x1df   : > { %2317 = vst [vmem:[%s5010_s27 + $0x38] sm:$0xff] %v2301_v19 }
 0x1e0   : > { %2316 = vst [vmem:[%s5010_s27 + $0x30] sm:$0xff] %v2300_v0  ;;  %v2308_v14 = vmax.f32 %v2292_v39, 0.0  ;;  %v2309_v47 = vmax.f32 %v2293_v33, 0.0 }
 0x1e2   : > { %2324 = vst [vmem:[%s5010_s27 + $0x70] sm:$0xff] %v2308_v14  ;;  %2325 = vst [vmem:[%s5010_s27 + $0x78] sm:$0xff] %v2309_v47 }
 0x1e3 PF: > { %s13_s16 = sadd.s32 1, %s4068_s16   ;;  %s5112_s12 = smov %s4060_s14 }
 0x1e4   : > { %p10_p8 = scmp.ge.s32.totalorder %s13_s16, 14   ;;  %s5113_s13 = smov %s4064_s15 }
 0x1e5   : > { %s5114_s14 = smov %s5117_s17  ;;  %s5115_s15 = smov %s5121_s18 }
 0x1e6   :  { %12 = sbr.rel (!%p10_p8) target bundleno = 3 (0x3), region = 72 }

// kernel: _lambda_.8
= control target key start
LH: loop header
LB: loop body
LE: loop exit
PB: predicated region body
PF: predicated region fallthrough
CT: control target
= control target key end

     0   :  { %s3454_s12 = smov 0   ;;  %s3456_s13 = smov 0   ;;  %s5129_s0 = inlined_call_operand.vmem [shape: f32[2,256,128], index: 0, kind: input, shape index: {}]   ;;  %s5130_s1 = inlined_call_operand.vmem [shape: f32[2,256,128], index: 1, kind: input, shape index: {}]   ;;  %s5131_s2 = inlined_call_operand.vmem [shape: f32[2,256,128], index: 2, kind: input, shape index: {}]   ;;  %s5132_s3 = inlined_call_operand.vmem [shape: f32[2,1,128], index: 3, kind: output, shape index: {}]  }
   0x1   :  { %s3458_s14 = smov 0   ;;  %s3460_s15 = smov 0  }
   0x2   :  { %s3462_s16 = smov 0  }
   0x3 LB: > { %s22_s17 = sadd.s32 1, %s3421_s14  ;;  %s25_s18 = sadd.s32 1, %s3425_s15  ;;  %s3429_s16 = sphi %s3462_s16, %s13_s16   ;;  %s3425_s15 = sphi %s3460_s15, %s5512_s15   ;;  %s3421_s14 = sphi %s3458_s14, %s5511_s14   ;;  %s3417_s13 = sphi %s3456_s13, %s5510_s13   ;;  %s3413_s12 = sphi %s3454_s12, %s5509_s12  }
   0x4   : > { %p23_p0 = scmp.ge.s32.totalorder %s22_s17, 2  ;;  %p2539_p1 = scmp.ge.s32.totalorder %s3429_s16, 1 }
   0x5   : > { %p176_p2 = scmp.lt.s32.totalorder %s3429_s16, 5 }
   0x6   : > { %s5514_s17 = smov (%p23_p0, %s22_s17), 0  ;;  %s5516_s18 = smov (!%p23_p0, %s25_s18), %s3425_s15 }
   0x7   : > { %p177_p3 = pnand %p2539_p1, %p176_p2  ;;  %p27_p4 = scmp.ge.s32.totalorder %s5516_s18, 2 }
   0x9   : > { %s5518_s18 = smov (%p27_p4, %s5516_s18), 0  ;;  %180 = sbr.rel (%p177_p3) target bundleno = 1189 (0x4a5), region = 32 }
  0x10   : > { %p212_p5 = scmp.lt.s32.totalorder %s3417_s13, 1  ;;  %s2544_s19 = sshll.u32 %s3413_s12, 4 }
  0x11   : > { %p225_p6 = scmp.lt.s32.totalorder %s2544_s19, 31  ;;  %p2547_p7 = scmp.ne.s32.totalorder %s3413_s12, 0 }
  0x12   : > { %s5520_s13 = smov (!%p212_p5, %s3417_s13), 1  ;;  %vm239_vm0 = vcmask (!%p2547_p7), 7168   ;;  %vm272_vm1 = vcmask (!%p2547_p7), 0   ;;  %v3431_v0 = vmov (!%p2547_p7), inf   ;;  %v3432_v1 = vmov (!%p2547_p7), 0.0  }
  0x13   : > { %s5522_s19 = smov (!%p225_p6, %s2544_s19), 31  ;;  %s2552_s20 = sshll.u32 %s5520_s13, 8  ;;  %240 = vst.msk [vmem:[#allocation2] sm:$0xff] (!%p2547_p7), %vm239_vm0, %v3431_v0  ;;  %241 = vst.msk [vmem:[#allocation2 + $0x8] sm:$0xff] (!%p2547_p7), %vm239_vm0, %v3431_v0 }
  0x14   : > { %s2545_s21 = sshll.u32 %s5520_s13, 5  ;;  %s3494_s24 = scalar_lea.vmem %s5129_s0, %s2552_s20  ;;  %242 = vst.msk [vmem:[#allocation2 + $0x10] sm:$0xff] (!%p2547_p7), %vm239_vm0, %v3431_v0  ;;  %243 = vst.msk [vmem:[#allocation2 + $0x18] sm:$0xff] (!%p2547_p7), %vm239_vm0, %v3431_v0 }
  0x15   : > { %s3499_s27 = scalar_lea.vmem %s5130_s1, %s2552_s20  ;;  %s228_s28 = sadd.s32 %s2545_s21, %s5522_s19  ;;  %244 = vst.msk [vmem:[#allocation2 + $0x20] sm:$0xff] (!%p2547_p7), %vm239_vm0, %v3431_v0  ;;  %245 = vst.msk [vmem:[#allocation2 + $0x28] sm:$0xff] (!%p2547_p7), %vm239_vm0, %v3431_v0 }
  0x16   : > { %s234_s4 = scalar_lea.vmem %s5132_s3, %s5520_s13  ;;  %s2546_s5 = sshll.u32 %s228_s28, 3  ;;  %246 = vst.msk [vmem:[#allocation2 + $0x30] sm:$0xff] (!%p2547_p7), %vm239_vm0, %v3431_v0  ;;  %247 = vst.msk [vmem:[#allocation2 + $0x38] sm:$0xff] (!%p2547_p7), %vm239_vm0, %v3431_v0 }
  0x17   : > { %s3508_s8 = scalar_lea.vmem %s5131_s2, %s2546_s5  ;;  %238 = sbr.rel (%p2547_p7) target bundleno = 36 (0x24), region = 36  ;;  %248 = vst.msk [vmem:[#allocation2 + $0x40] sm:$0xff] (!%p2547_p7), %vm239_vm0, %v3431_v0  ;;  %249 = vst.msk [vmem:[#allocation2 + $0x48] sm:$0xff] (!%p2547_p7), %vm239_vm0, %v3431_v0 }
  0x18   : > { %250 = vst.msk [vmem:[#allocation2 + $0x50] sm:$0xff] (!%p2547_p7), %vm239_vm0, %v3431_v0  ;;  %251 = vst.msk [vmem:[#allocation2 + $0x58] sm:$0xff] (!%p2547_p7), %vm239_vm0, %v3431_v0 }
  0x19   : > { %252 = vst.msk [vmem:[#allocation2 + $0x60] sm:$0xff] (!%p2547_p7), %vm239_vm0, %v3431_v0  ;;  %253 = vst.msk [vmem:[#allocation2 + $0x68] sm:$0xff] (!%p2547_p7), %vm239_vm0, %v3431_v0 }
  0x1a   : > { %254 = vst.msk [vmem:[#allocation2 + $0x70] sm:$0xff] (!%p2547_p7), %vm239_vm0, %v3431_v0  ;;  %255 = vst.msk [vmem:[#allocation2 + $0x78] sm:$0xff] (!%p2547_p7), %vm239_vm0, %v3431_v0 }
  0x1b   : > { %256 = vst.msk [vmem:[#allocation2 + $0x80] sm:$0xff] (!%p2547_p7), %vm239_vm0, %v3431_v0  ;;  %257 = vst.msk [vmem:[#allocation2 + $0x88] sm:$0xff] (!%p2547_p7), %vm239_vm0, %v3431_v0 }
  0x1c   : > { %258 = vst.msk [vmem:[#allocation2 + $0x90] sm:$0xff] (!%p2547_p7), %vm239_vm0, %v3431_v0  ;;  %259 = vst.msk [vmem:[#allocation2 + $0x98] sm:$0xff] (!%p2547_p7), %vm239_vm0, %v3431_v0 }
  0x1d   : > { %260 = vst.msk [vmem:[#allocation2 + $0xa0] sm:$0xff] (!%p2547_p7), %vm239_vm0, %v3431_v0  ;;  %261 = vst.msk [vmem:[#allocation2 + $0xa8] sm:$0xff] (!%p2547_p7), %vm239_vm0, %v3431_v0 }
  0x1e   : > { %262 = vst.msk [vmem:[#allocation2 + $0xb0] sm:$0xff] %vm239_vm0, %v3431_v0  ;;  %263 = vst.msk [vmem:[#allocation2 + $0xb8] sm:$0xff] %vm239_vm0, %v3431_v0 }
  0x1f   : > { %264 = vst.msk [vmem:[#allocation2 + $0xc0] sm:$0xff] %vm239_vm0, %v3431_v0  ;;  %265 = vst.msk [vmem:[#allocation2 + $0xc8] sm:$0xff] %vm239_vm0, %v3431_v0 }
  0x20   : > { %266 = vst.msk [vmem:[#allocation2 + $0xd0] sm:$0xff] %vm239_vm0, %v3431_v0  ;;  %267 = vst.msk [vmem:[#allocation2 + $0xd8] sm:$0xff] %vm239_vm0, %v3431_v0 }
  0x21   : > { %268 = vst.msk [vmem:[#allocation2 + $0xe0] sm:$0xff] %vm239_vm0, %v3431_v0  ;;  %269 = vst.msk [vmem:[#allocation2 + $0xe8] sm:$0xff] %vm239_vm0, %v3431_v0 }
  0x22   : > { %270 = vst.msk [vmem:[#allocation2 + $0xf0] sm:$0xff] %vm239_vm0, %v3431_v0  ;;  %271 = vst.msk [vmem:[#allocation2 + $0xf8] sm:$0xff] %vm239_vm0, %v3431_v0 }
  0x23   : > { %273 = vst.msk [vmem:[#allocation3] sm:$0x1] %vm272_vm1, %v3432_v1  ;;  %274 = vst.msk [vmem:[#allocation4] sm:$0x1] %vm272_vm1, %v3432_v1 }
  0x24 PF: > { %s2548_s9 = sshll.u32 %s3413_s12, 7  ;;  %vm2128_vm2 = vcmask 1040384   ;;  %vm2270_vm3 = vcmask 7168   ;;  %vm1831_vm4 = vcmask 0   ;;  %p2549_p8 = scmp.ne.s32.totalorder %s3413_s12, 1 }
  0x25   : > { %s3547_s10 = scalar_lea.vmem %s3499_s27, %s2548_s9  ;;  %s3550_s11 = scalar_lea.vmem %s3494_s24, %s2548_s9 }
  0x26   : > { %v3553_v2 = vld [vmem:[%s3547_s10] sm:$0xff]  ;;  %v3559_v4 = vld [vmem:[%s3547_s10 + $0x8] sm:$0xff]  ;;  %v3573_v10 = vld [vmem:[%s3550_s11 + $0x18] sm:$0xff] }
  0x27   : > { %v3556_v3 = vld [vmem:[%s3550_s11] sm:$0xff]  ;;  %v854_v5 = vmul.f32 %v3553_v2, %v3553_v2  ;;  %v3566_v7 = vld [vmem:[%s3550_s11 + $0x8] sm:$0xff]  ;;  %v855_v8 = vmul.f32 %v3559_v4, %v3559_v4  ;;  %v3576_v11 = vld [vmem:[%s3550_s11 + $0x10] sm:$0xff]  ;;  %v744_v12 = vmul.f32 %v3573_v10, %v3573_v10 }
  0x28   : > { %v741_v6 = vmul.f32 %v3556_v3, %v3556_v3  ;;  %v742_v9 = vmul.f32 %v3566_v7, %v3566_v7  ;;  %v743_v13 = vmul.f32 %v3576_v11, %v3576_v11  ;;  %v3583_v14 = vld [vmem:[%s3547_s10 + $0x18] sm:$0xff]  ;;  %v3586_v15 = vld [vmem:[%s3547_s10 + $0x10] sm:$0xff]  ;;  %v3593_v18 = vld [vmem:[%s3550_s11 + $0x28] sm:$0xff] }
  0x29   : > { %870 = vadd.xlane.f32.xlu1 %v854_v5  ;;  %v857_v16 = vmul.f32 %v3583_v14, %v3583_v14  ;;  %v856_v17 = vmul.f32 %v3586_v15, %v3586_v15  ;;  %v3596_v19 = vld [vmem:[%s3550_s11 + $0x20] sm:$0xff]  ;;  %v746_v20 = vmul.f32 %v3593_v18, %v3593_v18  ;;  %v3603_v22 = vld [vmem:[%s3547_s10 + $0x28] sm:$0xff]  ;;  %v3613_v26 = vld [vmem:[%s3550_s11 + $0x38] sm:$0xff] }
  0x2a   : > { %757 = vadd.xlane.f32.xlu0 %v741_v6  ;;  %v745_v21 = vmul.f32 %v3596_v19, %v3596_v19  ;;  %v3606_v23 = vld [vmem:[%s3547_s10 + $0x20] sm:$0xff]  ;;  %v859_v24 = vmul.f32 %v3603_v22, %v3603_v22  ;;  %v3616_v27 = vld [vmem:[%s3550_s11 + $0x30] sm:$0xff]  ;;  %v748_v28 = vmul.f32 %v3613_v26, %v3613_v26  ;;  %v3623_v30 = vld [vmem:[%s3547_s10 + $0x38] sm:$0xff] }
  0x2b   : > { %v858_v25 = vmul.f32 %v3606_v23, %v3606_v23  ;;  %v747_v29 = vmul.f32 %v3616_v27, %v3616_v27  ;;  %v3626_v31 = vld [vmem:[%s3547_s10 + $0x30] sm:$0xff]  ;;  %v861_v32 = vmul.f32 %v3623_v30, %v3623_v30  ;;  %v3633_v34 = vld [vmem:[%s3550_s11 + $0x48] sm:$0xff]  ;;  %v3636_v35 = vld [vmem:[%s3550_s11 + $0x40] sm:$0xff] }
  0x2c   : > { %v860_v33 = vmul.f32 %v3626_v31, %v3626_v31  ;;  %v750_v36 = vmul.f32 %v3633_v34, %v3633_v34  ;;  %v749_v37 = vmul.f32 %v3636_v35, %v3636_v35  ;;  %v3643_v38 = vld [vmem:[%s3547_s10 + $0x48] sm:$0xff]  ;;  %v3646_v39 = vld [vmem:[%s3547_s10 + $0x40] sm:$0xff]  ;;  %v3653_v42 = vld [vmem:[%s3550_s11 + $0x58] sm:$0xff] }
  0x2d   : > { %872 = vadd.xlane.f32.xlu1 %v855_v8  ;;  %v863_v40 = vmul.f32 %v3643_v38, %v3643_v38  ;;  %v862_v41 = vmul.f32 %v3646_v39, %v3646_v39  ;;  %v3656_v43 = vld [vmem:[%s3550_s11 + $0x50] sm:$0xff]  ;;  %v752_v44 = vmul.f32 %v3653_v42, %v3653_v42  ;;  %v3663_v46 = vld [vmem:[%s3547_s10 + $0x58] sm:$0xff]  ;;  %v3673_v50 = vld [vmem:[%s3550_s11 + $0x68] sm:$0xff] }
  0x2e   : > { %759 = vadd.xlane.f32.xlu0 %v742_v9  ;;  %v751_v45 = vmul.f32 %v3656_v43, %v3656_v43  ;;  %v3666_v47 = vld [vmem:[%s3547_s10 + $0x50] sm:$0xff]  ;;  %v865_v48 = vmul.f32 %v3663_v46, %v3663_v46  ;;  %v3676_v51 = vld [vmem:[%s3550_s11 + $0x60] sm:$0xff]  ;;  %v754_v52 = vmul.f32 %v3673_v50, %v3673_v50  ;;  %v3683_v54 = vld [vmem:[%s3547_s10 + $0x68] sm:$0xff] }
  0x2f   : > { %v864_v49 = vmul.f32 %v3666_v47, %v3666_v47  ;;  %v753_v53 = vmul.f32 %v3676_v51, %v3676_v51  ;;  %v3686_v55 = vld [vmem:[%s3547_s10 + $0x60] sm:$0xff]  ;;  %v867_v56 = vmul.f32 %v3683_v54, %v3683_v54  ;;  %v3693_v58 = vld [vmem:[%s3550_s11 + $0x78] sm:$0xff]  ;;  %v3696_v59 = vld [vmem:[%s3550_s11 + $0x70] sm:$0xff] }
  0x30   : > { %v866_v57 = vmul.f32 %v3686_v55, %v3686_v55  ;;  %v756_v60 = vmul.f32 %v3693_v58, %v3693_v58  ;;  %v755_v61 = vmul.f32 %v3696_v59, %v3696_v59  ;;  %v3703_v62 = vld [vmem:[%s3547_s10 + $0x78] sm:$0xff]  ;;  %v3706_v63 = vld [vmem:[%s3547_s10 + $0x70] sm:$0xff]  ;;  %v3713_v5 = vld [vmem:[%s3499_s27] sm:$0xff] }
  0x31   : > { %763 = vadd.xlane.f32.xlu1 %v744_v12  ;;  %v869_v0 = vmul.f32 %v3703_v62, %v3703_v62  ;;  %v868_v1 = vmul.f32 %v3706_v63, %v3706_v63  ;;  %v3716_v6 = vld [vmem:[%s3494_s24] sm:$0xff]  ;;  %v532_v8 = vmul.f32 %v3713_v5, %v3713_v5  ;;  %v3723_v12 = vld [vmem:[%s3499_s27 + $0x8] sm:$0xff] }
  0x32   : > { %761 = vadd.xlane.f32.xlu0 %v743_v13  ;;  %v308_v9 = vmul.f32 %v3716_v6, %v3716_v6  ;;  %v3726_v13 = vld [vmem:[%s3494_s24 + $0x8] sm:$0xff] }
  0x35   : > { %876 = vadd.xlane.f32.xlu1 %v857_v16  ;;  %v533_v16 = vmul.f32 %v3723_v12, %v3723_v12 }
  0x36   : > { %874 = vadd.xlane.f32.xlu0 %v856_v17  ;;  %v309_v17 = vmul.f32 %v3726_v13, %v3726_v13 }
  0x39   : > { %767 = vadd.xlane.f32.xlu1 %v746_v20  ;;  %v3733_v20 = vld [vmem:[%s3499_s27 + $0x10] sm:$0xff] }
  0x3a   : > { %765 = vadd.xlane.f32.xlu0 %v745_v21  ;;  %v3736_v21 = vld [vmem:[%s3494_s24 + $0x10] sm:$0xff] }
  0x3d   : > { %880 = vadd.xlane.f32.xlu1 %v859_v24  ;;  %v534_v24 = vmul.f32 %v3733_v20, %v3733_v20 }
  0x3e   : > { %878 = vadd.xlane.f32.xlu0 %v858_v25  ;;  %v310_v25 = vmul.f32 %v3736_v21, %v3736_v21 }
  0x41   : > { %771 = vadd.xlane.f32.xlu1 %v748_v28  ;;  %v3743_v28 = vld [vmem:[%s3499_s27 + $0x18] sm:$0xff] }
  0x42   : > { %769 = vadd.xlane.f32.xlu0 %v747_v29  ;;  %v3746_v29 = vld [vmem:[%s3494_s24 + $0x18] sm:$0xff] }
  0x45   : > { %884 = vadd.xlane.f32.xlu1 %v861_v32  ;;  %v535_v32 = vmul.f32 %v3743_v28, %v3743_v28 }
  0x46   : > { %882 = vadd.xlane.f32.xlu0 %v860_v33  ;;  %v311_v33 = vmul.f32 %v3746_v29, %v3746_v29 }
  0x49   : > { %775 = vadd.xlane.f32.xlu1 %v750_v36  ;;  %v3753_v36 = vld [vmem:[%s3499_s27 + $0x20] sm:$0xff] }
  0x4a   : > { %773 = vadd.xlane.f32.xlu0 %v749_v37  ;;  %v3756_v37 = vld [vmem:[%s3494_s24 + $0x20] sm:$0xff] }
  0x4d   : > { %888 = vadd.xlane.f32.xlu1 %v863_v40  ;;  %v536_v40 = vmul.f32 %v3753_v36, %v3753_v36 }
  0x4e   : > { %886 = vadd.xlane.f32.xlu0 %v862_v41  ;;  %v312_v41 = vmul.f32 %v3756_v37, %v3756_v37 }
  0x51   : > { %779 = vadd.xlane.f32.xlu1 %v752_v44  ;;  %v3763_v44 = vld [vmem:[%s3499_s27 + $0x28] sm:$0xff] }
  0x52   : > { %777 = vadd.xlane.f32.xlu0 %v751_v45  ;;  %v3766_v45 = vld [vmem:[%s3494_s24 + $0x28] sm:$0xff] }
  0x53   : > { %5267 = vst [vmem:[#allocation5_spill] sm:$0xff] %v3766_v45 }
  0x55   : > { %892 = vadd.xlane.f32.xlu1 %v865_v48  ;;  %v537_v48 = vmul.f32 %v3763_v44, %v3763_v44 }
  0x56   : > { %890 = vadd.xlane.f32.xlu0 %v864_v49  ;;  %v313_v49 = vmul.f32 %v3766_v45, %v3766_v45 }
  0x59   : > { %783 = vadd.xlane.f32.xlu1 %v754_v52  ;;  %v3773_v52 = vld [vmem:[%s3499_s27 + $0x30] sm:$0xff] }
  0x5a   : > { %781 = vadd.xlane.f32.xlu0 %v753_v53  ;;  %5268 = vst [vmem:[#allocation6_spill] sm:$0xff] %v3773_v52  ;;  %v3776_v53 = vld [vmem:[%s3494_s24 + $0x30] sm:$0xff] }
  0x5b   : > { %5269 = vst [vmem:[#allocation7_spill] sm:$0xff] %v3776_v53 }
  0x5d   : > { %896 = vadd.xlane.f32.xlu1 %v867_v56  ;;  %v538_v56 = vmul.f32 %v3773_v52, %v3773_v52 }
  0x5e   : > { %894 = vadd.xlane.f32.xlu0 %v866_v57  ;;  %v314_v57 = vmul.f32 %v3776_v53, %v3776_v53  ;;  %v300_v53 = vld [vmem:[%s3494_s24 + $0xc0] sm:$0xff] }
  0x61   : > { %787 = vadd.xlane.f32.xlu1 %v756_v60  ;;  %v507_v60 = vld [vmem:[%s3499_s27 + $0x38] sm:$0xff] }
  0x62   : > { %785 = vadd.xlane.f32.xlu0 %v755_v61  ;;  %v283_v61 = vld [vmem:[%s3494_s24 + $0x38] sm:$0xff] }
  0x65   : > { %900 = vadd.xlane.f32.xlu1 %v869_v0  ;;  %v539_v0 = vmul.f32 %v507_v60, %v507_v60 }
  0x66   : > { %898 = vadd.xlane.f32.xlu0 %v868_v1  ;;  %v315_v1 = vmul.f32 %v283_v61, %v283_v61 }
  0x69   : > { %564 = vadd.xlane.f32.xlu1 %v532_v8  ;;  %v508_v8 = vld [vmem:[%s3499_s27 + $0x40] sm:$0xff] }
  0x6a   : > { %340 = vadd.xlane.f32.xlu0 %v308_v9  ;;  %v284_v9 = vld [vmem:[%s3494_s24 + $0x40] sm:$0xff] }
  0x6d   : > { %566 = vadd.xlane.f32.xlu1 %v533_v16  ;;  %v540_v16 = vmul.f32 %v508_v8, %v508_v8 }
  0x6e   : > { %342 = vadd.xlane.f32.xlu0 %v309_v17  ;;  %v316_v17 = vmul.f32 %v284_v9, %v284_v9 }
  0x71   : > { %568 = vadd.xlane.f32.xlu1 %v534_v24  ;;  %v509_v24 = vld [vmem:[%s3499_s27 + $0x48] sm:$0xff] }
  0x72   : > { %344 = vadd.xlane.f32.xlu0 %v310_v25  ;;  %v285_v25 = vld [vmem:[%s3494_s24 + $0x48] sm:$0xff] }
  0x75   : > { %570 = vadd.xlane.f32.xlu1 %v535_v32  ;;  %v541_v32 = vmul.f32 %v509_v24, %v509_v24 }
  0x76   : > { %346 = vadd.xlane.f32.xlu0 %v311_v33  ;;  %v317_v33 = vmul.f32 %v285_v25, %v285_v25 }
  0x79   : > { %572 = vadd.xlane.f32.xlu1 %v536_v40  ;;  %v510_v40 = vld [vmem:[%s3499_s27 + $0x50] sm:$0xff] }
  0x7a   : > { %348 = vadd.xlane.f32.xlu0 %v312_v41  ;;  %v286_v41 = vld [vmem:[%s3494_s24 + $0x50] sm:$0xff] }
  0x7d   : > { %574 = vadd.xlane.f32.xlu1 %v537_v48  ;;  %v542_v48 = vmul.f32 %v510_v40, %v510_v40 }
  0x7e   : > { %350 = vadd.xlane.f32.xlu0 %v313_v49  ;;  %v318_v49 = vmul.f32 %v286_v41, %v286_v41 }
  0x81   : > { %576 = vadd.xlane.f32.xlu1 %v538_v56  ;;  %v511_v56 = vld [vmem:[%s3499_s27 + $0x58] sm:$0xff] }
  0x82   : > { %352 = vadd.xlane.f32.xlu0 %v314_v57  ;;  %v287_v57 = vld [vmem:[%s3494_s24 + $0x58] sm:$0xff]  ;;  %v543_v60 = vmul.f32 %v511_v56, %v511_v56 }
  0x83   : > { %v319_v61 = vmul.f32 %v287_v57, %v287_v57 }
  0x85   : > { %578 = vadd.xlane.f32.xlu1 %v539_v0  ;;  %v512_v0 = vld [vmem:[%s3499_s27 + $0x60] sm:$0xff] }
  0x86   : > { %354 = vadd.xlane.f32.xlu0 %v315_v1  ;;  %v288_v1 = vld [vmem:[%s3494_s24 + $0x60] sm:$0xff]  ;;  %v544_v8 = vmul.f32 %v512_v0, %v512_v0 }
  0x87   : > { %v320_v9 = vmul.f32 %v288_v1, %v288_v1 }
  0x89   : > { %580 = vadd.xlane.f32.xlu1 %v540_v16  ;;  %v513_v16 = vld [vmem:[%s3499_s27 + $0x68] sm:$0xff] }
  0x8a   : > { %356 = vadd.xlane.f32.xlu0 %v316_v17  ;;  %v289_v17 = vld [vmem:[%s3494_s24 + $0x68] sm:$0xff]  ;;  %v545_v24 = vmul.f32 %v513_v16, %v513_v16 }
  0x8b   : > { %v321_v25 = vmul.f32 %v289_v17, %v289_v17 }
  0x8d   : > { %582 = vadd.xlane.f32.xlu1 %v541_v32  ;;  %v514_v32 = vld [vmem:[%s3499_s27 + $0x70] sm:$0xff] }
  0x8e   : > { %358 = vadd.xlane.f32.xlu0 %v317_v33  ;;  %v290_v33 = vld [vmem:[%s3494_s24 + $0x70] sm:$0xff]  ;;  %v546_v40 = vmul.f32 %v514_v32, %v514_v32 }
  0x8f   : > { %v322_v41 = vmul.f32 %v290_v33, %v290_v33 }
  0x91   : > { %584 = vadd.xlane.f32.xlu1 %v542_v48  ;;  %v515_v48 = vld [vmem:[%s3499_s27 + $0x78] sm:$0xff] }
  0x92   : > { %360 = vadd.xlane.f32.xlu0 %v318_v49  ;;  %v291_v49 = vld [vmem:[%s3494_s24 + $0x78] sm:$0xff]  ;;  %v547_v56 = vmul.f32 %v515_v48, %v515_v48 }
  0x93   : > { %v323_v57 = vmul.f32 %v291_v49, %v291_v49 }
  0x95   : > { %586 = vadd.xlane.f32.xlu1 %v543_v60  ;;  %v516_v60 = vld [vmem:[%s3499_s27 + $0x80] sm:$0xff] }
  0x96   : > { %362 = vadd.xlane.f32.xlu0 %v319_v61  ;;  %v292_v61 = vld [vmem:[%s3494_s24 + $0x80] sm:$0xff]  ;;  %v548_v0 = vmul.f32 %v516_v60, %v516_v60 }
  0x97   : > { %v324_v1 = vmul.f32 %v292_v61, %v292_v61 }
  0x99   : > { %588 = vadd.xlane.f32.xlu1 %v544_v8  ;;  %v517_v8 = vld [vmem:[%s3499_s27 + $0x88] sm:$0xff] }
  0x9a   : > { %364 = vadd.xlane.f32.xlu0 %v320_v9  ;;  %v293_v9 = vld [vmem:[%s3494_s24 + $0x88] sm:$0xff]  ;;  %v549_v16 = vmul.f32 %v517_v8, %v517_v8 }
  0x9b   : > { %v325_v17 = vmul.f32 %v293_v9, %v293_v9  ;;  %v521_v8 = vld [vmem:[%s3499_s27 + $0xa8] sm:$0xff] }
  0x9c   : > { %v297_v9 = vld [vmem:[%s3494_s24 + $0xa8] sm:$0xff] }
  0x9d   : > { %590 = vadd.xlane.f32.xlu1 %v545_v24  ;;  %v518_v24 = vld [vmem:[%s3499_s27 + $0x90] sm:$0xff] }
  0x9e   : > { %366 = vadd.xlane.f32.xlu0 %v321_v25  ;;  %v294_v25 = vld [vmem:[%s3494_s24 + $0x90] sm:$0xff]  ;;  %v550_v32 = vmul.f32 %v518_v24, %v518_v24  ;;  %v553_v24 = vmul.f32 %v521_v8, %v521_v8 }
  0x9f   : > { %v326_v33 = vmul.f32 %v294_v25, %v294_v25  ;;  %v329_v25 = vmul.f32 %v297_v9, %v297_v9 }
  0xa1   : > { %592 = vadd.xlane.f32.xlu1 %v546_v40  ;;  %v519_v40 = vld [vmem:[%s3499_s27 + $0x98] sm:$0xff] }
  0xa2   : > { %368 = vadd.xlane.f32.xlu0 %v322_v41  ;;  %v295_v41 = vld [vmem:[%s3494_s24 + $0x98] sm:$0xff]  ;;  %v551_v48 = vmul.f32 %v519_v40, %v519_v40  ;;  %v951_v40 = vld [vmem:[%s3508_s8 + $0x8] sm:$0xff] }
  0xa3   : > { %v327_v49 = vmul.f32 %v295_v41, %v295_v41  ;;  %v950_v41 = vld [vmem:[%s3508_s8] sm:$0xff] }
  0xa5   : > { %594 = vadd.xlane.f32.xlu1 %v547_v56  ;;  %v520_v56 = vld [vmem:[%s3499_s27 + $0xa0] sm:$0xff] }
  0xa6   : > { %370 = vadd.xlane.f32.xlu0 %v323_v57  ;;  %v296_v57 = vld [vmem:[%s3494_s24 + $0xa0] sm:$0xff]  ;;  %v552_v60 = vmul.f32 %v520_v56, %v520_v56  ;;  %v967_v56 = vmul.f32 %v951_v40, %v951_v40 }
  0xa7   : > { %v328_v61 = vmul.f32 %v296_v57, %v296_v57  ;;  %v966_v57 = vmul.f32 %v950_v41, %v950_v41 }
  0xa9   : > { %596 = vadd.xlane.f32.xlu1 %v548_v0 }
  0xaa   : > { %372 = vadd.xlane.f32.xlu0 %v324_v1 }
  0xad   : > { %598 = vadd.xlane.f32.xlu1 %v549_v16 }
  0xae   : > { %374 = vadd.xlane.f32.xlu0 %v325_v17 }
  0xb1   : > { %600 = vadd.xlane.f32.xlu1 %v550_v32 }
  0xb2   : > { %376 = vadd.xlane.f32.xlu0 %v326_v33 }
  0xb5   : > { %602 = vadd.xlane.f32.xlu1 %v551_v48 }
  0xb6   : > { %378 = vadd.xlane.f32.xlu0 %v327_v49  ;;  %v871_v0 = vpop.xlane.xlu1 %870 }
  0xb7   : > { %v758_v1 = vpop.xlane.xlu0 %757  ;;  %v902_v16 = vadd.f32 1e-12, %v871_v0  ;;  %v522_v0 = vld [vmem:[%s3499_s27 + $0xb0] sm:$0xff] }
  0xb8   : > { %v789_v17 = vadd.f32 1e-12, %v758_v1  ;;  %v298_v1 = vld [vmem:[%s3494_s24 + $0xb0] sm:$0xff] }
  0xb9   : > { %604 = vadd.xlane.f32.xlu1 %v552_v60  ;;  %3099 = vrsqrt.f32 %v902_v16  ;;  %v554_v16 = vmul.f32 %v522_v0, %v522_v0 }
  0xba   : > { %380 = vadd.xlane.f32.xlu0 %v328_v61  ;;  %v873_v32 = vpop.xlane.xlu1 %872  ;;  %3101 = vrsqrt.f32 %v789_v17 }
  0xbb   : > { %v760_v33 = vpop.xlane.xlu0 %759  ;;  %v903_v48 = vadd.f32 1e-12, %v873_v32  ;;  %v330_v32 = vmul.f32 %v298_v1, %v298_v1 }
  0xbc   : > { %v790_v49 = vadd.f32 1e-12, %v760_v33  ;;  %v299_v33 = vld [vmem:[%s3494_s24 + $0xb8] sm:$0xff] }
  0xbd   : > { %3103 = vrsqrt.f32 %v903_v48  ;;  %606 = vadd.xlane.f32.xlu1 %v553_v24 }
  0xbe   : > { %382 = vadd.xlane.f32.xlu0 %v329_v25  ;;  %3105 = vrsqrt.f32 %v790_v49  ;;  %v764_v60 = vpop.xlane.xlu1 %763  ;;  %v523_v25 = vld [vmem:[%s3499_s27 + $0xb8] sm:$0xff] }
  0xbf   : > { %v762_v61 = vpop.xlane.xlu0 %761  ;;  %v792_v8 = vadd.f32 1e-12, %v764_v60  ;;  %v555_v49 = vmul.f32 %v523_v25, %v523_v25  ;;  %v331_v60 = vmul.f32 %v299_v33, %v299_v33 }
  0xc0   : > { %v791_v9 = vadd.f32 1e-12, %v762_v61 }
  0xc1   : > { %3107 = vrsqrt.f32 %v792_v8  ;;  %984 = vadd.xlane.f32.xlu1 %v967_v56 }
  0xc2   : > { %982 = vadd.xlane.f32.xlu0 %v966_v57  ;;  %3109 = vrsqrt.f32 %v791_v9  ;;  %v877_v17 = vpop.xlane.xlu1 %876  ;;  %v524_v9 = vld [vmem:[%s3499_s27 + $0xc0] sm:$0xff] }
  0xc3   : > { %v875_v24 = vpop.xlane.xlu0 %874  ;;  %v905_v40 = vadd.f32 1e-12, %v877_v17  ;;  %v3100_v48 = vpop.eup %3099 }
  0xc4   : > { %v904_v41 = vadd.f32 1e-12, %v875_v24  ;;  %v3102_v61 = vpop.eup %3101  ;;  %v934_v17 = vmul.f32 %v3100_v48, %v3553_v2 }
  0xc5   : > { %3111 = vrsqrt.f32 %v905_v40  ;;  %608 = vadd.xlane.f32.xlu1 %v554_v16  ;;  %v821_v16 = vmul.f32 %v3102_v61, %v3556_v3 }
  0xc6   : > { %384 = vadd.xlane.f32.xlu0 %v330_v32  ;;  %3113 = vrsqrt.f32 %v904_v41  ;;  %v768_v56 = vpop.xlane.xlu1 %767  ;;  %v556_v41 = vmul.f32 %v524_v9, %v524_v9 }
  0xc7   : > { %v766_v57 = vpop.xlane.xlu0 %765  ;;  %v3104_v0 = vpop.eup %3103  ;;  %v794_v1 = vadd.f32 1e-12, %v768_v56  ;;  %v332_v56 = vmul.f32 %v300_v53, %v300_v53 }
  0xc8   : > { %v793_v8 = vadd.f32 1e-12, %v766_v57  ;;  %v3106_v52 = vpop.eup %3105  ;;  %v935_v24 = vmul.f32 %v3104_v0, %v3559_v4  ;;  %v525_v4 = vld [vmem:[%s3499_s27 + $0xc8] sm:$0xff] }
  0xc9   : > { %3115 = vrsqrt.f32 %v794_v1  ;;  %610 = vadd.xlane.f32.xlu1 %v555_v49  ;;  %v822_v32 = vmul.f32 %v3106_v52, %v3566_v7  ;;  %v301_v0 = vld [vmem:[%s3494_s24 + $0xc8] sm:$0xff]  ;;  %v557_v53 = vmul.f32 %v525_v4, %v525_v4  ;;  %v302_v4 = vld [vmem:[%s3494_s24 + $0xd0] sm:$0xff] }
  0xca   : > { %386 = vadd.xlane.f32.xlu0 %v331_v60  ;;  %3117 = vrsqrt.f32 %v793_v8  ;;  %v881_v25 = vpop.xlane.xlu1 %880  ;;  %v2970_v40 = vpack.c.bf16 %v935_v24, %v934_v17  ;;  %v333_v60 = vmul.f32 %v301_v0, %v301_v0 }
  0xcb   : > { %v879_v33 = vpop.xlane.xlu0 %878  ;;  %v3108_v57 = vpop.eup %3107  ;;  %v907_v45 = vadd.f32 1e-12, %v881_v25  ;;  %v2938_v48 = vpack.c.bf16 %v822_v32, %v821_v16 }
  0xcc   : > { %v906_v2 = vadd.f32 1e-12, %v879_v33  ;;  %v3110_v1 = vpop.eup %3109  ;;  %2971 = vmatprep.subr.bf16.mxu1 %v2970_v40  ;;  %v824_v49 = vmul.f32 %v3108_v57, %v3573_v10  ;;  %v953_v10 = vld [vmem:[%s3508_s8 + $0x18] sm:$0xff] }
  0xcd   : > { %3119 = vrsqrt.f32 %v907_v45  ;;  %2939 = vmatprep.subr.bf16.mxu0 %v2938_v48  ;;  %2973 = vmatpush3.bf16.xpose.msra.mxu1 %v2970_v40  ;;  %v823_v3 = vmul.f32 %v3110_v1, %v3576_v11  ;;  %v952_v45 = vld [vmem:[%s3508_s8 + $0x10] sm:$0xff]  ;;  %v969_v33 = vmul.f32 %v953_v10, %v953_v10 }
  0xce   : > { %3121 = vrsqrt.f32 %v906_v2  ;;  %612 = vadd.xlane.f32.xlu1 %v556_v41  ;;  %388 = vadd.xlane.f32.xlu0 %v332_v56  ;;  %v772_v7 = vpop.xlane.xlu1 %771  ;;  %v968_v40 = vmul.f32 %v952_v45, %v952_v45 }
  0xcf   : > { %v770_v52 = vpop.xlane.xlu0 %769  ;;  %v3112_v61 = vpop.eup %3111  ;;  %2941 = vmatpush3.bf16.xpose.msra.mxu0 %v2938_v48  ;;  %v796_v8 = vadd.f32 1e-12, %v772_v7  ;;  %v2942_v17 = vpack.c.bf16 %v824_v49, %v823_v3  ;;  %v526_v48 = vld [vmem:[%s3499_s27 + $0xd0] sm:$0xff]  ;;  %v334_v7 = vmul.f32 %v302_v4, %v302_v4 }
  0xd0   : > { %v795_v9 = vadd.f32 1e-12, %v770_v52  ;;  %v3114_v24 = vpop.eup %3113  ;;  %v937_v16 = vmul.f32 %v3112_v61, %v3583_v14  ;;  %v558_v3 = vmul.f32 %v526_v48, %v526_v48 }
  0xd1   : > { %3123 = vrsqrt.f32 %v796_v8  ;;  %2943 = vmatprep.subr.bf16.mxu0 %v2942_v17  ;;  %v936_v11 = vmul.f32 %v3114_v24, %v3586_v15  ;;  %v303_v8 = vld [vmem:[%s3494_s24 + $0xd8] sm:$0xff] }
  0xd2   : > { %3125 = vrsqrt.f32 %v795_v9  ;;  %614 = vadd.xlane.f32.xlu1 %v557_v53  ;;  %390 = vadd.xlane.f32.xlu0 %v333_v60  ;;  %v885_v32 = vpop.xlane.xlu1 %884 }
  0xd3   : > { %v883_v25 = vpop.xlane.xlu0 %882  ;;  %v3116_v41 = vpop.eup %3115  ;;  %v909_v56 = vadd.f32 1e-12, %v885_v32  ;;  %v2974_v2 = vpack.c.bf16 %v937_v16, %v936_v11  ;;  %v335_v16 = vmul.f32 %v303_v8, %v303_v8 }
  0xd4   : > { %v908_v57 = vadd.f32 1e-12, %v883_v25  ;;  %v3118_v0 = vpop.eup %3117  ;;  %v826_v14 = vmul.f32 %v3116_v41, %v3593_v18  ;;  %v527_v18 = vld [vmem:[%s3499_s27 + $0xd8] sm:$0xff]  ;;  %v304_v41 = vld [vmem:[%s3494_s24 + $0xe0] sm:$0xff] }
  0xd5   : > { %3127 = vrsqrt.f32 %v909_v56  ;;  %2975 = vmatprep.subr.bf16.mxu1 %v2974_v2  ;;  %v825_v15 = vmul.f32 %v3118_v0, %v3596_v19  ;;  %v559_v24 = vmul.f32 %v527_v18, %v527_v18  ;;  %v336_v4 = vmul.f32 %v304_v41, %v304_v41 }
  0xd6   : > { %3129 = vrsqrt.f32 %v908_v57  ;;  %988 = vadd.xlane.f32.xlu1 %v969_v33  ;;  %986 = vadd.xlane.f32.xlu0 %v968_v40  ;;  %v776_v1 = vpop.xlane.xlu1 %775  ;;  %v528_v40 = vld [vmem:[%s3499_s27 + $0xe0] sm:$0xff] }
  0xd7   : > { %v774_v49 = vpop.xlane.xlu0 %773  ;;  %v3120_v52 = vpop.eup %3119  ;;  %2945 = vmatpush3.bf16.xpose.msra.mxu0 %v2942_v17  ;;  %2977 = vmatpush3.bf16.xpose.msra.mxu1 %v2974_v2  ;;  %v798_v53 = vadd.f32 1e-12, %v776_v1  ;;  %v2946_v61 = vpack.c.bf16 %v826_v14, %v825_v15  ;;  %v560_v48 = vmul.f32 %v528_v40, %v528_v40 }
  0xd8   : > { %v797_v60 = vadd.f32 1e-12, %v774_v49  ;;  %v3122_v9 = vpop.eup %3121  ;;  %v939_v10 = vmul.f32 %v3120_v52, %v3603_v22  ;;  %v305_v49 = vld [vmem:[%s3494_s24 + $0xe8] sm:$0xff] }
  0xd9   : > { %3131 = vrsqrt.f32 %v798_v53  ;;  %2947 = vmatprep.subr.bf16.mxu0 %v2946_v61  ;;  %v938_v19 = vmul.f32 %v3122_v9, %v3606_v23 }
  0xda   : > { %3133 = vrsqrt.f32 %v797_v60  ;;  %616 = vadd.xlane.f32.xlu1 %v558_v3  ;;  %392 = vadd.xlane.f32.xlu0 %v334_v7  ;;  %v889_v45 = vpop.xlane.xlu1 %888 }
  0xdb   : > { %v887_v17 = vpop.xlane.xlu0 %886  ;;  %v3124_v11 = vpop.eup %3123  ;;  %v911_v32 = vadd.f32 1e-12, %v889_v45  ;;  %v2978_v33 = vpack.c.bf16 %v939_v10, %v938_v19  ;;  %v955_v19 = vld [vmem:[%s3508_s8 + $0x28] sm:$0xff]  ;;  %v954_v45 = vld [vmem:[%s3508_s8 + $0x20] sm:$0xff] }
  0xdc   : > { %v910_v25 = vadd.f32 1e-12, %v887_v17  ;;  %v3126_v56 = vpop.eup %3125  ;;  %v828_v22 = vmul.f32 %v3124_v11, %v3613_v26  ;;  %v529_v26 = vld [vmem:[%s3499_s27 + $0xe8] sm:$0xff]  ;;  %v971_v11 = vmul.f32 %v955_v19, %v955_v19 }
  0xdd   : > { %3135 = vrsqrt.f32 %v911_v32  ;;  %2979 = vmatprep.subr.bf16.mxu1 %v2978_v33  ;;  %v827_v23 = vmul.f32 %v3126_v56, %v3616_v27  ;;  %v561_v60 = vmul.f32 %v529_v26, %v529_v26  ;;  %v970_v32 = vmul.f32 %v954_v45, %v954_v45  ;;  %v306_v56 = vld [vmem:[%s3494_s24 + $0xf0] sm:$0xff]  ;;  %v531_v26 = vld [vmem:[%s3499_s27 + $0xf8] sm:$0xff] }
  0xde   : > { %3137 = vrsqrt.f32 %v910_v25  ;;  %618 = vadd.xlane.f32.xlu1 %v559_v24  ;;  %394 = vadd.xlane.f32.xlu0 %v335_v16  ;;  %v780_v57 = vpop.xlane.xlu1 %779 }
  0xdf   : > { %v778_v2 = vpop.xlane.xlu0 %777  ;;  %v3128_v0 = vpop.eup %3127  ;;  %2949 = vmatpush3.bf16.xpose.msra.mxu0 %v2946_v61  ;;  %2981 = vmatpush3.bf16.xpose.msra.mxu1 %v2978_v33  ;;  %v800_v14 = vadd.f32 1e-12, %v780_v57  ;;  %v2950_v1 = vpack.c.bf16 %v828_v22, %v827_v23  ;;  %v337_v61 = vmul.f32 %v305_v49, %v305_v49  ;;  %v307_v49 = vld [vmem:[%s3494_s24 + $0xf8] sm:$0xff] }
  0xe0   : > { %v799_v15 = vadd.f32 1e-12, %v778_v2  ;;  %v3130_v3 = vpop.eup %3129  ;;  %v941_v7 = vmul.f32 %v3128_v0, %v3623_v30 }
  0xe1   : > { %3139 = vrsqrt.f32 %v800_v14  ;;  %2951 = vmatprep.subr.bf16.mxu0 %v2950_v1  ;;  %v940_v27 = vmul.f32 %v3130_v3, %v3626_v31 }
  0xe2   : > { %3141 = vrsqrt.f32 %v799_v15  ;;  %620 = vadd.xlane.f32.xlu1 %v560_v48  ;;  %396 = vadd.xlane.f32.xlu0 %v336_v4  ;;  %v893_v52 = vpop.xlane.xlu1 %892  ;;  %v338_v4 = vmul.f32 %v306_v56, %v306_v56 }
  0xe3   : > { %v891_v53 = vpop.xlane.xlu0 %890  ;;  %v3132_v18 = vpop.eup %3131  ;;  %v913_v8 = vadd.f32 1e-12, %v893_v52  ;;  %v2982_v10 = vpack.c.bf16 %v941_v7, %v940_v27  ;;  %v563_v52 = vmul.f32 %v531_v26, %v531_v26 }
  0xe4   : > { %v912_v9 = vadd.f32 1e-12, %v891_v53  ;;  %v3134_v17 = vpop.eup %3133  ;;  %v830_v30 = vmul.f32 %v3132_v18, %v3633_v34  ;;  %v530_v34 = vld [vmem:[%s3499_s27 + $0xf0] sm:$0xff]  ;;  %v339_v53 = vmul.f32 %v307_v49, %v307_v49 }
  0xe5   : > { %3143 = vrsqrt.f32 %v913_v8  ;;  %2983 = vmatprep.subr.bf16.mxu1 %v2982_v10  ;;  %v829_v31 = vmul.f32 %v3134_v17, %v3636_v35  ;;  %v562_v48 = vmul.f32 %v530_v34, %v530_v34 }
  0xe6   : > { %3145 = vrsqrt.f32 %v912_v9  ;;  %622 = vadd.xlane.f32.xlu1 %v561_v60  ;;  %398 = vadd.xlane.f32.xlu0 %v337_v61  ;;  %v784_v24 = vpop.xlane.xlu1 %783  ;;  %v956_v9 = vld [vmem:[%s3508_s8 + $0x30] sm:$0xff] }
  0xe7   : > { %v782_v16 = vpop.xlane.xlu0 %781  ;;  %v3136_v25 = vpop.eup %3135  ;;  %2953 = vmatpush3.bf16.xpose.msra.mxu0 %v2950_v1  ;;  %2985 = vmatpush3.bf16.xpose.msra.mxu1 %v2982_v10  ;;  %v802_v33 = vadd.f32 1e-12, %v784_v24  ;;  %v2954_v41 = vpack.c.bf16 %v830_v30, %v829_v31  ;;  %v972_v31 = vmul.f32 %v956_v9, %v956_v9 }
  0xe8   : > { %v801_v40 = vadd.f32 1e-12, %v782_v16  ;;  %v3138_v22 = vpop.eup %3137  ;;  %v943_v23 = vmul.f32 %v3136_v25, %v3643_v38  ;;  %v959_v25 = vld [vmem:[%s3508_s8 + $0x48] sm:$0xff] }
  0xe9   : > { %3147 = vrsqrt.f32 %v802_v33  ;;  %2955 = vmatprep.subr.bf16.mxu0 %v2954_v41  ;;  %v942_v35 = vmul.f32 %v3138_v22, %v3646_v39  ;;  %v958_v33 = vld [vmem:[%s3508_s8 + $0x40] sm:$0xff]  ;;  %v975_v56 = vmul.f32 %v959_v25, %v959_v25 }
  0xea   : > { %3149 = vrsqrt.f32 %v801_v40  ;;  %992 = vadd.xlane.f32.xlu1 %v971_v11  ;;  %990 = vadd.xlane.f32.xlu0 %v970_v32  ;;  %v897_v57 = vpop.xlane.xlu1 %896  ;;  %v974_v22 = vmul.f32 %v958_v33, %v958_v33 }
  0xeb   : > { %v895_v2 = vpop.xlane.xlu0 %894  ;;  %v3140_v0 = vpop.eup %3139  ;;  %v915_v14 = vadd.f32 1e-12, %v897_v57  ;;  %v2986_v1 = vpack.c.bf16 %v943_v23, %v942_v35 }
  0xec   : > { %v914_v15 = vadd.f32 1e-12, %v895_v2  ;;  %v3142_v3 = vpop.eup %3141  ;;  %v832_v38 = vmul.f32 %v3140_v0, %v3653_v42  ;;  %v957_v42 = vld [vmem:[%s3508_s8 + $0x38] sm:$0xff] }
  0xed   : > { %3151 = vrsqrt.f32 %v915_v14  ;;  %2987 = vmatprep.subr.bf16.mxu1 %v2986_v1  ;;  %v831_v39 = vmul.f32 %v3142_v3, %v3656_v43  ;;  %v973_v30 = vmul.f32 %v957_v42, %v957_v42 }
  0xee   : > { %3153 = vrsqrt.f32 %v914_v15  ;;  %624 = vadd.xlane.f32.xlu1 %v562_v48  ;;  %400 = vadd.xlane.f32.xlu0 %v338_v4  ;;  %v788_v7 = vpop.xlane.xlu1 %787  ;;  %v960_v48 = vld [vmem:[%s3508_s8 + $0x50] sm:$0xff] }
  0xef   : > { %v786_v27 = vpop.xlane.xlu0 %785  ;;  %v3144_v60 = vpop.eup %3143  ;;  %2957 = vmatpush3.bf16.xpose.msra.mxu0 %v2954_v41  ;;  %2989 = vmatpush3.bf16.xpose.msra.mxu1 %v2986_v1  ;;  %v804_v61 = vadd.f32 1e-12, %v788_v7  ;;  %v2958_v8 = vpack.c.bf16 %v832_v38, %v831_v39  ;;  %v976_v26 = vmul.f32 %v960_v48, %v960_v48  ;;  %v3873_v7 = vld [vmem:[%s3508_s8 + $0x68] sm:$0xff] }
  0xf0   : > { %v803_v18 = vadd.f32 1e-12, %v786_v27  ;;  %v3146_v10 = vpop.eup %3145  ;;  %v945_v19 = vmul.f32 %v3144_v60, %v3663_v46  ;;  %v3876_v27 = vld [vmem:[%s3508_s8 + $0x60] sm:$0xff] }
  0xf1   : > { %3155 = vrsqrt.f32 %v804_v61  ;;  %2959 = vmatprep.subr.bf16.mxu0 %v2958_v8  ;;  %v944_v43 = vmul.f32 %v3146_v10, %v3666_v47  ;;  %v979_v61 = vmul.f32 %v3873_v7, %v3873_v7 }
  0xf2   : > { %3157 = vrsqrt.f32 %v803_v18  ;;  %626 = vadd.xlane.f32.xlu1 %v563_v52  ;;  %402 = vadd.xlane.f32.xlu0 %v339_v53  ;;  %v901_v45 = vpop.xlane.xlu1 %900  ;;  %v978_v18 = vmul.f32 %v3876_v27, %v3876_v27 }
  0xf3   : > { %v899_v17 = vpop.xlane.xlu0 %898  ;;  %v3148_v24 = vpop.eup %3147  ;;  %v917_v16 = vadd.f32 1e-12, %v901_v45  ;;  %v2990_v32 = vpack.c.bf16 %v945_v19, %v944_v43  ;;  %v3890_v45 = vld [vmem:[%s3508_s8 + $0x70] sm:$0xff] }
  0xf4   : > { %v916_v11 = vadd.f32 1e-12, %v899_v17  ;;  %v3150_v40 = vpop.eup %3149  ;;  %v834_v46 = vmul.f32 %v3148_v24, %v3673_v50  ;;  %v961_v50 = vld [vmem:[%s3508_s8 + $0x58] sm:$0xff] }
  0xf5   : > { %3159 = vrsqrt.f32 %v917_v16  ;;  %2991 = vmatprep.subr.bf16.mxu1 %v2990_v32  ;;  %v833_v47 = vmul.f32 %v3150_v40, %v3676_v51  ;;  %v977_v1 = vmul.f32 %v961_v50, %v961_v50 }
  0xf6   : > { %3161 = vrsqrt.f32 %v916_v11  ;;  %996 = vadd.xlane.f32.xlu1 %v973_v30  ;;  %994 = vadd.xlane.f32.xlu0 %v972_v31  ;;  %v565_v41 = vpop.xlane.xlu1 %564 }
  0xf7   : > { %v341_v34 = vpop.xlane.xlu0 %340  ;;  %v3152_v23 = vpop.eup %3151  ;;  %2961 = vmatpush3.bf16.xpose.msra.mxu0 %v2958_v8  ;;  %2993 = vmatpush3.bf16.xpose.msra.mxu1 %v2990_v32  ;;  %v628_v35 = vadd.f32 1e-12, %v565_v41  ;;  %v2962_v2 = vpack.c.bf16 %v834_v46, %v833_v47 }
  0xf8   : > { %v404_v57 = vadd.f32 1e-12, %v341_v34  ;;  %v3154_v4 = vpop.eup %3153  ;;  %v947_v0 = vmul.f32 %v3152_v23, %v3683_v54 }
  0xf9   : > { %3163 = vrsqrt.f32 %v628_v35  ;;  %2963 = vmatprep.subr.bf16.mxu0 %v2962_v2  ;;  %v946_v51 = vmul.f32 %v3154_v4, %v3686_v55 }
  0xfa   : > { %3165 = vrsqrt.f32 %v404_v57  ;;  %v567_v14 = vpop.xlane.xlu1 %566  ;;  %1000 = vadd.xlane.f32.xlu1 %v975_v56  ;;  %998 = vadd.xlane.f32.xlu0 %v974_v22 }
  0xfb   : > { %v343_v15 = vpop.xlane.xlu0 %342  ;;  %v3156_v49 = vpop.eup %3155  ;;  %v629_v3 = vadd.f32 1e-12, %v567_v14  ;;  %v2994_v39 = vpack.c.bf16 %v947_v0, %v946_v51 }
  0xfc   : > { %v405_v38 = vadd.f32 1e-12, %v343_v15  ;;  %v3158_v54 = vpop.eup %3157  ;;  %v836_v52 = vmul.f32 %v3156_v49, %v3693_v58 }
  0xfd   : > { %2995 = vmatprep.subr.bf16.mxu1 %v2994_v39  ;;  %v835_v55 = vmul.f32 %v3158_v54, %v3696_v59  ;;  %3167 = vrsqrt.f32 %v629_v3  ;;  %v3885_v59 = vld [vmem:[%s3508_s8 + $0x78] sm:$0xff] }
  0xfe   : > { %v569_v53 = vpop.xlane.xlu1 %568  ;;  %1004 = vadd.xlane.f32.xlu1 %v977_v1  ;;  %1002 = vadd.xlane.f32.xlu0 %v976_v26  ;;  %3169 = vrsqrt.f32 %v405_v38  ;;  %v981_v31 = vmul.f32 %v3885_v59, %v3885_v59 }
  0xff   : > { %v345_v60 = vpop.xlane.xlu0 %344  ;;  %v3160_v8 = vpop.eup %3159  ;;  %2965 = vmatpush3.bf16.xpose.msra.mxu0 %v2962_v2  ;;  %2997 = vmatpush3.bf16.xpose.msra.mxu1 %v2994_v39  ;;  %v630_v58 = vadd.f32 1e-12, %v569_v53  ;;  %v2966_v9 = vpack.c.bf16 %v836_v52, %v835_v55 }
 0x100   : > { %v406_v42 = vadd.f32 1e-12, %v345_v60  ;;  %v3162_v10 = vpop.eup %3161  ;;  %v949_v19 = vmul.f32 %v3160_v8, %v3703_v62  ;;  %v5270_v8 = vld [vmem:[#allocation5_spill] sm:$0xff] }
 0x101   : > { %3171 = vrsqrt.f32 %v630_v58  ;;  %2967 = vmatprep.subr.bf16.mxu0 %v2966_v9  ;;  %v948_v43 = vmul.f32 %v3162_v10, %v3706_v63  ;;  %v980_v63 = vmul.f32 %v3890_v45, %v3890_v45 }
 0x102   : > { %3173 = vrsqrt.f32 %v406_v42  ;;  %v571_v17 = vpop.xlane.xlu1 %570  ;;  %1008 = vadd.xlane.f32.xlu1 %v979_v61  ;;  %1006 = vadd.xlane.f32.xlu0 %v978_v18 }
 0x103   : > { %v347_v30 = vpop.xlane.xlu0 %346  ;;  %v3164_v24 = vpop.eup %3163  ;;  %v631_v16 = vadd.f32 1e-12, %v571_v17  ;;  %v2998_v32 = vpack.c.bf16 %v949_v19, %v948_v43  ;;  %v5271_v43 = vld [vmem:[#allocation6_spill] sm:$0xff] }
 0x104   : > { %v407_v11 = vadd.f32 1e-12, %v347_v30  ;;  %v3166_v25 = vpop.eup %3165  ;;  %v692_v62 = vmul.f32 %v3164_v24, %v3713_v5 }
 0x105   : > { %3175 = vrsqrt.f32 %v631_v16  ;;  %2999 = vmatprep.subr.bf16.mxu1 %v2998_v32  ;;  %v3898_v33 = vmul.f32 %v3166_v25, %v3716_v6 }
 0x106   : > { %3177 = vrsqrt.f32 %v407_v11  ;;  %2810 = vmatprep.mubr.f32.mxu1 %v692_v62  ;;  %v573_v40 = vpop.xlane.xlu1 %572  ;;  %1012 = vadd.xlane.f32.xlu1 %v981_v31  ;;  %v3327_v62 = vld [vmem:[%s3499_s27 + $0x38] sm:$0xff] }
 0x107   : > { %v349_v46 = vpop.xlane.xlu0 %348  ;;  %2969 = vmatpush3.bf16.xpose.msra.mxu0 %v2966_v9  ;;  %3001 = vmatpush3.bf16.xpose.msra.mxu1 %v2998_v32  ;;  %v632_v47 = vadd.f32 1e-12, %v573_v40  ;;  %v3168_v34 = vpop.eup %3167  ;;  %v3328_v40 = vld [vmem:[%s3494_s24 + $0x38] sm:$0xff] }
 0x108   : > { %v408_v41 = vadd.f32 1e-12, %v349_v46  ;;  %2730 = vmatprep.mubr.f32.mxu0 %v3898_v33  ;;  %1010 = vadd.xlane.f32.xlu0 %v980_v63  ;;  %v3170_v5 = vpop.eup %3169  ;;  %v693_v50 = vmul.f32 %v3168_v34, %v3723_v12 }
 0x109   : > { %3179 = vrsqrt.f32 %v632_v47  ;;  %v3902_v2 = vmul.f32 %v3170_v5, %v3726_v13 }
 0x10a   : > { %3181 = vrsqrt.f32 %v408_v41  ;;  %v575_v56 = vpop.xlane.xlu1 %574 }
 0x10b   : > { %v351_v22 = vpop.xlane.xlu0 %350  ;;  %v3172_v6 = vpop.eup %3171  ;;  %v633_v23 = vadd.f32 1e-12, %v575_v56 }
 0x10c   : > { %v409_v35 = vadd.f32 1e-12, %v351_v22  ;;  %v3174_v57 = vpop.eup %3173  ;;  %v694_v48 = vmul.f32 %v3172_v6, %v3733_v20  ;;  %v3329_v6 = vld [vmem:[%s3499_s27 + $0x40] sm:$0xff] }
 0x10d   : > { %3183 = vrsqrt.f32 %v633_v23  ;;  %v3907_v4 = vmul.f32 %v3174_v57, %v3736_v21 }
 0x10e   : > { %3185 = vrsqrt.f32 %v409_v35  ;;  %2731 = vmatmul.mubr.f32.vlgmr.msra.gmra.mrb[0].mxu0 %v3902_v2  ;;  %2811 = vmatmul.mubr.f32.vlgmr.msra.gmra.mrb[0].mxu1 %v693_v50  ;;  %v577_v0 = vpop.xlane.xlu1 %576  ;;  %v3330_v35 = vld [vmem:[%s3494_s24 + $0x40] sm:$0xff] }
 0x10f   : > { %v353_v51 = vpop.xlane.xlu0 %352  ;;  %v3176_v14 = vpop.eup %3175  ;;  %v634_v15 = vadd.f32 1e-12, %v577_v0  ;;  %2733 = vmatprep.mubr.f32.mxu0 %v3907_v4  ;;  %2813 = vmatprep.mubr.f32.mxu1 %v694_v48 }
 0x110   : > { %v410_v13 = vadd.f32 1e-12, %v353_v51  ;;  %v3178_v1 = vpop.eup %3177  ;;  %v695_v12 = vmul.f32 %v3176_v14, %v3743_v28 }
 0x111   : > { %3187 = vrsqrt.f32 %v634_v15  ;;  %v3913_v20 = vmul.f32 %v3178_v1, %v3746_v29 }
 0x112   : > { %3189 = vrsqrt.f32 %v410_v13  ;;  %v579_v21 = vpop.xlane.xlu1 %578  ;;  %2814 = vmatmul.mubr.f32.gmra.mrb[2].mxu1 %v695_v12  ;;  %v3331_v13 = vld [vmem:[%s3499_s27 + $0x48] sm:$0xff] }
 0x113   : > { %v355_v26 = vpop.xlane.xlu0 %354  ;;  %v3180_v49 = vpop.eup %3179  ;;  %v635_v3 = vadd.f32 1e-12, %v579_v21  ;;  %2734 = vmatmul.mubr.f32.gmra.mrb[2].mxu0 %v3913_v20  ;;  %v3332_v12 = vld [vmem:[%s3494_s24 + $0x48] sm:$0xff] }
 0x114   : > { %v411_v38 = vadd.f32 1e-12, %v355_v26  ;;  %v3182_v39 = vpop.eup %3181  ;;  %v696_v54 = vmul.f32 %v3180_v49, %v3753_v36 }
 0x115   : > { %3191 = vrsqrt.f32 %v635_v3  ;;  %v3918_v52 = vmul.f32 %v3182_v39, %v3756_v37 }
 0x116   : > { %3193 = vrsqrt.f32 %v411_v38  ;;  %v581_v28 = vpop.xlane.xlu1 %580  ;;  %2816 = vmatprep.mubr.f32.mxu1 %v696_v54 }
 0x117   : > { %v357_v29 = vpop.xlane.xlu0 %356  ;;  %v3184_v55 = vpop.eup %3183  ;;  %v636_v53 = vadd.f32 1e-12, %v581_v28  ;;  %2736 = vmatprep.mubr.f32.mxu0 %v3918_v52  ;;  %v3333_v28 = vld [vmem:[%s3499_s27 + $0x50] sm:$0xff] }
 0x118   : > { %v412_v60 = vadd.f32 1e-12, %v357_v29  ;;  %v3186_v61 = vpop.eup %3185  ;;  %v697_v18 = vmul.f32 %v3184_v55, %v3763_v44  ;;  %v5272_v44 = vld [vmem:[#allocation7_spill] sm:$0xff] }
 0x119   : > { %3195 = vrsqrt.f32 %v636_v53  ;;  %v3923_v58 = vmul.f32 %v3186_v61, %v5270_v8  ;;  %v3334_v55 = vld [vmem:[%s3494_s24 + $0x50] sm:$0xff] }
 0x11a   : > { %3197 = vrsqrt.f32 %v412_v60  ;;  %v583_v36 = vpop.xlane.xlu1 %582  ;;  %2817 = vmatmul.mubr.f32.gmra.mrb[4].mxu1 %v697_v18 }
 0x11b   : > { %v359_v37 = vpop.xlane.xlu0 %358  ;;  %v3188_v42 = vpop.eup %3187  ;;  %v637_v9 = vadd.f32 1e-12, %v583_v36  ;;  %2737 = vmatmul.mubr.f32.gmra.mrb[4].mxu0 %v3923_v58 }
 0x11c   : > { %v413_v10 = vadd.f32 1e-12, %v359_v37  ;;  %v3190_v19 = vpop.eup %3189  ;;  %v698_v17 = vmul.f32 %v3188_v42, %v5271_v43  ;;  %v3335_v42 = vld [vmem:[%s3499_s27 + $0x58] sm:$0xff] }
 0x11d   : > { %3199 = vrsqrt.f32 %v637_v9  ;;  %v3928_v30 = vmul.f32 %v3190_v19, %v5272_v44 }
 0x11e   : > { %3201 = vrsqrt.f32 %v413_v10  ;;  %v585_v31 = vpop.xlane.xlu1 %584  ;;  %2819 = vmatprep.mubr.f32.mxu1 %v698_v17  ;;  %v3336_v10 = vld [vmem:[%s3494_s24 + $0x58] sm:$0xff] }
 0x11f   : > { %v361_v24 = vpop.xlane.xlu0 %360  ;;  %v3192_v16 = vpop.eup %3191  ;;  %v638_v11 = vadd.f32 1e-12, %v585_v31  ;;  %2739 = vmatprep.mubr.f32.mxu0 %v3928_v30 }
 0x120   : > { %v414_v32 = vadd.f32 1e-12, %v361_v24  ;;  %v3194_v25 = vpop.eup %3193  ;;  %v699_v63 = vmul.f32 %v3327_v62, %v3192_v16 }
 0x121   : > { %3203 = vrsqrt.f32 %v638_v11  ;;  %v3933_v46 = vmul.f32 %v3328_v40, %v3194_v25  ;;  %v3337_v11 = vld [vmem:[%s3499_s27 + $0x60] sm:$0xff] }
 0x122   : > { %3205 = vrsqrt.f32 %v414_v32  ;;  %v587_v47 = vpop.xlane.xlu1 %586  ;;  %2820 = vmatmul.mubr.f32.gmra.mrb[6].mxu1 %v699_v63  ;;  %v3338_v25 = vld [vmem:[%s3494_s24 + $0x60] sm:$0xff] }
 0x123   : > { %v363_v41 = vpop.xlane.xlu0 %362  ;;  %v3196_v34 = vpop.eup %3195  ;;  %v639_v5 = vadd.f32 1e-12, %v587_v47  ;;  %2740 = vmatmul.mubr.f32.gmra.mrb[6].mxu0 %v3933_v46 }
 0x124   : > { %v415_v56 = vadd.f32 1e-12, %v363_v41  ;;  %v3198_v22 = vpop.eup %3197  ;;  %v700_v23 = vmul.f32 %v3329_v6, %v3196_v34  ;;  %v3340_v6 = vld [vmem:[%s3494_s24 + $0x68] sm:$0xff] }
 0x125   : > { %3207 = vrsqrt.f32 %v639_v5  ;;  %v3938_v57 = vmul.f32 %v3330_v35, %v3198_v22 }
 0x126   : > { %3209 = vrsqrt.f32 %v415_v56  ;;  %v589_v50 = vpop.xlane.xlu1 %588  ;;  %2822 = vmatprep.mubr.f32.mxu1 %v700_v23  ;;  %v3339_v56 = vld [vmem:[%s3499_s27 + $0x68] sm:$0xff] }
 0x127   : > { %v365_v48 = vpop.xlane.xlu0 %364  ;;  %v3200_v0 = vpop.eup %3199  ;;  %v640_v51 = vadd.f32 1e-12, %v589_v50  ;;  %2742 = vmatprep.mubr.f32.mxu0 %v3938_v57 }
 0x128   : > { %v416_v14 = vadd.f32 1e-12, %v365_v48  ;;  %v3202_v15 = vpop.eup %3201  ;;  %v701_v1 = vmul.f32 %v3331_v13, %v3200_v0 }
 0x129   : > { %3211 = vrsqrt.f32 %v640_v51  ;;  %v3943_v21 = vmul.f32 %v3332_v12, %v3202_v15  ;;  %v3341_v15 = vld [vmem:[%s3499_s27 + $0x70] sm:$0xff] }
 0x12a   : > { %3213 = vrsqrt.f32 %v416_v14  ;;  %v591_v26 = vpop.xlane.xlu1 %590  ;;  %2823 = vmatmul.mubr.f32.gmra.mrb[8].mxu1 %v701_v1  ;;  %v3342_v1 = vld [vmem:[%s3494_s24 + $0x70] sm:$0xff] }
 0x12b   : > { %v367_v49 = vpop.xlane.xlu0 %366  ;;  %v3204_v3 = vpop.eup %3203  ;;  %v641_v38 = vadd.f32 1e-12, %v591_v26  ;;  %2743 = vmatmul.mubr.f32.gmra.mrb[8].mxu0 %v3943_v21 }
 0x12c   : > { %v417_v39 = vadd.f32 1e-12, %v367_v49  ;;  %v3206_v54 = vpop.eup %3205  ;;  %v702_v29 = vmul.f32 %v3333_v28, %v3204_v3  ;;  %v3343_v28 = vld [vmem:[%s3499_s27 + $0x78] sm:$0xff] }
 0x12d   : > { %3215 = vrsqrt.f32 %v641_v38  ;;  %v3948_v53 = vmul.f32 %v3334_v55, %v3206_v54  ;;  %v3344_v55 = vld [vmem:[%s3494_s24 + $0x78] sm:$0xff] }
 0x12e   : > { %3217 = vrsqrt.f32 %v417_v39  ;;  %v593_v60 = vpop.xlane.xlu1 %592  ;;  %2825 = vmatprep.mubr.f32.mxu1 %v702_v29 }
 0x12f   : > { %v369_v61 = vpop.xlane.xlu0 %368  ;;  %v3208_v18 = vpop.eup %3207  ;;  %v642_v8 = vadd.f32 1e-12, %v593_v60  ;;  %2745 = vmatprep.mubr.f32.mxu0 %v3948_v53 }
 0x130   : > { %v418_v36 = vadd.f32 1e-12, %v369_v61  ;;  %v3210_v37 = vpop.eup %3209  ;;  %v703_v9 = vmul.f32 %v3335_v42, %v3208_v18 }
 0x131   : > { %3219 = vrsqrt.f32 %v642_v8  ;;  %v3953_v19 = vmul.f32 %v3336_v10, %v3210_v37 }
 0x132   : > { %3221 = vrsqrt.f32 %v418_v36  ;;  %v595_v43 = vpop.xlane.xlu1 %594  ;;  %2826 = vmatmul.mubr.f32.gmra.mrb[10].mxu1 %v703_v9  ;;  %v3345_v9 = vld [vmem:[%s3499_s27 + $0x80] sm:$0xff] }
 0x133   : > { %v371_v17 = vpop.xlane.xlu0 %370  ;;  %v3212_v44 = vpop.eup %3211  ;;  %v643_v31 = vadd.f32 1e-12, %v595_v43  ;;  %2746 = vmatmul.mubr.f32.gmra.mrb[10].mxu0 %v3953_v19  ;;  %v3346_v43 = vld [vmem:[%s3494_s24 + $0x80] sm:$0xff] }
 0x134   : > { %v419_v24 = vadd.f32 1e-12, %v371_v17  ;;  %v3214_v16 = vpop.eup %3213  ;;  %v704_v32 = vmul.f32 %v3337_v11, %v3212_v44 }
 0x135   : > { %3223 = vrsqrt.f32 %v643_v31  ;;  %v3958_v62 = vmul.f32 %v3338_v25, %v3214_v16  ;;  %v3347_v25 = vld [vmem:[%s3499_s27 + $0x88] sm:$0xff] }
 0x136   : > { %3225 = vrsqrt.f32 %v419_v24  ;;  %v597_v63 = vpop.xlane.xlu1 %596  ;;  %2828 = vmatprep.mubr.f32.mxu1 %v704_v32 }
 0x137   : > { %v373_v40 = vpop.xlane.xlu0 %372  ;;  %v3216_v47 = vpop.eup %3215  ;;  %v644_v41 = vadd.f32 1e-12, %v597_v63  ;;  %2748 = vmatprep.mubr.f32.mxu0 %v3958_v62 }
 0x138   : > { %v420_v34 = vadd.f32 1e-12, %v373_v40  ;;  %v3218_v5 = vpop.eup %3217  ;;  %v705_v22 = vmul.f32 %v3339_v56, %v3216_v47  ;;  %v3348_v40 = vld [vmem:[%s3494_s24 + $0x88] sm:$0xff] }
 0x139   : > { %3227 = vrsqrt.f32 %v644_v41  ;;  %v3963_v23 = vmul.f32 %v3340_v6, %v3218_v5 }
 0x13a   : > { %3229 = vrsqrt.f32 %v420_v34  ;;  %v599_v35 = vpop.xlane.xlu1 %598  ;;  %2829 = vmatmul.mubr.f32.gmra.mrb[12].mxu1 %v705_v22 }
 0x13b   : > { %v375_v50 = vpop.xlane.xlu0 %374  ;;  %v3220_v48 = vpop.eup %3219  ;;  %v645_v0 = vadd.f32 1e-12, %v599_v35  ;;  %2749 = vmatmul.mubr.f32.gmra.mrb[12].mxu0 %v3963_v23  ;;  %v3349_v35 = vld [vmem:[%s3499_s27 + $0x90] sm:$0xff] }
 0x13c   : > { %v421_v51 = vadd.f32 1e-12, %v375_v50  ;;  %v3222_v14 = vpop.eup %3221  ;;  %v706_v13 = vmul.f32 %v3341_v15, %v3220_v48  ;;  %v3350_v48 = vld [vmem:[%s3494_s24 + $0x90] sm:$0xff] }
 0x13d   : > { %3231 = vrsqrt.f32 %v645_v0  ;;  %v3968_v12 = vmul.f32 %v3342_v1, %v3222_v14 }
 0x13e   : > { %3233 = vrsqrt.f32 %v421_v51  ;;  %v601_v26 = vpop.xlane.xlu1 %600  ;;  %2831 = vmatprep.mubr.f32.mxu1 %v706_v13 }
 0x13f   : > { %v377_v49 = vpop.xlane.xlu0 %376  ;;  %v3224_v3 = vpop.eup %3223  ;;  %v646_v38 = vadd.f32 1e-12, %v601_v26  ;;  %2751 = vmatprep.mubr.f32.mxu0 %v3968_v12 }
 0x140   : > { %v422_v39 = vadd.f32 1e-12, %v377_v49  ;;  %v3226_v54 = vpop.eup %3225  ;;  %v707_v29 = vmul.f32 %v3343_v28, %v3224_v3  ;;  %v3351_v49 = vld [vmem:[%s3499_s27 + $0x98] sm:$0xff] }
 0x141   : > { %3235 = vrsqrt.f32 %v646_v38  ;;  %v3973_v60 = vmul.f32 %v3344_v55, %v3226_v54  ;;  %v3352_v38 = vld [vmem:[%s3494_s24 + $0x98] sm:$0xff] }
 0x142   : > { %3237 = vrsqrt.f32 %v422_v39  ;;  %v603_v61 = vpop.xlane.xlu1 %602  ;;  %2832 = vmatmul.mubr.f32.gmra.mrb[14].mxu1 %v707_v29 }
 0x143   : > { %v379_v18 = vpop.xlane.xlu0 %378  ;;  %v3228_v8 = vpop.eup %3227  ;;  %v647_v36 = vadd.f32 1e-12, %v603_v61  ;;  %2752 = vmatmul.mubr.f32.gmra.mrb[14].mxu0 %v3973_v60 }
 0x144   : > { %v423_v37 = vadd.f32 1e-12, %v379_v18  ;;  %v3230_v42 = vpop.eup %3229  ;;  %v708_v10 = vmul.f32 %v3345_v9, %v3228_v8  ;;  %v3353_v8 = vld [vmem:[%s3499_s27 + $0xa0] sm:$0xff] }
 0x145   : > { %3239 = vrsqrt.f32 %v647_v36  ;;  %v3978_v17 = vmul.f32 %v3346_v43, %v3230_v42 }
 0x146   : > { %3241 = vrsqrt.f32 %v423_v37  ;;  %v605_v44 = vpop.xlane.xlu1 %604  ;;  %2834 = vmatprep.mubr.f32.mxu1 %v708_v10  ;;  %v3354_v37 = vld [vmem:[%s3494_s24 + $0xa0] sm:$0xff] }
 0x147   : > { %v381_v31 = vpop.xlane.xlu0 %380  ;;  %v3232_v24 = vpop.eup %3231  ;;  %v648_v16 = vadd.f32 1e-12, %v605_v44  ;;  %2754 = vmatprep.mubr.f32.mxu0 %v3978_v17 }
 0x148   : > { %v424_v11 = vadd.f32 1e-12, %v381_v31  ;;  %v3234_v32 = vpop.eup %3233  ;;  %v709_v63 = vmul.f32 %v3347_v25, %v3232_v24 }
 0x149   : > { %3243 = vrsqrt.f32 %v648_v16  ;;  %v3983_v47 = vmul.f32 %v3348_v40, %v3234_v32  ;;  %v3355_v16 = vld [vmem:[%s3499_s27 + $0xa8] sm:$0xff] }
 0x14a   : > { %3245 = vrsqrt.f32 %v424_v11  ;;  %v607_v41 = vpop.xlane.xlu1 %606  ;;  %2835 = vmatmul.mubr.f32.gmra.mrb[16].mxu1 %v709_v63  ;;  %v3356_v32 = vld [vmem:[%s3494_s24 + $0xa8] sm:$0xff] }
 0x14b   : > { %v383_v34 = vpop.xlane.xlu0 %382  ;;  %v3236_v5 = vpop.eup %3235  ;;  %v649_v56 = vadd.f32 1e-12, %v607_v41  ;;  %2755 = vmatmul.mubr.f32.gmra.mrb[16].mxu0 %v3983_v47 }
 0x14c   : > { %v425_v22 = vadd.f32 1e-12, %v383_v34  ;;  %v3238_v6 = vpop.eup %3237  ;;  %v710_v50 = vmul.f32 %v3349_v35, %v3236_v5  ;;  %v3358_v35 = vld [vmem:[%s3508_s8] sm:$0xff] }
 0x14d   : > { %3247 = vrsqrt.f32 %v649_v56  ;;  %v3988_v0 = vmul.f32 %v3350_v48, %v3238_v6 }
 0x14e   : > { %3249 = vrsqrt.f32 %v425_v22  ;;  %v985_v51 = vpop.xlane.xlu1 %984  ;;  %2837 = vmatprep.mubr.f32.mxu1 %v710_v50  ;;  %v3357_v22 = vld [vmem:[%s3508_s8 + $0x8] sm:$0xff] }
 0x14f   : > { %v983_v14 = vpop.xlane.xlu0 %982  ;;  %v3240_v15 = vpop.eup %3239  ;;  %v1015_v13 = vadd.f32 1e-12, %v985_v51  ;;  %2757 = vmatprep.mubr.f32.mxu0 %v3988_v0 }
 0x150   : > { %v1014_v1 = vadd.f32 1e-12, %v983_v14  ;;  %v3242_v26 = vpop.eup %3241  ;;  %v711_v3 = vmul.f32 %v3351_v49, %v3240_v15  ;;  %v3359_v49 = vld [vmem:[%s3499_s27 + $0xb0] sm:$0xff] }
 0x151   : > { %3251 = vrsqrt.f32 %v1015_v13  ;;  %v3993_v39 = vmul.f32 %v3352_v38, %v3242_v26  ;;  %v3360_v38 = vld [vmem:[%s3494_s24 + $0xb0] sm:$0xff] }
 0x152   : > { %3253 = vrsqrt.f32 %v1014_v1  ;;  %v609_v54 = vpop.xlane.xlu1 %608  ;;  %2838 = vmatmul.mubr.f32.gmra.mrb[18].mxu1 %v711_v3 }
 0x153   : > { %v385_v28 = vpop.xlane.xlu0 %384  ;;  %v3244_v29 = vpop.eup %3243  ;;  %v650_v55 = vadd.f32 1e-12, %v609_v54  ;;  %2758 = vmatmul.mubr.f32.gmra.mrb[18].mxu0 %v3993_v39 }
 0x154   : > { %v426_v61 = vadd.f32 1e-12, %v385_v28  ;;  %v3246_v18 = vpop.eup %3245  ;;  %v712_v36 = vmul.f32 %v3353_v8, %v3244_v29 }
 0x155   : > { %3255 = vrsqrt.f32 %v650_v55  ;;  %v3998_v42 = vmul.f32 %v3354_v37, %v3246_v18 }
 0x156   : > { %3257 = vrsqrt.f32 %v426_v61  ;;  %v611_v9 = vpop.xlane.xlu1 %610  ;;  %2840 = vmatprep.mubr.f32.mxu1 %v712_v36  ;;  %v3361_v36 = vld [vmem:[%s3499_s27 + $0xb8] sm:$0xff] }
 0x157   : > { %v387_v10 = vpop.xlane.xlu0 %386  ;;  %v3248_v43 = vpop.eup %3247  ;;  %v651_v44 = vadd.f32 1e-12, %v611_v9  ;;  %2760 = vmatprep.mubr.f32.mxu0 %v3998_v42  ;;  %v3362_v9 = vld [vmem:[%s3494_s24 + $0xb8] sm:$0xff] }
 0x158   : > { %v427_v31 = vadd.f32 1e-12, %v387_v10  ;;  %v3250_v24 = vpop.eup %3249  ;;  %v713_v11 = vmul.f32 %v3355_v16, %v3248_v43 }
 0x159   : > { %3259 = vrsqrt.f32 %v651_v44  ;;  %v4003_v25 = vmul.f32 %v3356_v32, %v3250_v24  ;;  %v3363_v32 = vld [vmem:[%s3499_s27 + $0xc0] sm:$0xff] }
 0x15a   : > { %3261 = vrsqrt.f32 %v427_v31  ;;  %2841 = vmatmul.mubr.f32.gmra.mrb[20].mxu1 %v713_v11 }
 0x15b   : > { %v3252_v63 = vpop.eup %3251  ;;  %v613_v40 = vpop.xlane.xlu1 %612  ;;  %2761 = vmatmul.mubr.f32.gmra.mrb[20].mxu0 %v4003_v25 }
 0x15c   : > { %v389_v41 = vpop.xlane.xlu0 %388  ;;  %v3254_v34 = vpop.eup %3253  ;;  %v652_v5 = vadd.f32 1e-12, %v613_v40  ;;  %v1047_v6 = vmul.f32 %v3357_v22, %v3252_v63  ;;  %v3364_v40 = vld [vmem:[%s3494_s24 + $0xc0] sm:$0xff] }
 0x15d   : > { %v428_v56 = vadd.f32 1e-12, %v389_v41  ;;  %v1046_v50 = vmul.f32 %v3358_v35, %v3254_v34 }
 0x15e   : > { %3263 = vrsqrt.f32 %v652_v5 }
 0x15f   : > { %v3256_v48 = vpop.eup %3255  ;;  %3265 = vrsqrt.f32 %v428_v56  ;;  %v615_v51 = vpop.xlane.xlu1 %614  ;;  %v3002_v15 = vpack.c.bf16 %v1047_v6, %v1046_v50  ;;  %v3365_v50 = vld [vmem:[%s3499_s27 + $0xc8] sm:$0xff] }
 0x160   : > { %v391_v14 = vpop.xlane.xlu0 %390  ;;  %v3258_v13 = vpop.eup %3257  ;;  %v653_v1 = vadd.f32 1e-12, %v615_v51  ;;  %v714_v3 = vmul.f32 %v3359_v49, %v3256_v48  ;;  %v3366_v51 = vld [vmem:[%s3494_s24 + $0xc8] sm:$0xff] }
 0x161   : > { %v429_v26 = vadd.f32 1e-12, %v391_v14  ;;  %3003 = vmatprep.subr.bf16.mxu0 %v3002_v15  ;;  %3034 = vmatprep.subr.bf16.mxu1 %v3002_v15  ;;  %v4010_v54 = vmul.f32 %v3360_v38, %v3258_v13  ;;  %v3367_v38 = vld [vmem:[%s3508_s8 + $0x18] sm:$0xff] }
 0x162   : > { %3267 = vrsqrt.f32 %v653_v1  ;;  %3005 = vmatpush3.bf16.xpose.msra.mxu0 %v3002_v15  ;;  %3042 = vmatpush3.bf16.xpose.msra.mxu1 %v3002_v15 }
 0x163   : > { %v3260_v28 = vpop.eup %3259  ;;  %3269 = vrsqrt.f32 %v429_v26  ;;  %v989_v29 = vpop.xlane.xlu1 %988  ;;  %2763 = vmatprep.mubr.f32.mxu0 %v4010_v54  ;;  %2843 = vmatprep.mubr.f32.mxu1 %v714_v3 }
 0x164   : > { %v987_v55 = vpop.xlane.xlu0 %986  ;;  %v3262_v61 = vpop.eup %3261  ;;  %v1017_v18 = vadd.f32 1e-12, %v989_v29  ;;  %v715_v37 = vmul.f32 %v3361_v36, %v3260_v28  ;;  %v3368_v29 = vld [vmem:[%s3508_s8 + $0x10] sm:$0xff] }
 0x165   : > { %v1016_v8 = vadd.f32 1e-12, %v987_v55  ;;  %v4015_v10 = vmul.f32 %v3362_v9, %v3262_v61 }
 0x166   : > { %3271 = vrsqrt.f32 %v1017_v18  ;;  %2844 = vmatmul.mubr.f32.gmra.mrb[22].mxu1 %v715_v37 }
 0x167   : > { %3273 = vrsqrt.f32 %v1016_v8  ;;  %v617_v43 = vpop.xlane.xlu1 %616  ;;  %2764 = vmatmul.mubr.f32.gmra.mrb[22].mxu0 %v4015_v10 }
 0x168   : > { %v393_v44 = vpop.xlane.xlu0 %392  ;;  %v3264_v31 = vpop.eup %3263  ;;  %v654_v24 = vadd.f32 1e-12, %v617_v43 }
 0x169   : > { %v430_v16 = vadd.f32 1e-12, %v393_v44  ;;  %v3266_v11 = vpop.eup %3265  ;;  %v716_v63 = vmul.f32 %v3363_v32, %v3264_v31  ;;  %v3369_v44 = vld [vmem:[%s3499_s27 + $0xd0] sm:$0xff] }
 0x16a   : > { %3275 = vrsqrt.f32 %v654_v24  ;;  %v4020_v41 = vmul.f32 %v3364_v40, %v3266_v11  ;;  %v3370_v24 = vld [vmem:[%s3494_s24 + $0xd0] sm:$0xff] }
 0x16b   : > { %3277 = vrsqrt.f32 %v430_v16  ;;  %v619_v34 = vpop.xlane.xlu1 %618  ;;  %2846 = vmatprep.mubr.f32.mxu1 %v716_v63 }
 0x16c   : > { %v395_v5 = vpop.xlane.xlu0 %394  ;;  %v3268_v56 = vpop.eup %3267  ;;  %v655_v22 = vadd.f32 1e-12, %v619_v34  ;;  %2766 = vmatprep.mubr.f32.mxu0 %v4020_v41 }
 0x16d   : > { %v431_v6 = vadd.f32 1e-12, %v395_v5  ;;  %v3270_v35 = vpop.eup %3269  ;;  %v717_v48 = vmul.f32 %v3365_v50, %v3268_v56  ;;  %v3371_v56 = vld [vmem:[%s3499_s27 + $0xd8] sm:$0xff] }
 0x16e   : > { %3279 = vrsqrt.f32 %v655_v22  ;;  %v4025_v14 = vmul.f32 %v3366_v51, %v3270_v35 }
 0x16f   : > { %3281 = vrsqrt.f32 %v431_v6  ;;  %v621_v15 = vpop.xlane.xlu1 %620  ;;  %2847 = vmatmul.mubr.f32.gmra.mrb[24].mxu1 %v717_v48  ;;  %v3372_v6 = vld [vmem:[%s3494_s24 + $0xd8] sm:$0xff] }
 0x170   : > { %v397_v13 = vpop.xlane.xlu0 %396  ;;  %v3272_v1 = vpop.eup %3271  ;;  %v656_v26 = vadd.f32 1e-12, %v621_v15  ;;  %2767 = vmatmul.mubr.f32.gmra.mrb[24].mxu0 %v4025_v14 }
 0x171   : > { %v432_v49 = vadd.f32 1e-12, %v397_v13  ;;  %v3274_v3 = vpop.eup %3273  ;;  %v1049_v28 = vmul.f32 %v3367_v38, %v3272_v1 }
 0x172   : > { %3283 = vrsqrt.f32 %v656_v26  ;;  %v1048_v55 = vmul.f32 %v3368_v29, %v3274_v3  ;;  %v3373_v26 = vld [vmem:[%s3499_s27 + $0xe0] sm:$0xff] }
 0x173   : > { %3285 = vrsqrt.f32 %v432_v49  ;;  %v623_v61 = vpop.xlane.xlu1 %622  ;;  %v3374_v3 = vld [vmem:[%s3494_s24 + $0xe0] sm:$0xff] }
 0x174   : > { %v399_v18 = vpop.xlane.xlu0 %398  ;;  %v3276_v8 = vpop.eup %3275  ;;  %v657_v36 = vadd.f32 1e-12, %v623_v61  ;;  %v3006_v9 = vpack.c.bf16 %v1049_v28, %v1048_v55 }
 0x175   : > { %v433_v37 = vadd.f32 1e-12, %v399_v18  ;;  %v3278_v43 = vpop.eup %3277  ;;  %v718_v31 = vmul.f32 %v3369_v44, %v3276_v8 }
 0x176   : > { %3287 = vrsqrt.f32 %v657_v36  ;;  %3007 = vmatprep.subr.bf16.mxu0 %v3006_v9  ;;  %3035 = vmatprep.subr.bf16.mxu1 %v3006_v9  ;;  %v4032_v16 = vmul.f32 %v3370_v24, %v3278_v43  ;;  %v3375_v36 = vld [vmem:[%s3499_s27 + $0xe8] sm:$0xff] }
 0x177   : > { %3289 = vrsqrt.f32 %v433_v37  ;;  %3009 = vmatpush3.bf16.xpose.msra.mxu0 %v3006_v9  ;;  %3043 = vmatpush3.bf16.xpose.msra.mxu1 %v3006_v9  ;;  %v993_v11 = vpop.xlane.xlu1 %992  ;;  %v3376_v9 = vld [vmem:[%s3494_s24 + $0xe8] sm:$0xff] }
 0x178   : > { %v991_v32 = vpop.xlane.xlu0 %990  ;;  %v3280_v63 = vpop.eup %3279  ;;  %v1019_v40 = vadd.f32 1e-12, %v993_v11  ;;  %2769 = vmatprep.mubr.f32.mxu0 %v4032_v16  ;;  %2849 = vmatprep.mubr.f32.mxu1 %v718_v31 }
 0x179   : > { %v1018_v34 = vadd.f32 1e-12, %v991_v32  ;;  %v3282_v5 = vpop.eup %3281  ;;  %v719_v22 = vmul.f32 %v3371_v56, %v3280_v63 }
 0x17a   : > { %3291 = vrsqrt.f32 %v1019_v40  ;;  %v4037_v35 = vmul.f32 %v3372_v6, %v3282_v5  ;;  %v3377_v40 = vld [vmem:[%s3508_s8 + $0x28] sm:$0xff]  ;;  %v3378_v5 = vld [vmem:[%s3508_s8 + $0x20] sm:$0xff] }
 0x17b   : > { %3293 = vrsqrt.f32 %v1018_v34  ;;  %v625_v50 = vpop.xlane.xlu1 %624  ;;  %2850 = vmatmul.mubr.f32.gmra.mrb[26].mxu1 %v719_v22 }
 0x17c   : > { %v401_v48 = vpop.xlane.xlu0 %400  ;;  %v3284_v51 = vpop.eup %3283  ;;  %v658_v15 = vadd.f32 1e-12, %v625_v50  ;;  %2770 = vmatmul.mubr.f32.gmra.mrb[26].mxu0 %v4037_v35 }
 0x17d   : > { %v434_v13 = vadd.f32 1e-12, %v401_v48  ;;  %v3286_v1 = vpop.eup %3285  ;;  %v720_v49 = vmul.f32 %v3373_v26, %v3284_v51 }
 0x17e   : > { %3295 = vrsqrt.f32 %v658_v15  ;;  %v4042_v38 = vmul.f32 %v3374_v3, %v3286_v1  ;;  %v3379_v1 = vld [vmem:[%s3499_s27 + $0xf0] sm:$0xff] }
 0x17f   : > { %3297 = vrsqrt.f32 %v434_v13  ;;  %v627_v28 = vpop.xlane.xlu1 %626  ;;  %2852 = vmatprep.mubr.f32.mxu1 %v720_v49  ;;  %v3380_v49 = vld [vmem:[%s3494_s24 + $0xf0] sm:$0xff] }
 0x180   : > { %v403_v29 = vpop.xlane.xlu0 %402  ;;  %v3288_v55 = vpop.eup %3287  ;;  %v659_v61 = vadd.f32 1e-12, %v627_v28  ;;  %2772 = vmatprep.mubr.f32.mxu0 %v4042_v38 }
 0x181   : > { %v435_v18 = vadd.f32 1e-12, %v403_v29  ;;  %v3290_v8 = vpop.eup %3289  ;;  %v721_v37 = vmul.f32 %v3375_v36, %v3288_v55  ;;  %v3381_v36 = vld [vmem:[%s3499_s27 + $0xf8] sm:$0xff] }
 0x182   : > { %3299 = vrsqrt.f32 %v659_v61  ;;  %v4047_v43 = vmul.f32 %v3376_v9, %v3290_v8  ;;  %v3382_v9 = vld [vmem:[%s3494_s24 + $0xf8] sm:$0xff] }
 0x183   : > { %3301 = vrsqrt.f32 %v435_v18  ;;  %v997_v44 = vpop.xlane.xlu1 %996  ;;  %2853 = vmatmul.mubr.f32.gmra.mrb[28].mxu1 %v721_v37 }
 0x184   : > { %v995_v31 = vpop.xlane.xlu0 %994  ;;  %v3292_v24 = vpop.eup %3291  ;;  %v1021_v11 = vadd.f32 1e-12, %v997_v44  ;;  %2773 = vmatmul.mubr.f32.gmra.mrb[28].mxu0 %v4047_v43 }
 0x185   : > { %v1020_v32 = vadd.f32 1e-12, %v995_v31  ;;  %v3294_v63 = vpop.eup %3293  ;;  %v1051_v34 = vmul.f32 %v3377_v40, %v3292_v24 }
 0x186   : > { %3303 = vrsqrt.f32 %v1021_v11  ;;  %v1050_v56 = vmul.f32 %v3378_v5, %v3294_v63 }
 0x187   : > { %3305 = vrsqrt.f32 %v1020_v32  ;;  %v1001_v22 = vpop.xlane.xlu1 %1000 }
 0x188   : > { %v999_v6 = vpop.xlane.xlu0 %998  ;;  %v3296_v50 = vpop.eup %3295  ;;  %v3010_v48 = vpack.c.bf16 %v1051_v34, %v1050_v56  ;;  %v1023_v51 = vadd.f32 1e-12, %v1001_v22  ;;  %v3383_v34 = vld [vmem:[%s3508_s8 + $0x38] sm:$0xff]  ;;  %v3384_v56 = vld [vmem:[%s3508_s8 + $0x30] sm:$0xff] }
 0x189   : > { %v1022_v15 = vadd.f32 1e-12, %v999_v6  ;;  %v3298_v13 = vpop.eup %3297  ;;  %v722_v26 = vmul.f32 %v3379_v1, %v3296_v50  ;;  %v3386_v1 = vld [vmem:[%s3508_s8 + $0x40] sm:$0xff] }
 0x18a   : > { %3011 = vmatprep.subr.bf16.mxu0 %v3010_v48  ;;  %3036 = vmatprep.subr.bf16.mxu1 %v3010_v48  ;;  %3307 = vrsqrt.f32 %v1023_v51  ;;  %v4054_v3 = vmul.f32 %v3380_v49, %v3298_v13 }
 0x18b   : > { %3013 = vmatpush3.bf16.xpose.msra.mxu0 %v3010_v48  ;;  %3044 = vmatpush3.bf16.xpose.msra.mxu1 %v3010_v48  ;;  %3309 = vrsqrt.f32 %v1022_v15  ;;  %v1005_v28 = vpop.xlane.xlu1 %1004  ;;  %v3385_v15 = vld [vmem:[%s3508_s8 + $0x48] sm:$0xff] }
 0x18c   : > { %v1003_v29 = vpop.xlane.xlu0 %1002  ;;  %v3300_v55 = vpop.eup %3299  ;;  %2775 = vmatprep.mubr.f32.mxu0 %v4054_v3  ;;  %2855 = vmatprep.mubr.f32.mxu1 %v722_v26  ;;  %v1025_v61 = vadd.f32 1e-12, %v1005_v28 }
 0x18d   : > { %v1024_v18 = vadd.f32 1e-12, %v1003_v29  ;;  %v3302_v8 = vpop.eup %3301  ;;  %v723_v37 = vmul.f32 %v3381_v36, %v3300_v55 }
 0x18e   : > { %v4059_v44 = vmul.f32 %v3382_v9, %v3302_v8  ;;  %3311 = vrsqrt.f32 %v1025_v61  ;;  %v3387_v61 = vld [vmem:[%s3508_s8 + $0x58] sm:$0xff]  ;;  %v3388_v8 = vld [vmem:[%s3508_s8 + $0x50] sm:$0xff] }
 0x18f   : > { %2856 = vmatmul.mubr.f32.gmra.mrb[30].mxu1 %v723_v37  ;;  %3313 = vrsqrt.f32 %v1024_v18  ;;  %v1009_v31 = vpop.xlane.xlu1 %1008 }
 0x190   : > { %v1007_v24 = vpop.xlane.xlu0 %1006  ;;  %v3304_v11 = vpop.eup %3303  ;;  %2776 = vmatmul.mubr.f32.gmra.mrb[30].mxu0 %v4059_v44  ;;  %2914 = vmatprep.mubr.f32.mxu1 %v3978_v17  ;;  %v1027_v32 = vadd.f32 1e-12, %v1009_v31 }
 0x191   : > { %v1026_v63 = vadd.f32 1e-12, %v1007_v24  ;;  %v3306_v40 = vpop.eup %3305  ;;  %2890 = vmatprep.mubr.f32.mxu0 %v3898_v33  ;;  %v1053_v5 = vmul.f32 %v3383_v34, %v3304_v11 }
 0x192   : > { %v1052_v22 = vmul.f32 %v3384_v56, %v3306_v40  ;;  %3315 = vrsqrt.f32 %v1027_v32 }
 0x193   : > { %3317 = vrsqrt.f32 %v1026_v63  ;;  %v1013_v6 = vpop.xlane.xlu1 %1012 }
 0x194   : > { %v3308_v50 = vpop.eup %3307  ;;  %v3014_v48 = vpack.c.bf16 %v1053_v5, %v1052_v22  ;;  %v1029_v26 = vadd.f32 1e-12, %v1013_v6 }
 0x195   : > { %v3310_v51 = vpop.eup %3309  ;;  %v1055_v13 = vmul.f32 %v3385_v15, %v3308_v50  ;;  %v1011_v17 = vpop.xlane.xlu0 %1010 }
 0x196   : > { %3015 = vmatprep.subr.bf16.mxu0 %v3014_v48  ;;  %3037 = vmatprep.subr.bf16.mxu1 %v3014_v48  ;;  %v1054_v33 = vmul.f32 %v3386_v1, %v3310_v51  ;;  %v1028_v49 = vadd.f32 1e-12, %v1011_v17  ;;  %3319 = vrsqrt.f32 %v1029_v26 }
 0x197   : > { %3017 = vmatpush3.bf16.xpose.msra.mxu0 %v3014_v48  ;;  %3045 = vmatpush3.bf16.xpose.msra.mxu1 %v3014_v48 }
 0x198   : > { %v3312_v28 = vpop.eup %3311  ;;  %v3018_v29 = vpack.c.bf16 %v1055_v13, %v1054_v33  ;;  %3321 = vrsqrt.f32 %v1028_v49 }
 0x199   : > { %v3314_v55 = vpop.eup %3313  ;;  %v1057_v18 = vmul.f32 %v3387_v61, %v3312_v28 }
 0x19a   : > { %3019 = vmatprep.subr.bf16.mxu0 %v3018_v29  ;;  %3038 = vmatprep.subr.bf16.mxu1 %v3018_v29  ;;  %v1056_v36 = vmul.f32 %v3388_v8, %v3314_v55 }
 0x19c   : > { %v3316_v37 = vpop.eup %3315  ;;  %v3022_v9 = vpack.c.bf16 %v1057_v18, %v1056_v36 }
 0x19d   : > { %v3318_v31 = vpop.eup %3317  ;;  %v1059_v11 = vmul.f32 %v3316_v37, %v3873_v7 }
 0x19e   : > { %v1058_v24 = vmul.f32 %v3318_v31, %v3876_v27 }
 0x19f   : > { %3021 = vmatpush3.bf16.xpose.msra.mxu0 %v3018_v29  ;;  %3046 = vmatpush3.bf16.xpose.msra.mxu1 %v3018_v29 }
 0x1a0   : > { %3023 = vmatprep.subr.bf16.mxu0 %v3022_v9  ;;  %3039 = vmatprep.subr.bf16.mxu1 %v3022_v9  ;;  %v3320_v32 = vpop.eup %3319  ;;  %v3026_v63 = vpack.c.bf16 %v1059_v11, %v1058_v24 }
 0x1a1   : > { %v1061_v5 = vmul.f32 %v3320_v32, %v3885_v59 }
 0x1a2   : > { %v3322_v40 = vpop.eup %3321 }
 0x1a3   : > { %v1060_v34 = vmul.f32 %v3322_v40, %v3890_v45 }
 0x1a5   : > { %v3030_v56 = vpack.c.bf16 %v1061_v5, %v1060_v34 }
 0x1a7   : > { %3025 = vmatpush3.bf16.xpose.msra.mxu0 %v3022_v9  ;;  %3047 = vmatpush3.bf16.xpose.msra.mxu1 %v3022_v9 }
 0x1a8   : > { %3027 = vmatprep.subr.bf16.mxu0 %v3026_v63  ;;  %3040 = vmatprep.subr.bf16.mxu1 %v3026_v63 }
 0x1af   : > { %3029 = vmatpush3.bf16.xpose.msra.mxu0 %v3026_v63  ;;  %3048 = vmatpush3.bf16.xpose.msra.mxu1 %v3026_v63 }
 0x1b0   : > { %3031 = vmatprep.subr.bf16.mxu0 %v3030_v56  ;;  %3041 = vmatprep.subr.bf16.mxu1 %v3030_v56 }
 0x1b7   : > { %3033 = vmatpush3.bf16.xpose.msra.mxu0 %v3030_v56  ;;  %3049 = vmatpush3.bf16.xpose.msra.mxu1 %v3030_v56 }
 0x1be   : > { %2891 = vmatmul.mubr.f32.vlgmr.msra.gmra.mrb[32].mxu0 %v3902_v2  ;;  %2915 = vmatmul.mubr.f32.vlgmr.msra.gmra.mrb[32].mxu1 %v3983_v47 }
 0x1bf   : > { %2893 = vmatprep.mubr.f32.mxu0 %v3907_v4  ;;  %2917 = vmatprep.mubr.f32.mxu1 %v3988_v0 }
 0x1c2   : > { %2894 = vmatmul.mubr.f32.gmra.mrb[34].mxu0 %v3913_v20  ;;  %2918 = vmatmul.mubr.f32.gmra.mrb[34].mxu1 %v3993_v39 }
 0x1c3   : > { %2896 = vmatprep.mubr.f32.mxu0 %v3918_v52  ;;  %2920 = vmatprep.mubr.f32.mxu1 %v3998_v42 }
 0x1c6   : > { %2897 = vmatmul.mubr.f32.gmra.mrb[36].mxu0 %v3923_v58  ;;  %2921 = vmatmul.mubr.f32.gmra.mrb[36].mxu1 %v4003_v25 }
 0x1c7   : > { %2899 = vmatprep.mubr.f32.mxu0 %v3928_v30  ;;  %2923 = vmatprep.mubr.f32.mxu1 %v4010_v54 }
 0x1ca   : > { %2900 = vmatmul.mubr.f32.gmra.mrb[38].mxu0 %v3933_v46  ;;  %2924 = vmatmul.mubr.f32.gmra.mrb[38].mxu1 %v4015_v10 }
 0x1cb   : > { %2902 = vmatprep.mubr.f32.mxu0 %v3938_v57  ;;  %2926 = vmatprep.mubr.f32.mxu1 %v4020_v41 }
 0x1ce   : > { %2903 = vmatmul.mubr.f32.gmra.mrb[40].mxu0 %v3943_v21  ;;  %2927 = vmatmul.mubr.f32.gmra.mrb[40].mxu1 %v4025_v14 }
 0x1cf   : > { %2905 = vmatprep.mubr.f32.mxu0 %v3948_v53  ;;  %2929 = vmatprep.mubr.f32.mxu1 %v4032_v16 }
 0x1d2   : > { %2906 = vmatmul.mubr.f32.gmra.mrb[42].mxu0 %v3953_v19  ;;  %2930 = vmatmul.mubr.f32.gmra.mrb[42].mxu1 %v4037_v35 }
 0x1d3   : > { %2908 = vmatprep.mubr.f32.mxu0 %v3958_v62  ;;  %2932 = vmatprep.mubr.f32.mxu1 %v4042_v38 }
 0x1d6   : > { %2909 = vmatmul.mubr.f32.gmra.mrb[44].mxu0 %v3963_v23  ;;  %2933 = vmatmul.mubr.f32.gmra.mrb[44].mxu1 %v4047_v43 }
 0x1d7   : > { %2911 = vmatprep.mubr.f32.mxu0 %v3968_v12  ;;  %2935 = vmatprep.mubr.f32.mxu1 %v4054_v3 }
 0x1da   : > { %2912 = vmatmul.mubr.f32.gmra.mrb[46].mxu0 %v3973_v60  ;;  %2936 = vmatmul.mubr.f32.gmra.mrb[46].mxu1 %v4059_v44 }
 0x1e1   : > { %v4104_v7 = vpop.f32.mrb[0].mxu0  ;;  %v4106_v27 = vpop.f32.mrb[0].mxu1 }
 0x1e2   : > { %v4108_v59 = vpop.f32.mrb[1].mxu0  ;;  %v4110_v45 = vpop.f32.mrb[1].mxu1  ;;  %v5167_v0 = vsub.f32 1.0, %v4104_v7  ;;  %v5171_v25 = vsub.f32 1.0, %v4106_v27 }
 0x1e3   : > { %v5172_v39 = vsub.f32 1.0, %v4108_v59  ;;  %v5177_v54 = vsub.f32 1.0, %v4110_v45 }
 0x1e5   : > { %v4112_v2 = vpop.f32.mrb[2].mxu1  ;;  %v1319_v38 = vadd.f32 %v5167_v0, %v5172_v39  ;;  %v1650_v43 = vadd.f32 %v5171_v25, %v5177_v54 }
 0x1e6   : > { %v4114_v4 = vpop.f32.mrb[2].mxu0  ;;  %v4116_v20 = vpop.f32.mrb[3].mxu1  ;;  %v5141_v48 = vsub.f32 1.0, %v4112_v2 }
 0x1e7   : > { %v4118_v52 = vpop.f32.mrb[3].mxu0  ;;  %v5170_v35 = vsub.f32 1.0, %v4116_v20  ;;  %v5159_v22 = vsub.f32 1.0, %v4114_v4 }
 0x1e8   : > { %v5164_v14 = vsub.f32 1.0, %v4118_v52 }
 0x1e9   : > { %v1651_v44 = vadd.f32 %v1650_v43, %v5170_v35 }
 0x1ea   : > { %v1320_v3 = vadd.f32 %v1319_v38, %v5164_v14 }
 0x1eb   : > { %v1652_v33 = vadd.f32 %v1651_v44, %v5141_v48 }
 0x1ec   : > { %v1321_v17 = vadd.f32 %v1320_v3, %v5159_v22 }
 0x1ed   : > { %v4120_v58 = vpop.f32.mrb[4].mxu1 }
 0x1ee   : > { %v4122_v30 = vpop.f32.mrb[4].mxu0  ;;  %v4124_v46 = vpop.f32.mrb[5].mxu1  ;;  %v5139_v55 = vsub.f32 1.0, %v4120_v58 }
 0x1ef   : > { %v4126_v57 = vpop.f32.mrb[5].mxu0  ;;  %v5140_v51 = vsub.f32 1.0, %v4124_v46  ;;  %v5155_v28 = vsub.f32 1.0, %v4122_v30 }
 0x1f0   : > { %v5158_v6 = vsub.f32 1.0, %v4126_v57 }
 0x1f1   : > { %v1653_v49 = vadd.f32 %v1652_v33, %v5140_v51 }
 0x1f2   : > { %v1322_v26 = vadd.f32 %v1321_v17, %v5158_v6 }
 0x1f3   : > { %v1654_v36 = vadd.f32 %v1653_v49, %v5139_v55 }
 0x1f4   : > { %v1323_v18 = vadd.f32 %v1322_v26, %v5155_v28 }
 0x1f5   : > { %v4128_v21 = vpop.f32.mrb[6].mxu1 }
 0x1f6   : > { %v4130_v53 = vpop.f32.mrb[6].mxu0  ;;  %v4132_v19 = vpop.f32.mrb[7].mxu1  ;;  %v5137_v40 = vsub.f32 1.0, %v4128_v21 }
 0x1f7   : > { %v4134_v62 = vpop.f32.mrb[7].mxu0  ;;  %v5138_v61 = vsub.f32 1.0, %v4132_v19  ;;  %v5147_v32 = vsub.f32 1.0, %v4130_v53 }
 0x1f8   : > { %v5152_v29 = vsub.f32 1.0, %v4134_v62 }
 0x1f9   : > { %v1655_v11 = vadd.f32 %v1654_v36, %v5138_v61 }
 0x1fa   : > { %v1324_v31 = vadd.f32 %v1323_v18, %v5152_v29 }
 0x1fb   : > { %v1656_v56 = vadd.f32 %v1655_v11, %v5137_v40 }
 0x1fc   : > { %v1325_v5 = vadd.f32 %v1324_v31, %v5147_v32 }
 0x1fd   : > { %v4136_v23 = vpop.f32.mrb[8].mxu1 }
 0x1fe   : > { %5273 = vst [vmem:[#allocation5_spill] sm:$0xff] %v4136_v23  ;;  %v4138_v12 = vpop.f32.mrb[8].mxu0  ;;  %v4140_v60 = vpop.f32.mrb[9].mxu1  ;;  %v5143_v18 = vsub.f32 1.0, %v4136_v23 }
 0x1ff   : > { %v4142_v47 = vpop.f32.mrb[9].mxu0  ;;  %v5136_v34 = vsub.f32 1.0, %v4140_v60  ;;  %v5145_v33 = vsub.f32 1.0, %v4138_v12 }
 0x200   : > { %v5146_v63 = vsub.f32 1.0, %v4142_v47 }
 0x201   : > { %v1657_v3 = vadd.f32 %v1656_v56, %v5136_v34 }
 0x202   : > { %v1326_v38 = vadd.f32 %v1325_v5, %v5146_v63 }
 0x203   : > { %v1658_v11 = vadd.f32 %v1657_v3, %v5143_v18 }
 0x204   : > { %v1327_v31 = vadd.f32 %v1326_v38, %v5145_v33 }
 0x205   : > { %v4146_v42 = vpop.f32.mrb[10].mxu1 }
 0x206   : > { %5274 = vst [vmem:[#allocation6_spill] sm:$0xff] %v4146_v42  ;;  %v4150_v10 = vpop.f32.mrb[10].mxu0  ;;  %v4152_v41 = vpop.f32.mrb[11].mxu1  ;;  %v5149_v55 = vsub.f32 1.0, %v4146_v42 }
 0x207   : > { %5275 = vst [vmem:[#allocation7_spill] sm:$0xff] %v4152_v41  ;;  %v4155_v16 = vpop.f32.mrb[11].mxu0  ;;  %v5142_v36 = vsub.f32 1.0, %v4152_v41  ;;  %v5148_v34 = vsub.f32 1.0, %v4150_v10 }
 0x208   : > { %v5144_v26 = vsub.f32 1.0, %v4155_v16 }
 0x209   : > { %v1659_v56 = vadd.f32 %v1658_v11, %v5142_v36 }
 0x20a   : > { %v1328_v5 = vadd.f32 %v1327_v31, %v5144_v26 }
 0x20b   : > { %v1660_v11 = vadd.f32 %v1659_v56, %v5149_v55 }
 0x20c   : > { %v1329_v3 = vadd.f32 %v1328_v5, %v5148_v34 }
 0x20d   : > { %v4172_v50 = vpop.f32.mrb[12].mxu1 }
 0x20e   : > { %5276 = vst [vmem:[#allocation8_spill] sm:$0xff] %v4172_v50  ;;  %v4176_v15 = vpop.f32.mrb[12].mxu0  ;;  %v4178_v13 = vpop.f32.mrb[13].mxu1  ;;  %v5154_v63 = vsub.f32 1.0, %v4172_v50 }
 0x20f   : > { %5277 = vst [vmem:[#allocation9_spill] sm:$0xff] %v4178_v13  ;;  %v4182_v1 = vpop.f32.mrb[13].mxu0  ;;  %v5150_v51 = vsub.f32 1.0, %v4178_v13  ;;  %v5153_v26 = vsub.f32 1.0, %v4176_v15 }
 0x210   : > { %v5151_v40 = vsub.f32 1.0, %v4182_v1 }
 0x211   : > { %v1661_v18 = vadd.f32 %v1660_v11, %v5150_v51 }
 0x212   : > { %v1330_v36 = vadd.f32 %v1329_v3, %v5151_v40 }
 0x213   : > { %v1662_v56 = vadd.f32 %v1661_v18, %v5154_v63 }
 0x214   : > { %v1331_v5 = vadd.f32 %v1330_v36, %v5153_v26 }
 0x215   : > { %v4196_v8 = vpop.f32.mrb[14].mxu1 }
 0x216   : > { %5278 = vst [vmem:[#allocation10_spill] sm:$0xff] %v4196_v8  ;;  %v4200_v37 = vpop.f32.mrb[14].mxu0  ;;  %v4202_v9 = vpop.f32.mrb[15].mxu1  ;;  %v5161_v26 = vsub.f32 1.0, %v4196_v8 }
 0x217   : > { %5279 = vst [vmem:[#allocation11_spill] sm:$0xff] %v4202_v9  ;;  %v4206_v24 = vpop.f32.mrb[15].mxu0  ;;  %v5156_v32 = vsub.f32 1.0, %v4202_v9  ;;  %v5160_v29 = vsub.f32 1.0, %v4200_v37 }
 0x218   : > { %v5157_v33 = vsub.f32 1.0, %v4206_v24 }
 0x219   : > { %v1663_v40 = vadd.f32 %v1662_v56, %v5156_v32 }
 0x21a   : > { %v1332_v11 = vadd.f32 %v1331_v5, %v5157_v33 }
 0x21b   : > { %v1664_v28 = vadd.f32 %v1663_v40, %v5161_v26 }
 0x21c   : > { %v1333_v63 = vadd.f32 %v1332_v11, %v5160_v29 }
 0x21d   : > { %v4220_v43 = vpop.f32.mrb[16].mxu1 }
 0x21e   : > { %5280 = vst [vmem:[#allocation12_spill] sm:$0xff] %v4220_v43  ;;  %v4224_v44 = vpop.f32.mrb[16].mxu0  ;;  %v4226_v17 = vpop.f32.mrb[17].mxu1  ;;  %v5166_v6 = vsub.f32 1.0, %v4220_v43 }
 0x21f   : > { %5281 = vst [vmem:[#allocation13_spill] sm:$0xff] %v4226_v17  ;;  %v4230_v49 = vpop.f32.mrb[17].mxu0  ;;  %v5162_v18 = vsub.f32 1.0, %v4226_v17  ;;  %v5165_v32 = vsub.f32 1.0, %v4224_v44 }
 0x220   : > { %v5163_v36 = vsub.f32 1.0, %v4230_v49 }
 0x221   : > { %v1665_v56 = vadd.f32 %v1664_v28, %v5162_v18 }
 0x222   : > { %v1334_v5 = vadd.f32 %v1333_v63, %v5163_v36 }
 0x223   : > { %v1666_v40 = vadd.f32 %v1665_v56, %v5166_v6 }
 0x224   : > { %v1335_v11 = vadd.f32 %v1334_v5, %v5165_v32 }
 0x225   : > { %v4244_v61 = vpop.f32.mrb[18].mxu1 }
 0x226   : > { %5282 = vst [vmem:[#allocation14_spill] sm:$0xff] %v4244_v61  ;;  %v4248_v38 = vpop.f32.mrb[18].mxu0  ;;  %v4250_v48 = vpop.f32.mrb[19].mxu1  ;;  %v5173_v32 = vsub.f32 1.0, %v4244_v61 }
 0x227   : > { %5283 = vst [vmem:[#allocation15_spill] sm:$0xff] %v4250_v48  ;;  %v4254_v31 = vpop.f32.mrb[19].mxu0  ;;  %v5168_v22 = vsub.f32 1.0, %v4250_v48  ;;  %v5176_v14 = vsub.f32 1.0, %v4248_v38 }
 0x228   : > { %v5169_v33 = vsub.f32 1.0, %v4254_v31 }
 0x229   : > { %v1667_v36 = vadd.f32 %v1666_v40, %v5168_v22 }
 0x22a   : > { %v1336_v28 = vadd.f32 %v1335_v11, %v5169_v33 }
 0x22b   : > { %v1668_v0 = vadd.f32 %v1667_v36, %v5173_v32 }
 0x22c   : > { %v1337_v6 = vadd.f32 %v1336_v28, %v5176_v14 }
 0x22d   : > { %v4268_v34 = vpop.f32.mrb[20].mxu1 }
 0x22e   : > { %5284 = vst [vmem:[#allocation16_spill] sm:$0xff] %v4268_v34  ;;  %v4272_v3 = vpop.f32.mrb[20].mxu0  ;;  %v4274_v55 = vpop.f32.mrb[21].mxu1  ;;  %v5181_v28 = vsub.f32 1.0, %v4268_v34 }
 0x22f   : > { %5285 = vst [vmem:[#allocation17_spill] sm:$0xff] %v4274_v55  ;;  %v4278_v51 = vpop.f32.mrb[21].mxu0  ;;  %v5174_v56 = vsub.f32 1.0, %v4274_v55  ;;  %v5183_v33 = vsub.f32 1.0, %v4272_v3 }
 0x230   : > { %v5175_v5 = vsub.f32 1.0, %v4278_v51 }
 0x231   : > { %v1669_v40 = vadd.f32 %v1668_v0, %v5174_v56 }
 0x232   : > { %v1338_v11 = vadd.f32 %v1337_v6, %v5175_v5 }
 0x233   : > { %v1670_v0 = vadd.f32 %v1669_v40, %v5181_v28 }
 0x234   : > { %v1339_v6 = vadd.f32 %v1338_v11, %v5183_v33 }
 0x239   : > { %v4300_v29 = vpop.f32.mrb[22].mxu1 }
 0x23a   : > { %5286 = vst [vmem:[#allocation18_spill] sm:$0xff] %v4300_v29  ;;  %v4304_v63 = vpop.f32.mrb[22].mxu0  ;;  %v4306_v26 = vpop.f32.mrb[23].mxu1  ;;  %v5185_v55 = vsub.f32 1.0, %v4300_v29 }
 0x23b   : > { %5287 = vst [vmem:[#allocation19_spill] sm:$0xff] %v4306_v26  ;;  %v4310_v18 = vpop.f32.mrb[23].mxu0  ;;  %v5180_v36 = vsub.f32 1.0, %v4306_v26  ;;  %v5188_v14 = vsub.f32 1.0, %v4304_v63 }
 0x23c   : > { %v5182_v35 = vsub.f32 1.0, %v4310_v18 }
 0x23d   : > { %v1671_v5 = vadd.f32 %v1670_v0, %v5180_v36 }
 0x23e   : > { %v1340_v56 = vadd.f32 %v1339_v6, %v5182_v35 }
 0x23f   : > { %v1672_v40 = vadd.f32 %v1671_v5, %v5185_v55 }
 0x240   : > { %v1341_v11 = vadd.f32 %v1340_v56, %v5188_v14 }
 0x242   : > { %v4326_v22 = vpop.f32.mrb[24].mxu1 }
 0x243   : > { %5288 = vst [vmem:[#allocation20_spill] sm:$0xff] %v4326_v22  ;;  %v4330_v25 = vpop.f32.mrb[24].mxu0  ;;  %v4332_v39 = vpop.f32.mrb[25].mxu1  ;;  %v5193_v26 = vsub.f32 1.0, %v4326_v22 }
 0x244   : > { %5289 = vst [vmem:[#allocation21_spill] sm:$0xff] %v4332_v39  ;;  %v4336_v32 = vpop.f32.mrb[25].mxu0  ;;  %v5186_v61 = vsub.f32 1.0, %v4332_v39  ;;  %v5195_v28 = vsub.f32 1.0, %v4330_v25 }
 0x245   : > { %v5187_v54 = vsub.f32 1.0, %v4336_v32 }
 0x246   : > { %v1673_v0 = vadd.f32 %v1672_v40, %v5186_v61 }
 0x247   : > { %v1342_v6 = vadd.f32 %v1341_v11, %v5187_v54 }
 0x248   : > { %v1674_v40 = vadd.f32 %v1673_v0, %v5193_v26 }
 0x249   : > { %v1343_v11 = vadd.f32 %v1342_v6, %v5195_v28 }
 0x24e   : > { %v4358_v36 = vpop.f32.mrb[26].mxu1 }
 0x24f   : > { %5290 = vst [vmem:[#allocation22_spill] sm:$0xff] %v4358_v36  ;;  %v4361_v35 = vpop.f32.mrb[26].mxu0  ;;  %v4363_v33 = vpop.f32.mrb[27].mxu1  ;;  %v5200_v29 = vsub.f32 1.0, %v4358_v36 }
 0x250   : > { %5291 = vst [vmem:[#allocation23_spill] sm:$0xff] %v4363_v33  ;;  %v4366_v56 = vpop.f32.mrb[27].mxu0  ;;  %v5194_v5 = vsub.f32 1.0, %v4363_v33  ;;  %v5196_v61 = vsub.f32 1.0, %v4361_v35 }
 0x251   : > { %v5197_v55 = vsub.f32 1.0, %v4366_v56 }
 0x252   : > { %v1675_v14 = vadd.f32 %v1674_v40, %v5194_v5 }
 0x253   : > { %v1344_v54 = vadd.f32 %v1343_v11, %v5197_v55 }
 0x254   : > { %v1676_v11 = vadd.f32 %v1675_v14, %v5200_v29 }
 0x255   : > { %v1345_v39 = vadd.f32 %v1344_v54, %v5196_v61 }
 0x256   : > { %v4382_v34 = vpop.f32.mrb[28].mxu1 }
 0x257   : > { %5292 = vst [vmem:[#allocation24_spill] sm:$0xff] %v4382_v34  ;;  %v4384_v48 = vpop.f32.mrb[28].mxu0  ;;  %v4386_v6 = vpop.f32.mrb[29].mxu1  ;;  %v5206_v5 = vsub.f32 1.0, %v4382_v34 }
 0x258   : > { %5293 = vst [vmem:[#allocation25_spill] sm:$0xff] %v4386_v6  ;;  %v4388_v0 = vpop.f32.mrb[29].mxu0  ;;  %v5204_v26 = vsub.f32 1.0, %v4386_v6  ;;  %v5208_v28 = vsub.f32 1.0, %v4384_v48 }
 0x259   : > { %v5207_v40 = vsub.f32 1.0, %v4388_v0 }
 0x25a   : > { %v1677_v54 = vadd.f32 %v1676_v11, %v5204_v26 }
 0x25b   : > { %v1346_v61 = vadd.f32 %v1345_v39, %v5207_v40 }
 0x25c   : > { %v1678_v55 = vadd.f32 %v1677_v54, %v5206_v5 }
 0x25d   : > { %v1347_v33 = vadd.f32 %v1346_v61, %v5208_v28 }
 0x262   : > { %v4404_v36 = vpop.f32.mrb[30].mxu1 }
 0x263   : > { %5294 = vst [vmem:[#allocation26_spill] sm:$0xff] %v4404_v36  ;;  %v4406_v14 = vpop.f32.mrb[30].mxu0  ;;  %v1609_v29 = vpop.f32.mrb[31].mxu1  ;;  %v5217_v11 = vsub.f32 1.0, %v4404_v36 }
 0x264   : > { %v1278_v22 = vpop.f32.mrb[31].mxu0  ;;  %v1648_v43 = vsub.f32 1.0, %v1609_v29  ;;  %v1318_v17 = vsub.f32 1.0, %v4406_v14 }
 0x265   : > { %v1317_v6 = vsub.f32 1.0, %v1278_v22 }
 0x266   : > { %v1679_v26 = vadd.f32 %v1678_v55, %v1648_v43 }
 0x267   : > { %v1348_v39 = vadd.f32 %v1347_v33, %v1317_v6 }
 0x268   : > { %v1680_v54 = vadd.f32 %v1679_v26, %v5217_v11 }
 0x269   : > { %v1349_v5 = vadd.f32 %v1348_v39, %v1318_v17 }
 0x26a   : > { %v1681_v40 = vrot.slane %v1680_v54, 4 }
 0x26b   : > { %v1350_v61 = vrot.slane %v1349_v5, 4 }
 0x26c   : > { %v1682_v28 = vadd.f32 %v1681_v40, %v1680_v54 }
 0x26d   : > { %v1351_v34 = vadd.f32 %v1350_v61, %v1349_v5 }
 0x26e   : > { %v1683_v8 = vrot.slane %v1682_v28, 2 }
 0x26f   : > { %v1352_v9 = vrot.slane %v1351_v34, 2 }
 0x270   : > { %v1684_v50 = vadd.f32 %v1683_v8, %v1682_v28  ;;  %v5300_v28 = vsub.f32 1.0, %v4116_v20  ;;  %v5305_v20 = vsub.f32 1.0, %v4122_v30  ;;  %v5310_v30 = vsub.f32 1.0, %v4155_v16 }
 0x271   : > { %v1353_v13 = vadd.f32 %v1352_v9, %v1351_v34  ;;  %v5296_v9 = vsub.f32 1.0, %v4110_v45  ;;  %v5301_v45 = vsub.f32 1.0, %v4104_v7  ;;  %v5306_v7 = vsub.f32 1.0, %v4134_v62 }
 0x272   : > { %v1685_v29 = vrot.slane %v1684_v50, 1  ;;  %v5311_v62 = vsub.f32 1.0, %v4150_v10  ;;  %v5315_v16 = vsub.f32 1.0, %v4200_v37  ;;  %v5316_v10 = vsub.f32 1.0, %v4230_v49 }
 0x273   : > { %v1354_v22 = vrot.slane %v1353_v13, 1  ;;  %v5320_v37 = vsub.f32 1.0, %v4278_v51  ;;  %v5321_v49 = vsub.f32 1.0, %v4272_v3  ;;  %v5327_v51 = vsub.f32 1.0, %v4361_v35 }
 0x274   : > { %v1686_v42 = vadd.f32 %v1685_v29, %v1684_v50  ;;  %v5329_v3 = vsub.f32 1.0, %v4388_v0  ;;  %v5338_v35 = vsub.f32 1.0, %v4330_v25  ;;  %v5344_v25 = vsub.f32 1.0, %v4120_v58 }
 0x275   : > { %v1355_v41 = vadd.f32 %v1354_v22, %v1353_v13 }
 0x276   : > { %v1687_v55 = vmax.f32 %v1686_v42, 1e-12 }
 0x277   : > { %v1356_v23 = vmax.f32 %v1355_v41, 1e-12  ;;  %v5298_v41 = vsub.f32 1.0, %v4108_v59  ;;  %v5303_v59 = vsub.f32 1.0, %v4114_v4  ;;  %v5308_v4 = vsub.f32 1.0, %v4142_v47 }
 0x278   : > { %3323 = vrcp.f32 %v1687_v55  ;;  %v5313_v47 = vsub.f32 1.0, %v4176_v15  ;;  %v5318_v15 = vsub.f32 1.0, %v4254_v31  ;;  %v5323_v31 = vsub.f32 1.0, %v4304_v63 }
 0x279   : > { %3325 = vrcp.f32 %v1356_v23 }
 0x282   : > { %v3324_v33 = vpop.eup %3323 }
 0x283   : > { %v3326_v14 = vpop.eup %3325  ;;  %v1689_v26 = vmul.f32 %v3324_v33, %v1687_v55 }
 0x284   : > { %v1358_v39 = vmul.f32 %v3326_v14, %v1356_v23  ;;  %v5299_v23 = vsub.f32 1.0, %v4106_v27  ;;  %v5304_v27 = vsub.f32 1.0, %v4126_v57  ;;  %v5309_v57 = vsub.f32 1.0, %v4138_v12 }
 0x285   : > { %v1690_v11 = vsub.f32 2.0, %v1689_v26  ;;  %v5314_v12 = vsub.f32 1.0, %v4206_v24  ;;  %v5319_v24 = vsub.f32 1.0, %v4248_v38  ;;  %v5325_v38 = vsub.f32 1.0, %v4366_v56 }
 0x286   : > { %v1359_v36 = vsub.f32 2.0, %v1358_v39  ;;  %v5336_v56 = vsub.f32 1.0, %v4336_v32  ;;  %v5343_v32 = vsub.f32 1.0, %v4124_v46  ;;  %v5347_v46 = vsub.f32 1.0, %v4140_v60 }
 0x287   : > { %v4412_v40 = vmul.f32 %v3324_v33, %v1690_v11 }
 0x288   : > { %v1360_v5 = vmul.f32 %v3326_v14, %v1359_v36 }
 0x289   : > { %v4415_v8 = vmul.f32 %v4412_v40, %v1648_v43  ;;  %v4420_v50 = vmul.f32 %v4412_v40, %v5296_v9  ;;  %v4431_v34 = vmul.f32 %v4412_v40, %v5299_v23  ;;  %v4436_v43 = vmul.f32 %v4412_v40, %v5300_v28 }
 0x28a   : > { %v4422_v42 = vmul.f32 %v1360_v5, %v1317_v6  ;;  %v4426_v13 = vmul.f32 %v1360_v5, %v5298_v41  ;;  %v4440_v36 = vmul.f32 %v1360_v5, %v5301_v45  ;;  %v5302_v6 = vsub.f32 1.0, %v4118_v52 }
 0x28b   : > { %5295 = vst [vmem:[#allocation27_spill] sm:$0xff] %v4415_v8  ;;  %v4448_v54 = vmul.f32 %v1360_v5, %v5303_v59  ;;  %v4452_v61 = vmul.f32 %v1360_v5, %v5304_v27  ;;  %v4456_v29 = vmul.f32 %v1360_v5, %v5305_v20  ;;  %v4460_v22 = vmul.f32 %v1360_v5, %v5306_v7 }
 0x28c   : > { %5297 = vst [vmem:[#allocation28_spill] sm:$0xff] %v4422_v42  ;;  %v4444_v11 = vmul.f32 %v1360_v5, %v5302_v6  ;;  %v5307_v52 = vsub.f32 1.0, %v4130_v53  ;;  %v4468_v33 = vmul.f32 %v1360_v5, %v5308_v4  ;;  %v4472_v14 = vmul.f32 %v1360_v5, %v5309_v57 }
 0x28d   : > { %v4476_v26 = vmul.f32 %v1360_v5, %v5310_v30  ;;  %v4480_v39 = vmul.f32 %v1360_v5, %v5311_v62  ;;  %v5312_v53 = vsub.f32 1.0, %v4182_v1  ;;  %v4488_v41 = vmul.f32 %v1360_v5, %v5313_v47 }
 0x28e   : > { %v4464_v55 = vmul.f32 %v1360_v5, %v5307_v52  ;;  %v4492_v23 = vmul.f32 %v1360_v5, %v5314_v12  ;;  %v4496_v28 = vmul.f32 %v1360_v5, %v5315_v16  ;;  %v4500_v45 = vmul.f32 %v1360_v5, %v5316_v10 }
 0x28f   : > { %v4484_v9 = vmul.f32 %v1360_v5, %v5312_v53  ;;  %v5317_v1 = vsub.f32 1.0, %v4224_v44  ;;  %v4508_v59 = vmul.f32 %v1360_v5, %v5318_v15  ;;  %v4512_v27 = vmul.f32 %v1360_v5, %v5319_v24 }
 0x290   : > { %v4516_v20 = vmul.f32 %v1360_v5, %v5320_v37  ;;  %v4520_v7 = vmul.f32 %v1360_v5, %v5321_v49  ;;  %v5322_v44 = vsub.f32 1.0, %v4310_v18  ;;  %v4528_v4 = vmul.f32 %v1360_v5, %v5323_v31 }
 0x291   : > { %v4504_v6 = vmul.f32 %v1360_v5, %v5317_v1  ;;  %v4532_v57 = vmul.f32 %v1360_v5, %v5325_v38  ;;  %v4536_v30 = vmul.f32 %v1360_v5, %v5327_v51  ;;  %v4540_v62 = vmul.f32 %v1360_v5, %v5329_v3  ;;  %v4548_v63 = vpop.f32.mrb[32].mxu0  ;;  %v4550_v12 = vpop.f32.mrb[32].mxu1  ;;  %v5348_v38 = vld [vmem:[#allocation5_spill] sm:$0xff]  ;;  %v5350_v3 = vld [vmem:[#allocation7_spill] sm:$0xff] }
 0x292   : > { %v4524_v52 = vmul.f32 %v1360_v5, %v5322_v44  ;;  %5324 = vst [vmem:[#allocation29_spill] sm:$0xff] %v4528_v4  ;;  %v5331_v18 = vsub.f32 1.0, %v4384_v48  ;;  %v4546_v47 = vmul.f32 %v1360_v5, %v1318_v17  ;;  %5334 = vst [vmem:[#allocation35_spill] sm:$0xff] %v4548_v63  ;;  %v4554_v16 = vmul.f32 %v1360_v5, %v5336_v56  ;;  %v4567_v1 = vpop.f32.mrb[33].mxu0  ;;  %v4569_v15 = vpop.f32.mrb[33].mxu1  ;;  %v5352_v56 = vld [vmem:[#allocation6_spill] sm:$0xff] }
 0x293   : > { %5326 = vst [vmem:[#allocation30_spill] sm:$0xff] %v4532_v57  ;;  %5328 = vst [vmem:[#allocation31_spill] sm:$0xff] %v4536_v30  ;;  %v4558_v10 = vmul.f32 %v1360_v5, %v5338_v35  ;;  %v5340_v48 = vsub.f32 1.0, %v4112_v2  ;;  %v4574_v24 = vmul.f32 %v4412_v40, %v5343_v32  ;;  %v5345_v37 = vsub.f32 1.0, %v4132_v19  ;;  %v5392_v30 = vld [vmem:[#allocation25_spill] sm:$0xff]  ;;  %v5395_v57 = vld [vmem:[#allocation22_spill] sm:$0xff] }
 0x294   : > { %5330 = vst [vmem:[#allocation32_spill] sm:$0xff] %v4540_v62  ;;  %v4544_v53 = vmul.f32 %v1360_v5, %v5331_v18  ;;  %5333 = vst [vmem:[#allocation34_spill] sm:$0xff] %v4546_v47  ;;  %v4579_v5 = vmul.f32 %v4412_v40, %v5344_v25  ;;  %v5346_v49 = vsub.f32 1.0, %v4128_v21  ;;  %v4594_v31 = vmul.f32 %v4412_v40, %v5347_v46  ;;  %v5356_v25 = vld [vmem:[#allocation8_spill] sm:$0xff]  ;;  %v5358_v46 = vld [vmem:[#allocation11_spill] sm:$0xff] }
 0x295   : > { %5335 = vst [vmem:[#allocation36_spill] sm:$0xff] %v4550_v12  ;;  %5337 = vst [vmem:[#allocation37_spill] sm:$0xff] %v4554_v16  ;;  %v4565_v17 = vmul.f32 %v4412_v40, %v5340_v48  ;;  %v4584_v2 = vmul.f32 %v4412_v40, %v5345_v37  ;;  %v5349_v58 = vsub.f32 1.0, %v5348_v38  ;;  %v5351_v19 = vsub.f32 1.0, %v5350_v3  ;;  %v5354_v48 = vld [vmem:[#allocation9_spill] sm:$0xff]  ;;  %v5360_v3 = vld [vmem:[#allocation10_spill] sm:$0xff] }
 0x296   : > { %5332 = vst [vmem:[#allocation33_spill] sm:$0xff] %v4544_v53  ;;  %5339 = vst [vmem:[#allocation38_spill] sm:$0xff] %v4558_v10  ;;  %v4589_v44 = vmul.f32 %v4412_v40, %v5346_v49  ;;  %v5353_v21 = vsub.f32 1.0, %v5352_v56  ;;  %v5355_v60 = vsub.f32 1.0, %v5354_v48  ;;  %v5357_v37 = vsub.f32 1.0, %v5356_v25  ;;  %v4633_v48 = vpop.f32.mrb[34].mxu1 }
 0x297   : > { %5341 = vst [vmem:[#allocation39_spill] sm:$0xff] %v4567_v1  ;;  %5342 = vst [vmem:[#allocation40_spill] sm:$0xff] %v4569_v15  ;;  %v4599_v51 = vmul.f32 %v4412_v40, %v5349_v58  ;;  %v4604_v18 = vmul.f32 %v4412_v40, %v5351_v19  ;;  %v5359_v38 = vsub.f32 1.0, %v5358_v46  ;;  %v5361_v19 = vsub.f32 1.0, %v5360_v3  ;;  %v5386_v53 = vld [vmem:[#allocation20_spill] sm:$0xff]  ;;  %v5389_v62 = vld [vmem:[#allocation23_spill] sm:$0xff] }
 0x298   : > { %v4609_v35 = vmul.f32 %v4412_v40, %v5353_v21  ;;  %v4614_v32 = vmul.f32 %v4412_v40, %v5355_v60  ;;  %v4619_v49 = vmul.f32 %v4412_v40, %v5357_v37  ;;  %v4631_v21 = vpop.f32.mrb[34].mxu0  ;;  %5363 = vst [vmem:[#allocation7_spill] sm:$0xff] %v4633_v48  ;;  %v5364_v60 = vld [vmem:[#allocation13_spill] sm:$0xff]  ;;  %v5366_v37 = vld [vmem:[#allocation12_spill] sm:$0xff] }
 0x299   : > { %v4624_v58 = vmul.f32 %v4412_v40, %v5359_v38  ;;  %v4629_v56 = vmul.f32 %v4412_v40, %v5361_v19  ;;  %5362 = vst [vmem:[#allocation5_spill] sm:$0xff] %v4631_v21  ;;  %v5365_v0 = vsub.f32 1.0, %v5364_v60  ;;  %v5367_v8 = vsub.f32 1.0, %v5366_v37  ;;  %v5368_v38 = vld [vmem:[#allocation15_spill] sm:$0xff]  ;;  %v5370_v19 = vld [vmem:[#allocation14_spill] sm:$0xff]  ;;  %v4655_v48 = vpop.f32.mrb[35].mxu0 }
 0x29a   : > { %v5369_v42 = vsub.f32 1.0, %v5368_v38  ;;  %v5371_v15 = vsub.f32 1.0, %v5370_v19  ;;  %5372 = vst [vmem:[#allocation6_spill] sm:$0xff] %v4655_v48  ;;  %v4657_v60 = vpop.f32.mrb[35].mxu1  ;;  %v5398_v10 = vld [vmem:[#allocation24_spill] sm:$0xff] }
 0x29b   : > { %v4638_v25 = vmul.f32 %v4412_v40, %v5365_v0  ;;  %v4643_v46 = vmul.f32 %v4412_v40, %v5367_v8  ;;  %5373 = vst [vmem:[#allocation9_spill] sm:$0xff] %v4657_v60  ;;  %v5374_v0 = vld [vmem:[#allocation17_spill] sm:$0xff]  ;;  %v5376_v8 = vld [vmem:[#allocation16_spill] sm:$0xff] }
 0x29c   : > { %v4648_v3 = vmul.f32 %v4412_v40, %v5369_v42  ;;  %v4653_v12 = vmul.f32 %v4412_v40, %v5371_v15  ;;  %v5375_v21 = vsub.f32 1.0, %v5374_v0  ;;  %v5377_v1 = vsub.f32 1.0, %v5376_v8  ;;  %v5378_v42 = vld [vmem:[#allocation19_spill] sm:$0xff]  ;;  %v5380_v15 = vld [vmem:[#allocation18_spill] sm:$0xff]  ;;  %v5383_v60 = vld [vmem:[#allocation21_spill] sm:$0xff] }
 0x29d   : > { %v5379_v63 = vsub.f32 1.0, %v5378_v42  ;;  %v5381_v47 = vsub.f32 1.0, %v5380_v15  ;;  %v5384_v0 = vsub.f32 1.0, %v5383_v60  ;;  %v5387_v8 = vsub.f32 1.0, %v5386_v53 }
 0x29e   : > { %v4662_v37 = vmul.f32 %v4412_v40, %v5375_v21  ;;  %v4667_v38 = vmul.f32 %v4412_v40, %v5377_v1  ;;  %v5390_v42 = vsub.f32 1.0, %v5389_v62  ;;  %v5393_v15 = vsub.f32 1.0, %v5392_v30 }
 0x29f   : > { %v4672_v19 = vmul.f32 %v4412_v40, %v5379_v63  ;;  %v4677_v48 = vmul.f32 %v4412_v40, %v5381_v47  ;;  %v4682_v21 = vmul.f32 %v4412_v40, %v5384_v0  ;;  %v4687_v1 = vmul.f32 %v4412_v40, %v5387_v8 }
 0x2a0   : > { %v4692_v63 = vmul.f32 %v4412_v40, %v5390_v42  ;;  %v4697_v47 = vmul.f32 %v4412_v40, %v5393_v15  ;;  %v5396_v60 = vsub.f32 1.0, %v5395_v57  ;;  %v5399_v53 = vsub.f32 1.0, %v5398_v10  ;;  %v4716_v15 = vpop.f32.mrb[36].mxu0 }
 0x2a1   : > { %5382 = vst [vmem:[#allocation8_spill] sm:$0xff] %v4677_v48  ;;  %5385 = vst [vmem:[#allocation11_spill] sm:$0xff] %v4682_v21  ;;  %v1725_v30 = vsub.f32 %v4426_v13, %v4420_v50  ;;  %v1726_v57 = vsub.f32 %v4440_v36, %v4431_v34  ;;  %v1727_v10 = vsub.f32 %v4444_v11, %v4436_v43  ;;  %v5417_v48 = vld [vmem:[#allocation35_spill] sm:$0xff] }
 0x2a2   : > { %5388 = vst [vmem:[#allocation10_spill] sm:$0xff] %v4687_v1  ;;  %5391 = vst [vmem:[#allocation13_spill] sm:$0xff] %v4692_v63  ;;  %v4702_v0 = vmul.f32 %v4412_v40, %v5396_v60  ;;  %v4707_v8 = vmul.f32 %v4412_v40, %v5399_v53  ;;  %v5401_v1 = vld [vmem:[#allocation26_spill] sm:$0xff]  ;;  %v1728_v60 = vsub.f32 %v4448_v54, %v4565_v17 }
 0x2a3   : > { %5394 = vst [vmem:[#allocation12_spill] sm:$0xff] %v4697_v47  ;;  %v5402_v62 = vsub.f32 1.0, %v5401_v1  ;;  %5404 = vst [vmem:[#allocation16_spill] sm:$0xff] %v4716_v15  ;;  %v4718_v47 = vpop.f32.mrb[36].mxu1  ;;  %v4728_v1 = vpop.f32.mrb[37].mxu0  ;;  %v1730_v50 = vsub.f32 %v4456_v29, %v4579_v5  ;;  %v1731_v13 = vsub.f32 %v4460_v22, %v4584_v2  ;;  %v1732_v34 = vsub.f32 %v4464_v55, %v4589_v44 }
 0x2a4   : > { %5397 = vst [vmem:[#allocation15_spill] sm:$0xff] %v4702_v0  ;;  %5400 = vst [vmem:[#allocation14_spill] sm:$0xff] %v4707_v8  ;;  %v4730_v53 = vpop.f32.mrb[37].mxu1  ;;  %v1733_v43 = vsub.f32 %v4468_v33, %v4594_v31  ;;  %v1734_v36 = vsub.f32 %v4472_v14, %v4599_v51  ;;  %v1735_v11 = vsub.f32 %v4476_v26, %v4604_v18  ;;  %v4756_v14 = vpop.f32.mrb[38].mxu0  ;;  %v1757_v4 = vand.u32 2147483647, %v1725_v30 }
 0x2a5   : > { %v4712_v42 = vmul.f32 %v4412_v40, %v5402_v62  ;;  %v1729_v40 = vsub.f32 %v4452_v61, %v4574_v24  ;;  %5405 = vst [vmem:[#allocation19_spill] sm:$0xff] %v4728_v1  ;;  %v1736_v54 = vsub.f32 %v4480_v39, %v4609_v35  ;;  %5406 = vst [vmem:[#allocation18_spill] sm:$0xff] %v4756_v14  ;;  %v4758_v26 = vpop.f32.mrb[38].mxu1  ;;  %v4768_v2 = vpop.f32.mrb[39].mxu0  ;;  %v1758_v17 = vand.u32 2147483647, %v1726_v57 }
 0x2a6   : > { %5407 = vst [vmem:[#allocation21_spill] sm:$0xff] %v4768_v2  ;;  %v4770_v44 = vpop.f32.mrb[39].mxu1  ;;  %v4792_v35 = vpop.f32.mrb[40].mxu0  ;;  %v1759_v62 = vand.u32 2147483647, %v1727_v10  ;;  %v2079_v16 = vsub.f32 1.0, %v4718_v47 }
 0x2a7   : > { %5403 = vst [vmem:[#allocation17_spill] sm:$0xff] %v4712_v42  ;;  %5416 = vst [vmem:[#allocation20_spill] sm:$0xff] %v4792_v35  ;;  %v4794_v21 = vpop.f32.mrb[40].mxu1  ;;  %v1789_v39 = vadd.f32 %v1758_v17, %v1757_v4  ;;  %v1760_v63 = vand.u32 2147483647, %v1728_v60  ;;  %v4796_v51 = vpop.f32.mrb[41].mxu0 }
 0x2a8   : > { %v1761_v55 = vand.u32 2147483647, %v1729_v40  ;;  %v1762_v29 = vand.u32 2147483647, %v1730_v50  ;;  %v1763_v22 = vand.u32 2147483647, %v1731_v13 }
 0x2a9   : > { %v1790_v5 = vadd.f32 %v1789_v39, %v1759_v62  ;;  %v1764_v31 = vand.u32 2147483647, %v1732_v34  ;;  %v1765_v61 = vand.u32 2147483647, %v1733_v43  ;;  %v1766_v8 = vand.u32 2147483647, %v1734_v36 }
 0x2aa   : > { %v4798_v30 = vpop.f32.mrb[41].mxu1  ;;  %v5245_v42 = vsub.f32 1.0, %v5417_v48  ;;  %v1767_v18 = vand.u32 2147483647, %v1735_v11  ;;  %v5244_v4 = vsub.f32 1.0, %v4716_v15  ;;  %v4802_v10 = vpop.f32.mrb[42].mxu0  ;;  %v5422_v39 = vsub.f32 %v4484_v9, %v4614_v32 }
 0x2ab   : > { %v1791_v0 = vadd.f32 %v1790_v5, %v1760_v63  ;;  %v4804_v60 = vpop.f32.mrb[42].mxu1  ;;  %v5418_v63 = vld [vmem:[#allocation39_spill] sm:$0xff]  ;;  %v5419_v40 = vld [vmem:[#allocation5_spill] sm:$0xff]  ;;  %v5248_v13 = vsub.f32 1.0, %v4728_v1  ;;  %v5252_v34 = vsub.f32 1.0, %v4756_v14  ;;  %v4810_v43 = vpop.f32.mrb[43].mxu0 }
 0x2ac   : > { %v4812_v36 = vpop.f32.mrb[43].mxu1  ;;  %v5420_v11 = vld [vmem:[#allocation6_spill] sm:$0xff]  ;;  %v4820_v17 = vpop.f32.mrb[44].mxu0  ;;  %v1768_v62 = vand.u32 2147483647, %v1736_v54  ;;  %v5423_v1 = vsub.f32 1.0, %v4768_v2 }
 0x2ad   : > { %v1792_v33 = vadd.f32 %v1791_v0, %v1761_v55  ;;  %v5249_v0 = vsub.f32 1.0, %v5418_v63  ;;  %v4822_v5 = vpop.f32.mrb[44].mxu1  ;;  %v1769_v54 = vand.u32 2147483647, %v5422_v39  ;;  %v5427_v9 = vsub.f32 1.0, %v4792_v35  ;;  %v5429_v63 = vld [vmem:[#allocation7_spill] sm:$0xff] }
 0x2ae   : > { %v5430_v24 = vsub.f32 1.0, %v4796_v51  ;;  %v5506_v47 = vsub.f32 1.0, %v4770_v44 }
 0x2af   : > { %v1793_v57 = vadd.f32 %v1792_v33, %v1762_v29  ;;  %v2092_v33 = vmin.f32 %v5245_v42, %v5244_v4  ;;  %v2091_v50 = vmin.f32 %v5249_v0, %v5248_v13  ;;  %v4833_v4 = vpop.f32.mrb[45].mxu0  ;;  %v4835_v42 = vpop.f32.mrb[45].mxu1  ;;  %v5424_v13 = vsub.f32 1.0, %v5420_v11 }
 0x2b0   : > { %v4845_v14 = vpop.f32.mrb[46].mxu0  ;;  %v5260_v29 = vsub.f32 1.0, %v4810_v43 }
 0x2b1   : > { %v1794_v55 = vadd.f32 %v1793_v57, %v1763_v22  ;;  %v5421_v22 = vsub.f32 1.0, %v5419_v40  ;;  %v2093_v0 = vmin.f32 %v5424_v13, %v5423_v1  ;;  %v5426_v40 = vsub.f32 %v4488_v41, %v4619_v49  ;;  %v5428_v13 = vld [vmem:[#allocation40_spill] sm:$0xff] }
 0x2b2   : > { %v2096_v32 = vmin.f32 %v2092_v33, %v5427_v9  ;;  %v2095_v41 = vmin.f32 %v2091_v50, %v5430_v24  ;;  %v5262_v33 = vsub.f32 1.0, %v4833_v4  ;;  %v5431_v9 = vld [vmem:[#allocation9_spill] sm:$0xff]  ;;  %v5263_v2 = vsub.f32 1.0, %v4845_v14 }
 0x2b3   : > { %v2094_v57 = vmin.f32 %v5421_v22, %v5252_v34  ;;  %v1795_v15 = vadd.f32 %v1794_v55, %v1764_v31  ;;  %v4847_v22 = vpop.f32.mrb[46].mxu1  ;;  %v5425_v34 = vld [vmem:[#allocation36_spill] sm:$0xff]  ;;  %v1770_v48 = vand.u32 2147483647, %v5426_v40  ;;  %v5259_v31 = vsub.f32 1.0, %v4802_v10  ;;  %v4856_v55 = vpop.f32.mrb[47].mxu0 }
 0x2b4   : > { %v4858_v1 = vpop.f32.mrb[47].mxu1  ;;  %v5261_v40 = vsub.f32 1.0, %v4820_v17  ;;  %v2099_v24 = vmin.f32 %v2095_v41, %v5262_v33  ;;  %v5264_v50 = vsub.f32 1.0, %v4856_v55 }
 0x2b5   : > { %v1796_v11 = vadd.f32 %v1795_v15, %v1765_v61  ;;  %v2098_v49 = vmin.f32 %v2094_v57, %v5259_v31  ;;  %v2097_v15 = vmin.f32 %v2093_v0, %v5260_v29  ;;  %v5432_v0 = vsub.f32 1.0, %v5425_v34 }
 0x2b6   : > { %v2100_v61 = vmin.f32 %v2096_v32, %v5261_v40  ;;  %v5433_v32 = vsub.f32 1.0, %v5428_v13  ;;  %v2083_v57 = vsub.f32 1.0, %v4794_v21  ;;  %v5507_v21 = vsub.f32 1.0, %v4812_v36 }
 0x2b7   : > { %v1797_v39 = vadd.f32 %v1796_v11, %v1766_v8  ;;  %v2102_v8 = vmin.f32 %v2098_v49, %v5263_v2  ;;  %v2101_v41 = vmin.f32 %v2097_v15, %v5264_v50  ;;  %v2085_v49 = vsub.f32 1.0, %v4804_v60 }
 0x2b8   : > { %v2104_v29 = vmin.f32 %v2100_v61, %v5432_v0  ;;  %v2103_v40 = vmin.f32 %v2099_v24, %v5433_v32  ;;  %v5435_v61 = vsub.f32 1.0, %v4730_v53  ;;  %v5436_v24 = vsub.f32 1.0, %v5431_v9 }
 0x2b9   : > { %v1798_v31 = vadd.f32 %v1797_v39, %v1767_v18  ;;  %v2082_v18 = vsub.f32 1.0, %v4798_v30  ;;  %v5434_v39 = vsub.f32 1.0, %v5429_v63  ;;  %v5437_v50 = vsub.f32 1.0, %v4758_v26 }
 0x2ba   : > { %v2108_v2 = vmin.f32 %v2104_v29, %v2079_v16  ;;  %v2107_v0 = vmin.f32 %v2103_v40, %v5435_v61  ;;  %v2105_v32 = vmin.f32 %v2101_v41, %v5436_v24  ;;  %v5438_v40 = vsub.f32 1.0, %v4770_v44 }
 0x2bb   : > { %v1799_v33 = vadd.f32 %v1798_v31, %v1768_v62  ;;  %v2106_v35 = vmin.f32 %v2102_v8, %v5434_v39  ;;  %v5266_v62 = vsub.f32 1.0, %v4812_v36  ;;  %v2087_v31 = vsub.f32 1.0, %v4822_v5 }
 0x2bc   : > { %v2112_v8 = vmin.f32 %v2108_v2, %v2083_v57  ;;  %v5265_v39 = vsub.f32 1.0, %v4835_v42  ;;  %v2111_v29 = vmin.f32 %v2107_v0, %v2082_v18  ;;  %v2109_v61 = vmin.f32 %v2105_v32, %v5438_v40 }
 0x2bd   : > { %v1800_v15 = vadd.f32 %v1799_v33, %v1769_v54  ;;  %v2110_v11 = vmin.f32 %v2106_v35, %v5437_v50  ;;  %v5439_v54 = vsub.f32 %v4492_v23, %v4624_v58  ;;  %v2089_v24 = vsub.f32 1.0, %v4847_v22 }
 0x2be   : > { %v2116_v2 = vmin.f32 %v2112_v8, %v2087_v31  ;;  %v2115_v50 = vmin.f32 %v2111_v29, %v5265_v39  ;;  %v2088_v0 = vsub.f32 1.0, %v4858_v1  ;;  %v2113_v32 = vmin.f32 %v2109_v61, %v5266_v62 }
 0x2bf   : > { %v1771_v33 = vand.u32 2147483647, %v5439_v54  ;;  %v1801_v41 = vadd.f32 %v1800_v15, %v1770_v48  ;;  %v2114_v35 = vmin.f32 %v2110_v11, %v2085_v49  ;;  %v5440_v23 = vsub.f32 %v4496_v28, %v4629_v56 }
 0x2c0   : > { %v2119_v11 = vmin.f32 %v2115_v50, %v2116_v2  ;;  %v2117_v8 = vmin.f32 %v2113_v32, %v2088_v0  ;;  %v5441_v29 = vsub.f32 %v4500_v45, %v4638_v25  ;;  %v5442_v61 = vsub.f32 %v4504_v6, %v4643_v46 }
 0x2c1   : > { %v1772_v58 = vand.u32 2147483647, %v5440_v23  ;;  %v1802_v48 = vadd.f32 %v1801_v41, %v1771_v33  ;;  %v2118_v15 = vmin.f32 %v2114_v35, %v2089_v24  ;;  %v5443_v33 = vsub.f32 %v4508_v59, %v4648_v3 }
 0x2c2   : > { %v1773_v40 = vand.u32 2147483647, %v5441_v29  ;;  %v1774_v62 = vand.u32 2147483647, %v5442_v61  ;;  %v5444_v50 = vsub.f32 %v4512_v27, %v4653_v12  ;;  %v5445_v23 = vsub.f32 %v4516_v20, %v4662_v37  ;;  %v5452_v61 = vld [vmem:[#allocation11_spill] sm:$0xff] }
 0x2c3   : > { %v1803_v54 = vadd.f32 %v1802_v48, %v1772_v58  ;;  %v2120_v39 = vmin.f32 %v2117_v8, %v2118_v15  ;;  %v1775_v41 = vand.u32 2147483647, %v5443_v33  ;;  %v5449_v8 = vld [vmem:[#allocation8_spill] sm:$0xff]  ;;  %v5454_v33 = vld [vmem:[#allocation38_spill] sm:$0xff] }
 0x2c4   : > { %v1776_v32 = vand.u32 2147483647, %v5444_v50  ;;  %v1777_v58 = vand.u32 2147483647, %v5445_v23  ;;  %v5458_v50 = vld [vmem:[#allocation13_spill] sm:$0xff]  ;;  %v5460_v23 = vld [vmem:[#allocation31_spill] sm:$0xff] }
 0x2c5   : > { %v1804_v28 = vadd.f32 %v1803_v54, %v1773_v40  ;;  %v2121_v56 = vmin.f32 %v2119_v11, %v2120_v39  ;;  %v5446_v39 = vsub.f32 %v4520_v7, %v4667_v38  ;;  %v5448_v11 = vld [vmem:[#allocation29_spill] sm:$0xff] }
 0x2c6   : > { %v5450_v29 = vsub.f32 %v5448_v11, %v5449_v8  ;;  %v5451_v54 = vld [vmem:[#allocation37_spill] sm:$0xff]  ;;  %v5469_v8 = vld [vmem:[#allocation14_spill] sm:$0xff] }
 0x2c7   : > { %v1805_v35 = vadd.f32 %v1804_v28, %v1774_v62  ;;  %v2122_v2 = vrot.slane %v2121_v56, 4  ;;  %v1778_v48 = vand.u32 2147483647, %v5446_v39  ;;  %v5447_v62 = vsub.f32 %v4524_v52, %v4672_v19  ;;  %v5468_v11 = vld [vmem:[#allocation33_spill] sm:$0xff] }
 0x2c8   : > { %v1780_v40 = vand.u32 2147483647, %v5450_v29  ;;  %v5453_v28 = vsub.f32 %v5451_v54, %v5452_v61  ;;  %v5470_v29 = vsub.f32 %v5468_v11, %v5469_v8  ;;  %v5473_v61 = vld [vmem:[#allocation28_spill] sm:$0xff]  ;;  %v5495_v11 = vsub.f32 1.0, %v4845_v14 }
 0x2c9   : > { %v1806_v45 = vadd.f32 %v1805_v35, %v1775_v41  ;;  %v2123_v25 = vmin.f32 %v2121_v56, %v2122_v2  ;;  %v1779_v15 = vand.u32 2147483647, %v5447_v62  ;;  %v5455_v41 = vld [vmem:[#allocation10_spill] sm:$0xff]  ;;  %v5466_v62 = vld [vmem:[#allocation12_spill] sm:$0xff]  ;;  %v5496_v8 = vsub.f32 1.0, %v4796_v51 }
 0x2ca   : > { %v1781_v7 = vand.u32 2147483647, %v5453_v28  ;;  %v5456_v35 = vsub.f32 %v5454_v33, %v5455_v41  ;;  %v5457_v2 = vld [vmem:[#allocation30_spill] sm:$0xff]  ;;  %v5474_v28 = vld [vmem:[#allocation27_spill] sm:$0xff]  ;;  %v5477_v41 = vld [vmem:[#allocation17_spill] sm:$0xff]  ;;  %v5501_v14 = vsub.f32 1.0, %v4856_v55 }
 0x2cb   : > { %v1807_v6 = vadd.f32 %v1806_v45, %v1776_v32  ;;  %v2124_v46 = vrot.slane %v2123_v25, 2  ;;  %v5459_v32 = vsub.f32 %v5457_v2, %v5458_v50  ;;  %v5476_v33 = vld [vmem:[#allocation34_spill] sm:$0xff]  ;;  %v5479_v2 = vld [vmem:[#allocation16_spill] sm:$0xff]  ;;  %v5502_v51 = vsub.f32 1.0, %v4758_v26 }
 0x2cc   : > { %v1782_v52 = vand.u32 2147483647, %v5456_v35  ;;  %v5478_v35 = vsub.f32 %v5476_v33, %v5477_v41  ;;  %v5480_v50 = vsub.f32 1.0, %v5479_v2  ;;  %v5508_v26 = vsub.f32 1.0, %v4835_v42  ;;  %v2147_v55 = vld [vmem:[#allocation2 + $0x28] sm:$0xff]  ;;  %v2153_v33 = vld [vmem:[#allocation2 + $0x58] sm:$0xff] }
 0x2cd   : > { %v1808_v59 = vadd.f32 %v1807_v6, %v1777_v58  ;;  %v2125_v3 = vmin.f32 %v2123_v25, %v2124_v46  ;;  %v1783_v45 = vand.u32 2147483647, %v5459_v32  ;;  %v5461_v58 = vld [vmem:[#allocation15_spill] sm:$0xff] }
 0x2ce   : > { %v5462_v6 = vsub.f32 %v5460_v23, %v5461_v58  ;;  %v5483_v23 = vld [vmem:[#allocation39_spill] sm:$0xff] }
 0x2cf   : > { %v1809_v27 = vadd.f32 %v1808_v59, %v1778_v48  ;;  %v2126_v12 = vrot.slane %v2125_v3, 1  ;;  %v5463_v48 = vld [vmem:[#allocation35_spill] sm:$0xff]  ;;  %v5484_v58 = vsub.f32 1.0, %v5483_v23 }
 0x2d0   : > { %v1784_v46 = vand.u32 2147483647, %v5462_v6  ;;  %v5464_v59 = vsub.f32 1.0, %v5463_v48  ;;  %v5485_v6 = vld [vmem:[#allocation20_spill] sm:$0xff] }
 0x2d1   : > { %v1810_v20 = vadd.f32 %v1809_v27, %v1779_v15  ;;  %v2127_v37 = vmin.f32 %v2125_v3, %v2126_v12  ;;  %v5465_v3 = vld [vmem:[#allocation32_spill] sm:$0xff] }
 0x2d2   : > { %v5467_v15 = vsub.f32 %v5465_v3, %v5466_v62  ;;  %v5490_v3 = vld [vmem:[#allocation19_spill] sm:$0xff] }
 0x2d3   : > { %v1811_v38 = vadd.f32 %v1810_v20, %v1780_v40  ;;  %v2129_v56 = vsel %vm2128_vm2, %v2127_v37, 0.0  ;;  %v1786_v40 = vand.u32 2147483647, %v5470_v29  ;;  %v5471_v37 = vld [vmem:[#allocation5_spill] sm:$0xff]  ;;  %v5491_v62 = vsub.f32 1.0, %v5490_v3  ;;  %v2157_v3 = vld [vmem:[#allocation2 + $0x78] sm:$0xff] }
 0x2d4   : > { %2130 = vadd.xlane.f32.xlu1 %v2129_v56  ;;  %v1785_v27 = vand.u32 2147483647, %v5467_v15  ;;  %v5472_v54 = vsub.f32 1.0, %v5471_v37  ;;  %v5492_v15 = vsub.f32 1.0, %v4820_v17  ;;  %v5497_v29 = vsub.f32 1.0, %v5425_v34 }
 0x2d5   : > { %v1812_v19 = vadd.f32 %v1811_v38, %v1781_v7  ;;  %v5475_v7 = vsub.f32 %v5473_v61, %v5474_v28  ;;  %v5500_v17 = vsub.f32 1.0, %v4833_v4  ;;  %v5503_v34 = vsub.f32 1.0, %v5428_v13  ;;  %v2143_v4 = vld [vmem:[#allocation2 + $0x8] sm:$0xff] }
 0x2d7   : > { %v1813_v25 = vadd.f32 %v1812_v19, %v1782_v52  ;;  %v1787_v38 = vand.u32 2147483647, %v5475_v7  ;;  %v1788_v52 = vand.u32 2147483647, %v5478_v35 }
 0x2d8   : > { %2176 = vmin.xlane.f32.xlu1 %v5464_v59  ;;  %v5489_v59 = vsub.f32 1.0, %v4802_v10  ;;  %v5498_v10 = vsub.f32 1.0, %v4810_v43  ;;  %v2145_v43 = vld [vmem:[#allocation2 + $0x18] sm:$0xff] }
 0x2d9   : > { %v1814_v39 = vadd.f32 %v1813_v25, %v1783_v45  ;;  %v5481_v45 = vld [vmem:[#allocation18_spill] sm:$0xff] }
 0x2da   : > { %v5482_v25 = vsub.f32 1.0, %v5481_v45  ;;  %v2146_v45 = vld [vmem:[#allocation2 + $0x20] sm:$0xff] }
 0x2db   : > { %v1815_v12 = vadd.f32 %v1814_v39, %v1784_v46  ;;  %v5486_v46 = vsub.f32 1.0, %v5485_v6  ;;  %v5487_v39 = vld [vmem:[#allocation6_spill] sm:$0xff] }
 0x2dc   : > { %2180 = vmin.xlane.f32.xlu1 %v5472_v54  ;;  %v5488_v48 = vsub.f32 1.0, %v5487_v39 }
 0x2dd   : > { %v1816_v20 = vadd.f32 %v1815_v12, %v1785_v27  ;;  %v5493_v27 = vld [vmem:[#allocation21_spill] sm:$0xff] }
 0x2de   : > { %v5494_v12 = vsub.f32 1.0, %v5493_v27 }
 0x2df   : > { %v1817_v56 = vadd.f32 %v1816_v20, %v1786_v40  ;;  %v5499_v40 = vsub.f32 1.0, %v5429_v63  ;;  %v5504_v63 = vsub.f32 1.0, %v5431_v9  ;;  %v2149_v9 = vld [vmem:[#allocation2 + $0x38] sm:$0xff] }
 0x2e0   : > { %2184 = vmin.xlane.f32.xlu1 %v5480_v50 }
 0x2e1   : > { %v1818_v19 = vadd.f32 %v1817_v56, %v1787_v38  ;;  %v2144_v56 = vld [vmem:[#allocation2 + $0x10] sm:$0xff] }
 0x2e3   : > { %v1819_v32 = vadd.f32 %v1818_v19, %v1788_v52 }
 0x2e4   : > { %2188 = vmin.xlane.f32.xlu1 %v5482_v25  ;;  %v2155_v25 = vld [vmem:[#allocation2 + $0x68] sm:$0xff] }
 0x2e5   : > { %1820 = vadd.xlane.f32.xlu0 %v1819_v32 }
 0x2e8   : > { %2192 = vmin.xlane.f32.xlu1 %v5486_v46 }
 0x2e9   : > { %2174 = vmin.xlane.f32.xlu0 %v5484_v58 }
 0x2ec   : > { %2196 = vmin.xlane.f32.xlu1 %v5489_v59  ;;  %v2148_v59 = vld [vmem:[#allocation2 + $0x30] sm:$0xff] }
 0x2ed   : > { %2178 = vmin.xlane.f32.xlu0 %v5488_v48 }
 0x2f0   : > { %2200 = vmin.xlane.f32.xlu1 %v5492_v15 }
 0x2f1   : > { %2182 = vmin.xlane.f32.xlu0 %v5491_v62 }
 0x2f4   : > { %2204 = vmin.xlane.f32.xlu1 %v5495_v11  ;;  %v2150_v11 = vld [vmem:[#allocation2 + $0x40] sm:$0xff] }
 0x2f5   : > { %2186 = vmin.xlane.f32.xlu0 %v5494_v12 }
 0x2f8   : > { %2208 = vmin.xlane.f32.xlu1 %v5497_v29 }
 0x2f9   : > { %2190 = vmin.xlane.f32.xlu0 %v5496_v8  ;;  %v2159_v8 = vld [vmem:[#allocation2 + $0x88] sm:$0xff] }
 0x2fc   : > { %2212 = vmin.xlane.f32.xlu1 %v5499_v40 }
 0x2fd   : > { %2194 = vmin.xlane.f32.xlu0 %v5498_v10 }
 0x300   : > { %2216 = vmin.xlane.f32.xlu1 %v2079_v16  ;;  %v5505_v16 = vsub.f32 1.0, %v4730_v53 }
 0x301   : > { %2198 = vmin.xlane.f32.xlu0 %v5500_v17 }
 0x304   : > { %2220 = vmin.xlane.f32.xlu1 %v5502_v51  ;;  %v2161_v51 = vld [vmem:[#allocation2 + $0x98] sm:$0xff] }
 0x305   : > { %2202 = vmin.xlane.f32.xlu0 %v5501_v14  ;;  %v2152_v14 = vld [vmem:[#allocation2 + $0x50] sm:$0xff] }
 0x308   : > { %2224 = vmin.xlane.f32.xlu1 %v2083_v57 }
 0x309   : > { %2206 = vmin.xlane.f32.xlu0 %v5503_v34 }
 0x30c   : > { %2228 = vmin.xlane.f32.xlu1 %v2085_v49 }
 0x30d   : > { %2210 = vmin.xlane.f32.xlu0 %v5504_v63 }
 0x310   : > { %2232 = vmin.xlane.f32.xlu1 %v2087_v31 }
 0x311   : > { %2214 = vmin.xlane.f32.xlu0 %v5505_v16 }
 0x314   : > { %2236 = vmin.xlane.f32.xlu1 %v2089_v24  ;;  %v2142_v24 = vld [vmem:[#allocation2] sm:$0xff] }
 0x315   : > { %2218 = vmin.xlane.f32.xlu0 %v5506_v47 }
 0x319   : > { %2222 = vmin.xlane.f32.xlu0 %v2082_v18 }
 0x31d   : > { %2226 = vmin.xlane.f32.xlu0 %v5507_v21  ;;  %v2154_v21 = vld [vmem:[#allocation2 + $0x60] sm:$0xff] }
 0x321   : > { %2230 = vmin.xlane.f32.xlu0 %v5508_v26  ;;  %v2163_v26 = vld [vmem:[#allocation2 + $0xa8] sm:$0xff] }
 0x325   : > { %2234 = vmin.xlane.f32.xlu0 %v2088_v0  ;;  %v2151_v0 = vld [vmem:[#allocation2 + $0x48] sm:$0xff] }
 0x361   : > { %v2131_v53 = vpop.xlane.xlu1 %2130 }
 0x362   : > { %v2132_v5 = vrot.slane %v2131_v53, 4 }
 0x364   : > { %v2133_v36 = vadd.f32 %v2132_v5, %v2131_v53  ;;  %v2165_v5 = vld [vmem:[#allocation2 + $0xb8] sm:$0xff] }
 0x365   : > { %v2177_v44 = vpop.xlane.xlu1 %2176 }
 0x366   : > { %v2239_v60 = vmin.f32 %v2143_v4, %v2177_v44  ;;  %v2134_v1 = vrot.slane %v2133_v36, 2 }
 0x368   : > { %2272 = vst.msk [vmem:[#allocation2 + $0x8] sm:$0xff] %vm2270_vm3, %v2239_v60  ;;  %v2135_v54 = vadd.f32 %v2134_v1, %v2133_v36 }
 0x369   : > { %v2181_v30 = vpop.xlane.xlu1 %2180 }
 0x36a   : > { %v2241_v22 = vmin.f32 %v2145_v43, %v2181_v30  ;;  %v2136_v52 = vrot.slane %v2135_v54, 1  ;;  %v2156_v43 = vld [vmem:[#allocation2 + $0x70] sm:$0xff] }
 0x36c   : > { %2274 = vst.msk [vmem:[#allocation2 + $0x18] sm:$0xff] %vm2270_vm3, %v2241_v22  ;;  %v2137_v6 = vadd.f32 %v2136_v52, %v2135_v54  ;;  %v2162_v54 = vld [vmem:[#allocation2 + $0xa0] sm:$0xff] }
 0x36d   : > { %v2185_v42 = vpop.xlane.xlu1 %2184 }
 0x36e   : > { %v2243_v13 = vmin.f32 %v2147_v55, %v2185_v42  ;;  %v2158_v42 = vld [vmem:[#allocation2 + $0x80] sm:$0xff] }
 0x370   : > { %2276 = vst.msk [vmem:[#allocation2 + $0x28] sm:$0xff] %vm2270_vm3, %v2243_v13  ;;  %v2167_v13 = vld [vmem:[#allocation2 + $0xc8] sm:$0xff] }
 0x371   : > { %v2189_v18 = vpop.xlane.xlu1 %2188 }
 0x372   : > { %v1821_v57 = vpop.xlane.xlu0 %1820  ;;  %v2245_v31 = vmin.f32 %v2149_v9, %v2189_v18 }
 0x373   : > { %v1822_v49 = vrot.slane %v1821_v57, 4 }
 0x374   : > { %2278 = vst.msk [vmem:[#allocation2 + $0x38] sm:$0xff] %vm2270_vm3, %v2245_v31  ;;  %v2169_v31 = vld [vmem:[#allocation2 + $0xd8] sm:$0xff] }
 0x375   : > { %v1823_v20 = vadd.f32 %v1822_v49, %v1821_v57  ;;  %v2193_v61 = vpop.xlane.xlu1 %2192  ;;  %v2160_v49 = vld [vmem:[#allocation2 + $0x90] sm:$0xff] }
 0x376   : > { %v2175_v37 = vpop.xlane.xlu0 %2174  ;;  %v2247_v38 = vmin.f32 %v2151_v0, %v2193_v61  ;;  %v2171_v61 = vld [vmem:[#allocation2 + $0xe8] sm:$0xff] }
 0x377   : > { %v1824_v28 = vrot.slane %v1823_v20, 2  ;;  %v2238_v7 = vmin.f32 %v2142_v24, %v2175_v37 }
 0x378   : > { %2280 = vst.msk [vmem:[#allocation2 + $0x48] sm:$0xff] %vm2270_vm3, %v2247_v38 }
 0x379   : > { %2271 = vst.msk [vmem:[#allocation2] sm:$0xff] %vm2270_vm3, %v2238_v7  ;;  %v1825_v41 = vadd.f32 %v1824_v28, %v1823_v20  ;;  %v2197_v19 = vpop.xlane.xlu1 %2196 }
 0x37a   : > { %v2179_v35 = vpop.xlane.xlu0 %2178  ;;  %v2249_v32 = vmin.f32 %v2153_v33, %v2197_v19  ;;  %v2164_v33 = vld [vmem:[#allocation2 + $0xb0] sm:$0xff] }
 0x37b   : > { %v2240_v2 = vmin.f32 %v2144_v56, %v2179_v35  ;;  %v1826_v50 = vrot.slane %v1825_v41, 1 }
 0x37c   : > { %2282 = vst.msk [vmem:[#allocation2 + $0x58] sm:$0xff] %vm2270_vm3, %v2249_v32 }
 0x37d   : > { %2273 = vst.msk [vmem:[#allocation2 + $0x10] sm:$0xff] %vm2270_vm3, %v2240_v2  ;;  %v1827_v23 = vadd.f32 %v1826_v50, %v1825_v41  ;;  %v2201_v46 = vpop.xlane.xlu1 %2200  ;;  %v2173_v41 = vld [vmem:[#allocation2 + $0xf8] sm:$0xff]  ;;  %v2166_v50 = vld [vmem:[#allocation2 + $0xc0] sm:$0xff] }
 0x37e   : > { %v2183_v58 = vpop.xlane.xlu0 %2182  ;;  %v2251_v48 = vmin.f32 %v2155_v25, %v2201_v46  ;;  %v2168_v25 = vld [vmem:[#allocation2 + $0xd0] sm:$0xff] }
 0x37f   : > { %v2242_v39 = vmin.f32 %v2146_v45, %v2183_v58  ;;  %3050 = vpush %v1827_v23 }
 0x380   : > { %3052 = vpush %v2137_v6  ;;  %v2170_v6 = vld [vmem:[#allocation2 + $0xe0] sm:$0xff] }
 0x381   : > { %2275 = vst.msk [vmem:[#allocation2 + $0x20] sm:$0xff] %vm2270_vm3, %v2242_v39  ;;  %2284 = vst.msk [vmem:[#allocation2 + $0x68] sm:$0xff] %vm2270_vm3, %v2251_v48  ;;  %v2205_v15 = vpop.xlane.xlu1 %2204  ;;  %v1724_v48 = vld [vmem:[#allocation3] sm:$0x1] }
 0x382   : > { %v2187_v62 = vpop.xlane.xlu0 %2186  ;;  %v2253_v12 = vmin.f32 %v2157_v3, %v2205_v15  ;;  %v2172_v3 = vld [vmem:[#allocation2 + $0xf0] sm:$0xff] }
 0x383   : > { %v2244_v27 = vmin.f32 %v2148_v59, %v2187_v62  ;;  %v2090_v59 = vld [vmem:[#allocation4] sm:$0x1] }
 0x384   : > { %2286 = vst.msk [vmem:[#allocation2 + $0x78] sm:$0xff] %vm2270_vm3, %v2253_v12 }
 0x385   : > { %2277 = vst.msk [vmem:[#allocation2 + $0x30] sm:$0xff] %vm2270_vm3, %v2244_v27  ;;  %v2209_v10 = vpop.xlane.xlu1 %2208 }
 0x386   : > { %v2191_v29 = vpop.xlane.xlu0 %2190  ;;  %v2255_v17 = vmin.f32 %v2159_v8, %v2209_v10  ;;  %v2308_v10 = vld [vmem:[#allocation2 + $0x8] sm:$0xff] (!%p2549_p8) }
 0x387   : > { %v2246_v40 = vmin.f32 %v2150_v11, %v2191_v29  ;;  %v2307_v29 = vld [vmem:[#allocation2] sm:$0xff] (!%p2549_p8) }
 0x388   : > { %2288 = vst.msk [vmem:[#allocation2 + $0x88] sm:$0xff] %vm2270_vm3, %v2255_v17  ;;  %v2310_v17 = vld [vmem:[#allocation2 + $0x18] sm:$0xff] (!%p2549_p8) }
 0x389   : > { %2279 = vst.msk [vmem:[#allocation2 + $0x40] sm:$0xff] %vm2270_vm3, %v2246_v40  ;;  %v2213_v63 = vpop.xlane.xlu1 %2212  ;;  %v2309_v40 = vld [vmem:[#allocation2 + $0x10] sm:$0xff] (!%p2549_p8) }
 0x38a   : > { %v2195_v34 = vpop.xlane.xlu0 %2194  ;;  %v2257_v47 = vmin.f32 %v2161_v51, %v2213_v63  ;;  %v2340_v51 = vsel (!%p2549_p8), %vm2270_vm3, %v2308_v10, 0.0  ;;  %v3433_v63 = vmov (!%p2549_p8), 0  }
 0x38b   : > { %v2248_v16 = vmin.f32 %v2152_v14, %v2195_v34  ;;  %v2339_v14 = vsel (!%p2549_p8), %vm2270_vm3, %v2307_v29, 0.0  ;;  %v2342_v34 = vsel (!%p2549_p8), %vm2270_vm3, %v2309_v40, 0.0  ;;  %3389 = vset.pattern.permute.xlu0 (!%p2549_p8), %v3433_v63  ;;  %3390 = vset.pattern.permute.xlu1 (!%p2549_p8), %v3433_v63 }
 0x38c   : > { %2290 = vst.msk [vmem:[#allocation2 + $0x98] sm:$0xff] %vm2270_vm3, %v2257_v47  ;;  %v2341_v47 = vadd.f32 (!%p2549_p8), %v2340_v51, %v2339_v14 }
 0x38d   : > { %2281 = vst.msk [vmem:[#allocation2 + $0x50] sm:$0xff] %vm2270_vm3, %v2248_v16  ;;  %v2217_v4 = vpop.xlane.xlu1 %2216  ;;  %v2311_v16 = vld [vmem:[#allocation2 + $0x20] sm:$0xff] (!%p2549_p8) }
 0x38e   : > { %v2199_v53 = vpop.xlane.xlu0 %2198  ;;  %v2259_v60 = vmin.f32 %v2163_v26, %v2217_v4  ;;  %v2312_v26 = vld [vmem:[#allocation2 + $0x28] sm:$0xff] (!%p2549_p8)  ;;  %v2346_v4 = vsel (!%p2549_p8), %vm2270_vm3, %v2311_v16, 0.0 }
 0x38f   : > { %v2250_v44 = vmin.f32 %v2154_v21, %v2199_v53  ;;  %v2344_v21 = vsel (!%p2549_p8), %vm2270_vm3, %v2310_v17, 0.0  ;;  %v2343_v53 = vadd.f32 (!%p2549_p8), %v2342_v34, %v2341_v47 }
 0x390   : > { %2292 = vst.msk [vmem:[#allocation2 + $0xa8] sm:$0xff] %vm2270_vm3, %v2259_v60 }
 0x391   : > { %2283 = vst.msk [vmem:[#allocation2 + $0x60] sm:$0xff] %vm2270_vm3, %v2250_v44  ;;  %v2221_v22 = vpop.xlane.xlu1 %2220  ;;  %v2313_v44 = vld [vmem:[#allocation2 + $0x30] sm:$0xff] (!%p2549_p8)  ;;  %v2345_v60 = vadd.f32 (!%p2549_p8), %v2344_v21, %v2343_v53 }
 0x392   : > { %v2203_v30 = vpop.xlane.xlu0 %2202  ;;  %v2261_v36 = vmin.f32 %v2165_v5, %v2221_v22  ;;  %v2314_v5 = vld [vmem:[#allocation2 + $0x38] sm:$0xff] (!%p2549_p8)  ;;  %v2350_v22 = vsel (!%p2549_p8), %vm2270_vm3, %v2313_v44, 0.0 }
 0x393   : > { %v2252_v55 = vmin.f32 %v2156_v43, %v2203_v30  ;;  %v2348_v43 = vsel (!%p2549_p8), %vm2270_vm3, %v2312_v26, 0.0  ;;  %v2347_v30 = vadd.f32 (!%p2549_p8), %v2346_v4, %v2345_v60 }
 0x394   : > { %2294 = vst.msk [vmem:[#allocation2 + $0xb8] sm:$0xff] %vm2270_vm3, %v2261_v36 }
 0x395   : > { %2285 = vst.msk [vmem:[#allocation2 + $0x70] sm:$0xff] %vm2270_vm3, %v2252_v55  ;;  %v2225_v1 = vpop.xlane.xlu1 %2224  ;;  %v2315_v55 = vld [vmem:[#allocation2 + $0x40] sm:$0xff] (!%p2549_p8)  ;;  %v2349_v36 = vadd.f32 (!%p2549_p8), %v2348_v43, %v2347_v30 }
 0x396   : > { %v2207_v9 = vpop.xlane.xlu0 %2206  ;;  %v2263_v18 = vmin.f32 %v2167_v13, %v2225_v1 }
 0x397   : > { %v2254_v57 = vmin.f32 %v2158_v42, %v2207_v9  ;;  %v2352_v42 = vsel (!%p2549_p8), %vm2270_vm3, %v2314_v5, 0.0  ;;  %v2316_v9 = vld [vmem:[#allocation2 + $0x48] sm:$0xff] (!%p2549_p8)  ;;  %v2351_v1 = vadd.f32 (!%p2549_p8), %v2350_v22, %v2349_v36 }
 0x398   : > { %2296 = vst.msk [vmem:[#allocation2 + $0xc8] sm:$0xff] %vm2270_vm3, %v2263_v18  ;;  %v2317_v18 = vld [vmem:[#allocation2 + $0x50] sm:$0xff] (!%p2549_p8) }
 0x399   : > { %2287 = vst.msk [vmem:[#allocation2 + $0x80] sm:$0xff] %vm2270_vm3, %v2254_v57  ;;  %v2229_v0 = vpop.xlane.xlu1 %2228  ;;  %v2354_v57 = vsel (!%p2549_p8), %vm2270_vm3, %v2315_v55, 0.0 }
 0x39a   : > { %v2211_v24 = vpop.xlane.xlu0 %2210  ;;  %v2265_v37 = vmin.f32 %v2169_v31, %v2229_v0  ;;  %v2356_v31 = vsel (!%p2549_p8), %vm2270_vm3, %v2316_v9, 0.0 }
 0x39b   : > { %v2256_v20 = vmin.f32 %v2160_v49, %v2211_v24  ;;  %v2353_v49 = vadd.f32 (!%p2549_p8), %v2352_v42, %v2351_v1  ;;  %v2318_v24 = vld [vmem:[#allocation2 + $0x58] sm:$0xff] (!%p2549_p8) }
 0x39c   : > { %2298 = vst.msk [vmem:[#allocation2 + $0xd8] sm:$0xff] %vm2270_vm3, %v2265_v37  ;;  %v2319_v37 = vld [vmem:[#allocation2 + $0x60] sm:$0xff] (!%p2549_p8)  ;;  %v2330_v40 = vld [vmem:[#allocation2 + $0xb8] sm:$0xff] (!%p2549_p8) }
 0x39d   : > { %2289 = vst.msk [vmem:[#allocation2 + $0x90] sm:$0xff] %vm2270_vm3, %v2256_v20  ;;  %v2233_v7 = vpop.xlane.xlu1 %2232  ;;  %v2355_v0 = vadd.f32 (!%p2549_p8), %v2354_v57, %v2353_v49  ;;  %v2358_v20 = vsel (!%p2549_p8), %vm2270_vm3, %v2317_v18, 0.0  ;;  %v2384_v63 = vsel (!%p2549_p8), %vm2270_vm3, %v2330_v40, 0.0 }
 0x39e   : > { %v2215_v28 = vpop.xlane.xlu0 %2214  ;;  %v2267_v56 = vmin.f32 %v2171_v61, %v2233_v7  ;;  %v2360_v61 = vsel (!%p2549_p8), %vm2270_vm3, %v2318_v24, 0.0 }
 0x39f   : > { %v2258_v38 = vmin.f32 %v2162_v54, %v2215_v28  ;;  %v2357_v54 = vadd.f32 (!%p2549_p8), %v2356_v31, %v2355_v0  ;;  %v2320_v28 = vld [vmem:[#allocation2 + $0x68] sm:$0xff] (!%p2549_p8) }
 0x3a0   : > { %2300 = vst.msk [vmem:[#allocation2 + $0xe8] sm:$0xff] %vm2270_vm3, %v2267_v56  ;;  %v2321_v56 = vld [vmem:[#allocation2 + $0x70] sm:$0xff] (!%p2549_p8)  ;;  %v2332_v16 = vld [vmem:[#allocation2 + $0xc8] sm:$0xff] (!%p2549_p8) }
 0x3a1   : > { %2291 = vst.msk [vmem:[#allocation2 + $0xa0] sm:$0xff] %vm2270_vm3, %v2258_v38  ;;  %v2237_v52 = vpop.xlane.xlu1 %2236  ;;  %v2359_v7 = vadd.f32 (!%p2549_p8), %v2358_v20, %v2357_v54  ;;  %v2362_v38 = vsel (!%p2549_p8), %vm2270_vm3, %v2319_v37, 0.0  ;;  %v2388_v4 = vsel (!%p2549_p8), %vm2270_vm3, %v2332_v16, 0.0 }
 0x3a2   : > { %v2219_v35 = vpop.xlane.xlu0 %2218  ;;  %v2269_v2 = vmin.f32 %v2173_v41, %v2237_v52  ;;  %v2364_v41 = vsel (!%p2549_p8), %vm2270_vm3, %v2320_v28, 0.0 }
 0x3a3   : > { %v2260_v19 = vmin.f32 %v2164_v33, %v2219_v35  ;;  %v2361_v33 = vadd.f32 (!%p2549_p8), %v2360_v61, %v2359_v7  ;;  %v2322_v35 = vld [vmem:[#allocation2 + $0x78] sm:$0xff] (!%p2549_p8) }
 0x3a4   : > { %2302 = vst.msk [vmem:[#allocation2 + $0xf8] sm:$0xff] %vm2270_vm3, %v2269_v2  ;;  %v2323_v2 = vld [vmem:[#allocation2 + $0x80] sm:$0xff] (!%p2549_p8)  ;;  %v2334_v44 = vld [vmem:[#allocation2 + $0xd8] sm:$0xff] (!%p2549_p8) }
 0x3a5   : > { %2293 = vst.msk [vmem:[#allocation2 + $0xb0] sm:$0xff] %vm2270_vm3, %v2260_v19  ;;  %v2363_v52 = vadd.f32 (!%p2549_p8), %v2362_v38, %v2361_v33  ;;  %v2366_v19 = vsel (!%p2549_p8), %vm2270_vm3, %v2321_v56, 0.0  ;;  %v2392_v22 = vsel (!%p2549_p8), %vm2270_vm3, %v2334_v44, 0.0 }
 0x3a6   : > { %v2223_v32 = vpop.xlane.xlu0 %2222 }
 0x3a7   : > { %v2262_v45 = vmin.f32 %v2166_v50, %v2223_v32  ;;  %v2365_v50 = vadd.f32 (!%p2549_p8), %v2364_v41, %v2363_v52  ;;  %v2368_v32 = vsel (!%p2549_p8), %vm2270_vm3, %v2322_v35, 0.0  ;;  %v2336_v55 = vld [vmem:[#allocation2 + $0xe8] sm:$0xff] (!%p2549_p8)  ;;  %v2413_v41 = vlaneseq (!%p2549_p8) }
 0x3a8   : > { %v2396_v1 = vsel (!%p2549_p8), %vm2270_vm3, %v2336_v55, 0.0 }
 0x3a9   : > { %2295 = vst.msk [vmem:[#allocation2 + $0xc0] sm:$0xff] %vm2270_vm3, %v2262_v45  ;;  %v2324_v45 = vld [vmem:[#allocation2 + $0x88] sm:$0xff] (!%p2549_p8)  ;;  %v2422_v35 = vshrl.u32 (!%p2549_p8), %v2413_v41, 7 }
 0x3aa   : > { %v2227_v23 = vpop.xlane.xlu0 %2226 }
 0x3ab   : > { %v2264_v58 = vmin.f32 %v2168_v25, %v2227_v23  ;;  %v2367_v25 = vadd.f32 (!%p2549_p8), %v2366_v19, %v2365_v50  ;;  %v2370_v23 = vsel (!%p2549_p8), %vm2270_vm3, %v2323_v2, 0.0  ;;  %v2338_v57 = vld [vmem:[#allocation2 + $0xf8] sm:$0xff] (!%p2549_p8)  ;;  %v2423_v52 = vsub.s32 (!%p2549_p8), 0, %v2422_v35 }
 0x3ac   : > { %v2400_v24 = vsel (!%p2549_p8), %vm2270_vm3, %v2338_v57, 0.0  ;;  %v2414_v19 = vand.u32 (!%p2549_p8), 127, %v2413_v41 }
 0x3ad   : > { %2297 = vst.msk [vmem:[#allocation2 + $0xd0] sm:$0xff] %vm2270_vm3, %v2264_v58  ;;  %v2325_v58 = vld [vmem:[#allocation2 + $0x90] sm:$0xff] (!%p2549_p8) }
 0x3ae   : > { %v2231_v46 = vpop.xlane.xlu0 %2230  ;;  %vm2415_vm5 = vcmp.eq.s32.totalorder (!%p2549_p8), %v2414_v19, 0  ;;  %vm2426_vm6 = vcmp.eq.s32.totalorder (!%p2549_p8), %v2414_v19, 1  ;;  %vm2430_vm7 = vcmp.eq.s32.totalorder (!%p2549_p8), %v2414_v19, 2 }
 0x3af   : > { %v2266_v39 = vmin.f32 %v2170_v6, %v2231_v46  ;;  %v2369_v6 = vadd.f32 (!%p2549_p8), %v2368_v32, %v2367_v25  ;;  %v2372_v46 = vsel (!%p2549_p8), %vm2270_vm3, %v2324_v45, 0.0 }
 0x3b0   : > { %s3051_s19 = spop %3050  ;;  %2306 = sbr.rel (%p2549_p8) target bundleno = 1189 (0x4a5), region = 40  ;;  %v2331_v51 = vld [vmem:[#allocation2 + $0xc0] sm:$0xff] (!%p2549_p8) }
 0x3b1   : > { %2299 = vst.msk [vmem:[#allocation2 + $0xe0] sm:$0xff] %vm2270_vm3, %v2266_v39  ;;  %v1829_v62 = vstv %s3051_s19  ;;  %s3053_s20 = spop %3052  ;;  %v2326_v39 = vld [vmem:[#allocation2 + $0x98] sm:$0xff] (!%p2549_p8)  ;;  %v2386_v21 = vsel (!%p2549_p8), %vm2270_vm3, %v2331_v51, 0.0 }
 0x3b2   : > { %v1830_v15 = vadd.f32 %v1829_v62, %v1724_v48  ;;  %v2139_v27 = vstv %s3053_s20  ;;  %v2235_v12 = vpop.xlane.xlu0 %2234  ;;  %v2371_v48 = vadd.f32 (!%p2549_p8), %v2370_v23, %v2369_v6 }
 0x3b3   : > { %v2140_v11 = vadd.f32 %v2139_v27, %v2090_v59  ;;  %v2268_v8 = vmin.f32 %v2172_v3, %v2235_v12  ;;  %v2374_v59 = vsel (!%p2549_p8), %vm2270_vm3, %v2325_v58, 0.0  ;;  %v2327_v3 = vld [vmem:[#allocation2 + $0xa0] sm:$0xff] (!%p2549_p8)  ;;  %v2328_v27 = vld [vmem:[#allocation2 + $0xa8] sm:$0xff] (!%p2549_p8) }
 0x3b4   : > { %1832 = vst.msk [vmem:[#allocation3] sm:$0x1] %vm1831_vm4, %v1830_v15  ;;  %v2373_v62 = vadd.f32 (!%p2549_p8), %v2372_v46, %v2371_v48  ;;  %v2376_v15 = vsel (!%p2549_p8), %vm2270_vm3, %v2326_v39, 0.0  ;;  %v2380_v10 = vsel (!%p2549_p8), %vm2270_vm3, %v2328_v27, 0.0  ;;  %v2333_v26 = vld [vmem:[#allocation2 + $0xd0] sm:$0xff] (!%p2549_p8) }
 0x3b5   : > { %2141 = vst.msk [vmem:[#allocation4] sm:$0x1] %vm1831_vm4, %v2140_v11  ;;  %v2378_v11 = vsel (!%p2549_p8), %vm2270_vm3, %v2327_v3, 0.0  ;;  %v2390_v43 = vsel (!%p2549_p8), %vm2270_vm3, %v2333_v26, 0.0 }
 0x3b6   : > { %2301 = vst.msk [vmem:[#allocation2 + $0xf0] sm:$0xff] %vm2270_vm3, %v2268_v8  ;;  %v2375_v12 = vadd.f32 (!%p2549_p8), %v2374_v59, %v2373_v62  ;;  %v2329_v8 = vld [vmem:[#allocation2 + $0xb0] sm:$0xff] (!%p2549_p8) }
 0x3b7   : > { %v2382_v14 = vsel %vm2270_vm3, %v2329_v8, 0.0 }
 0x3b8   : > { %v2377_v29 = vadd.f32 %v2376_v15, %v2375_v12  ;;  %v2335_v5 = vld [vmem:[#allocation2 + $0xe0] sm:$0xff] }
 0x3b9   : > { %v2394_v42 = vsel %vm2270_vm3, %v2335_v5, 0.0 }
 0x3ba   : > { %v2379_v17 = vadd.f32 %v2378_v11, %v2377_v29 }
 0x3bb   : > { %v2411_v37 = vld [vmem:[#allocation3] sm:$0x1] }
 0x3bc   : > { %v2412_v13 = vld [vmem:[#allocation4] sm:$0x1]  ;;  %v2381_v34 = vadd.f32 %v2380_v10, %v2379_v17 }
 0x3bd   : > { %2433 = vperm.xlu1 %3390, %v2412_v13   ;;  %v2337_v13 = vld [vmem:[#allocation2 + $0xf0] sm:$0xff] }
 0x3be   : > { %v2383_v47 = vadd.f32 %v2382_v14, %v2381_v34  ;;  %v2398_v49 = vsel %vm2270_vm3, %v2337_v13, 0.0 }
 0x3c0   : > { %v2385_v53 = vadd.f32 %v2384_v63, %v2383_v47 }
 0x3c2   : > { %v2387_v60 = vadd.f32 %v2386_v21, %v2385_v53 }
 0x3c4   : > { %v2389_v30 = vadd.f32 %v2388_v4, %v2387_v60 }
 0x3c6   : > { %v2391_v36 = vadd.f32 %v2390_v43, %v2389_v30 }
 0x3c8   : > { %v2393_v9 = vadd.f32 %v2392_v22, %v2391_v36 }
 0x3ca   : > { %v2395_v18 = vadd.f32 %v2394_v42, %v2393_v9 }
 0x3cc   : > { %v2397_v31 = vadd.f32 %v2396_v1, %v2395_v18 }
 0x3ce   : > { %v2399_v0 = vadd.f32 %v2398_v49, %v2397_v31 }
 0x3d0   : > { %v2401_v20 = vadd.f32 %v2400_v24, %v2399_v0 }
 0x3d2   : > { %2402 = vadd.xlane.f32.xlu0 %v2401_v20 }
 0x3e8   : > { %2418 = vperm.xlu0 %3389, %v2411_v37  }
 0x43c   : > { %v2434_v50 = vpop.permute.xlu1 %2433 }
 0x43d   : > { %v2439_v45 = vrot.slane %v2434_v50, %v2423_v52 }
 0x43f   : > { %v2440_v6 = vsel %vm2430_vm7, %v2439_v45, 0.0 }
 0x45f   : > { %v2403_v54 = vpop.xlane.xlu0 %2402 }
 0x460   : > { %v2404_v61 = vrot.slane %v2403_v54, 4 }
 0x462   : > { %v2405_v28 = vadd.f32 %v2404_v61, %v2403_v54 }
 0x464   : > { %v2406_v7 = vrot.slane %v2405_v28, 2 }
 0x466   : > { %v2407_v38 = vadd.f32 %v2406_v7, %v2405_v28 }
 0x467   : > { %v2419_v2 = vpop.permute.xlu0 %2418 }
 0x468   : > { %v2408_v56 = vrot.slane %v2407_v38, 1  ;;  %v2424_v32 = vrot.slane %v2419_v2, %v2423_v52 }
 0x46a   : > { %v2409_v33 = vadd.f32 %v2408_v56, %v2407_v38  ;;  %v2425_v25 = vsel %vm2415_vm5, %v2424_v32, 0.0 }
 0x46c   : > { %3054 = vpush %v2409_v33 }
 0x49d   : > { %s3055_s12 = spop %3054 }
 0x49e   : > { %v2427_v23 = vstv %s3055_s12 }
 0x49f   : > { %v2428_v58 = vsel %vm2426_vm6, %v2427_v23, 0.0 }
 0x4a0   : > { %v2429_v46 = vadd.f32 %v2428_v58, %v2425_v25 }
 0x4a2   : > { %v2441_v39 = vadd.f32 %v2440_v6, %v2429_v46 }
 0x4a4   : > { %2442 = vst [vmem:[%s234_s4] sm:$0x1] %v2441_v39 }
 0x4a5 PF: > { %s13_s16 = sadd.s32 1, %s3429_s16   ;;  %s5509_s12 = smov %s3421_s14 }
 0x4a6   : > { %p10_p9 = scmp.ge.s32.totalorder %s13_s16, 6   ;;  %s5510_s13 = smov %s3425_s15 }
 0x4a7   : > { %s5511_s14 = smov %s5514_s17  ;;  %s5512_s15 = smov %s5518_s18 }
 0x4a8   :  { %12 = sbr.rel (!%p10_p9) target bundleno = 3 (0x3), region = 78 }

// kernel: _lambda_.9
= control target key start
LH: loop header
LB: loop body
LE: loop exit
PB: predicated region body
PF: predicated region fallthrough
CT: control target
= control target key end

     0   :  { %s1590_s12 = smov 0   ;;  %s1592_s13 = smov 0   ;;  %s1981_s0 = inlined_call_operand.vmem [shape: f32[2,64,128], index: 0, kind: input, shape index: {}]   ;;  %s1982_s1 = inlined_call_operand.vmem [shape: f32[2,64,128], index: 1, kind: input, shape index: {}]   ;;  %s1983_s2 = inlined_call_operand.vmem [shape: f32[2,64,128], index: 2, kind: input, shape index: {}]   ;;  %s1984_s3 = inlined_call_operand.vmem [shape: f32[2,1,128], index: 3, kind: output, shape index: {}]  }
   0x1   :  { %s1594_s14 = smov 0  }
   0x2 LB: > { %s25_s15 = sadd.s32 1, %s1561_s13  ;;  %p1224_p0 = scmp.ge.s32.totalorder %s1565_s14, 1  ;;  %s1565_s14 = sphi %s1594_s14, %s13_s14   ;;  %s1561_s13 = sphi %s1592_s13, %s1986_s13   ;;  %s1557_s12 = sphi %s1590_s12, %s1985_s12  }
   0x3   : > { %p27_p1 = scmp.ge.s32.totalorder %s25_s15, 2  ;;  %p176_p2 = scmp.lt.s32.totalorder %s1565_s14, 3 }
   0x5   : > { %s1988_s15 = smov (%p27_p1, %s25_s15), 0  ;;  %p177_p3 = pnand %p1224_p0, %p176_p2 }
   0x6   : > { %p212_p4 = scmp.lt.s32.totalorder (!%p177_p3), %s1557_s12, 1  ;;  %vm239_vm0 = vcmask (!%p177_p3), 7168   ;;  %vm647_vm1 = vcmask (!%p177_p3), 523264   ;;  %vm1009_vm2 = vcmask (!%p177_p3), 516096   ;;  %vm248_vm3 = vcmask (!%p177_p3), 0  }
   0x7   : > { %180 = sbr.rel (%p177_p3) target bundleno = 872 (0x368), region = 32 }
   0xe   : > { %s1990_s12 = smov (!%p212_p4, %s1557_s12), 1 }
   0xf   : > { %s1611_s16 = sshll.u32 %s1990_s12, 6  ;;  %s234_s4 = scalar_lea.vmem %s1984_s3, %s1990_s12 }
  0x10   : > { %s1617_s19 = scalar_lea.vmem %s1982_s1, %s1611_s16  ;;  %s1623_s22 = scalar_lea.vmem %s1981_s0, %s1611_s16 }
  0x11   : > { %v1626_v0 = vld [vmem:[%s1617_s19] sm:$0xff]  ;;  %v1632_v2 = vld [vmem:[%s1617_s19 + $0x8] sm:$0xff]  ;;  %v1646_v8 = vld [vmem:[%s1623_s22 + $0x18] sm:$0xff]  ;;  %s230_s25 = scalar_lea.vmem %s1983_s2, %s1611_s16 }
  0x12   : > { %v1629_v1 = vld [vmem:[%s1623_s22] sm:$0xff]  ;;  %v430_v3 = vmul.f32 %v1626_v0, %v1626_v0  ;;  %v1639_v5 = vld [vmem:[%s1623_s22 + $0x8] sm:$0xff]  ;;  %v431_v6 = vmul.f32 %v1632_v2, %v1632_v2  ;;  %v1649_v9 = vld [vmem:[%s1623_s22 + $0x10] sm:$0xff]  ;;  %v376_v10 = vmul.f32 %v1646_v8, %v1646_v8 }
  0x13   : > { %v373_v4 = vmul.f32 %v1629_v1, %v1629_v1  ;;  %v374_v7 = vmul.f32 %v1639_v5, %v1639_v5  ;;  %v375_v11 = vmul.f32 %v1649_v9, %v1649_v9  ;;  %v1656_v12 = vld [vmem:[%s1617_s19 + $0x18] sm:$0xff]  ;;  %v1659_v13 = vld [vmem:[%s1617_s19 + $0x10] sm:$0xff]  ;;  %v1666_v16 = vld [vmem:[%s1623_s22 + $0x28] sm:$0xff] }
  0x14   : > { %438 = vadd.xlane.f32.xlu1 %v430_v3  ;;  %v433_v14 = vmul.f32 %v1656_v12, %v1656_v12  ;;  %v432_v15 = vmul.f32 %v1659_v13, %v1659_v13  ;;  %v1669_v17 = vld [vmem:[%s1623_s22 + $0x20] sm:$0xff]  ;;  %v378_v18 = vmul.f32 %v1666_v16, %v1666_v16  ;;  %v1676_v20 = vld [vmem:[%s1617_s19 + $0x28] sm:$0xff]  ;;  %v1686_v24 = vld [vmem:[%s1623_s22 + $0x38] sm:$0xff] }
  0x15   : > { %381 = vadd.xlane.f32.xlu0 %v373_v4  ;;  %v377_v19 = vmul.f32 %v1669_v17, %v1669_v17  ;;  %v1679_v21 = vld [vmem:[%s1617_s19 + $0x20] sm:$0xff]  ;;  %v435_v22 = vmul.f32 %v1676_v20, %v1676_v20  ;;  %v1689_v25 = vld [vmem:[%s1623_s22 + $0x30] sm:$0xff]  ;;  %v380_v26 = vmul.f32 %v1686_v24, %v1686_v24  ;;  %v1696_v28 = vld [vmem:[%s1617_s19 + $0x38] sm:$0xff] }
  0x16   : > { %v434_v23 = vmul.f32 %v1679_v21, %v1679_v21  ;;  %v379_v27 = vmul.f32 %v1689_v25, %v1689_v25  ;;  %v1699_v29 = vld [vmem:[%s1617_s19 + $0x30] sm:$0xff]  ;;  %v437_v30 = vmul.f32 %v1696_v28, %v1696_v28  ;;  %v1709_v32 = vld [vmem:[%s230_s25 + $0x8] sm:$0xff]  ;;  %v1711_v33 = vld [vmem:[%s230_s25] sm:$0xff] }
  0x17   : > { %v436_v31 = vmul.f32 %v1699_v29, %v1699_v29  ;;  %v487_v34 = vmul.f32 %v1709_v32, %v1709_v32  ;;  %v486_v35 = vmul.f32 %v1711_v33, %v1711_v33  ;;  %v1717_v36 = vld [vmem:[%s230_s25 + $0x18] sm:$0xff]  ;;  %v1719_v37 = vld [vmem:[%s230_s25 + $0x10] sm:$0xff]  ;;  %v1725_v40 = vld [vmem:[%s230_s25 + $0x28] sm:$0xff] }
  0x18   : > { %440 = vadd.xlane.f32.xlu1 %v431_v6  ;;  %v489_v38 = vmul.f32 %v1717_v36, %v1717_v36  ;;  %v488_v39 = vmul.f32 %v1719_v37, %v1719_v37  ;;  %v1727_v41 = vld [vmem:[%s230_s25 + $0x20] sm:$0xff]  ;;  %v491_v42 = vmul.f32 %v1725_v40, %v1725_v40  ;;  %v1733_v44 = vld [vmem:[%s230_s25 + $0x38] sm:$0xff]  ;;  %v1735_v45 = vld [vmem:[%s230_s25 + $0x30] sm:$0xff] }
  0x19   : > { %383 = vadd.xlane.f32.xlu0 %v374_v7  ;;  %v490_v43 = vmul.f32 %v1727_v41, %v1727_v41  ;;  %v493_v46 = vmul.f32 %v1733_v44, %v1733_v44  ;;  %v492_v47 = vmul.f32 %v1735_v45, %v1735_v45 }
  0x1c   : > { %387 = vadd.xlane.f32.xlu1 %v376_v10 }
  0x1d   : > { %385 = vadd.xlane.f32.xlu0 %v375_v11 }
  0x20   : > { %444 = vadd.xlane.f32.xlu1 %v433_v14 }
  0x21   : > { %442 = vadd.xlane.f32.xlu0 %v432_v15 }
  0x24   : > { %391 = vadd.xlane.f32.xlu1 %v378_v18 }
  0x25   : > { %389 = vadd.xlane.f32.xlu0 %v377_v19 }
  0x28   : > { %448 = vadd.xlane.f32.xlu1 %v435_v22 }
  0x29   : > { %446 = vadd.xlane.f32.xlu0 %v434_v23 }
  0x2c   : > { %395 = vadd.xlane.f32.xlu1 %v380_v26 }
  0x2d   : > { %393 = vadd.xlane.f32.xlu0 %v379_v27 }
  0x30   : > { %452 = vadd.xlane.f32.xlu1 %v437_v30 }
  0x31   : > { %450 = vadd.xlane.f32.xlu0 %v436_v31 }
  0x34   : > { %324 = vadd.xlane.f32.xlu1 %v430_v3 }
  0x35   : > { %268 = vadd.xlane.f32.xlu0 %v373_v4 }
  0x38   : > { %326 = vadd.xlane.f32.xlu1 %v431_v6 }
  0x39   : > { %270 = vadd.xlane.f32.xlu0 %v374_v7 }
  0x3c   : > { %328 = vadd.xlane.f32.xlu1 %v432_v15 }
  0x3d   : > { %272 = vadd.xlane.f32.xlu0 %v375_v11 }
  0x40   : > { %330 = vadd.xlane.f32.xlu1 %v433_v14 }
  0x41   : > { %274 = vadd.xlane.f32.xlu0 %v376_v10 }
  0x44   : > { %332 = vadd.xlane.f32.xlu1 %v434_v23 }
  0x45   : > { %276 = vadd.xlane.f32.xlu0 %v377_v19 }
  0x48   : > { %334 = vadd.xlane.f32.xlu1 %v435_v22 }
  0x49   : > { %278 = vadd.xlane.f32.xlu0 %v378_v18 }
  0x4c   : > { %336 = vadd.xlane.f32.xlu1 %v436_v31 }
  0x4d   : > { %280 = vadd.xlane.f32.xlu0 %v379_v27 }
  0x50   : > { %338 = vadd.xlane.f32.xlu1 %v437_v30 }
  0x51   : > { %282 = vadd.xlane.f32.xlu0 %v380_v26 }
  0x54   : > { %496 = vadd.xlane.f32.xlu1 %v487_v34 }
  0x55   : > { %494 = vadd.xlane.f32.xlu0 %v486_v35 }
  0x58   : > { %500 = vadd.xlane.f32.xlu1 %v489_v38 }
  0x59   : > { %498 = vadd.xlane.f32.xlu0 %v488_v39 }
  0x5c   : > { %504 = vadd.xlane.f32.xlu1 %v491_v42 }
  0x5d   : > { %502 = vadd.xlane.f32.xlu0 %v490_v43 }
  0x60   : > { %508 = vadd.xlane.f32.xlu1 %v493_v46 }
  0x61   : > { %506 = vadd.xlane.f32.xlu0 %v492_v47 }
  0xa1   : > { %v439_v48 = vpop.xlane.xlu1 %438 }
  0xa2   : > { %v382_v49 = vpop.xlane.xlu0 %381  ;;  %v454_v50 = vadd.f32 1e-12, %v439_v48 }
  0xa3   : > { %v397_v51 = vadd.f32 1e-12, %v382_v49 }
  0xa4   : > { %1459 = vrsqrt.f32 %v454_v50 }
  0xa5   : > { %v441_v52 = vpop.xlane.xlu1 %440  ;;  %1461 = vrsqrt.f32 %v397_v51 }
  0xa6   : > { %v384_v53 = vpop.xlane.xlu0 %383  ;;  %v455_v54 = vadd.f32 1e-12, %v441_v52 }
  0xa7   : > { %v398_v55 = vadd.f32 1e-12, %v384_v53 }
  0xa8   : > { %1463 = vrsqrt.f32 %v455_v54 }
  0xa9   : > { %1465 = vrsqrt.f32 %v398_v55  ;;  %v388_v56 = vpop.xlane.xlu1 %387 }
  0xaa   : > { %v386_v57 = vpop.xlane.xlu0 %385  ;;  %v400_v58 = vadd.f32 1e-12, %v388_v56 }
  0xab   : > { %v399_v59 = vadd.f32 1e-12, %v386_v57 }
  0xac   : > { %1467 = vrsqrt.f32 %v400_v58 }
  0xad   : > { %1469 = vrsqrt.f32 %v399_v59  ;;  %v445_v60 = vpop.xlane.xlu1 %444 }
  0xae   : > { %v443_v61 = vpop.xlane.xlu0 %442  ;;  %v457_v62 = vadd.f32 1e-12, %v445_v60  ;;  %v1460_v3 = vpop.eup %1459 }
  0xaf   : > { %v456_v63 = vadd.f32 1e-12, %v443_v61  ;;  %v1462_v4 = vpop.eup %1461  ;;  %v470_v18 = vmul.f32 %v1460_v3, %v1626_v0 }
  0xb0   : > { %1471 = vrsqrt.f32 %v457_v62  ;;  %v413_v22 = vmul.f32 %v1462_v4, %v1629_v1 }
  0xb1   : > { %1473 = vrsqrt.f32 %v456_v63  ;;  %v392_v6 = vpop.xlane.xlu1 %391 }
  0xb2   : > { %v390_v7 = vpop.xlane.xlu0 %389  ;;  %v1464_v10 = vpop.eup %1463  ;;  %v402_v11 = vadd.f32 1e-12, %v392_v6 }
  0xb3   : > { %v401_v14 = vadd.f32 1e-12, %v390_v7  ;;  %v1466_v15 = vpop.eup %1465  ;;  %v471_v19 = vmul.f32 %v1464_v10, %v1632_v2 }
  0xb4   : > { %1475 = vrsqrt.f32 %v402_v11  ;;  %v414_v23 = vmul.f32 %v1466_v15, %v1639_v5 }
  0xb5   : > { %1477 = vrsqrt.f32 %v401_v14  ;;  %v449_v26 = vpop.xlane.xlu1 %448  ;;  %v1384_v30 = vpack.c.bf16 %v471_v19, %v470_v18 }
  0xb6   : > { %v447_v27 = vpop.xlane.xlu0 %446  ;;  %v1468_v31 = vpop.eup %1467  ;;  %v459_v34 = vadd.f32 1e-12, %v449_v26  ;;  %v1368_v38 = vpack.c.bf16 %v414_v23, %v413_v22 }
  0xb7   : > { %v458_v35 = vadd.f32 1e-12, %v447_v27  ;;  %v1470_v39 = vpop.eup %1469  ;;  %1385 = vmatprep.subr.bf16.mxu1 %v1384_v30  ;;  %v416_v42 = vmul.f32 %v1468_v31, %v1646_v8 }
  0xb8   : > { %1479 = vrsqrt.f32 %v459_v34  ;;  %1369 = vmatprep.subr.bf16.mxu0 %v1368_v38  ;;  %1387 = vmatpush3.bf16.xpose.msra.mxu1 %v1384_v30  ;;  %v415_v43 = vmul.f32 %v1470_v39, %v1649_v9 }
  0xb9   : > { %1481 = vrsqrt.f32 %v458_v35  ;;  %1371 = vmatpush3.bf16.xpose.msra.mxu0 %v1368_v38  ;;  %v396_v46 = vpop.xlane.xlu1 %395 }
  0xba   : > { %v394_v47 = vpop.xlane.xlu0 %393  ;;  %v1472_v48 = vpop.eup %1471  ;;  %v404_v49 = vadd.f32 1e-12, %v396_v46  ;;  %v1372_v51 = vpack.c.bf16 %v416_v42, %v415_v43 }
  0xbb   : > { %v403_v50 = vadd.f32 1e-12, %v394_v47  ;;  %v1474_v52 = vpop.eup %1473  ;;  %v473_v53 = vmul.f32 %v1472_v48, %v1656_v12 }
  0xbc   : > { %1483 = vrsqrt.f32 %v404_v49  ;;  %1373 = vmatprep.subr.bf16.mxu0 %v1372_v51  ;;  %v472_v54 = vmul.f32 %v1474_v52, %v1659_v13 }
  0xbd   : > { %1485 = vrsqrt.f32 %v403_v50  ;;  %v453_v55 = vpop.xlane.xlu1 %452 }
  0xbe   : > { %v451_v56 = vpop.xlane.xlu0 %450  ;;  %v1476_v57 = vpop.eup %1475  ;;  %v461_v58 = vadd.f32 1e-12, %v453_v55  ;;  %v1388_v60 = vpack.c.bf16 %v473_v53, %v472_v54 }
  0xbf   : > { %v460_v59 = vadd.f32 1e-12, %v451_v56  ;;  %v1478_v61 = vpop.eup %1477  ;;  %v418_v62 = vmul.f32 %v1476_v57, %v1666_v16 }
  0xc0   : > { %1487 = vrsqrt.f32 %v461_v58  ;;  %1389 = vmatprep.subr.bf16.mxu1 %v1388_v60  ;;  %v417_v63 = vmul.f32 %v1478_v61, %v1669_v17 }
  0xc1   : > { %1489 = vrsqrt.f32 %v460_v59  ;;  %1375 = vmatpush3.bf16.xpose.msra.mxu0 %v1372_v51  ;;  %1391 = vmatpush3.bf16.xpose.msra.mxu1 %v1388_v60  ;;  %v325_v3 = vpop.xlane.xlu1 %324 }
  0xc2   : > { %v269_v4 = vpop.xlane.xlu0 %268  ;;  %v1480_v6 = vpop.eup %1479  ;;  %v340_v7 = vadd.f32 1e-12, %v325_v3  ;;  %v1376_v11 = vpack.c.bf16 %v418_v62, %v417_v63 }
  0xc3   : > { %v284_v10 = vadd.f32 1e-12, %v269_v4  ;;  %v1482_v14 = vpop.eup %1481  ;;  %v475_v15 = vmul.f32 %v1480_v6, %v1676_v20 }
  0xc4   : > { %1491 = vrsqrt.f32 %v340_v7  ;;  %1377 = vmatprep.subr.bf16.mxu0 %v1376_v11  ;;  %v474_v18 = vmul.f32 %v1482_v14, %v1679_v21 }
  0xc5   : > { %1493 = vrsqrt.f32 %v284_v10  ;;  %v327_v19 = vpop.xlane.xlu1 %326 }
  0xc6   : > { %v271_v22 = vpop.xlane.xlu0 %270  ;;  %v1484_v23 = vpop.eup %1483  ;;  %v341_v26 = vadd.f32 1e-12, %v327_v19  ;;  %v1392_v30 = vpack.c.bf16 %v475_v15, %v474_v18 }
  0xc7   : > { %v285_v27 = vadd.f32 1e-12, %v271_v22  ;;  %v1486_v31 = vpop.eup %1485  ;;  %v420_v34 = vmul.f32 %v1484_v23, %v1686_v24 }
  0xc8   : > { %1495 = vrsqrt.f32 %v341_v26  ;;  %1393 = vmatprep.subr.bf16.mxu1 %v1392_v30  ;;  %v419_v35 = vmul.f32 %v1486_v31, %v1689_v25 }
  0xc9   : > { %1497 = vrsqrt.f32 %v285_v27  ;;  %1379 = vmatpush3.bf16.xpose.msra.mxu0 %v1376_v11  ;;  %1395 = vmatpush3.bf16.xpose.msra.mxu1 %v1392_v30  ;;  %v329_v38 = vpop.xlane.xlu1 %328 }
  0xca   : > { %v273_v39 = vpop.xlane.xlu0 %272  ;;  %v1488_v42 = vpop.eup %1487  ;;  %v342_v43 = vadd.f32 1e-12, %v329_v38  ;;  %v1380_v47 = vpack.c.bf16 %v420_v34, %v419_v35 }
  0xcb   : > { %v286_v46 = vadd.f32 1e-12, %v273_v39  ;;  %v1490_v48 = vpop.eup %1489  ;;  %v477_v49 = vmul.f32 %v1488_v42, %v1696_v28 }
  0xcc   : > { %1499 = vrsqrt.f32 %v342_v43  ;;  %1381 = vmatprep.subr.bf16.mxu0 %v1380_v47  ;;  %v476_v50 = vmul.f32 %v1490_v48, %v1699_v29 }
  0xcd   : > { %1501 = vrsqrt.f32 %v286_v46  ;;  %v331_v51 = vpop.xlane.xlu1 %330 }
  0xce   : > { %v275_v52 = vpop.xlane.xlu0 %274  ;;  %v1492_v53 = vpop.eup %1491  ;;  %v343_v54 = vadd.f32 1e-12, %v331_v51  ;;  %v1396_v56 = vpack.c.bf16 %v477_v49, %v476_v50 }
  0xcf   : > { %v287_v55 = vadd.f32 1e-12, %v275_v52  ;;  %v1494_v57 = vpop.eup %1493  ;;  %v356_v58 = vmul.f32 %v1492_v53, %v1626_v0 }
  0xd0   : > { %1503 = vrsqrt.f32 %v343_v54  ;;  %1397 = vmatprep.subr.bf16.mxu1 %v1396_v56  ;;  %v1759_v59 = vmul.f32 %v1494_v57, %v1629_v1 }
  0xd1   : > { %1505 = vrsqrt.f32 %v287_v55  ;;  %1383 = vmatpush3.bf16.xpose.msra.mxu0 %v1380_v47  ;;  %1399 = vmatpush3.bf16.xpose.msra.mxu1 %v1396_v56  ;;  %v333_v60 = vpop.xlane.xlu1 %332 }
  0xd2   : > { %v277_v61 = vpop.xlane.xlu0 %276  ;;  %v1496_v62 = vpop.eup %1495  ;;  %1328 = vmatprep.mubr.f32.mxu1 %v356_v58  ;;  %v344_v63 = vadd.f32 1e-12, %v333_v60  ;;  %1300 = vmatprep.mubr.f32.mxu0 %v1759_v59 }
  0xd3   : > { %v288_v3 = vadd.f32 1e-12, %v277_v61  ;;  %v1498_v4 = vpop.eup %1497  ;;  %v357_v14 = vmul.f32 %v1496_v62, %v1632_v2 }
  0xd4   : > { %1507 = vrsqrt.f32 %v344_v63  ;;  %v1763_v11 = vmul.f32 %v1498_v4, %v1639_v5 }
  0xd5   : > { %1509 = vrsqrt.f32 %v288_v3  ;;  %v335_v0 = vpop.xlane.xlu1 %334 }
  0xd6   : > { %v279_v6 = vpop.xlane.xlu0 %278  ;;  %v1500_v7 = vpop.eup %1499  ;;  %v345_v10 = vadd.f32 1e-12, %v335_v0 }
  0xd7   : > { %v289_v1 = vadd.f32 1e-12, %v279_v6  ;;  %v1502_v15 = vpop.eup %1501  ;;  %v358_v18 = vmul.f32 %v1500_v7, %v1659_v13 }
  0xd8   : > { %1511 = vrsqrt.f32 %v345_v10  ;;  %1301 = vmatmul.mubr.f32.vlgmr.msra.gmra.mrb[0].mxu0 %v1763_v11  ;;  %1329 = vmatmul.mubr.f32.vlgmr.msra.gmra.mrb[0].mxu1 %v357_v14  ;;  %v1769_v19 = vmul.f32 %v1502_v15, %v1649_v9 }
  0xd9   : > { %1513 = vrsqrt.f32 %v289_v1  ;;  %v337_v22 = vpop.xlane.xlu1 %336  ;;  %1331 = vmatprep.mubr.f32.mxu1 %v358_v18 }
  0xda   : > { %v281_v23 = vpop.xlane.xlu0 %280  ;;  %v1504_v26 = vpop.eup %1503  ;;  %v346_v27 = vadd.f32 1e-12, %v337_v22  ;;  %1303 = vmatprep.mubr.f32.mxu0 %v1769_v19 }
  0xdb   : > { %v290_v5 = vadd.f32 1e-12, %v281_v23  ;;  %v1506_v2 = vpop.eup %1505  ;;  %v359_v30 = vmul.f32 %v1504_v26, %v1656_v12 }
  0xdc   : > { %1515 = vrsqrt.f32 %v346_v27  ;;  %v1774_v13 = vmul.f32 %v1506_v2, %v1646_v8 }
  0xdd   : > { %1517 = vrsqrt.f32 %v290_v5  ;;  %v339_v31 = vpop.xlane.xlu1 %338  ;;  %1332 = vmatmul.mubr.f32.gmra.mrb[2].mxu1 %v359_v30 }
  0xde   : > { %v283_v9 = vpop.xlane.xlu0 %282  ;;  %v1508_v34 = vpop.eup %1507  ;;  %v347_v35 = vadd.f32 1e-12, %v339_v31  ;;  %1304 = vmatmul.mubr.f32.gmra.mrb[2].mxu0 %v1774_v13 }
  0xdf   : > { %v291_v38 = vadd.f32 1e-12, %v283_v9  ;;  %v1510_v39 = vpop.eup %1509  ;;  %v360_v42 = vmul.f32 %v1508_v34, %v1679_v21 }
  0xe0   : > { %1519 = vrsqrt.f32 %v347_v35  ;;  %v304_v43 = vmul.f32 %v1510_v39, %v1669_v17 }
  0xe1   : > { %1521 = vrsqrt.f32 %v291_v38  ;;  %v497_v12 = vpop.xlane.xlu1 %496  ;;  %1334 = vmatprep.mubr.f32.mxu1 %v360_v42 }
  0xe2   : > { %v495_v8 = vpop.xlane.xlu0 %494  ;;  %v1512_v46 = vpop.eup %1511  ;;  %v511_v47 = vadd.f32 1e-12, %v497_v12  ;;  %1306 = vmatprep.mubr.f32.mxu0 %v304_v43 }
  0xe3   : > { %v510_v48 = vadd.f32 1e-12, %v495_v8  ;;  %v1514_v49 = vpop.eup %1513  ;;  %v361_v50 = vmul.f32 %v1512_v46, %v1676_v20 }
  0xe4   : > { %1523 = vrsqrt.f32 %v511_v47  ;;  %v1781_v51 = vmul.f32 %v1514_v49, %v1666_v16 }
  0xe5   : > { %1525 = vrsqrt.f32 %v510_v48  ;;  %1335 = vmatmul.mubr.f32.gmra.mrb[4].mxu1 %v361_v50  ;;  %v501_v21 = vpop.xlane.xlu1 %500 }
  0xe6   : > { %v499_v52 = vpop.xlane.xlu0 %498  ;;  %v1516_v17 = vpop.eup %1515  ;;  %1307 = vmatmul.mubr.f32.gmra.mrb[4].mxu0 %v1781_v51  ;;  %v513_v53 = vadd.f32 1e-12, %v501_v21 }
  0xe7   : > { %v512_v54 = vadd.f32 1e-12, %v499_v52  ;;  %v1518_v55 = vpop.eup %1517  ;;  %v362_v56 = vmul.f32 %v1516_v17, %v1699_v29 }
  0xe8   : > { %1527 = vrsqrt.f32 %v513_v53  ;;  %v306_v57 = vmul.f32 %v1518_v55, %v1689_v25 }
  0xe9   : > { %1337 = vmatprep.mubr.f32.mxu1 %v362_v56  ;;  %1529 = vrsqrt.f32 %v512_v54  ;;  %v505_v20 = vpop.xlane.xlu1 %504 }
  0xea   : > { %v503_v16 = vpop.xlane.xlu0 %502  ;;  %v1520_v58 = vpop.eup %1519  ;;  %1309 = vmatprep.mubr.f32.mxu0 %v306_v57  ;;  %v515_v60 = vadd.f32 1e-12, %v505_v20 }
  0xeb   : > { %v514_v61 = vadd.f32 1e-12, %v503_v16  ;;  %v1522_v62 = vpop.eup %1521  ;;  %v363_v63 = vmul.f32 %v1520_v58, %v1696_v28 }
  0xec   : > { %v307_v3 = vmul.f32 %v1522_v62, %v1686_v24  ;;  %1531 = vrsqrt.f32 %v515_v60 }
  0xed   : > { %1338 = vmatmul.mubr.f32.gmra.mrb[6].mxu1 %v363_v63  ;;  %1533 = vrsqrt.f32 %v514_v61  ;;  %v509_v29 = vpop.xlane.xlu1 %508 }
  0xee   : > { %v507_v4 = vpop.xlane.xlu0 %506  ;;  %v1524_v0 = vpop.eup %1523  ;;  %1310 = vmatmul.mubr.f32.gmra.mrb[6].mxu0 %v307_v3  ;;  %1362 = vmatprep.mubr.f32.mxu1 %v304_v43  ;;  %v517_v25 = vadd.f32 1e-12, %v509_v29 }
  0xef   : > { %v516_v6 = vadd.f32 1e-12, %v507_v4  ;;  %v1526_v7 = vpop.eup %1525  ;;  %1356 = vmatprep.mubr.f32.mxu0 %v1759_v59  ;;  %v527_v10 = vmul.f32 %v1524_v0, %v1709_v32 }
  0xf0   : > { %v526_v1 = vmul.f32 %v1526_v7, %v1711_v33  ;;  %1535 = vrsqrt.f32 %v517_v25 }
  0xf1   : > { %1537 = vrsqrt.f32 %v516_v6 }
  0xf2   : > { %v1528_v24 = vpop.eup %1527  ;;  %v1400_v28 = vpack.c.bf16 %v527_v10, %v526_v1 }
  0xf3   : > { %v1530_v14 = vpop.eup %1529  ;;  %v529_v15 = vmul.f32 %v1528_v24, %v1717_v36 }
  0xf4   : > { %1401 = vmatprep.subr.bf16.mxu0 %v1400_v28  ;;  %1416 = vmatprep.subr.bf16.mxu1 %v1400_v28  ;;  %v528_v18 = vmul.f32 %v1530_v14, %v1719_v37 }
  0xf5   : > { %1403 = vmatpush3.bf16.xpose.msra.mxu0 %v1400_v28  ;;  %1420 = vmatpush3.bf16.xpose.msra.mxu1 %v1400_v28 }
  0xf6   : > { %v1532_v22 = vpop.eup %1531  ;;  %v1404_v23 = vpack.c.bf16 %v529_v15, %v528_v18 }
  0xf7   : > { %v1534_v59 = vpop.eup %1533  ;;  %v531_v32 = vmul.f32 %v1532_v22, %v1725_v40  ;;  %v1567_v40 = vmov inf  }
  0xf8   : > { %1405 = vmatprep.subr.bf16.mxu0 %v1404_v23  ;;  %1417 = vmatprep.subr.bf16.mxu1 %v1404_v23  ;;  %v530_v33 = vmul.f32 %v1534_v59, %v1727_v41  ;;  %241 = vst.msk [vmem:[#allocation2 + $0x8] sm:$0xff] %vm239_vm0, %v1567_v40  ;;  %240 = vst.msk [vmem:[#allocation2] sm:$0xff] %vm239_vm0, %v1567_v40 }
  0xf9   : > { %242 = vst.msk [vmem:[#allocation2 + $0x10] sm:$0xff] %vm239_vm0, %v1567_v40  ;;  %243 = vst.msk [vmem:[#allocation2 + $0x18] sm:$0xff] %vm239_vm0, %v1567_v40 }
  0xfa   : > { %v1536_v26 = vpop.eup %1535  ;;  %v1408_v27 = vpack.c.bf16 %v531_v32, %v530_v33  ;;  %244 = vst.msk [vmem:[#allocation2 + $0x20] sm:$0xff] %vm239_vm0, %v1567_v40  ;;  %245 = vst.msk [vmem:[#allocation2 + $0x28] sm:$0xff] %vm239_vm0, %v1567_v40 }
  0xfb   : > { %v1538_v5 = vpop.eup %1537  ;;  %v533_v37 = vmul.f32 %v1536_v26, %v1733_v44  ;;  %246 = vst.msk [vmem:[#allocation2 + $0x30] sm:$0xff] %vm239_vm0, %v1567_v40  ;;  %247 = vst.msk [vmem:[#allocation2 + $0x38] sm:$0xff] %vm239_vm0, %v1567_v40 }
  0xfc   : > { %v532_v36 = vmul.f32 %v1538_v5, %v1735_v45 }
  0xfd   : > { %1407 = vmatpush3.bf16.xpose.msra.mxu0 %v1404_v23  ;;  %1421 = vmatpush3.bf16.xpose.msra.mxu1 %v1404_v23 }
  0xfe   : > { %1409 = vmatprep.subr.bf16.mxu0 %v1408_v27  ;;  %1418 = vmatprep.subr.bf16.mxu1 %v1408_v27  ;;  %v1412_v2 = vpack.c.bf16 %v533_v37, %v532_v36 }
 0x105   : > { %1411 = vmatpush3.bf16.xpose.msra.mxu0 %v1408_v27  ;;  %1422 = vmatpush3.bf16.xpose.msra.mxu1 %v1408_v27 }
 0x106   : > { %1413 = vmatprep.subr.bf16.mxu0 %v1412_v2  ;;  %1419 = vmatprep.subr.bf16.mxu1 %v1412_v2 }
 0x10d   : > { %1415 = vmatpush3.bf16.xpose.msra.mxu0 %v1412_v2  ;;  %1423 = vmatpush3.bf16.xpose.msra.mxu1 %v1412_v2 }
 0x114   : > { %1357 = vmatmul.mubr.f32.vlgmr.msra.gmra.mrb[8].mxu0 %v1763_v11  ;;  %1363 = vmatmul.mubr.f32.vlgmr.msra.gmra.mrb[8].mxu1 %v1781_v51 }
 0x115   : > { %1359 = vmatprep.mubr.f32.mxu0 %v1769_v19  ;;  %1365 = vmatprep.mubr.f32.mxu1 %v306_v57 }
 0x118   : > { %1360 = vmatmul.mubr.f32.gmra.mrb[10].mxu0 %v1774_v13  ;;  %1366 = vmatmul.mubr.f32.gmra.mrb[10].mxu1 %v307_v3 }
 0x1ab   : > { %v1809_v41 = vpop.f32.mrb[0].mxu0  ;;  %v1811_v44 = vpop.f32.mrb[0].mxu1 }
 0x1ac   : > { %v640_v45 = vsub.f32 1.0, %v1809_v41  ;;  %v788_v11 = vsub.f32 1.0, %v1811_v44  ;;  %v1815_v19 = vpop.f32.mrb[1].mxu0  ;;  %v1817_v30 = vpop.f32.mrb[1].mxu1 }
 0x1ad   : > { %v639_v13 = vsub.f32 1.0, %v1815_v19  ;;  %v787_v31 = vsub.f32 1.0, %v1817_v30 }
 0x1ae   : > { %v649_v9 = vsel %vm647_vm1, %v640_v45, 0.0  ;;  %v796_v34 = vsel %vm647_vm1, %v788_v11, 0.0 }
 0x1af   : > { %v648_v35 = vsel %vm647_vm1, %v639_v13, 0.0  ;;  %v795_v38 = vsel %vm647_vm1, %v787_v31, 0.0 }
 0x1b0   : > { %v650_v39 = vadd.f32 %v649_v9, %v648_v35  ;;  %v797_v42 = vadd.f32 %v796_v34, %v795_v38  ;;  %v1833_v43 = vpop.f32.mrb[2].mxu1 }
 0x1b1   : > { %v1835_v12 = vpop.f32.mrb[2].mxu0  ;;  %v1837_v8 = vpop.f32.mrb[3].mxu1  ;;  %v790_v46 = vsub.f32 1.0, %v1833_v43 }
 0x1b2   : > { %v1840_v47 = vpop.f32.mrb[3].mxu0  ;;  %v789_v48 = vsub.f32 1.0, %v1837_v8  ;;  %v642_v49 = vsub.f32 1.0, %v1835_v12 }
 0x1b3   : > { %v641_v50 = vsub.f32 1.0, %v1840_v47  ;;  %v800_v17 = vsel %vm647_vm1, %v790_v46, 0.0 }
 0x1b4   : > { %v798_v51 = vsel %vm647_vm1, %v789_v48, 0.0  ;;  %v653_v54 = vsel %vm647_vm1, %v642_v49, 0.0 }
 0x1b5   : > { %v651_v21 = vsel %vm647_vm1, %v641_v50, 0.0  ;;  %v799_v52 = vadd.f32 %v798_v51, %v797_v42 }
 0x1b6   : > { %v652_v53 = vadd.f32 %v651_v21, %v650_v39 }
 0x1b7   : > { %v801_v55 = vadd.f32 %v800_v17, %v799_v52 }
 0x1b8   : > { %v1857_v56 = vpop.f32.mrb[4].mxu1  ;;  %v654_v57 = vadd.f32 %v653_v54, %v652_v53 }
 0x1b9   : > { %v1859_v20 = vpop.f32.mrb[4].mxu0  ;;  %v1861_v16 = vpop.f32.mrb[5].mxu1  ;;  %v792_v58 = vsub.f32 1.0, %v1857_v56 }
 0x1ba   : > { %v1864_v60 = vpop.f32.mrb[5].mxu0  ;;  %v791_v61 = vsub.f32 1.0, %v1861_v16  ;;  %v644_v62 = vsub.f32 1.0, %v1859_v20 }
 0x1bb   : > { %v643_v63 = vsub.f32 1.0, %v1864_v60  ;;  %v804_v0 = vsel %vm647_vm1, %v792_v58, 0.0 }
 0x1bc   : > { %v802_v3 = vsel %vm647_vm1, %v791_v61, 0.0  ;;  %v657_v6 = vsel %vm647_vm1, %v644_v62, 0.0 }
 0x1bd   : > { %v655_v29 = vsel %vm647_vm1, %v643_v63, 0.0  ;;  %v803_v4 = vadd.f32 %v802_v3, %v801_v55 }
 0x1be   : > { %v656_v25 = vadd.f32 %v655_v29, %v654_v57 }
 0x1bf   : > { %v805_v7 = vadd.f32 %v804_v0, %v803_v4 }
 0x1c0   : > { %v1881_v10 = vpop.f32.mrb[6].mxu1  ;;  %v658_v1 = vadd.f32 %v657_v6, %v656_v25 }
 0x1c1   : > { %v1883_v24 = vpop.f32.mrb[6].mxu0  ;;  %v778_v28 = vpop.f32.mrb[7].mxu1  ;;  %v794_v14 = vsub.f32 1.0, %v1881_v10 }
 0x1c2   : > { %v630_v15 = vpop.f32.mrb[7].mxu0  ;;  %v793_v18 = vsub.f32 1.0, %v778_v28  ;;  %v646_v22 = vsub.f32 1.0, %v1883_v24 }
 0x1c3   : > { %v645_v23 = vsub.f32 1.0, %v630_v15  ;;  %v808_v26 = vsel %vm647_vm1, %v794_v14, 0.0 }
 0x1c4   : > { %v806_v59 = vsel %vm647_vm1, %v793_v18, 0.0  ;;  %v661_v5 = vsel %vm647_vm1, %v646_v22, 0.0 }
 0x1c5   : > { %v659_v32 = vsel %vm647_vm1, %v645_v23, 0.0  ;;  %v807_v33 = vadd.f32 %v806_v59, %v805_v7 }
 0x1c6   : > { %v660_v27 = vadd.f32 %v659_v32, %v658_v1 }
 0x1c7   : > { %v809_v36 = vadd.f32 %v808_v26, %v807_v33 }
 0x1c8   : > { %v662_v37 = vadd.f32 %v661_v5, %v660_v27 }
 0x1c9   : > { %v810_v2 = vrot.slane %v809_v36, 4 }
 0x1ca   : > { %v663_v40 = vrot.slane %v662_v37, 4 }
 0x1cb   : > { %v811_v9 = vadd.f32 %v810_v2, %v809_v36 }
 0x1cc   : > { %v664_v34 = vadd.f32 %v663_v40, %v662_v37 }
 0x1cd   : > { %v812_v35 = vrot.slane %v811_v9, 2 }
 0x1ce   : > { %v665_v38 = vrot.slane %v664_v34, 2 }
 0x1cf   : > { %v813_v39 = vadd.f32 %v812_v35, %v811_v9 }
 0x1d0   : > { %v666_v42 = vadd.f32 %v665_v38, %v664_v34 }
 0x1d1   : > { %v814_v51 = vrot.slane %v813_v39, 1 }
 0x1d2   : > { %v667_v21 = vrot.slane %v666_v42, 1 }
 0x1d3   : > { %v815_v52 = vadd.f32 %v814_v51, %v813_v39 }
 0x1d4   : > { %v668_v17 = vadd.f32 %v667_v21, %v666_v42 }
 0x1d5   : > { %v816_v53 = vmax.f32 %v815_v52, 1e-12 }
 0x1d6   : > { %v669_v54 = vmax.f32 %v668_v17, 1e-12 }
 0x1d7   : > { %1539 = vrcp.f32 %v816_v53 }
 0x1d8   : > { %1541 = vrcp.f32 %v669_v54 }
 0x1e1   : > { %v1540_v55 = vpop.eup %1539 }
 0x1e2   : > { %v1542_v57 = vpop.eup %1541  ;;  %v818_v3 = vmul.f32 %v1540_v55, %v816_v53 }
 0x1e3   : > { %v671_v29 = vmul.f32 %v1542_v57, %v669_v54 }
 0x1e4   : > { %v819_v4 = vsub.f32 2.0, %v818_v3 }
 0x1e5   : > { %v672_v0 = vsub.f32 2.0, %v671_v29 }
 0x1e6   : > { %v820_v25 = vmul.f32 %v1540_v55, %v819_v4 }
 0x1e7   : > { %v673_v6 = vmul.f32 %v1542_v57, %v672_v0  ;;  %v1358_v7 = vpop.f32.mrb[8].mxu0  ;;  %v1364_v1 = vpop.f32.mrb[8].mxu1 }
 0x1e8   : > { %v1895_v28 = vmul.f32 %v820_v25, %v793_v18  ;;  %v980_v15 = vsub.f32 1.0, %v1358_v7  ;;  %v984_v59 = vsub.f32 1.0, %v1364_v1  ;;  %v940_v32 = vpop.f32.mrb[9].mxu0  ;;  %v960_v33 = vpop.f32.mrb[9].mxu1  ;;  %v821_v26 = vmul.f32 %v820_v25, %v787_v31 }
 0x1e9   : > { %v1899_v27 = vmul.f32 %v673_v6, %v645_v23  ;;  %v979_v5 = vsub.f32 1.0, %v940_v32  ;;  %v983_v36 = vsub.f32 1.0, %v960_v33  ;;  %v674_v37 = vmul.f32 %v673_v6, %v639_v13 }
 0x1ea   : > { %v989_v2 = vsel %vm647_vm1, %v980_v15, inf  ;;  %v994_v40 = vsel %vm647_vm1, %v984_v59, inf  ;;  %v675_v18 = vmul.f32 %v673_v6, %v640_v45  ;;  %v676_v9 = vmul.f32 %v673_v6, %v641_v50 }
 0x1eb   : > { %v836_v30 = vsub.f32 %v1899_v27, %v1895_v28  ;;  %v1367_v31 = vpop.f32.mrb[10].mxu1  ;;  %1033 = vmin.xlane.f32.xlu1 %v989_v2  ;;  %v1361_v23 = vpop.f32.mrb[10].mxu0  ;;  %v988_v34 = vsel %vm647_vm1, %v979_v5, inf  ;;  %v995_v19 = vmin.f32 %v989_v2, %v994_v40  ;;  %v992_v13 = vsel %vm647_vm1, %v983_v36, inf }
 0x1ec   : > { %v986_v35 = vsub.f32 1.0, %v1367_v31  ;;  %v982_v38 = vsub.f32 1.0, %v1361_v23  ;;  %v970_v39 = vpop.f32.mrb[11].mxu1  ;;  %1031 = vmin.xlane.f32.xlu0 %v988_v34  ;;  %v950_v41 = vpop.f32.mrb[11].mxu0  ;;  %v993_v45 = vmin.f32 %v988_v34, %v992_v13  ;;  %v677_v47 = vmul.f32 %v673_v6, %v642_v49 }
 0x1ed   : > { %v985_v50 = vsub.f32 1.0, %v970_v39  ;;  %v981_v42 = vsub.f32 1.0, %v950_v41  ;;  %v678_v51 = vmul.f32 %v673_v6, %v643_v63  ;;  %v679_v53 = vmul.f32 %v673_v6, %v644_v62  ;;  %v1023_v39 = vld [vmem:[#allocation2] sm:$0xff] }
 0x1ee   : > { %v991_v21 = vsel %vm647_vm1, %v982_v38, inf  ;;  %v1000_v52 = vmin.f32 %v993_v45, %v995_v19  ;;  %v998_v17 = vsel %vm647_vm1, %v986_v35, inf  ;;  %v681_v49 = vmul.f32 %v673_v6, %v646_v22 }
 0x1ef   : > { %1037 = vmin.xlane.f32.xlu1 %v991_v21  ;;  %v990_v54 = vsel %vm647_vm1, %v981_v42, inf  ;;  %v999_v55 = vmin.f32 %v991_v21, %v998_v17  ;;  %v996_v12 = vsel %vm647_vm1, %v985_v50, inf  ;;  %v822_v63 = vmul.f32 %v820_v25, %v788_v11  ;;  %v1026_v42 = vld [vmem:[#allocation2 + $0x18] sm:$0xff] }
 0x1f0   : > { %1035 = vmin.xlane.f32.xlu0 %v990_v54  ;;  %v997_v60 = vmin.f32 %v990_v54, %v996_v12  ;;  %v823_v57 = vmul.f32 %v820_v25, %v789_v48  ;;  %v824_v20 = vmul.f32 %v820_v25, %v790_v46  ;;  %v825_v62 = vmul.f32 %v820_v25, %v791_v61  ;;  %v1028_v54 = vld [vmem:[#allocation2 + $0x28] sm:$0xff] }
 0x1f1   : > { %v826_v3 = vmul.f32 %v820_v25, %v792_v58  ;;  %v828_v24 = vmul.f32 %v820_v25, %v794_v14  ;;  %v830_v22 = vsub.f32 %v674_v37, %v821_v26  ;;  %v831_v4 = vsub.f32 %v675_v18, %v822_v63 }
 0x1f2   : > { %v1001_v29 = vmin.f32 %v997_v60, %v999_v55  ;;  %v832_v44 = vsub.f32 %v676_v9, %v823_v57  ;;  %v833_v11 = vsub.f32 %v677_v47, %v824_v20  ;;  %v834_v8 = vsub.f32 %v678_v51, %v825_v62  ;;  %v1025_v51 = vld [vmem:[#allocation2 + $0x10] sm:$0xff]  ;;  %v1027_v55 = vld [vmem:[#allocation2 + $0x20] sm:$0xff]  ;;  %v1030_v57 = vld [vmem:[#allocation2 + $0x38] sm:$0xff] }
 0x1f3   : > { %1041 = vmin.xlane.f32.xlu1 %v994_v40  ;;  %v835_v48 = vsub.f32 %v679_v53, %v826_v3  ;;  %v837_v0 = vsub.f32 %v681_v49, %v828_v24  ;;  %v838_v43 = vand.u32 2147483647, %v830_v22  ;;  %v839_v16 = vand.u32 2147483647, %v831_v4  ;;  %v1029_v62 = vld [vmem:[#allocation2 + $0x30] sm:$0xff] }
 0x1f4   : > { %1039 = vmin.xlane.f32.xlu0 %v992_v13  ;;  %v1002_v46 = vmin.f32 %v1000_v52, %v1001_v29  ;;  %v840_v61 = vand.u32 2147483647, %v832_v44  ;;  %v841_v58 = vand.u32 2147483647, %v833_v11  ;;  %v842_v7 = vand.u32 2147483647, %v834_v8 }
 0x1f5   : > { %v845_v6 = vand.u32 2147483647, %v837_v0  ;;  %v846_v10 = vsel %vm647_vm1, %v838_v43, 0.0  ;;  %v847_v14 = vsel %vm647_vm1, %v839_v16, 0.0  ;;  %v843_v33 = vand.u32 2147483647, %v835_v48 }
 0x1f6   : > { %v1003_v56 = vrot.slane %v1002_v46, 4  ;;  %v848_v25 = vadd.f32 %v847_v14, %v846_v10  ;;  %v849_v1 = vsel %vm647_vm1, %v840_v61, 0.0  ;;  %v851_v26 = vsel %vm647_vm1, %v841_v58, 0.0 }
 0x1f7   : > { %1045 = vmin.xlane.f32.xlu1 %v998_v17  ;;  %v859_v15 = vsel %vm647_vm1, %v845_v6, 0.0  ;;  %v844_v37 = vand.u32 2147483647, %v836_v30  ;;  %v853_v2 = vsel %vm647_vm1, %v842_v7, 0.0  ;;  %v855_v9 = vsel %vm647_vm1, %v843_v33, 0.0  ;;  %v1024_v30 = vld [vmem:[#allocation2 + $0x8] sm:$0xff] }
 0x1f8   : > { %1043 = vmin.xlane.f32.xlu0 %v996_v12  ;;  %v1004_v59 = vmin.f32 %v1002_v46, %v1003_v56  ;;  %v850_v32 = vadd.f32 %v849_v1, %v848_v25  ;;  %v1568_v28 = vmov 0.0   ;;  %v1569_v27 = vmov 0  }
 0x1f9   : > { %v857_v34 = vsel %vm647_vm1, %v844_v37, 0.0  ;;  %249 = vst.msk [vmem:[#allocation3] sm:$0x1] %vm248_vm3, %v1568_v28  ;;  %250 = vst.msk [vmem:[#allocation4] sm:$0x1] %vm248_vm3, %v1568_v28  ;;  %1457 = vset.pattern.permute.xlu1 %v1569_v27  ;;  %1458 = vset.pattern.permute.xlu0 %v1569_v27 }
 0x1fa   : > { %v1005_v5 = vrot.slane %v1004_v59, 2  ;;  %v852_v36 = vadd.f32 %v851_v26, %v850_v32 }
 0x1fc   : > { %v1006_v40 = vmin.f32 %v1004_v59, %v1005_v5  ;;  %v854_v18 = vadd.f32 %v853_v2, %v852_v36 }
 0x1fe   : > { %v1007_v31 = vrot.slane %v1006_v40, 1  ;;  %v856_v23 = vadd.f32 %v855_v9, %v854_v18 }
 0x200   : > { %v1008_v19 = vmin.f32 %v1006_v40, %v1007_v31  ;;  %v858_v13 = vadd.f32 %v857_v34, %v856_v23  ;;  %v987_v28 = vld [vmem:[#allocation4] sm:$0x1] }
 0x202   : > { %v1010_v35 = vsel %vm1009_vm2, %v1008_v19, 0.0  ;;  %v860_v38 = vadd.f32 %v859_v15, %v858_v13 }
 0x203   : > { %1011 = vadd.xlane.f32.xlu1 %v1010_v35 }
 0x204   : > { %861 = vadd.xlane.f32.xlu0 %v860_v38  ;;  %v829_v38 = vld [vmem:[#allocation3] sm:$0x1] }
 0x278   : > { %v1034_v41 = vpop.xlane.xlu1 %1033 }
 0x279   : > { %v1048_v45 = vmin.f32 %v1024_v30, %v1034_v41  ;;  %v1032_v47 = vpop.xlane.xlu0 %1031 }
 0x27a   : > { %v1047_v50 = vmin.f32 %v1023_v39, %v1032_v47 }
 0x27b   : > { %1057 = vst.msk [vmem:[#allocation2 + $0x8] sm:$0xff] %vm239_vm0, %v1048_v45 }
 0x27c   : > { %1056 = vst.msk [vmem:[#allocation2] sm:$0xff] %vm239_vm0, %v1047_v50  ;;  %v1038_v21 = vpop.xlane.xlu1 %1037 }
 0x27d   : > { %v1050_v52 = vmin.f32 %v1026_v42, %v1038_v21  ;;  %v1036_v17 = vpop.xlane.xlu0 %1035 }
 0x27e   : > { %v1049_v53 = vmin.f32 %v1025_v51, %v1036_v17 }
 0x27f   : > { %1059 = vst.msk [vmem:[#allocation2 + $0x18] sm:$0xff] %vm239_vm0, %v1050_v52 }
 0x280   : > { %1058 = vst.msk [vmem:[#allocation2 + $0x10] sm:$0xff] %vm239_vm0, %v1049_v53  ;;  %v1042_v12 = vpop.xlane.xlu1 %1041 }
 0x281   : > { %v1052_v49 = vmin.f32 %v1028_v54, %v1042_v12  ;;  %v1040_v60 = vpop.xlane.xlu0 %1039  ;;  %v1101_v54 = vlaneseq }
 0x282   : > { %v1051_v63 = vmin.f32 %v1027_v55, %v1040_v60  ;;  %v1068_v20 = vld [vmem:[#allocation2 + $0x8] sm:$0xff] }
 0x283   : > { %1061 = vst.msk [vmem:[#allocation2 + $0x28] sm:$0xff] %vm239_vm0, %v1052_v49  ;;  %v1067_v3 = vld [vmem:[#allocation2] sm:$0xff]  ;;  %v1076_v29 = vsel %vm239_vm0, %v1068_v20, 0.0  ;;  %v1110_v55 = vshrl.u32 %v1101_v54, 7  ;;  %v1102_v49 = vand.u32 127, %v1101_v54 }
 0x284   : > { %1060 = vst.msk [vmem:[#allocation2 + $0x20] sm:$0xff] %vm239_vm0, %v1051_v63  ;;  %v1046_v24 = vpop.xlane.xlu1 %1045  ;;  %v1075_v22 = vsel %vm239_vm0, %v1067_v3, 0.0 }
 0x285   : > { %v1054_v4 = vmin.f32 %v1030_v57, %v1046_v24  ;;  %v1044_v44 = vpop.xlane.xlu0 %1043  ;;  %v1077_v0 = vadd.f32 %v1076_v29, %v1075_v22  ;;  %v1111_v12 = vsub.s32 0, %v1110_v55  ;;  %vm1103_vm4 = vcmp.eq.s32.totalorder %v1102_v49, 0 }
 0x286   : > { %v1053_v11 = vmin.f32 %v1029_v62, %v1044_v44  ;;  %v1070_v48 = vld [vmem:[#allocation2 + $0x18] sm:$0xff]  ;;  %vm1114_vm5 = vcmp.eq.s32.totalorder %v1102_v49, 1  ;;  %vm1118_vm6 = vcmp.eq.s32.totalorder %v1102_v49, 2 }
 0x287   : > { %1063 = vst.msk [vmem:[#allocation2 + $0x38] sm:$0xff] %vm239_vm0, %v1054_v4  ;;  %v1069_v8 = vld [vmem:[#allocation2 + $0x10] sm:$0xff]  ;;  %v1080_v16 = vsel %vm239_vm0, %v1070_v48, 0.0 }
 0x288   : > { %1062 = vst.msk [vmem:[#allocation2 + $0x30] sm:$0xff] %vm239_vm0, %v1053_v11  ;;  %v1078_v43 = vsel %vm239_vm0, %v1069_v8, 0.0 }
 0x289   : > { %v1079_v46 = vadd.f32 %v1078_v43, %v1077_v0 }
 0x28a   : > { %v1072_v6 = vld [vmem:[#allocation2 + $0x28] sm:$0xff] }
 0x28b   : > { %v1071_v61 = vld [vmem:[#allocation2 + $0x20] sm:$0xff]  ;;  %v1081_v56 = vadd.f32 %v1080_v16, %v1079_v46  ;;  %v1084_v14 = vsel %vm239_vm0, %v1072_v6, 0.0 }
 0x28c   : > { %v1082_v58 = vsel %vm239_vm0, %v1071_v61, 0.0 }
 0x28d   : > { %v1083_v10 = vadd.f32 %v1082_v58, %v1081_v56 }
 0x28e   : > { %v1074_v7 = vld [vmem:[#allocation2 + $0x38] sm:$0xff] }
 0x28f   : > { %v1073_v25 = vld [vmem:[#allocation2 + $0x30] sm:$0xff]  ;;  %v1085_v1 = vadd.f32 %v1084_v14, %v1083_v10  ;;  %v1088_v5 = vsel %vm239_vm0, %v1074_v7, 0.0 }
 0x290   : > { %v1012_v15 = vpop.xlane.xlu1 %1011  ;;  %v1086_v59 = vsel %vm239_vm0, %v1073_v25, 0.0 }
 0x291   : > { %v1013_v32 = vrot.slane %v1012_v15, 4  ;;  %v1087_v33 = vadd.f32 %v1086_v59, %v1085_v1  ;;  %v862_v26 = vpop.xlane.xlu0 %861 }
 0x292   : > { %v863_v36 = vrot.slane %v862_v26, 4 }
 0x293   : > { %v1014_v37 = vadd.f32 %v1013_v32, %v1012_v15  ;;  %v1089_v2 = vadd.f32 %v1088_v5, %v1087_v33 }
 0x294   : > { %v864_v40 = vadd.f32 %v863_v36, %v862_v26 }
 0x295   : > { %v1015_v18 = vrot.slane %v1014_v37, 2  ;;  %1090 = vadd.xlane.f32.xlu0 %v1089_v2 }
 0x296   : > { %v865_v9 = vrot.slane %v864_v40, 2 }
 0x297   : > { %v1016_v31 = vadd.f32 %v1015_v18, %v1014_v37 }
 0x298   : > { %v866_v23 = vadd.f32 %v865_v9, %v864_v40 }
 0x299   : > { %v1017_v34 = vrot.slane %v1016_v31, 1 }
 0x29a   : > { %v867_v19 = vrot.slane %v866_v23, 1 }
 0x29b   : > { %v1018_v13 = vadd.f32 %v1017_v34, %v1016_v31 }
 0x29c   : > { %v868_v35 = vadd.f32 %v867_v19, %v866_v23 }
 0x29e   : > { %1424 = vpush %v868_v35 }
 0x29f   : > { %1426 = vpush %v1018_v13 }
 0x2cf   : > { %s1425_s26 = spop %1424 }
 0x2d0   : > { %v870_v27 = vstv %s1425_s26  ;;  %s1427_s27 = spop %1426 }
 0x2d1   : > { %v871_v30 = vadd.f32 %v870_v27, %v829_v38  ;;  %v1020_v39 = vstv %s1427_s27 }
 0x2d2   : > { %v1021_v41 = vadd.f32 %v1020_v39, %v987_v28 }
 0x2d3   : > { %873 = vst.msk [vmem:[#allocation3] sm:$0x1] %vm248_vm3, %v871_v30 }
 0x2d4   : > { %1022 = vst.msk [vmem:[#allocation4] sm:$0x1] %vm248_vm3, %v1021_v41 }
 0x2da   : > { %v1099_v45 = vld [vmem:[#allocation3] sm:$0x1] }
 0x2db   : > { %1106 = vperm.xlu1 %1457, %v1099_v45   ;;  %v1100_v47 = vld [vmem:[#allocation4] sm:$0x1] }
 0x2dc   : > { %1121 = vperm.xlu0 %1458, %v1100_v47  }
 0x322   : > { %v1091_v50 = vpop.xlane.xlu0 %1090 }
 0x323   : > { %v1092_v42 = vrot.slane %v1091_v50, 4 }
 0x325   : > { %v1093_v51 = vadd.f32 %v1092_v42, %v1091_v50 }
 0x327   : > { %v1094_v21 = vrot.slane %v1093_v51, 2 }
 0x329   : > { %v1095_v52 = vadd.f32 %v1094_v21, %v1093_v51 }
 0x32b   : > { %v1096_v17 = vrot.slane %v1095_v52, 1 }
 0x32d   : > { %v1097_v53 = vadd.f32 %v1096_v17, %v1095_v52 }
 0x32f   : > { %1428 = vpush %v1097_v53 }
 0x35a   : > { %v1107_v60 = vpop.permute.xlu1 %1106 }
 0x35b   : > { %v1122_v63 = vpop.permute.xlu0 %1121  ;;  %v1112_v57 = vrot.slane %v1107_v60, %v1111_v12 }
 0x35c   : > { %v1127_v20 = vrot.slane %v1122_v63, %v1111_v12 }
 0x35d   : > { %v1113_v3 = vsel %vm1103_vm4, %v1112_v57, 0.0 }
 0x35e   : > { %v1128_v29 = vsel %vm1118_vm6, %v1127_v20, 0.0 }
 0x360   : > { %s1429_s28 = spop %1428 }
 0x361   : > { %v1115_v62 = vstv %s1429_s28 }
 0x362   : > { %v1116_v24 = vsel %vm1114_vm5, %v1115_v62, 0.0 }
 0x363   : > { %v1117_v22 = vadd.f32 %v1116_v24, %v1113_v3 }
 0x365   : > { %v1129_v4 = vadd.f32 %v1128_v29, %v1117_v22 }
 0x367   : > { %1130 = vst [vmem:[%s234_s4] sm:$0x1] %v1129_v4 }
 0x368 PF: > { %s13_s14 = sadd.s32 1, %s1565_s14   ;;  %s1985_s12 = smov %s1561_s13 }
 0x369   : > { %p10_p5 = scmp.ge.s32.totalorder %s13_s14, 4   ;;  %s1986_s13 = smov %s1988_s15 }
 0x36b   :  { %12 = sbr.rel (!%p10_p5) target bundleno = 2 (0x2), region = 78 }

// kernel: _lambda_.7
= control target key start
LH: loop header
LB: loop body
LE: loop exit
PB: predicated region body
PF: predicated region fallthrough
CT: control target
= control target key end

     0   :  { %s3313_s12 = smov 0   ;;  %s3315_s13 = smov 0   ;;  %s4074_s0 = inlined_call_operand.vmem [shape: f32[6,10,16,128], index: 0, kind: input, shape index: {}]   ;;  %s4075_s1 = inlined_call_operand.vmem [shape: f32[9,128,128], index: 1, kind: input, shape index: {}]   ;;  %s4076_s2 = inlined_call_operand.vmem [shape: f32[1,128], index: 2, kind: input, shape index: {}]   ;;  %s4077_s3 = inlined_call_operand.vmem [shape: f32[6,64,128], index: 3, kind: output, shape index: {}]  }
   0x1   :  { %s3317_s14 = smov 0  }
   0x2 LB: > { %s25_s15 = sadd.s32 1, %s3287_s13  ;;  %p1916_p0 = scmp.ge.s32.totalorder %s3291_s14, 1  ;;  %s3291_s14 = sphi %s3317_s14, %s13_s14   ;;  %s3287_s13 = sphi %s3315_s13, %s4079_s13   ;;  %s3283_s12 = sphi %s3313_s12, %s4078_s12  }
   0x3   : > { %p27_p1 = scmp.ge.s32.totalorder %s25_s15, 6  ;;  %p155_p2 = scmp.lt.s32.totalorder %s3291_s14, 7 }
   0x5   : > { %s4081_s15 = smov (%p27_p1, %s25_s15), 0  ;;  %p156_p3 = pnand %p1916_p0, %p155_p2 }
   0x6   : > { %v1936_v0 = vld [vmem:[%s4075_s1 + $0x180] sm:$0xff] (!%p156_p3)  ;;  %v1937_v1 = vld [vmem:[%s4075_s1 + $0x188] sm:$0xff] (!%p156_p3)  ;;  %p185_p4 = scmp.lt.s32.totalorder (!%p156_p3), %s3283_s12, 5  ;;  %v1938_v5 = vld [vmem:[%s4075_s1 + $0x190] sm:$0xff] (!%p156_p3) }
   0x7   : > { %159 = sbr.rel (%p156_p3) target bundleno = 408 (0x198), region = 32  ;;  %v217_v2 = vld [vmem:[%s4075_s1] sm:$0xff] (!%p156_p3)  ;;  %v2876_v3 = vpack.c.bf16 (!%p156_p3), %v1937_v1, %v1936_v0  ;;  %v218_v4 = vld [vmem:[%s4075_s1 + $0x8] sm:$0xff] (!%p156_p3)  ;;  %v1939_v6 = vld [vmem:[%s4075_s1 + $0x198] sm:$0xff] (!%p156_p3) }
   0x8   : > { %v2908_v7 = vpack.c.bf16 (!%p156_p3), %v218_v4, %v217_v2  ;;  %v2880_v8 = vpack.c.bf16 (!%p156_p3), %v1939_v6, %v1938_v5  ;;  %v219_v9 = vld [vmem:[%s4075_s1 + $0x10] sm:$0xff] (!%p156_p3)  ;;  %v220_v10 = vld [vmem:[%s4075_s1 + $0x18] sm:$0xff] (!%p156_p3)  ;;  %v1940_v11 = vld [vmem:[%s4075_s1 + $0x1a0] sm:$0xff] (!%p156_p3) }
   0x9   : > { %2877 = vmatprep.subr.bf16.mxu0 (!%p156_p3), %v2876_v3  ;;  %v2912_v12 = vpack.c.bf16 (!%p156_p3), %v220_v10, %v219_v9  ;;  %v1941_v13 = vld [vmem:[%s4075_s1 + $0x1a8] sm:$0xff] (!%p156_p3)  ;;  %v221_v14 = vld [vmem:[%s4075_s1 + $0x20] sm:$0xff] (!%p156_p3)  ;;  %v1942_v18 = vld [vmem:[%s4075_s1 + $0x1b0] sm:$0xff] (!%p156_p3) }
   0xa   : > { %v222_v15 = vld [vmem:[%s4075_s1 + $0x28] sm:$0xff] (!%p156_p3)  ;;  %2909 = vmatprep.subr.bf16.mxu1 (!%p156_p3), %v2908_v7  ;;  %2879 = vmatpush3.bf16.msra.mxu0 (!%p156_p3), %v2876_v3  ;;  %v2884_v16 = vpack.c.bf16 (!%p156_p3), %v1941_v13, %v1940_v11  ;;  %v1943_v19 = vld [vmem:[%s4075_s1 + $0x1b8] sm:$0xff] (!%p156_p3)  ;;  %v223_v20 = vld [vmem:[%s4075_s1 + $0x30] sm:$0xff] (!%p156_p3) }
   0xb   : > { %2911 = vmatpush3.bf16.msra.mxu1 (!%p156_p3), %v2908_v7  ;;  %2881 = vmatprep.subr.bf16.mxu0 (!%p156_p3), %v2880_v8  ;;  %v2916_v17 = vpack.c.bf16 (!%p156_p3), %v222_v15, %v221_v14  ;;  %v224_v21 = vld [vmem:[%s4075_s1 + $0x38] sm:$0xff] (!%p156_p3)  ;;  %v2888_v22 = vpack.c.bf16 (!%p156_p3), %v1943_v19, %v1942_v18  ;;  %v1944_v24 = vld [vmem:[%s4075_s1 + $0x1c0] sm:$0xff] (!%p156_p3)  ;;  %v1945_v25 = vld [vmem:[%s4075_s1 + $0x1c8] sm:$0xff] (!%p156_p3) }
   0xc   : > { %2913 = vmatprep.subr.bf16.mxu1 (!%p156_p3), %v2912_v12  ;;  %v2920_v23 = vpack.c.bf16 (!%p156_p3), %v224_v21, %v223_v20  ;;  %v225_v27 = vld [vmem:[%s4075_s1 + $0x40] sm:$0xff] (!%p156_p3)  ;;  %v226_v28 = vld [vmem:[%s4075_s1 + $0x48] sm:$0xff] (!%p156_p3)  ;;  %v2892_v30 = vpack.c.bf16 (!%p156_p3), %v1945_v25, %v1944_v24  ;;  %v1946_v32 = vld [vmem:[%s4075_s1 + $0x1d0] sm:$0xff] (!%p156_p3) }
   0xd   : > { %v2924_v31 = vpack.c.bf16 (!%p156_p3), %v226_v28, %v225_v27  ;;  %v1947_v33 = vld [vmem:[%s4075_s1 + $0x1d8] sm:$0xff] (!%p156_p3)  ;;  %v227_v34 = vld [vmem:[%s4075_s1 + $0x50] sm:$0xff] (!%p156_p3)  ;;  %v1948_v38 = vld [vmem:[%s4075_s1 + $0x1e0] sm:$0xff] (!%p156_p3) }
   0xe   : > { %s4083_s12 = smov (!%p185_p4, %s3283_s12), 5  ;;  %2883 = vmatpush3.bf16.msra.mxu0 %v2880_v8  ;;  %v228_v35 = vld [vmem:[%s4075_s1 + $0x58] sm:$0xff]  ;;  %v2896_v36 = vpack.c.bf16 %v1947_v33, %v1946_v32  ;;  %v1949_v39 = vld [vmem:[%s4075_s1 + $0x1e8] sm:$0xff]  ;;  %v229_v40 = vld [vmem:[%s4075_s1 + $0x60] sm:$0xff] }
   0xf   : > { %s3244_s17 = smul.u32 160, %s4083_s12  ;;  %2915 = vmatpush3.bf16.msra.mxu1 %v2912_v12  ;;  %2885 = vmatprep.subr.bf16.mxu0 %v2884_v16  ;;  %v2928_v37 = vpack.c.bf16 %v228_v35, %v227_v34  ;;  %v230_v41 = vld [vmem:[%s4075_s1 + $0x68] sm:$0xff]  ;;  %v2900_v42 = vpack.c.bf16 %v1949_v39, %v1948_v38  ;;  %v1950_v44 = vld [vmem:[%s4075_s1 + $0x1f0] sm:$0xff]  ;;  %v1951_v45 = vld [vmem:[%s4075_s1 + $0x1f8] sm:$0xff]  ;;  %s2083_s18 = sshll.u32 %s4083_s12, 6 }
  0x10   : > { %2917 = vmatprep.subr.bf16.mxu1 %v2916_v17  ;;  %v2932_v43 = vpack.c.bf16 %v230_v41, %v229_v40  ;;  %v231_v46 = vld [vmem:[%s4075_s1 + $0x70] sm:$0xff]  ;;  %v232_v47 = vld [vmem:[%s4075_s1 + $0x78] sm:$0xff]  ;;  %v2904_v48 = vpack.c.bf16 %v1951_v45, %v1950_v44  ;;  %v1968_v50 = vld [vmem:[%s4075_s1 + $0x300] sm:$0xff]  ;;  %s4029_s20 = scalar_lea.vmem %s4077_s3, %s2083_s18 }
  0x11   : > { %s3385_s28 = scalar_lea.vmem %s4074_s0, %s3244_s17  ;;  %v2936_v49 = vpack.c.bf16 %v232_v47, %v231_v46  ;;  %v1969_v51 = vld [vmem:[%s4075_s1 + $0x308] sm:$0xff]  ;;  %v2000_v52 = vld [vmem:[%s4075_s1 + $0x200] sm:$0xff]  ;;  %v1970_v56 = vld [vmem:[%s4075_s1 + $0x310] sm:$0xff] }
  0x12   : > { %v3394_v26 = vld [vmem:[%s3385_s28 + $0x10] sm:$0xff]  ;;  %v3404_v29 = vld [vmem:[%s3385_s28] sm:$0xff]  ;;  %2887 = vmatpush3.bf16.msra.mxu0 %v2884_v16  ;;  %v2001_v53 = vld [vmem:[%s4075_s1 + $0x208] sm:$0xff]  ;;  %v2940_v54 = vpack.c.bf16 %v1969_v51, %v1968_v50 }
  0x13   : > { %2404 = vmatprep.mubr.f32.mxu0 %v3394_v26  ;;  %2460 = vmatprep.mubr.f32.mxu1 %v3404_v29  ;;  %v2972_v55 = vpack.c.bf16 %v2001_v53, %v2000_v52  ;;  %v1971_v57 = vld [vmem:[%s4075_s1 + $0x318] sm:$0xff]  ;;  %v2002_v59 = vld [vmem:[%s4075_s1 + $0x210] sm:$0xff]  ;;  %v3471_v61 = vld [vmem:[%s3385_s28 + $0x8] sm:$0xff] }
  0x14   : > { %2919 = vmatpush3.bf16.msra.mxu1 %v2916_v17  ;;  %2889 = vmatprep.subr.bf16.mxu0 %v2888_v22  ;;  %v3462_v58 = vld [vmem:[%s3385_s28 + $0x18] sm:$0xff]  ;;  %v3474_v62 = vld [vmem:[%s3385_s28 + $0x20] sm:$0xff]  ;;  %v2944_v63 = vpack.c.bf16 %v1971_v57, %v1970_v56  ;;  %v1973_v2 = vld [vmem:[%s4075_s1 + $0x328] sm:$0xff] }
  0x15   : > { %2921 = vmatprep.subr.bf16.mxu1 %v2920_v23  ;;  %v2003_v60 = vld [vmem:[%s4075_s1 + $0x218] sm:$0xff]  ;;  %v1972_v1 = vld [vmem:[%s4075_s1 + $0x320] sm:$0xff]  ;;  %v3485_v3 = vld [vmem:[%s3385_s28 + $0x28] sm:$0xff] }
  0x16   : > { %2891 = vmatpush3.bf16.msra.mxu0 %v2888_v22  ;;  %v2976_v0 = vpack.c.bf16 %v2003_v60, %v2002_v59  ;;  %v2004_v4 = vld [vmem:[%s4075_s1 + $0x220] sm:$0xff]  ;;  %v2005_v5 = vld [vmem:[%s4075_s1 + $0x228] sm:$0xff]  ;;  %v3496_v6 = vld [vmem:[%s3385_s28 + $0x30] sm:$0xff]  ;;  %v2948_v7 = vpack.c.bf16 %v1973_v2, %v1972_v1 }
  0x17   : > { %2893 = vmatprep.subr.bf16.mxu0 %v2892_v30  ;;  %v2980_v8 = vpack.c.bf16 %v2005_v5, %v2004_v4  ;;  %v1974_v9 = vld [vmem:[%s4075_s1 + $0x330] sm:$0xff]  ;;  %v1975_v10 = vld [vmem:[%s4075_s1 + $0x338] sm:$0xff]  ;;  %v3518_v14 = vld [vmem:[%s3385_s28 + $0x40] sm:$0xff] }
  0x18   : > { %2923 = vmatpush3.bf16.msra.mxu1 %v2920_v23  ;;  %v3507_v11 = vld [vmem:[%s3385_s28 + $0x38] sm:$0xff]  ;;  %v2006_v12 = vld [vmem:[%s4075_s1 + $0x230] sm:$0xff]  ;;  %v2952_v15 = vpack.c.bf16 %v1975_v10, %v1974_v9  ;;  %v1976_v17 = vld [vmem:[%s4075_s1 + $0x340] sm:$0xff] }
  0x19   : > { %2925 = vmatprep.subr.bf16.mxu1 %v2924_v31  ;;  %v2007_v13 = vld [vmem:[%s4075_s1 + $0x238] sm:$0xff]  ;;  %v1977_v18 = vld [vmem:[%s4075_s1 + $0x348] sm:$0xff]  ;;  %v2008_v20 = vld [vmem:[%s4075_s1 + $0x240] sm:$0xff] }
  0x1a   : > { %2895 = vmatpush3.bf16.msra.mxu0 %v2892_v30  ;;  %v2984_v16 = vpack.c.bf16 %v2007_v13, %v2006_v12  ;;  %v3529_v19 = vld [vmem:[%s3385_s28 + $0x48] sm:$0xff]  ;;  %v3540_v22 = vld [vmem:[%s3385_s28 + $0x50] sm:$0xff]  ;;  %v2956_v23 = vpack.c.bf16 %v1977_v18, %v1976_v17  ;;  %v1979_v27 = vld [vmem:[%s4075_s1 + $0x358] sm:$0xff] }
  0x1b   : > { %2897 = vmatprep.subr.bf16.mxu0 %v2896_v36  ;;  %v2009_v21 = vld [vmem:[%s4075_s1 + $0x248] sm:$0xff]  ;;  %v1978_v25 = vld [vmem:[%s4075_s1 + $0x350] sm:$0xff]  ;;  %v3551_v28 = vld [vmem:[%s3385_s28 + $0x58] sm:$0xff] }
  0x1c   : > { %2927 = vmatpush3.bf16.msra.mxu1 %v2924_v31  ;;  %v2988_v24 = vpack.c.bf16 %v2009_v21, %v2008_v20  ;;  %v2010_v30 = vld [vmem:[%s4075_s1 + $0x250] sm:$0xff]  ;;  %v2011_v31 = vld [vmem:[%s4075_s1 + $0x258] sm:$0xff]  ;;  %v3562_v32 = vld [vmem:[%s3385_s28 + $0x60] sm:$0xff]  ;;  %v2960_v33 = vpack.c.bf16 %v1979_v27, %v1978_v25 }
  0x1d   : > { %2929 = vmatprep.subr.bf16.mxu1 %v2928_v37  ;;  %v2992_v34 = vpack.c.bf16 %v2011_v31, %v2010_v30  ;;  %v1980_v35 = vld [vmem:[%s4075_s1 + $0x360] sm:$0xff]  ;;  %v2013_v39 = vld [vmem:[%s4075_s1 + $0x268] sm:$0xff]  ;;  %v3584_v40 = vld [vmem:[%s3385_s28 + $0x70] sm:$0xff] }
  0x1e   : > { %2899 = vmatpush3.bf16.msra.mxu0 %v2896_v36  ;;  %v1981_v36 = vld [vmem:[%s4075_s1 + $0x368] sm:$0xff]  ;;  %v2012_v38 = vld [vmem:[%s4075_s1 + $0x260] sm:$0xff]  ;;  %v1983_v44 = vld [vmem:[%s4075_s1 + $0x378] sm:$0xff] }
  0x1f   : > { %2901 = vmatprep.subr.bf16.mxu0 %v2900_v42  ;;  %v2964_v41 = vpack.c.bf16 %v1981_v36, %v1980_v35  ;;  %v3595_v45 = vld [vmem:[%s3385_s28 + $0x78] sm:$0xff]  ;;  %v2014_v46 = vld [vmem:[%s4075_s1 + $0x270] sm:$0xff]  ;;  %v1984_v51 = vld [vmem:[%s4075_s1 + $0x80] sm:$0xff] }
  0x20   : > { %2931 = vmatpush3.bf16.msra.mxu1 %v2928_v37  ;;  %v3573_v37 = vld [vmem:[%s3385_s28 + $0x68] sm:$0xff]  ;;  %v2015_v47 = vld [vmem:[%s4075_s1 + $0x278] sm:$0xff]  ;;  %v1986_v59 = vld [vmem:[%s4075_s1 + $0x90] sm:$0xff] }
  0x21   : > { %2933 = vmatprep.subr.bf16.mxu1 %v2932_v43  ;;  %v3000_v50 = vpack.c.bf16 %v2015_v47, %v2014_v46  ;;  %v1985_v52 = vld [vmem:[%s4075_s1 + $0x88] sm:$0xff]  ;;  %v1987_v60 = vld [vmem:[%s4075_s1 + $0x98] sm:$0xff]  ;;  %v1988_v4 = vld [vmem:[%s4075_s1 + $0xa0] sm:$0xff] }
  0x22   : > { %2903 = vmatpush3.bf16.msra.mxu0 %v2900_v42  ;;  %v2996_v42 = vpack.c.bf16 %v2013_v39, %v2012_v38  ;;  %v3617_v53 = vld [vmem:[%s3385_s28 + $0x88] sm:$0xff]  ;;  %v3004_v56 = vpack.c.bf16 %v1985_v52, %v1984_v51  ;;  %v3008_v1 = vpack.c.bf16 %v1987_v60, %v1986_v59  ;;  %v1990_v12 = vld [vmem:[%s4075_s1 + $0xb0] sm:$0xff]  ;;  %v1991_v13 = vld [vmem:[%s4075_s1 + $0xb8] sm:$0xff] }
  0x23   : > { %2905 = vmatprep.subr.bf16.mxu0 %v2904_v48  ;;  %v1989_v5 = vld [vmem:[%s4075_s1 + $0xa8] sm:$0xff]  ;;  %v3016_v17 = vpack.c.bf16 %v1991_v13, %v1990_v12  ;;  %v1992_v20 = vld [vmem:[%s4075_s1 + $0xc0] sm:$0xff]  ;;  %v1994_v30 = vld [vmem:[%s4075_s1 + $0xd0] sm:$0xff] }
  0x24   : > { %2935 = vmatpush3.bf16.msra.mxu1 %v2932_v43  ;;  %v1982_v43 = vld [vmem:[%s4075_s1 + $0x370] sm:$0xff]  ;;  %v3012_v9 = vpack.c.bf16 %v1989_v5, %v1988_v4  ;;  %v1993_v21 = vld [vmem:[%s4075_s1 + $0xc8] sm:$0xff]  ;;  %v1995_v31 = vld [vmem:[%s4075_s1 + $0xd8] sm:$0xff] }
  0x25   : > { %2937 = vmatprep.subr.bf16.mxu1 %v2936_v49  ;;  %v3020_v25 = vpack.c.bf16 %v1993_v21, %v1992_v20  ;;  %v3024_v35 = vpack.c.bf16 %v1995_v31, %v1994_v30  ;;  %v1996_v38 = vld [vmem:[%s4075_s1 + $0xe0] sm:$0xff]  ;;  %v1997_v39 = vld [vmem:[%s4075_s1 + $0xe8] sm:$0xff]  ;;  %v1998_v46 = vld [vmem:[%s4075_s1 + $0xf0] sm:$0xff] }
  0x26   : > { %2907 = vmatpush3.bf16.msra.mxu0 %v2904_v48  ;;  %v3606_v48 = vld [vmem:[%s3385_s28 + $0x80] sm:$0xff]  ;;  %v1999_v47 = vld [vmem:[%s4075_s1 + $0xf8] sm:$0xff]  ;;  %v3740_v51 = vld [vmem:[%s3385_s28 + $0x90] sm:$0xff] }
  0x27   : > { %2941 = vmatprep.subr.bf16.mxu0 %v2940_v54  ;;  %v3032_v52 = vpack.c.bf16 %v1999_v47, %v1998_v46  ;;  %v2032_v59 = vld [vmem:[%s4075_s1 + $0x100] sm:$0xff]  ;;  %v2033_v60 = vld [vmem:[%s4075_s1 + $0x108] sm:$0xff]  ;;  %v2034_v4 = vld [vmem:[%s4075_s1 + $0x110] sm:$0xff] }
  0x28   : > { %2939 = vmatpush3.bf16.msra.mxu1 %v2936_v49  ;;  %v2968_v49 = vpack.c.bf16 %v1983_v44, %v1982_v43  ;;  %v3028_v43 = vpack.c.bf16 %v1997_v39, %v1996_v38  ;;  %v2035_v5 = vld [vmem:[%s4075_s1 + $0x118] sm:$0xff]  ;;  %v2036_v12 = vld [vmem:[%s4075_s1 + $0x120] sm:$0xff]  ;;  %v2037_v13 = vld [vmem:[%s4075_s1 + $0x128] sm:$0xff] }
  0x29   : > { %2973 = vmatprep.subr.bf16.mxu1 %v2972_v55  ;;  %2405 = vmatmul.mubr.f32.vlgmr.msra.gmra.mrb[0].mxu0 %v3462_v58  ;;  %v2038_v20 = vld [vmem:[%s4075_s1 + $0x130] sm:$0xff]  ;;  %v2039_v21 = vld [vmem:[%s4075_s1 + $0x138] sm:$0xff]  ;;  %v2040_v30 = vld [vmem:[%s4075_s1 + $0x140] sm:$0xff] }
  0x2a   : > { %2943 = vmatpush3.bf16.msra.mxu0 %v2940_v54  ;;  %2407 = vmatprep.mubr.f32.mxu0 %v3474_v62  ;;  %v2048_v54 = vld [vmem:[%s4075_s1 + $0x280] sm:$0xff]  ;;  %v2041_v31 = vld [vmem:[%s4075_s1 + $0x148] sm:$0xff]  ;;  %v2042_v38 = vld [vmem:[%s4075_s1 + $0x150] sm:$0xff] }
  0x2b   : > { %2461 = vmatmul.mubr.f32.vlgmr.msra.gmra.mrb[0].mxu1 %v3471_v61  ;;  %2945 = vmatprep.subr.bf16.mxu0 %v2944_v63  ;;  %v2043_v39 = vld [vmem:[%s4075_s1 + $0x158] sm:$0xff]  ;;  %v2044_v46 = vld [vmem:[%s4075_s1 + $0x160] sm:$0xff]  ;;  %v2045_v47 = vld [vmem:[%s4075_s1 + $0x168] sm:$0xff] }
  0x2c   : > { %2975 = vmatpush3.bf16.msra.mxu1 %v2972_v55  ;;  %2463 = vmatprep.mubr.f32.mxu1 %v3394_v26  ;;  %v2049_v55 = vld [vmem:[%s4075_s1 + $0x288] sm:$0xff] }
  0x2d   : > { %2408 = vmatmul.mubr.f32.gmra.mrb[2].mxu0 %v3485_v3  ;;  %2977 = vmatprep.subr.bf16.mxu1 %v2976_v0  ;;  %v3068_v57 = vpack.c.bf16 %v2049_v55, %v2048_v54  ;;  %v2016_v55 = vld [vmem:[%s4075_s1 + $0x380] sm:$0xff] }
  0x2e   : > { %2947 = vmatpush3.bf16.msra.mxu0 %v2944_v63  ;;  %2410 = vmatprep.mubr.f32.mxu0 %v3496_v6  ;;  %v2050_v63 = vld [vmem:[%s4075_s1 + $0x290] sm:$0xff] }
  0x2f   : > { %2464 = vmatmul.mubr.f32.gmra.mrb[2].mxu1 %v3462_v58  ;;  %2949 = vmatprep.subr.bf16.mxu0 %v2948_v7 }
  0x30   : > { %2979 = vmatpush3.bf16.msra.mxu1 %v2976_v0  ;;  %2466 = vmatprep.mubr.f32.mxu1 %v3474_v62  ;;  %v2051_v0 = vld [vmem:[%s4075_s1 + $0x298] sm:$0xff] }
  0x31   : > { %2411 = vmatmul.mubr.f32.gmra.mrb[4].mxu0 %v3507_v11  ;;  %2981 = vmatprep.subr.bf16.mxu1 %v2980_v8  ;;  %v3072_v2 = vpack.c.bf16 %v2051_v0, %v2050_v63  ;;  %v3100_v0 = vpack.c.bf16 %v2033_v60, %v2032_v59 }
  0x32   : > { %2951 = vmatpush3.bf16.msra.mxu0 %v2948_v7  ;;  %2413 = vmatprep.mubr.f32.mxu0 %v3518_v14  ;;  %v2052_v7 = vld [vmem:[%s4075_s1 + $0x2a0] sm:$0xff] }
  0x33   : > { %2467 = vmatmul.mubr.f32.gmra.mrb[4].mxu1 %v3485_v3  ;;  %2953 = vmatprep.subr.bf16.mxu0 %v2952_v15 }
  0x34   : > { %2983 = vmatpush3.bf16.msra.mxu1 %v2980_v8  ;;  %2469 = vmatprep.mubr.f32.mxu1 %v3496_v6  ;;  %v2053_v8 = vld [vmem:[%s4075_s1 + $0x2a8] sm:$0xff] }
  0x35   : > { %2414 = vmatmul.mubr.f32.gmra.mrb[6].mxu0 %v3529_v19  ;;  %2985 = vmatprep.subr.bf16.mxu1 %v2984_v16  ;;  %v3076_v10 = vpack.c.bf16 %v2053_v8, %v2052_v7  ;;  %v3104_v8 = vpack.c.bf16 %v2035_v5, %v2034_v4  ;;  %v2067_v4 = vld [vmem:[%s4075_s1 + $0x418] sm:$0xff] }
  0x36   : > { %2955 = vmatpush3.bf16.msra.mxu0 %v2952_v15  ;;  %2416 = vmatprep.mubr.f32.mxu0 %v3540_v22  ;;  %v2054_v15 = vld [vmem:[%s4075_s1 + $0x2b0] sm:$0xff] }
  0x37   : > { %2470 = vmatmul.mubr.f32.gmra.mrb[6].mxu1 %v3507_v11  ;;  %2957 = vmatprep.subr.bf16.mxu0 %v2956_v23 }
  0x38   : > { %2987 = vmatpush3.bf16.msra.mxu1 %v2984_v16  ;;  %2472 = vmatprep.mubr.f32.mxu1 %v3518_v14  ;;  %v2055_v16 = vld [vmem:[%s4075_s1 + $0x2b8] sm:$0xff] }
  0x39   : > { %2417 = vmatmul.mubr.f32.gmra.mrb[8].mxu0 %v3551_v28  ;;  %2989 = vmatprep.subr.bf16.mxu1 %v2988_v24  ;;  %v3080_v18 = vpack.c.bf16 %v2055_v16, %v2054_v15  ;;  %v3108_v16 = vpack.c.bf16 %v2037_v13, %v2036_v12  ;;  %v2074_v13 = vld [vmem:[%s4075_s1 + $0x450] sm:$0xff] }
  0x3a   : > { %2959 = vmatpush3.bf16.msra.mxu0 %v2956_v23  ;;  %2419 = vmatprep.mubr.f32.mxu0 %v3562_v32  ;;  %v2056_v23 = vld [vmem:[%s4075_s1 + $0x2c0] sm:$0xff] }
  0x3b   : > { %2473 = vmatmul.mubr.f32.gmra.mrb[8].mxu1 %v3529_v19  ;;  %2961 = vmatprep.subr.bf16.mxu0 %v2960_v33 }
  0x3c   : > { %2991 = vmatpush3.bf16.msra.mxu1 %v2988_v24  ;;  %2475 = vmatprep.mubr.f32.mxu1 %v3540_v22  ;;  %v2057_v24 = vld [vmem:[%s4075_s1 + $0x2c8] sm:$0xff] }
  0x3d   : > { %2420 = vmatmul.mubr.f32.gmra.mrb[10].mxu0 %v3573_v37  ;;  %2993 = vmatprep.subr.bf16.mxu1 %v2992_v34  ;;  %v3084_v27 = vpack.c.bf16 %v2057_v24, %v2056_v23  ;;  %v3112_v24 = vpack.c.bf16 %v2039_v21, %v2038_v20  ;;  %v2078_v21 = vld [vmem:[%s4075_s1 + $0x470] sm:$0xff] }
  0x3e   : > { %2963 = vmatpush3.bf16.msra.mxu0 %v2960_v33  ;;  %2422 = vmatprep.mubr.f32.mxu0 %v3584_v40  ;;  %v2058_v33 = vld [vmem:[%s4075_s1 + $0x2d0] sm:$0xff] }
  0x3f   : > { %2476 = vmatmul.mubr.f32.gmra.mrb[10].mxu1 %v3551_v28  ;;  %2965 = vmatprep.subr.bf16.mxu0 %v2964_v41 }
  0x40   : > { %2995 = vmatpush3.bf16.msra.mxu1 %v2992_v34  ;;  %2478 = vmatprep.mubr.f32.mxu1 %v3562_v32  ;;  %v2059_v34 = vld [vmem:[%s4075_s1 + $0x2d8] sm:$0xff] }
  0x41   : > { %2423 = vmatmul.mubr.f32.gmra.mrb[12].mxu0 %v3595_v45  ;;  %2997 = vmatprep.subr.bf16.mxu1 %v2996_v42  ;;  %v3088_v36 = vpack.c.bf16 %v2059_v34, %v2058_v33  ;;  %v3116_v34 = vpack.c.bf16 %v2041_v31, %v2040_v30 }
  0x42   : > { %2967 = vmatpush3.bf16.msra.mxu0 %v2964_v41  ;;  %2425 = vmatprep.mubr.f32.mxu0 %v3606_v48  ;;  %v2060_v41 = vld [vmem:[%s4075_s1 + $0x2e0] sm:$0xff] }
  0x43   : > { %2479 = vmatmul.mubr.f32.gmra.mrb[12].mxu1 %v3573_v37  ;;  %2969 = vmatprep.subr.bf16.mxu0 %v2968_v49 }
  0x44   : > { %2999 = vmatpush3.bf16.msra.mxu1 %v2996_v42  ;;  %2481 = vmatprep.mubr.f32.mxu1 %v3584_v40  ;;  %v2061_v42 = vld [vmem:[%s4075_s1 + $0x2e8] sm:$0xff] }
  0x45   : > { %2426 = vmatmul.mubr.f32.gmra.mrb[14].mxu0 %v3617_v53  ;;  %3001 = vmatprep.subr.bf16.mxu1 %v3000_v50  ;;  %v3092_v44 = vpack.c.bf16 %v2061_v42, %v2060_v41  ;;  %v3120_v42 = vpack.c.bf16 %v2043_v39, %v2042_v38 }
  0x46   : > { %2971 = vmatpush3.bf16.msra.mxu0 %v2968_v49  ;;  %2516 = vmatprep.mubr.f32.mxu0 %v3474_v62  ;;  %v2062_v49 = vld [vmem:[%s4075_s1 + $0x2f0] sm:$0xff] }
  0x47   : > { %2482 = vmatmul.mubr.f32.gmra.mrb[14].mxu1 %v3595_v45  ;;  %3069 = vmatprep.subr.bf16.mxu0 %v3068_v57 }
  0x48   : > { %3003 = vmatpush3.bf16.msra.mxu1 %v3000_v50  ;;  %2572 = vmatprep.mubr.f32.mxu1 %v3394_v26  ;;  %v2063_v50 = vld [vmem:[%s4075_s1 + $0x2f8] sm:$0xff] }
  0x49   : > { %3005 = vmatprep.subr.bf16.mxu1 %v3004_v56  ;;  %2517 = vmatmul.mubr.f32.vlgmr.msra.gmra.mrb[16].mxu0 %v3485_v3  ;;  %v3096_v54 = vpack.c.bf16 %v2063_v50, %v2062_v49  ;;  %v3124_v50 = vpack.c.bf16 %v2045_v47, %v2044_v46 }
  0x4a   : > { %3071 = vmatpush3.bf16.msra.mxu0 %v3068_v57  ;;  %2519 = vmatprep.mubr.f32.mxu0 %v3496_v6  ;;  %v3751_v57 = vld [vmem:[%s3385_s28 + $0x98] sm:$0xff] }
  0x4b   : > { %2573 = vmatmul.mubr.f32.vlgmr.msra.gmra.mrb[16].mxu1 %v3462_v58  ;;  %3073 = vmatprep.subr.bf16.mxu0 %v3072_v2 }
  0x4c   : > { %3007 = vmatpush3.bf16.msra.mxu1 %v3004_v56  ;;  %2575 = vmatprep.mubr.f32.mxu1 %v3474_v62  ;;  %v2017_v56 = vld [vmem:[%s4075_s1 + $0x388] sm:$0xff] }
  0x4d   : > { %3009 = vmatprep.subr.bf16.mxu1 %v3008_v1  ;;  %2520 = vmatmul.mubr.f32.gmra.mrb[18].mxu0 %v3507_v11  ;;  %v3036_v63 = vpack.c.bf16 %v2017_v56, %v2016_v55  ;;  %v2046_v55 = vld [vmem:[%s4075_s1 + $0x170] sm:$0xff]  ;;  %v2047_v56 = vld [vmem:[%s4075_s1 + $0x178] sm:$0xff] }
  0x4e   : > { %3075 = vmatpush3.bf16.msra.mxu0 %v3072_v2  ;;  %2522 = vmatprep.mubr.f32.mxu0 %v3518_v14  ;;  %v2019_v2 = vld [vmem:[%s4075_s1 + $0x398] sm:$0xff]  ;;  %v3128_v60 = vpack.c.bf16 %v2047_v56, %v2046_v55 }
  0x4f   : > { %2576 = vmatmul.mubr.f32.gmra.mrb[18].mxu1 %v3485_v3  ;;  %3077 = vmatprep.subr.bf16.mxu0 %v3076_v10 }
  0x50   : > { %3011 = vmatpush3.bf16.msra.mxu1 %v3008_v1  ;;  %2578 = vmatprep.mubr.f32.mxu1 %v3496_v6  ;;  %v2018_v1 = vld [vmem:[%s4075_s1 + $0x390] sm:$0xff] }
  0x51   : > { %3013 = vmatprep.subr.bf16.mxu1 %v3012_v9  ;;  %2523 = vmatmul.mubr.f32.gmra.mrb[20].mxu0 %v3529_v19  ;;  %v3040_v7 = vpack.c.bf16 %v2019_v2, %v2018_v1  ;;  %v2066_v2 = vld [vmem:[%s4075_s1 + $0x410] sm:$0xff] }
  0x52   : > { %3079 = vmatpush3.bf16.msra.mxu0 %v3076_v10  ;;  %2525 = vmatprep.mubr.f32.mxu0 %v3540_v22  ;;  %v2021_v10 = vld [vmem:[%s4075_s1 + $0x3a8] sm:$0xff]  ;;  %v3136_v5 = vpack.c.bf16 %v2067_v4, %v2066_v2 }
  0x53   : > { %2579 = vmatmul.mubr.f32.gmra.mrb[20].mxu1 %v3507_v11  ;;  %3081 = vmatprep.subr.bf16.mxu0 %v3080_v18 }
  0x54   : > { %3015 = vmatpush3.bf16.msra.mxu1 %v3012_v9  ;;  %2581 = vmatprep.mubr.f32.mxu1 %v3518_v14  ;;  %v2020_v9 = vld [vmem:[%s4075_s1 + $0x3a0] sm:$0xff] }
  0x55   : > { %3017 = vmatprep.subr.bf16.mxu1 %v3016_v17  ;;  %2526 = vmatmul.mubr.f32.gmra.mrb[22].mxu0 %v3551_v28  ;;  %v3044_v15 = vpack.c.bf16 %v2021_v10, %v2020_v9  ;;  %v2071_v9 = vld [vmem:[%s4075_s1 + $0x438] sm:$0xff]  ;;  %v2073_v10 = vld [vmem:[%s4075_s1 + $0x448] sm:$0xff] }
  0x56   : > { %3083 = vmatpush3.bf16.msra.mxu0 %v3080_v18  ;;  %2528 = vmatprep.mubr.f32.mxu0 %v3562_v32  ;;  %v2023_v18 = vld [vmem:[%s4075_s1 + $0x3b8] sm:$0xff] }
  0x57   : > { %2582 = vmatmul.mubr.f32.gmra.mrb[22].mxu1 %v3529_v19  ;;  %3085 = vmatprep.subr.bf16.mxu0 %v3084_v27 }
  0x58   : > { %3019 = vmatpush3.bf16.msra.mxu1 %v3016_v17  ;;  %2584 = vmatprep.mubr.f32.mxu1 %v3540_v22  ;;  %v2022_v17 = vld [vmem:[%s4075_s1 + $0x3b0] sm:$0xff] }
  0x59   : > { %3021 = vmatprep.subr.bf16.mxu1 %v3020_v25  ;;  %2529 = vmatmul.mubr.f32.gmra.mrb[24].mxu0 %v3573_v37  ;;  %v3048_v23 = vpack.c.bf16 %v2023_v18, %v2022_v17  ;;  %v2076_v17 = vld [vmem:[%s4075_s1 + $0x460] sm:$0xff]  ;;  %v2077_v18 = vld [vmem:[%s4075_s1 + $0x468] sm:$0xff] }
  0x5a   : > { %3087 = vmatpush3.bf16.msra.mxu0 %v3084_v27  ;;  %2531 = vmatprep.mubr.f32.mxu0 %v3584_v40  ;;  %v2025_v27 = vld [vmem:[%s4075_s1 + $0x3c8] sm:$0xff]  ;;  %v3156_v20 = vpack.c.bf16 %v2077_v18, %v2076_v17 }
  0x5b   : > { %2585 = vmatmul.mubr.f32.gmra.mrb[24].mxu1 %v3551_v28  ;;  %3089 = vmatprep.subr.bf16.mxu0 %v3088_v36 }
  0x5c   : > { %3023 = vmatpush3.bf16.msra.mxu1 %v3020_v25  ;;  %2587 = vmatprep.mubr.f32.mxu1 %v3562_v32  ;;  %v2024_v25 = vld [vmem:[%s4075_s1 + $0x3c0] sm:$0xff] }
  0x5d   : > { %3025 = vmatprep.subr.bf16.mxu1 %v3024_v35  ;;  %2532 = vmatmul.mubr.f32.gmra.mrb[26].mxu0 %v3595_v45  ;;  %v3052_v33 = vpack.c.bf16 %v2025_v27, %v2024_v25 }
  0x5e   : > { %3091 = vmatpush3.bf16.msra.mxu0 %v3088_v36  ;;  %2534 = vmatprep.mubr.f32.mxu0 %v3606_v48  ;;  %v2027_v36 = vld [vmem:[%s4075_s1 + $0x3d8] sm:$0xff] }
  0x5f   : > { %2588 = vmatmul.mubr.f32.gmra.mrb[26].mxu1 %v3573_v37  ;;  %3093 = vmatprep.subr.bf16.mxu0 %v3092_v44 }
  0x60   : > { %3027 = vmatpush3.bf16.msra.mxu1 %v3024_v35  ;;  %2590 = vmatprep.mubr.f32.mxu1 %v3584_v40  ;;  %v2026_v35 = vld [vmem:[%s4075_s1 + $0x3d0] sm:$0xff] }
  0x61   : > { %3029 = vmatprep.subr.bf16.mxu1 %v3028_v43  ;;  %2535 = vmatmul.mubr.f32.gmra.mrb[28].mxu0 %v3617_v53  ;;  %v3056_v41 = vpack.c.bf16 %v2027_v36, %v2026_v35 }
  0x62   : > { %3095 = vmatpush3.bf16.msra.mxu0 %v3092_v44  ;;  %2537 = vmatprep.mubr.f32.mxu0 %v3740_v51  ;;  %v2029_v44 = vld [vmem:[%s4075_s1 + $0x3e8] sm:$0xff] }
  0x63   : > { %2591 = vmatmul.mubr.f32.gmra.mrb[28].mxu1 %v3595_v45  ;;  %3097 = vmatprep.subr.bf16.mxu0 %v3096_v54 }
  0x64   : > { %3031 = vmatpush3.bf16.msra.mxu1 %v3028_v43  ;;  %2593 = vmatprep.mubr.f32.mxu1 %v3606_v48  ;;  %v2028_v43 = vld [vmem:[%s4075_s1 + $0x3e0] sm:$0xff] }
  0x65   : > { %3033 = vmatprep.subr.bf16.mxu1 %v3032_v52  ;;  %2538 = vmatmul.mubr.f32.gmra.mrb[30].mxu0 %v3751_v57  ;;  %v3060_v49 = vpack.c.bf16 %v2029_v44, %v2028_v43 }
  0x66   : > { %3099 = vmatpush3.bf16.msra.mxu0 %v3096_v54  ;;  %2740 = vmatprep.mubr.f32.mxu0 %v3394_v26  ;;  %v2031_v54 = vld [vmem:[%s4075_s1 + $0x3f8] sm:$0xff] }
  0x67   : > { %2594 = vmatmul.mubr.f32.gmra.mrb[30].mxu1 %v3617_v53  ;;  %3101 = vmatprep.subr.bf16.mxu0 %v3100_v0 }
  0x68   : > { %3035 = vmatpush3.bf16.msra.mxu1 %v3032_v52  ;;  %2628 = vmatprep.mubr.f32.mxu1 %v3404_v29  ;;  %v2030_v52 = vld [vmem:[%s4075_s1 + $0x3f0] sm:$0xff] }
  0x69   : > { %3037 = vmatprep.subr.bf16.mxu1 %v3036_v63  ;;  %2741 = vmatmul.mubr.f32.vlgmr.msra.gmra.mrb[32].mxu0 %v3462_v58  ;;  %v3064_v59 = vpack.c.bf16 %v2031_v54, %v2030_v52 }
  0x6a   : > { %3103 = vmatpush3.bf16.msra.mxu0 %v3100_v0  ;;  %2743 = vmatprep.mubr.f32.mxu0 %v3474_v62  ;;  %v2065_v0 = vld [vmem:[%s4075_s1 + $0x408] sm:$0xff] }
  0x6b   : > { %2629 = vmatmul.mubr.f32.vlgmr.msra.gmra.mrb[16].mxu1 %v3471_v61  ;;  %3105 = vmatprep.subr.bf16.mxu0 %v3104_v8 }
  0x6c   : > { %3039 = vmatpush3.bf16.msra.mxu1 %v3036_v63  ;;  %2631 = vmatprep.mubr.f32.mxu1 %v3394_v26  ;;  %v2064_v63 = vld [vmem:[%s4075_s1 + $0x400] sm:$0xff] }
  0x6d   : > { %3041 = vmatprep.subr.bf16.mxu1 %v3040_v7  ;;  %2744 = vmatmul.mubr.f32.gmra.mrb[34].mxu0 %v3485_v3  ;;  %v3132_v1 = vpack.c.bf16 %v2065_v0, %v2064_v63 }
  0x6e   : > { %3107 = vmatpush3.bf16.msra.mxu0 %v3104_v8  ;;  %2746 = vmatprep.mubr.f32.mxu0 %v3496_v6  ;;  %v2069_v8 = vld [vmem:[%s4075_s1 + $0x428] sm:$0xff] }
  0x6f   : > { %2632 = vmatmul.mubr.f32.gmra.mrb[18].mxu1 %v3462_v58  ;;  %3109 = vmatprep.subr.bf16.mxu0 %v3108_v16 }
  0x70   : > { %3043 = vmatpush3.bf16.msra.mxu1 %v3040_v7  ;;  %2634 = vmatprep.mubr.f32.mxu1 %v3474_v62  ;;  %v2068_v7 = vld [vmem:[%s4075_s1 + $0x420] sm:$0xff] }
  0x71   : > { %3045 = vmatprep.subr.bf16.mxu1 %v3044_v15  ;;  %2747 = vmatmul.mubr.f32.gmra.mrb[36].mxu0 %v3507_v11 }
  0x72   : > { %3111 = vmatpush3.bf16.msra.mxu0 %v3108_v16  ;;  %2749 = vmatprep.mubr.f32.mxu0 %v3518_v14 }
  0x73   : > { %2635 = vmatmul.mubr.f32.gmra.mrb[20].mxu1 %v3485_v3  ;;  %3113 = vmatprep.subr.bf16.mxu0 %v3112_v24 }
  0x74   : > { %3047 = vmatpush3.bf16.msra.mxu1 %v3044_v15  ;;  %2637 = vmatprep.mubr.f32.mxu1 %v3496_v6  ;;  %v2075_v15 = vld [vmem:[%s4075_s1 + $0x458] sm:$0xff] }
  0x75   : > { %3049 = vmatprep.subr.bf16.mxu1 %v3048_v23  ;;  %2750 = vmatmul.mubr.f32.gmra.mrb[38].mxu0 %v3529_v19  ;;  %v3152_v16 = vpack.c.bf16 %v2075_v15, %v2074_v13 }
  0x76   : > { %3115 = vmatpush3.bf16.msra.mxu0 %v3112_v24  ;;  %2752 = vmatprep.mubr.f32.mxu0 %v3540_v22 }
  0x77   : > { %2638 = vmatmul.mubr.f32.gmra.mrb[22].mxu1 %v3507_v11  ;;  %3117 = vmatprep.subr.bf16.mxu0 %v3116_v34 }
  0x78   : > { %3051 = vmatpush3.bf16.msra.mxu1 %v3048_v23  ;;  %2640 = vmatprep.mubr.f32.mxu1 %v3518_v14  ;;  %v2079_v23 = vld [vmem:[%s4075_s1 + $0x478] sm:$0xff] }
  0x79   : > { %3053 = vmatprep.subr.bf16.mxu1 %v3052_v33  ;;  %2753 = vmatmul.mubr.f32.gmra.mrb[40].mxu0 %v3551_v28  ;;  %v3160_v24 = vpack.c.bf16 %v2079_v23, %v2078_v21 }
  0x7a   : > { %3119 = vmatpush3.bf16.msra.mxu0 %v3116_v34  ;;  %2755 = vmatprep.mubr.f32.mxu0 %v3562_v32 }
  0x7b   : > { %2641 = vmatmul.mubr.f32.gmra.mrb[24].mxu1 %v3529_v19  ;;  %3121 = vmatprep.subr.bf16.mxu0 %v3120_v42 }
  0x7c   : > { %3055 = vmatpush3.bf16.msra.mxu1 %v3052_v33  ;;  %2643 = vmatprep.mubr.f32.mxu1 %v3540_v22 }
  0x7d   : > { %3057 = vmatprep.subr.bf16.mxu1 %v3056_v41  ;;  %2756 = vmatmul.mubr.f32.gmra.mrb[42].mxu0 %v3573_v37 }
  0x7e   : > { %3123 = vmatpush3.bf16.msra.mxu0 %v3120_v42  ;;  %2758 = vmatprep.mubr.f32.mxu0 %v3584_v40 }
  0x7f   : > { %2644 = vmatmul.mubr.f32.gmra.mrb[26].mxu1 %v3551_v28  ;;  %3125 = vmatprep.subr.bf16.mxu0 %v3124_v50 }
  0x80   : > { %3059 = vmatpush3.bf16.msra.mxu1 %v3056_v41  ;;  %2646 = vmatprep.mubr.f32.mxu1 %v3562_v32 }
  0x81   : > { %3061 = vmatprep.subr.bf16.mxu1 %v3060_v49  ;;  %2759 = vmatmul.mubr.f32.gmra.mrb[44].mxu0 %v3595_v45 }
  0x82   : > { %3127 = vmatpush3.bf16.msra.mxu0 %v3124_v50  ;;  %2761 = vmatprep.mubr.f32.mxu0 %v3606_v48 }
  0x83   : > { %2647 = vmatmul.mubr.f32.gmra.mrb[28].mxu1 %v3573_v37  ;;  %3129 = vmatprep.subr.bf16.mxu0 %v3128_v60 }
  0x84   : > { %3063 = vmatpush3.bf16.msra.mxu1 %v3060_v49  ;;  %2649 = vmatprep.mubr.f32.mxu1 %v3584_v40 }
  0x85   : > { %3065 = vmatprep.subr.bf16.mxu1 %v3064_v59  ;;  %2762 = vmatmul.mubr.f32.gmra.mrb[46].mxu0 %v3617_v53 }
  0x86   : > { %3131 = vmatpush3.bf16.msra.mxu0 %v3128_v60  ;;  %2796 = vmatprep.mubr.f32.mxu0 %v3404_v29  ;;  %v3140_v29 = vpack.c.bf16 %v2069_v8, %v2068_v7 }
  0x87   : > { %2650 = vmatmul.mubr.f32.gmra.mrb[30].mxu1 %v3595_v45  ;;  %3133 = vmatprep.subr.bf16.mxu0 %v3132_v1 }
  0x88   : > { %3067 = vmatpush3.bf16.msra.mxu1 %v3064_v59  ;;  %2684 = vmatprep.mubr.f32.mxu1 %v3474_v62 }
  0x89   : > { %2797 = vmatmul.mubr.f32.vlgmr.msra.gmra.mrb[32].mxu0 %v3471_v61  ;;  %3164 = vmatprep.subr.bf16.mxu1 %v3132_v1  ;;  %v2070_v61 = vld [vmem:[%s4075_s1 + $0x430] sm:$0xff] }
  0x8a   : > { %3135 = vmatpush3.bf16.msra.mxu0 %v3132_v1  ;;  %2799 = vmatprep.mubr.f32.mxu0 %v3394_v26  ;;  %v3144_v26 = vpack.c.bf16 %v2071_v9, %v2070_v61 }
  0x8b   : > { %2685 = vmatmul.mubr.f32.vlgmr.msra.gmra.mrb[16].mxu1 %v3485_v3  ;;  %3137 = vmatprep.subr.bf16.mxu0 %v3136_v5 }
  0x8c   : > { %3172 = vmatpush3.bf16.msra.mxu1 %v3132_v1  ;;  %2687 = vmatprep.mubr.f32.mxu1 %v3496_v6 }
  0x8d   : > { %2800 = vmatmul.mubr.f32.gmra.mrb[34].mxu0 %v3462_v58  ;;  %3165 = vmatprep.subr.bf16.mxu1 %v3136_v5  ;;  %v2072_v58 = vld [vmem:[%s4075_s1 + $0x440] sm:$0xff] }
  0x8e   : > { %3139 = vmatpush3.bf16.msra.mxu0 %v3136_v5  ;;  %2802 = vmatprep.mubr.f32.mxu0 %v3474_v62  ;;  %v3148_v12 = vpack.c.bf16 %v2073_v10, %v2072_v58 }
  0x8f   : > { %2688 = vmatmul.mubr.f32.gmra.mrb[18].mxu1 %v3507_v11  ;;  %3141 = vmatprep.subr.bf16.mxu0 %v3140_v29 }
  0x90   : > { %3173 = vmatpush3.bf16.msra.mxu1 %v3136_v5  ;;  %2690 = vmatprep.mubr.f32.mxu1 %v3518_v14 }
  0x91   : > { %2803 = vmatmul.mubr.f32.gmra.mrb[36].mxu0 %v3485_v3  ;;  %3166 = vmatprep.subr.bf16.mxu1 %v3140_v29 }
  0x92   : > { %3143 = vmatpush3.bf16.msra.mxu0 %v3140_v29  ;;  %2805 = vmatprep.mubr.f32.mxu0 %v3496_v6 }
  0x93   : > { %2691 = vmatmul.mubr.f32.gmra.mrb[20].mxu1 %v3529_v19  ;;  %3145 = vmatprep.subr.bf16.mxu0 %v3144_v26 }
  0x94   : > { %3174 = vmatpush3.bf16.msra.mxu1 %v3140_v29  ;;  %2693 = vmatprep.mubr.f32.mxu1 %v3540_v22 }
  0x95   : > { %2806 = vmatmul.mubr.f32.gmra.mrb[38].mxu0 %v3507_v11  ;;  %3167 = vmatprep.subr.bf16.mxu1 %v3144_v26 }
  0x96   : > { %3147 = vmatpush3.bf16.msra.mxu0 %v3144_v26  ;;  %2808 = vmatprep.mubr.f32.mxu0 %v3518_v14 }
  0x97   : > { %2694 = vmatmul.mubr.f32.gmra.mrb[22].mxu1 %v3551_v28  ;;  %3149 = vmatprep.subr.bf16.mxu0 %v3148_v12 }
  0x98   : > { %3175 = vmatpush3.bf16.msra.mxu1 %v3144_v26  ;;  %2696 = vmatprep.mubr.f32.mxu1 %v3562_v32 }
  0x99   : > { %2809 = vmatmul.mubr.f32.gmra.mrb[40].mxu0 %v3529_v19  ;;  %3168 = vmatprep.subr.bf16.mxu1 %v3148_v12 }
  0x9a   : > { %3151 = vmatpush3.bf16.msra.mxu0 %v3148_v12  ;;  %2811 = vmatprep.mubr.f32.mxu0 %v3540_v22 }
  0x9b   : > { %2697 = vmatmul.mubr.f32.gmra.mrb[24].mxu1 %v3573_v37  ;;  %3153 = vmatprep.subr.bf16.mxu0 %v3152_v16 }
  0x9c   : > { %3176 = vmatpush3.bf16.msra.mxu1 %v3148_v12  ;;  %2699 = vmatprep.mubr.f32.mxu1 %v3584_v40 }
  0x9d   : > { %2812 = vmatmul.mubr.f32.gmra.mrb[42].mxu0 %v3551_v28  ;;  %3169 = vmatprep.subr.bf16.mxu1 %v3152_v16 }
  0x9e   : > { %3155 = vmatpush3.bf16.msra.mxu0 %v3152_v16  ;;  %2814 = vmatprep.mubr.f32.mxu0 %v3562_v32 }
  0x9f   : > { %2700 = vmatmul.mubr.f32.gmra.mrb[26].mxu1 %v3595_v45  ;;  %3157 = vmatprep.subr.bf16.mxu0 %v3156_v20 }
  0xa0   : > { %3177 = vmatpush3.bf16.msra.mxu1 %v3152_v16  ;;  %2702 = vmatprep.mubr.f32.mxu1 %v3606_v48 }
  0xa1   : > { %2815 = vmatmul.mubr.f32.gmra.mrb[44].mxu0 %v3573_v37  ;;  %3170 = vmatprep.subr.bf16.mxu1 %v3156_v20 }
  0xa2   : > { %3159 = vmatpush3.bf16.msra.mxu0 %v3156_v20  ;;  %2817 = vmatprep.mubr.f32.mxu0 %v3584_v40 }
  0xa3   : > { %2703 = vmatmul.mubr.f32.gmra.mrb[28].mxu1 %v3617_v53  ;;  %3161 = vmatprep.subr.bf16.mxu0 %v3160_v24 }
  0xa4   : > { %3178 = vmatpush3.bf16.msra.mxu1 %v3156_v20  ;;  %2705 = vmatprep.mubr.f32.mxu1 %v3740_v51 }
  0xa5   : > { %2818 = vmatmul.mubr.f32.gmra.mrb[46].mxu0 %v3595_v45  ;;  %3171 = vmatprep.subr.bf16.mxu1 %v3160_v24 }
  0xa6   : > { %3163 = vmatpush3.bf16.msra.mxu0 %v3160_v24  ;;  %2852 = vmatprep.mubr.f32.mxu0 %v3474_v62 }
  0xa7   : > { %2706 = vmatmul.mubr.f32.gmra.mrb[30].mxu1 %v3751_v57 }
  0xa8   : > { %3179 = vmatpush3.bf16.msra.mxu1 %v3160_v24  ;;  %2864 = vmatprep.mubr.f32.mxu1 %v3562_v32 }
  0xa9   : > { %2853 = vmatmul.mubr.f32.vlgmr.msra.gmra.mrb[32].mxu0 %v3485_v3 }
  0xaa   : > { %2855 = vmatprep.mubr.f32.mxu0 %v3496_v6 }
  0xab   : > { %2865 = vmatmul.mubr.f32.vlgmr.msra.gmra.mrb[32].mxu1 %v3573_v37 }
  0xac   : > { %2867 = vmatprep.mubr.f32.mxu1 %v3584_v40 }
  0xad   : > { %2856 = vmatmul.mubr.f32.gmra.mrb[34].mxu0 %v3507_v11 }
  0xae   : > { %2858 = vmatprep.mubr.f32.mxu0 %v3518_v14 }
  0xaf   : > { %2868 = vmatmul.mubr.f32.gmra.mrb[34].mxu1 %v3595_v45 }
  0xb0   : > { %2870 = vmatprep.mubr.f32.mxu1 %v3606_v48 }
  0xb1   : > { %2859 = vmatmul.mubr.f32.gmra.mrb[36].mxu0 %v3529_v19 }
  0xb2   : > { %2861 = vmatprep.mubr.f32.mxu0 %v3540_v22 }
  0xb3   : > { %2871 = vmatmul.mubr.f32.gmra.mrb[36].mxu1 %v3617_v53 }
  0xb4   : > { %2873 = vmatprep.mubr.f32.mxu1 %v3740_v51 }
  0xb5   : > { %2862 = vmatmul.mubr.f32.gmra.mrb[38].mxu0 %v3551_v28 }
  0xb7   : > { %2874 = vmatmul.mubr.f32.gmra.mrb[38].mxu1 %v3751_v57 }
  0xfc   : > { %v2406_v62 = vpop.f32.mrb[0].mxu0 }
  0xfd   : > { %v333_v6 = vpop.f32.mrb[1].mxu0  ;;  %v1246_v62 = vlaneseq }
  0xfe   : > { %v2462_v3 = vpop.f32.mrb[0].mxu1 }
  0xff   : > { %v470_v11 = vpop.f32.mrb[1].mxu1  ;;  %v3977_v3 = vshrl.u32 %v1246_v62, 7 }
 0x100   : > { %v471_v32 = vadd.f32 %v470_v11, %v333_v6  ;;  %v2409_v14 = vpop.f32.mrb[2].mxu0 }
 0x101   : > { %v342_v40 = vpop.f32.mrb[3].mxu0  ;;  %vm1248_vm0 = vcmp.lt.s32.totalorder %v3977_v3, 7  ;;  %vm1783_vm1 = vcmp.lt.s32.totalorder %v3977_v3, 6 }
 0x102   : > { %v2465_v37 = vpop.f32.mrb[2].mxu1 }
 0x103   : > { %v479_v45 = vpop.f32.mrb[3].mxu1 }
 0x104   : > { %v480_v19 = vadd.f32 %v479_v45, %v342_v40  ;;  %v2412_v48 = vpop.f32.mrb[4].mxu0 }
 0x105   : > { %v351_v25 = vpop.f32.mrb[5].mxu0 }
 0x106   : > { %v2468_v53 = vpop.f32.mrb[4].mxu1 }
 0x107   : > { %v488_v22 = vpop.f32.mrb[5].mxu1 }
 0x108   : > { %v489_v27 = vadd.f32 %v488_v22, %v351_v25  ;;  %v2415_v51 = vpop.f32.mrb[6].mxu0 }
 0x109   : > { %v360_v28 = vpop.f32.mrb[7].mxu0 }
 0x10a   : > { %v2471_v30 = vpop.f32.mrb[6].mxu1 }
 0x10b   : > { %v497_v31 = vpop.f32.mrb[7].mxu1 }
 0x10c   : > { %v498_v57 = vadd.f32 %v497_v31, %v360_v28  ;;  %v2418_v33 = vpop.f32.mrb[8].mxu0 }
 0x10d   : > { %v369_v35 = vpop.f32.mrb[9].mxu0 }
 0x10e   : > { %v2474_v34 = vpop.f32.mrb[8].mxu1 }
 0x10f   : > { %v506_v36 = vpop.f32.mrb[9].mxu1 }
 0x110   : > { %v507_v38 = vadd.f32 %v506_v36, %v369_v35  ;;  %v2421_v39 = vpop.f32.mrb[10].mxu0 }
 0x111   : > { %v378_v42 = vpop.f32.mrb[11].mxu0 }
 0x112   : > { %v2477_v41 = vpop.f32.mrb[10].mxu1 }
 0x113   : > { %v515_v43 = vpop.f32.mrb[11].mxu1 }
 0x114   : > { %v516_v44 = vadd.f32 %v515_v43, %v378_v42  ;;  %v2424_v46 = vpop.f32.mrb[12].mxu0 }
 0x115   : > { %v387_v49 = vpop.f32.mrb[13].mxu0 }
 0x116   : > { %v2480_v47 = vpop.f32.mrb[12].mxu1 }
 0x117   : > { %v524_v50 = vpop.f32.mrb[13].mxu1 }
 0x118   : > { %v525_v52 = vadd.f32 %v524_v50, %v387_v49  ;;  %v2427_v54 = vpop.f32.mrb[14].mxu0 }
 0x119   : > { %v396_v56 = vpop.f32.mrb[15].mxu0 }
 0x11a   : > { %v2483_v55 = vpop.f32.mrb[14].mxu1 }
 0x11b   : > { %v533_v59 = vpop.f32.mrb[15].mxu1 }
 0x11c   : > { %v534_v60 = vadd.f32 %v533_v59, %v396_v56  ;;  %v2518_v63 = vpop.f32.mrb[16].mxu0 }
 0x11d   : > { %v641_v0 = vpop.f32.mrb[17].mxu0 }
 0x11e   : > { %v712_v1 = vadd.f32 %v641_v0, %v471_v32 }
 0x120   : > { %v2521_v2 = vpop.f32.mrb[18].mxu0 }
 0x121   : > { %v650_v4 = vpop.f32.mrb[19].mxu0 }
 0x122   : > { %v713_v5 = vadd.f32 %v650_v4, %v480_v19 }
 0x124   : > { %v2524_v7 = vpop.f32.mrb[20].mxu0 }
 0x125   : > { %v659_v8 = vpop.f32.mrb[21].mxu0 }
 0x126   : > { %v714_v29 = vadd.f32 %v659_v8, %v489_v27 }
 0x128   : > { %v2527_v61 = vpop.f32.mrb[22].mxu0 }
 0x129   : > { %v668_v9 = vpop.f32.mrb[23].mxu0 }
 0x12a   : > { %v715_v26 = vadd.f32 %v668_v9, %v498_v57 }
 0x12c   : > { %v2530_v58 = vpop.f32.mrb[24].mxu0 }
 0x12d   : > { %v677_v10 = vpop.f32.mrb[25].mxu0 }
 0x12e   : > { %v716_v12 = vadd.f32 %v677_v10, %v507_v38 }
 0x130   : > { %v2533_v13 = vpop.f32.mrb[26].mxu0 }
 0x131   : > { %v686_v15 = vpop.f32.mrb[27].mxu0 }
 0x132   : > { %v717_v16 = vadd.f32 %v686_v15, %v516_v44 }
 0x134   : > { %v2536_v17 = vpop.f32.mrb[28].mxu0 }
 0x135   : > { %v695_v18 = vpop.f32.mrb[29].mxu0 }
 0x136   : > { %v718_v20 = vadd.f32 %v695_v18, %v525_v52 }
 0x138   : > { %v2539_v21 = vpop.f32.mrb[30].mxu0 }
 0x139   : > { %v704_v23 = vpop.f32.mrb[31].mxu0 }
 0x13a   : > { %v3975_v24 = vadd.f32 %v704_v23, %v534_v60 }
 0x15e   : > { %v2686_v6 = vpop.f32.mrb[16].mxu1 }
 0x15f   : > { %v1231_v11 = vrot.slane %v2686_v6, 1  ;;  %v1135_v32 = vpop.f32.mrb[17].mxu1 }
 0x160   : > { %v1230_v14 = vrot.slane %v1135_v32, 1 }
 0x162   : > { %v1256_v37 = vsel %vm1248_vm0, %v1230_v14, %v1231_v11  ;;  %v2689_v40 = vpop.f32.mrb[18].mxu1 }
 0x163   : > { %v3982_v45 = vadd.f32 %v1256_v37, %v712_v1  ;;  %v1233_v19 = vrot.slane %v2689_v40, 1  ;;  %v1145_v48 = vpop.f32.mrb[19].mxu1  ;;  %v4019_v37 = vld [vmem:[%s4076_s2] ss:$0 sm:$0xff] }
 0x164   : > { %v1232_v53 = vrot.slane %v1145_v48, 1 }
 0x166   : > { %v1255_v25 = vsel %vm1248_vm0, %v1232_v53, %v1233_v19  ;;  %v2692_v22 = vpop.f32.mrb[20].mxu1 }
 0x167   : > { %v3986_v27 = vadd.f32 %v1255_v25, %v713_v5  ;;  %v1235_v51 = vrot.slane %v2692_v22, 1  ;;  %v1155_v30 = vpop.f32.mrb[21].mxu1 }
 0x168   : > { %v1234_v28 = vrot.slane %v1155_v30, 1 }
 0x16a   : > { %v1254_v31 = vsel %vm1248_vm0, %v1234_v28, %v1235_v51  ;;  %v2695_v57 = vpop.f32.mrb[22].mxu1 }
 0x16b   : > { %v3990_v33 = vadd.f32 %v1254_v31, %v714_v29  ;;  %v1237_v34 = vrot.slane %v2695_v57, 1  ;;  %v1165_v35 = vpop.f32.mrb[23].mxu1 }
 0x16c   : > { %v1236_v36 = vrot.slane %v1165_v35, 1  ;;  %v2810_v38 = vpop.f32.mrb[40].mxu0 }
 0x16d   : > { %v1550_v42 = vpop.f32.mrb[41].mxu0 }
 0x16e   : > { %v1253_v39 = vsel %vm1248_vm0, %v1236_v36, %v1237_v34  ;;  %v2698_v41 = vpop.f32.mrb[24].mxu1 }
 0x16f   : > { %v3994_v43 = vadd.f32 %v1253_v39, %v715_v26  ;;  %v1239_v44 = vrot.slane %v2698_v41, 1  ;;  %v1175_v46 = vpop.f32.mrb[25].mxu1 }
 0x170   : > { %v1238_v47 = vrot.slane %v1175_v46, 1  ;;  %v2813_v49 = vpop.f32.mrb[42].mxu0 }
 0x171   : > { %v1560_v54 = vpop.f32.mrb[43].mxu0 }
 0x172   : > { %v1252_v50 = vsel %vm1248_vm0, %v1238_v47, %v1239_v44  ;;  %v2701_v52 = vpop.f32.mrb[26].mxu1 }
 0x173   : > { %v1261_v55 = vadd.f32 %v1252_v50, %v716_v12  ;;  %v1241_v56 = vrot.slane %v2701_v52, 1  ;;  %v1185_v59 = vpop.f32.mrb[27].mxu1 }
 0x174   : > { %v1240_v60 = vrot.slane %v1185_v59, 1  ;;  %v2816_v63 = vpop.f32.mrb[44].mxu0 }
 0x175   : > { %v1570_v2 = vpop.f32.mrb[45].mxu0 }
 0x176   : > { %v1251_v0 = vsel %vm1248_vm0, %v1240_v60, %v1241_v56  ;;  %v2704_v1 = vpop.f32.mrb[28].mxu1 }
 0x177   : > { %v1262_v4 = vadd.f32 %v1251_v0, %v717_v16  ;;  %v1243_v5 = vrot.slane %v2704_v1, 1  ;;  %v1195_v7 = vpop.f32.mrb[29].mxu1 }
 0x178   : > { %v1242_v8 = vrot.slane %v1195_v7, 1  ;;  %v4000_v29 = vpop.f32.mrb[46].mxu0 }
 0x179   : > { %v4004_v26 = vpop.f32.mrb[47].mxu0 }
 0x17a   : > { %v1250_v61 = vsel %vm1248_vm0, %v1242_v8, %v1243_v5  ;;  %v2707_v9 = vpop.f32.mrb[30].mxu1 }
 0x17b   : > { %v4006_v58 = vadd.f32 %v1250_v61, %v718_v20  ;;  %v1245_v10 = vrot.slane %v2707_v9, 1  ;;  %v1205_v12 = vpop.f32.mrb[31].mxu1 }
 0x17c   : > { %v1244_v13 = vrot.slane %v1205_v12, 1  ;;  %v2854_v15 = vpop.f32.mrb[32].mxu0 }
 0x17d   : > { %v1768_v17 = vrot.slane %v2854_v15, 2  ;;  %v1672_v21 = vpop.f32.mrb[33].mxu0 }
 0x17e   : > { %v1249_v16 = vsel %vm1248_vm0, %v1244_v13, %v1245_v10  ;;  %v2866_v18 = vpop.f32.mrb[32].mxu1  ;;  %v1767_v6 = vrot.slane %v1672_v21, 2 }
 0x17f   : > { %v4012_v23 = vadd.f32 %v1249_v16, %v3975_v24  ;;  %v3180_v62 = vadd.f32 %v2866_v18, %v2810_v38  ;;  %v1712_v20 = vpop.f32.mrb[33].mxu1 }
 0x180   : > { %v3181_v11 = vadd.f32 %v1712_v20, %v1550_v42  ;;  %v1791_v14 = vsel %vm1783_vm1, %v1767_v6, %v1768_v17  ;;  %v2857_v40 = vpop.f32.mrb[34].mxu0 }
 0x181   : > { %v1776_v32 = vrot.slane %v3180_v62, 2  ;;  %v1792_v19 = vadd.f32 %v1791_v14, %v3982_v45  ;;  %v1770_v24 = vrot.slane %v2857_v40, 2  ;;  %v1682_v25 = vpop.f32.mrb[35].mxu0 }
 0x182   : > { %v1775_v48 = vrot.slane %v3181_v11, 2  ;;  %v2869_v53 = vpop.f32.mrb[34].mxu1  ;;  %v1769_v51 = vrot.slane %v1682_v25, 2 }
 0x183   : > { %v3182_v22 = vadd.f32 %v2869_v53, %v2813_v49  ;;  %v1722_v30 = vpop.f32.mrb[35].mxu1  ;;  %v1807_v28 = vadd.f32 %v4019_v37, %v1792_v19 }
 0x184   : > { %v1787_v31 = vsel %vm1783_vm1, %v1775_v48, %v1776_v32  ;;  %v3183_v57 = vadd.f32 %v1722_v30, %v1560_v54  ;;  %v1790_v35 = vsel %vm1783_vm1, %v1769_v51, %v1770_v24  ;;  %v2860_v36 = vpop.f32.mrb[36].mxu0 }
 0x185   : > { %v1796_v45 = vadd.f32 %v1787_v31, %v1261_v55  ;;  %v1778_v34 = vrot.slane %v3182_v22, 2  ;;  %v1815_v38 = vmax.f32 %v1807_v28, 0.0  ;;  %v1793_v39 = vadd.f32 %v1790_v35, %v3986_v27  ;;  %v1692_v46 = vpop.f32.mrb[37].mxu0 }
 0x186   : > { %v1777_v41 = vrot.slane %v3183_v57, 2  ;;  %v1772_v42 = vrot.slane %v2860_v36, 2  ;;  %v2872_v44 = vpop.f32.mrb[36].mxu1  ;;  %v1771_v50 = vrot.slane %v1692_v46, 2 }
 0x187   : > { %v1811_v47 = vadd.f32 %v4019_v37, %v1796_v45  ;;  %v3184_v49 = vadd.f32 %v2872_v44, %v2816_v63  ;;  %v1732_v52 = vpop.f32.mrb[37].mxu1  ;;  %1823 = vst [vmem:[%s4029_s20] sm:$0xff] %v1815_v38  ;;  %v1808_v54 = vadd.f32 %v4019_v37, %v1793_v39 }
 0x188   : > { %v1786_v55 = vsel %vm1783_vm1, %v1777_v41, %v1778_v34  ;;  %v3185_v56 = vadd.f32 %v1732_v52, %v1570_v2  ;;  %v1789_v0 = vsel %vm1783_vm1, %v1771_v50, %v1772_v42  ;;  %v2863_v1 = vpop.f32.mrb[38].mxu0 }
 0x189   : > { %v1819_v59 = vmax.f32 %v1811_v47, 0.0  ;;  %v1797_v27 = vadd.f32 %v1786_v55, %v1262_v4  ;;  %v1780_v60 = vrot.slane %v3184_v49, 2  ;;  %v1816_v5 = vmax.f32 %v1808_v54, 0.0  ;;  %v1702_v9 = vpop.f32.mrb[39].mxu0 }
 0x18a   : > { %v1794_v63 = vadd.f32 %v1789_v0, %v3990_v33  ;;  %v1779_v7 = vrot.slane %v3185_v56, 2  ;;  %v1774_v8 = vrot.slane %v2863_v1, 2  ;;  %v2875_v61 = vpop.f32.mrb[38].mxu1  ;;  %v1773_v4 = vrot.slane %v1702_v9, 2 }
 0x18b   : > { %1827 = vst [vmem:[%s4029_s20 + $0x20] sm:$0xff] %v1819_v59  ;;  %v1812_v10 = vadd.f32 %v4019_v37, %v1797_v27  ;;  %v3186_v2 = vadd.f32 %v2875_v61, %v4000_v29  ;;  %v1742_v12 = vpop.f32.mrb[39].mxu1  ;;  %1824 = vst [vmem:[%s4029_s20 + $0x8] sm:$0xff] %v1816_v5 }
 0x18c   : > { %v1809_v13 = vadd.f32 %v4019_v37, %v1794_v63  ;;  %v1785_v15 = vsel %vm1783_vm1, %v1779_v7, %v1780_v60  ;;  %v3187_v33 = vadd.f32 %v1742_v12, %v4004_v26  ;;  %v1788_v29 = vsel %vm1783_vm1, %v1773_v4, %v1774_v8 }
 0x18d   : > { %v1820_v16 = vmax.f32 %v1812_v10, 0.0  ;;  %v1798_v17 = vadd.f32 %v1785_v15, %v4006_v58  ;;  %v1782_v18 = vrot.slane %v3186_v2, 2  ;;  %v1795_v62 = vadd.f32 %v1788_v29, %v3994_v43 }
 0x18e   : > { %v1817_v21 = vmax.f32 %v1809_v13, 0.0  ;;  %v1781_v6 = vrot.slane %v3187_v33, 2 }
 0x18f   : > { %1828 = vst [vmem:[%s4029_s20 + $0x28] sm:$0xff] %v1820_v16  ;;  %v1813_v20 = vadd.f32 %v4019_v37, %v1798_v17  ;;  %v1810_v26 = vadd.f32 %v4019_v37, %v1795_v62 }
 0x190   : > { %1825 = vst [vmem:[%s4029_s20 + $0x10] sm:$0xff] %v1817_v21  ;;  %v1784_v11 = vsel %vm1783_vm1, %v1781_v6, %v1782_v18 }
 0x191   : > { %v1821_v58 = vmax.f32 %v1813_v20, 0.0  ;;  %v1799_v32 = vadd.f32 %v1784_v11, %v4012_v23  ;;  %v1818_v14 = vmax.f32 %v1810_v26, 0.0 }
 0x193   : > { %1829 = vst [vmem:[%s4029_s20 + $0x30] sm:$0xff] %v1821_v58  ;;  %v1814_v40 = vadd.f32 %v4019_v37, %v1799_v32  ;;  %1826 = vst [vmem:[%s4029_s20 + $0x18] sm:$0xff] %v1818_v14 }
 0x195   : > { %v1822_v19 = vmax.f32 %v1814_v40, 0.0 }
 0x197   : > { %1830 = vst [vmem:[%s4029_s20 + $0x38] sm:$0xff] %v1822_v19 }
 0x198 PF: > { %s13_s14 = sadd.s32 1, %s3291_s14   ;;  %s4078_s12 = smov %s3287_s13 }
 0x199   : > { %p10_p5 = scmp.ge.s32.totalorder %s13_s14, 8   ;;  %s4079_s13 = smov %s4081_s15 }
 0x19b   :  { %12 = sbr.rel (!%p10_p5) target bundleno = 2 (0x2), region = 72 }

</bundles_post_ra>
